<compile_context>
chip_gen: v7x
topology: tpu7x:2x2x1
jax: 0.10.0
libtpu: 0.0.40
codegen_flags: <defaults>
</compile_context>

<pallas_src>
import jax
import jax.numpy as jnp
from jax.experimental import pallas as pl
from jax.experimental.pallas import tpu as pltpu


def _silu(v):
    # exp on the EUP, approximate reciprocal keeps the divide off the VALU slot.
    return v * pl.reciprocal(1.0 + jnp.exp(-v), approx=True)


def _sigmoid(v):
    return pl.reciprocal(1.0 + jnp.exp(-v), approx=True)


# ---------------------------------------------------------------------------
# Per-image fused kernel: stem -> MBConv -> head conv -> avgpool -> classifier
# ---------------------------------------------------------------------------
def _effnetb5_kernel(
    x_ref,                       # (1, H, W, Cin)   one image, NHWC
    stem_w_ref, stem_b_ref,      # (9*Cin, C0), (1, C0)   conv3x3 s2 (BN folded)
    exp_w_ref, exp_b_ref,        # (C0, E),     (1, E)    expand 1x1 (BN folded)
    dw_w_ref, dw_b_ref,          # (9, E),      (1, E)    depthwise 3x3 (BN folded)
    se1_w_ref, se1_b_ref,        # (E, S),      (1, S)    SE squeeze FC
    se2_w_ref, se2_b_ref,        # (S, E),      (1, E)    SE excite FC
    prj_w_ref, prj_b_ref,        # (E, C0),     (1, C0)   project 1x1 (BN folded)
    head_w_ref, head_b_ref,      # (C0, F) bf16,(1, F)    head 1x1 -> 2048
    fc1_w_hbm,                   # (F, D1) bf16 raw HBM ref (manual DMA)
    fc1_b_ref,                   # (1, D1)
    fc2_w_ref, fc2_b_ref,        # (D1, D2) bf16,(1, D2)
    o_ref,                       # (1, 1, D2)       log-probabilities
    xpad_scr,                    # (H+2, W+2, Cin)  zero-halo padded input
    xrow_scr,                    # (3*Ho, W+2, Cin) stride-2 H-subsampled rows
    imcol_scr,                   # (Ho*Wo, 9*Cin)   im2col slab
    dwpad_scr,                   # (Ho+2, Wo+2, E)  padded expanded feature
    fc1_scr,                     # (F, D1) bf16     fc1 weight landing buffer
    fc1_sem,                     # DMA semaphore
):
    f32 = jnp.float32
    bf16 = jnp.bfloat16
    _, H, W, Cin = x_ref.shape
    C0 = stem_b_ref.shape[1]
    E = exp_b_ref.shape[1]
    D2 = fc2_b_ref.shape[1]
    Ho, Wo = H // 2, W // 2
    rows = Ho * Wo

    # ---- Start the fc1 weight DMA now; it is only needed at the very end. ----
    fc1_cp = pltpu.make_async_copy(fc1_w_hbm, fc1_scr, fc1_sem)
    fc1_cp.start()

    # ---- Stem: Conv2d(Cin->C0, k=3, s=2, p=1) + folded BN + SiLU --------------
    # Zero only the halo of the padded buffer; interior is overwritten below.
    xpad_scr[pl.ds(0, 1), :, :] = jnp.zeros((1, W + 2, Cin), f32)
    xpad_scr[pl.ds(H + 1, 1), :, :] = jnp.zeros((1, W + 2, Cin), f32)
    xpad_scr[:, pl.ds(0, 1), :] = jnp.zeros((H + 2, 1, Cin), f32)
    xpad_scr[:, pl.ds(W + 1, 1), :] = jnp.zeros((H + 2, 1, Cin), f32)
    xpad_scr[pl.ds(1, H), pl.ds(1, W), :] = x_ref[0]

    # Gather only the stride-2 output positions (no full stride-1 conv):
    # stage the three H-offset / stride-2 row selections once, ...
    for kh in range(3):
        xrow_scr[pl.ds(kh * Ho, Ho), :, :] = xpad_scr[pl.ds(kh, Ho, stride=2), :, :]
    # ... then build the (rows, 9*Cin) im2col slab with stride-2 W selections.
    for kh in range(3):
        for kw in range(3):
            k = kh * 3 + kw
            tap = xrow_scr[pl.ds(kh * Ho, Ho), pl.ds(kw, Wo, stride=2), :]  # (Ho,Wo,Cin)
            imcol_scr[:, pl.ds(k * Cin, Cin)] = tap.reshape(rows, Cin)

    # Single K=27 MXU matmul instead of 9 separate K=3 passes.
    stem = _silu(jnp.dot(imcol_scr[...], stem_w_ref[...],
                         preferred_element_type=f32) + stem_b_ref[...])    # (rows, C0)

    # ---- MBConv: expand 1x1 -> depthwise 3x3 -> SE -> project 1x1 + residual -
    exp2 = _silu(jnp.dot(stem, exp_w_ref[...], preferred_element_type=f32)
                 + exp_b_ref[...])                                         # (rows, E)

    dwpad_scr[pl.ds(0, 1), :, :] = jnp.zeros((1, Wo + 2, E), f32)
    dwpad_scr[pl.ds(Ho + 1, 1), :, :] = jnp.zeros((1, Wo + 2, E), f32)
    dwpad_scr[:, pl.ds(0, 1), :] = jnp.zeros((Ho + 2, 1, E), f32)
    dwpad_scr[:, pl.ds(Wo + 1, 1), :] = jnp.zeros((Ho + 2, 1, E), f32)
    dwpad_scr[pl.ds(1, Ho), pl.ds(1, Wo), :] = exp2.reshape(Ho, Wo, E)

    # Depthwise 3x3 stride 1: lane-dense (E=128) VPU FMAs, register accumulation
    # (per-image accumulator is only (Ho, Wo, E) = 8 vregs, no spill risk).
    dw_acc = jnp.zeros((Ho, Wo, E), f32)
    for kh in range(3):
        for kw in range(3):
            k = kh * 3 + kw
            tap = dwpad_scr[pl.ds(kh, Ho), pl.ds(kw, Wo), :]               # (Ho,Wo,E)
            dw_acc = dw_acc + tap * dw_w_ref[pl.ds(k, 1), :]
    dw2 = _silu(dw_acc.reshape(rows, E) + dw_b_ref[...])                   # (rows, E)

    # Squeeze-and-excitation: plain mean + broadcast (no pooling matmuls).
    se_in = jnp.mean(dw2, axis=0, keepdims=True)                           # (1, E)
    se_h = _silu(jnp.dot(se_in, se1_w_ref[...], preferred_element_type=f32)
                 + se1_b_ref[...])                                         # (1, S)
    se_g = _sigmoid(jnp.dot(se_h, se2_w_ref[...], preferred_element_type=f32)
                    + se2_b_ref[...])                                      # (1, E)
    prj = (jnp.dot(dw2 * se_g, prj_w_ref[...], preferred_element_type=f32)
           + prj_b_ref[...])                                               # (rows, C0)
    block_out = prj + stem                      # residual (stride 1, C0 == C0)

    # ---- Head conv 1x1 (C0 -> 2048) + SiLU, then global average pool ---------
    head2 = _silu(jnp.dot(block_out.astype(bf16), head_w_ref[...],
                          preferred_element_type=f32) + head_b_ref[...])   # (rows, F)
    pooled = jnp.mean(head2, axis=0, keepdims=True)                        # (1, F)

    # ---- Classifier: Dropout(eval=id) -> Linear -> ReLU
    #                  -> Dropout(0) -> Linear -> LogSoftmax(dim=1)
    fc1_cp.wait()                               # fc1 weights arrived during backbone
    h1 = jnp.maximum(jnp.dot(pooled.astype(bf16), fc1_scr[...],
                             preferred_element_type=f32) + fc1_b_ref[...], 0.0)
    logits = (jnp.dot(h1.astype(bf16), fc2_w_ref[...],
                      preferred_element_type=f32) + fc2_b_ref[...])        # (1, D2)
    m = jnp.max(logits, axis=1, keepdims=True)
    s = logits - m
    out = s - jnp.log(jnp.sum(jnp.exp(s), axis=1, keepdims=True))
    o_ref[...] = out.reshape(1, 1, D2)


# ---------------------------------------------------------------------------
# Host wrapper: one pallas_call, grid over batch (parallel across TCs on v7x)
# ---------------------------------------------------------------------------
@jax.jit
def effnetb5_forward(x_nchw, params):
    # NCHW (PyTorch) -> NHWC so channels sit on the 128-lane axis in the kernel.
    x = jnp.transpose(x_nchw, (0, 2, 3, 1)).astype(jnp.float32)
    N, H, W, Cin = x.shape
    # stride-2 / k=3 / pad=1 stem mapping used in-kernel requires even H, W.
    assert H % 2 == 0 and W % 2 == 0, "stem stride-2 path assumes even H, W"
    Ho, Wo = H // 2, W // 2
    C0 = params['stem_b'].shape[1]
    E = params['exp_b'].shape[1]
    F = params['head_b'].shape[1]
    D1 = params['fc1_b'].shape[1]
    D2 = params['fc2_b'].shape[1]

    # Big weights fed to the MXU as bf16 (f32 accumulation inside the kernel).
    head_w = params['head_w'].astype(jnp.bfloat16)
    fc1_w = params['fc1_w'].astype(jnp.bfloat16)
    fc2_w = params['fc2_w'].astype(jnp.bfloat16)

    args = (x,
            params['stem_w'], params['stem_b'],
            params['exp_w'], params['exp_b'],
            params['dw_w'], params['dw_b'],
            params['se1_w'], params['se1_b'],
            params['se2_w'], params['se2_b'],
            params['prj_w'], params['prj_b'],
            head_w, params['head_b'],
            fc1_w, params['fc1_b'],
            fc2_w, params['fc2_b'])

    def _resident_spec(shape):
        # Whole weight resident in VMEM; block index constant across the grid.
        return pl.BlockSpec(shape, lambda i, nd=len(shape): (0,) * nd)

    fc1_idx = 15  # position of fc1_w in `args` — manual HBM->VMEM DMA in-kernel
    in_specs = [pl.BlockSpec((1, H, W, Cin), lambda i: (i, 0, 0, 0))]
    for idx, a in enumerate(args[1:], start=1):
        if idx == fc1_idx:
            in_specs.append(pl.BlockSpec(memory_space=pl.ANY))
        else:
            in_specs.append(_resident_spec(a.shape))

    out = pl.pallas_call(
        _effnetb5_kernel,
        out_shape=jax.ShapeDtypeStruct((N, 1, D2), jnp.float32),
        grid=(N,),
        in_specs=in_specs,
        out_specs=pl.BlockSpec((1, 1, D2), lambda i: (i, 0, 0)),
        scratch_shapes=[
            pltpu.VMEM((H + 2, W + 2, Cin), jnp.float32),    # padded input
            pltpu.VMEM((3 * Ho, W + 2, Cin), jnp.float32),   # stride-2 H rows
            pltpu.VMEM((Ho * Wo, 9 * Cin), jnp.float32),     # im2col slab
            pltpu.VMEM((Ho + 2, Wo + 2, E), jnp.float32),    # padded expanded feat
            pltpu.VMEM((F, D1), jnp.bfloat16),               # fc1 weight buffer
            pltpu.SemaphoreType.DMA,                         # fc1 DMA semaphore
        ],
        compiler_params=pltpu.CompilerParams(
            dimension_semantics=("parallel",),
            vmem_limit_bytes=32 * 1024 * 1024),
    )(*args)
    return out.reshape(N, D2)


# ---------------------------------------------------------------------------
# Deterministic synthetic parameters (BatchNorm in eval mode folded into biases;
# torchvision pretrained weights are not loadable in-script).
# ---------------------------------------------------------------------------
def init_params(key):
    ks = jax.random.split(key, 18)

    def w(k, shape):
        return jax.random.normal(k, shape, jnp.float32) * (shape[0] ** -0.5)

    def b(k, n):
        return jax.random.normal(k, (1, n), jnp.float32) * 0.05

    return {
        'stem_w': w(ks[0], (9 * 3, 32)),   'stem_b': b(ks[1], 32),
        'exp_w':  w(ks[2], (32, 128)),     'exp_b':  b(ks[3], 128),
        'dw_w':   w(ks[4], (9, 128)),      'dw_b':   b(ks[5], 128),
        'se1_w':  w(ks[6], (128, 8)),      'se1_b':  b(ks[7], 8),
        'se2_w':  w(ks[8], (8, 128)),      'se2_b':  b(ks[9], 128),
        'prj_w':  w(ks[10], (128, 32)),    'prj_b':  b(ks[11], 32),
        'head_w': w(ks[12], (32, 2048)),   'head_b': b(ks[13], 2048),
        # classifier: pre_cls_shape=2048 (per spec), clf_neurons=(256, 10)
        'fc1_w':  w(ks[14], (2048, 256)),  'fc1_b':  b(ks[15], 256),
        'fc2_w':  w(ks[16], (256, 10)),    'fc2_b':  b(ks[17], 10),
    }


if __name__ == "__main__":
    key = jax.random.PRNGKey(0)
    pkey, xkey = jax.random.split(key)
    params = init_params(pkey)
    x = jax.random.normal(xkey, (2, 3, 16, 16), jnp.float32)   # NCHW, like torch
    out = effnetb5_forward(x, params)
    out = jax.block_until_ready(out)
    assert out.shape == (2, 10), out.shape
    # rows of a log-softmax must exponentiate-sum to 1
    assert bool(jnp.allclose(jnp.sum(jnp.exp(out), axis=1), 1.0, atol=1e-3))
    print("KERNEL_OK")
</pallas_src>

<mosaic_0001>
module attributes {stable_mosaic.version = 11 : i64} {
  func.func @_effnetb5_kernel(%arg0: i32, %arg1: memref<1x16x16x3xf32, #tpu.memory_space<vmem>>, %arg2: memref<27x32xf32, #tpu.memory_space<vmem>>, %arg3: memref<1x32xf32, #tpu.memory_space<vmem>>, %arg4: memref<32x128xf32, #tpu.memory_space<vmem>>, %arg5: memref<1x128xf32, #tpu.memory_space<vmem>>, %arg6: memref<9x128xf32, #tpu.memory_space<vmem>>, %arg7: memref<1x128xf32, #tpu.memory_space<vmem>>, %arg8: memref<128x8xf32, #tpu.memory_space<vmem>>, %arg9: memref<1x8xf32, #tpu.memory_space<vmem>>, %arg10: memref<8x128xf32, #tpu.memory_space<vmem>>, %arg11: memref<1x128xf32, #tpu.memory_space<vmem>>, %arg12: memref<128x32xf32, #tpu.memory_space<vmem>>, %arg13: memref<1x32xf32, #tpu.memory_space<vmem>>, %arg14: memref<32x2048xbf16, #tpu.memory_space<vmem>>, %arg15: memref<1x2048xf32, #tpu.memory_space<vmem>>, %arg16: memref<2048x256xbf16, #tpu.memory_space<any>>, %arg17: memref<1x256xf32, #tpu.memory_space<vmem>>, %arg18: memref<256x10xbf16, #tpu.memory_space<vmem>>, %arg19: memref<1x10xf32, #tpu.memory_space<vmem>>, %arg20: memref<1x1x10xf32, #tpu.memory_space<vmem>>, %arg21: memref<18x18x3xf32, #tpu.memory_space<vmem>>, %arg22: memref<24x18x3xf32, #tpu.memory_space<vmem>>, %arg23: memref<64x27xf32, #tpu.memory_space<vmem>>, %arg24: memref<10x10x128xf32, #tpu.memory_space<vmem>>, %arg25: memref<2048x256xbf16, #tpu.memory_space<vmem>>, %arg26: memref<!tpu.dma_semaphore, #tpu.memory_space<semaphore_mem>>) attributes {dimension_semantics = [#tpu.dimension_semantics<parallel>], iteration_bounds = array<i64: 2>, scalar_prefetch = 0 : i64, scratch_operands = 6 : i64, tpu.core_type = #tpu.core_type<tc>, window_params = [{transform_indices = @transform_0, window_bounds = array<i64: 1, 16, 16, 3>}, {pipeline_mode = #tpu.pipeline_mode<synchronous>, transform_indices = @transform_1, window_bounds = array<i64: 27, 32>}, {pipeline_mode = #tpu.pipeline_mode<synchronous>, transform_indices = @transform_2, window_bounds = array<i64: 1, 32>}, {pipeline_mode = #tpu.pipeline_mode<synchronous>, transform_indices = @transform_3, window_bounds = array<i64: 32, 128>}, {pipeline_mode = #tpu.pipeline_mode<synchronous>, transform_indices = @transform_4, window_bounds = array<i64: 1, 128>}, {pipeline_mode = #tpu.pipeline_mode<synchronous>, transform_indices = @transform_5, window_bounds = array<i64: 9, 128>}, {pipeline_mode = #tpu.pipeline_mode<synchronous>, transform_indices = @transform_6, window_bounds = array<i64: 1, 128>}, {pipeline_mode = #tpu.pipeline_mode<synchronous>, transform_indices = @transform_7, window_bounds = array<i64: 128, 8>}, {pipeline_mode = #tpu.pipeline_mode<synchronous>, transform_indices = @transform_8, window_bounds = array<i64: 1, 8>}, {pipeline_mode = #tpu.pipeline_mode<synchronous>, transform_indices = @transform_9, window_bounds = array<i64: 8, 128>}, {pipeline_mode = #tpu.pipeline_mode<synchronous>, transform_indices = @transform_10, window_bounds = array<i64: 1, 128>}, {pipeline_mode = #tpu.pipeline_mode<synchronous>, transform_indices = @transform_11, window_bounds = array<i64: 128, 32>}, {pipeline_mode = #tpu.pipeline_mode<synchronous>, transform_indices = @transform_12, window_bounds = array<i64: 1, 32>}, {pipeline_mode = #tpu.pipeline_mode<synchronous>, transform_indices = @transform_13, window_bounds = array<i64: 32, 2048>}, {pipeline_mode = #tpu.pipeline_mode<synchronous>, transform_indices = @transform_14, window_bounds = array<i64: 1, 2048>}, {}, {pipeline_mode = #tpu.pipeline_mode<synchronous>, transform_indices = @transform_16, window_bounds = array<i64: 1, 256>}, {pipeline_mode = #tpu.pipeline_mode<synchronous>, transform_indices = @transform_17, window_bounds = array<i64: 256, 10>}, {pipeline_mode = #tpu.pipeline_mode<synchronous>, transform_indices = @transform_18, window_bounds = array<i64: 1, 10>}, {transform_indices = @transform_19, window_bounds = array<i64: 1, 1, 10>}]} {
    tpu.enqueue_dma source(%arg16 : memref<2048x256xbf16, #tpu.memory_space<any>>) target(%arg25 : memref<2048x256xbf16, #tpu.memory_space<vmem>>) target_semaphore(%arg26 : memref<!tpu.dma_semaphore, #tpu.memory_space<semaphore_mem>>)
    %cst = arith.constant 0.000000e+00 : f32
    %0 = vector.broadcast %cst : f32 to vector<1x18x3xf32>
    %c0 = arith.constant 0 : index
    %c0_0 = arith.constant 0 : index
    %c0_1 = arith.constant 0 : index
    %1 = vector.load %arg21[%c0, %c0_0, %c0_1] : memref<18x18x3xf32, #tpu.memory_space<vmem>>, vector<1x18x3xf32>
    tpu.vector_store %arg21[%c0, %c0_0, %c0_1], %0 {strides = array<i32>} : memref<18x18x3xf32, #tpu.memory_space<vmem>>, vector<1x18x3xf32>,
    %cst_2 = arith.constant 0.000000e+00 : f32
    %2 = vector.broadcast %cst_2 : f32 to vector<1x18x3xf32>
    %c17 = arith.constant 17 : index
    %c0_3 = arith.constant 0 : index
    %c0_4 = arith.constant 0 : index
    %3 = vector.load %arg21[%c17, %c0_3, %c0_4] : memref<18x18x3xf32, #tpu.memory_space<vmem>>, vector<1x18x3xf32>
    tpu.vector_store %arg21[%c17, %c0_3, %c0_4], %2 {strides = array<i32>} : memref<18x18x3xf32, #tpu.memory_space<vmem>>, vector<1x18x3xf32>,
    %cst_5 = arith.constant 0.000000e+00 : f32
    %4 = vector.broadcast %cst_5 : f32 to vector<18x1x3xf32>
    %c0_6 = arith.constant 0 : index
    %c0_7 = arith.constant 0 : index
    %c0_8 = arith.constant 0 : index
    %5 = vector.load %arg21[%c0_6, %c0_7, %c0_8] : memref<18x18x3xf32, #tpu.memory_space<vmem>>, vector<18x1x3xf32>
    tpu.vector_store %arg21[%c0_6, %c0_7, %c0_8], %4 {strides = array<i32>} : memref<18x18x3xf32, #tpu.memory_space<vmem>>, vector<18x1x3xf32>,
    %cst_9 = arith.constant 0.000000e+00 : f32
    %6 = vector.broadcast %cst_9 : f32 to vector<18x1x3xf32>
    %c0_10 = arith.constant 0 : index
    %c17_11 = arith.constant 17 : index
    %c0_12 = arith.constant 0 : index
    %7 = vector.load %arg21[%c0_10, %c17_11, %c0_12] : memref<18x18x3xf32, #tpu.memory_space<vmem>>, vector<18x1x3xf32>
    tpu.vector_store %arg21[%c0_10, %c17_11, %c0_12], %6 {strides = array<i32>} : memref<18x18x3xf32, #tpu.memory_space<vmem>>, vector<18x1x3xf32>,
    %c0_13 = arith.constant 0 : index
    %c0_14 = arith.constant 0 : index
    %c0_15 = arith.constant 0 : index
    %c0_16 = arith.constant 0 : index
    %8 = vector.load %arg1[%c0_13, %c0_14, %c0_15, %c0_16] : memref<1x16x16x3xf32, #tpu.memory_space<vmem>>, vector<1x16x16x3xf32>
    %9 = vector.shape_cast %8 : vector<1x16x16x3xf32> to vector<16x16x3xf32>
    %c1 = arith.constant 1 : index
    %c1_17 = arith.constant 1 : index
    %c0_18 = arith.constant 0 : index
    %10 = vector.load %arg21[%c1, %c1_17, %c0_18] : memref<18x18x3xf32, #tpu.memory_space<vmem>>, vector<16x16x3xf32>
    tpu.vector_store %arg21[%c1, %c1_17, %c0_18], %9 {strides = array<i32>} : memref<18x18x3xf32, #tpu.memory_space<vmem>>, vector<16x16x3xf32>,
    %c0_19 = arith.constant 0 : index
    %c0_20 = arith.constant 0 : index
    %c0_21 = arith.constant 0 : index
    %11 = tpu.strided_load %arg21[%c0_19, %c0_20, %c0_21] {strides = array<i32: 2, 1, 1>} : memref<18x18x3xf32, #tpu.memory_space<vmem>>, vector<8x18x3xf32>
    %c0_22 = arith.constant 0 : index
    %c0_23 = arith.constant 0 : index
    %c0_24 = arith.constant 0 : index
    %12 = vector.load %arg22[%c0_22, %c0_23, %c0_24] : memref<24x18x3xf32, #tpu.memory_space<vmem>>, vector<8x18x3xf32>
    tpu.vector_store %arg22[%c0_22, %c0_23, %c0_24], %11 {strides = array<i32>} : memref<24x18x3xf32, #tpu.memory_space<vmem>>, vector<8x18x3xf32>,
    %c1_25 = arith.constant 1 : index
    %c0_26 = arith.constant 0 : index
    %c0_27 = arith.constant 0 : index
    %13 = tpu.strided_load %arg21[%c1_25, %c0_26, %c0_27] {strides = array<i32: 2, 1, 1>} : memref<18x18x3xf32, #tpu.memory_space<vmem>>, vector<8x18x3xf32>
    %c8 = arith.constant 8 : index
    %c0_28 = arith.constant 0 : index
    %c0_29 = arith.constant 0 : index
    %14 = vector.load %arg22[%c8, %c0_28, %c0_29] : memref<24x18x3xf32, #tpu.memory_space<vmem>>, vector<8x18x3xf32>
    tpu.vector_store %arg22[%c8, %c0_28, %c0_29], %13 {strides = array<i32>} : memref<24x18x3xf32, #tpu.memory_space<vmem>>, vector<8x18x3xf32>,
    %c2 = arith.constant 2 : index
    %c0_30 = arith.constant 0 : index
    %c0_31 = arith.constant 0 : index
    %15 = tpu.strided_load %arg21[%c2, %c0_30, %c0_31] {strides = array<i32: 2, 1, 1>} : memref<18x18x3xf32, #tpu.memory_space<vmem>>, vector<8x18x3xf32>
    %c16 = arith.constant 16 : index
    %c0_32 = arith.constant 0 : index
    %c0_33 = arith.constant 0 : index
    %16 = vector.load %arg22[%c16, %c0_32, %c0_33] : memref<24x18x3xf32, #tpu.memory_space<vmem>>, vector<8x18x3xf32>
    tpu.vector_store %arg22[%c16, %c0_32, %c0_33], %15 {strides = array<i32>} : memref<24x18x3xf32, #tpu.memory_space<vmem>>, vector<8x18x3xf32>,
    %c0_34 = arith.constant 0 : index
    %c0_35 = arith.constant 0 : index
    %c0_36 = arith.constant 0 : index
    %17 = tpu.strided_load %arg22[%c0_34, %c0_35, %c0_36] {strides = array<i32: 1, 2, 1>} : memref<24x18x3xf32, #tpu.memory_space<vmem>>, vector<8x8x3xf32>
    %18 = vector.shape_cast %17 : vector<8x8x3xf32> to vector<64x3xf32>
    %c0_37 = arith.constant 0 : index
    %c0_38 = arith.constant 0 : index
    %19 = vector.load %arg23[%c0_37, %c0_38] : memref<64x27xf32, #tpu.memory_space<vmem>>, vector<64x3xf32>
    tpu.vector_store %arg23[%c0_37, %c0_38], %18 {strides = array<i32>} : memref<64x27xf32, #tpu.memory_space<vmem>>, vector<64x3xf32>,
    %c0_39 = arith.constant 0 : index
    %c1_40 = arith.constant 1 : index
    %c0_41 = arith.constant 0 : index
    %20 = tpu.strided_load %arg22[%c0_39, %c1_40, %c0_41] {strides = array<i32: 1, 2, 1>} : memref<24x18x3xf32, #tpu.memory_space<vmem>>, vector<8x8x3xf32>
    %21 = vector.shape_cast %20 : vector<8x8x3xf32> to vector<64x3xf32>
    %c0_42 = arith.constant 0 : index
    %c3 = arith.constant 3 : index
    %22 = vector.load %arg23[%c0_42, %c3] : memref<64x27xf32, #tpu.memory_space<vmem>>, vector<64x3xf32>
    tpu.vector_store %arg23[%c0_42, %c3], %21 {strides = array<i32>} : memref<64x27xf32, #tpu.memory_space<vmem>>, vector<64x3xf32>,
    %c0_43 = arith.constant 0 : index
    %c2_44 = arith.constant 2 : index
    %c0_45 = arith.constant 0 : index
    %23 = tpu.strided_load %arg22[%c0_43, %c2_44, %c0_45] {strides = array<i32: 1, 2, 1>} : memref<24x18x3xf32, #tpu.memory_space<vmem>>, vector<8x8x3xf32>
    %24 = vector.shape_cast %23 : vector<8x8x3xf32> to vector<64x3xf32>
    %c0_46 = arith.constant 0 : index
    %c6 = arith.constant 6 : index
    %25 = vector.load %arg23[%c0_46, %c6] : memref<64x27xf32, #tpu.memory_space<vmem>>, vector<64x3xf32>
    tpu.vector_store %arg23[%c0_46, %c6], %24 {strides = array<i32>} : memref<64x27xf32, #tpu.memory_space<vmem>>, vector<64x3xf32>,
    %c8_47 = arith.constant 8 : index
    %c0_48 = arith.constant 0 : index
    %c0_49 = arith.constant 0 : index
    %26 = tpu.strided_load %arg22[%c8_47, %c0_48, %c0_49] {strides = array<i32: 1, 2, 1>} : memref<24x18x3xf32, #tpu.memory_space<vmem>>, vector<8x8x3xf32>
    %27 = vector.shape_cast %26 : vector<8x8x3xf32> to vector<64x3xf32>
    %c0_50 = arith.constant 0 : index
    %c9 = arith.constant 9 : index
    %28 = vector.load %arg23[%c0_50, %c9] : memref<64x27xf32, #tpu.memory_space<vmem>>, vector<64x3xf32>
    tpu.vector_store %arg23[%c0_50, %c9], %27 {strides = array<i32>} : memref<64x27xf32, #tpu.memory_space<vmem>>, vector<64x3xf32>,
    %c8_51 = arith.constant 8 : index
    %c1_52 = arith.constant 1 : index
    %c0_53 = arith.constant 0 : index
    %29 = tpu.strided_load %arg22[%c8_51, %c1_52, %c0_53] {strides = array<i32: 1, 2, 1>} : memref<24x18x3xf32, #tpu.memory_space<vmem>>, vector<8x8x3xf32>
    %30 = vector.shape_cast %29 : vector<8x8x3xf32> to vector<64x3xf32>
    %c0_54 = arith.constant 0 : index
    %c12 = arith.constant 12 : index
    %31 = vector.load %arg23[%c0_54, %c12] : memref<64x27xf32, #tpu.memory_space<vmem>>, vector<64x3xf32>
    tpu.vector_store %arg23[%c0_54, %c12], %30 {strides = array<i32>} : memref<64x27xf32, #tpu.memory_space<vmem>>, vector<64x3xf32>,
    %c8_55 = arith.constant 8 : index
    %c2_56 = arith.constant 2 : index
    %c0_57 = arith.constant 0 : index
    %32 = tpu.strided_load %arg22[%c8_55, %c2_56, %c0_57] {strides = array<i32: 1, 2, 1>} : memref<24x18x3xf32, #tpu.memory_space<vmem>>, vector<8x8x3xf32>
    %33 = vector.shape_cast %32 : vector<8x8x3xf32> to vector<64x3xf32>
    %c0_58 = arith.constant 0 : index
    %c15 = arith.constant 15 : index
    %34 = vector.load %arg23[%c0_58, %c15] : memref<64x27xf32, #tpu.memory_space<vmem>>, vector<64x3xf32>
    tpu.vector_store %arg23[%c0_58, %c15], %33 {strides = array<i32>} : memref<64x27xf32, #tpu.memory_space<vmem>>, vector<64x3xf32>,
    %c16_59 = arith.constant 16 : index
    %c0_60 = arith.constant 0 : index
    %c0_61 = arith.constant 0 : index
    %35 = tpu.strided_load %arg22[%c16_59, %c0_60, %c0_61] {strides = array<i32: 1, 2, 1>} : memref<24x18x3xf32, #tpu.memory_space<vmem>>, vector<8x8x3xf32>
    %36 = vector.shape_cast %35 : vector<8x8x3xf32> to vector<64x3xf32>
    %c0_62 = arith.constant 0 : index
    %c18 = arith.constant 18 : index
    %37 = vector.load %arg23[%c0_62, %c18] : memref<64x27xf32, #tpu.memory_space<vmem>>, vector<64x3xf32>
    tpu.vector_store %arg23[%c0_62, %c18], %36 {strides = array<i32>} : memref<64x27xf32, #tpu.memory_space<vmem>>, vector<64x3xf32>,
    %c16_63 = arith.constant 16 : index
    %c1_64 = arith.constant 1 : index
    %c0_65 = arith.constant 0 : index
    %38 = tpu.strided_load %arg22[%c16_63, %c1_64, %c0_65] {strides = array<i32: 1, 2, 1>} : memref<24x18x3xf32, #tpu.memory_space<vmem>>, vector<8x8x3xf32>
    %39 = vector.shape_cast %38 : vector<8x8x3xf32> to vector<64x3xf32>
    %c0_66 = arith.constant 0 : index
    %c21 = arith.constant 21 : index
    %40 = vector.load %arg23[%c0_66, %c21] : memref<64x27xf32, #tpu.memory_space<vmem>>, vector<64x3xf32>
    tpu.vector_store %arg23[%c0_66, %c21], %39 {strides = array<i32>} : memref<64x27xf32, #tpu.memory_space<vmem>>, vector<64x3xf32>,
    %c16_67 = arith.constant 16 : index
    %c2_68 = arith.constant 2 : index
    %c0_69 = arith.constant 0 : index
    %41 = tpu.strided_load %arg22[%c16_67, %c2_68, %c0_69] {strides = array<i32: 1, 2, 1>} : memref<24x18x3xf32, #tpu.memory_space<vmem>>, vector<8x8x3xf32>
    %42 = vector.shape_cast %41 : vector<8x8x3xf32> to vector<64x3xf32>
    %c0_70 = arith.constant 0 : index
    %c24 = arith.constant 24 : index
    %43 = vector.load %arg23[%c0_70, %c24] : memref<64x27xf32, #tpu.memory_space<vmem>>, vector<64x3xf32>
    tpu.vector_store %arg23[%c0_70, %c24], %42 {strides = array<i32>} : memref<64x27xf32, #tpu.memory_space<vmem>>, vector<64x3xf32>,
    %c0_71 = arith.constant 0 : index
    %c0_72 = arith.constant 0 : index
    %44 = vector.load %arg23[%c0_71, %c0_72] : memref<64x27xf32, #tpu.memory_space<vmem>>, vector<64x27xf32>
    %c0_73 = arith.constant 0 : index
    %c0_74 = arith.constant 0 : index
    %45 = vector.load %arg2[%c0_73, %c0_74] : memref<27x32xf32, #tpu.memory_space<vmem>>, vector<27x32xf32>
    %cst_75 = arith.constant dense<0.000000e+00> : vector<64x32xf32>
    %46 = tpu.matmul %44, %45, %cst_75 {dimension_numbers = #tpu.dot_dimension_numbers<[1], [0], [0], [1], [0, 0, 1, 1], [], []>} : vector<64x27xf32>, vector<27x32xf32>, vector<64x32xf32> -> vector<64x32xf32>
    %c0_76 = arith.constant 0 : index
    %c0_77 = arith.constant 0 : index
    %47 = vector.load %arg3[%c0_76, %c0_77] : memref<1x32xf32, #tpu.memory_space<vmem>>, vector<1x32xf32>
    %48 = vector.broadcast %47 : vector<1x32xf32> to vector<64x32xf32>
    %49 = arith.addf %46, %48 : vector<64x32xf32>
    %cst_78 = arith.constant 0.000000e+00 : f32
    %50 = vector.broadcast %cst_78 : f32 to vector<64x32xf32>
    %51 = arith.subf %50, %49 : vector<64x32xf32>
    %52 = math.exp %51 : vector<64x32xf32>
    %cst_79 = arith.constant 1.000000e+00 : f32
    %53 = vector.broadcast %cst_79 : f32 to vector<64x32xf32>
    %54 = arith.addf %53, %52 : vector<64x32xf32>
    %55 = tpu.reciprocal %54 {approx = true} : vector<64x32xf32> -> vector<64x32xf32>
    %56 = arith.mulf %49, %55 : vector<64x32xf32>
    %c0_80 = arith.constant 0 : index
    %c0_81 = arith.constant 0 : index
    %57 = vector.load %arg4[%c0_80, %c0_81] : memref<32x128xf32, #tpu.memory_space<vmem>>, vector<32x128xf32>
    %cst_82 = arith.constant dense<0.000000e+00> : vector<64x128xf32>
    %58 = tpu.matmul %56, %57, %cst_82 {dimension_numbers = #tpu.dot_dimension_numbers<[1], [0], [0], [1], [0, 0, 1, 1], [], []>} : vector<64x32xf32>, vector<32x128xf32>, vector<64x128xf32> -> vector<64x128xf32>
    %c0_83 = arith.constant 0 : index
    %c0_84 = arith.constant 0 : index
    %59 = vector.load %arg5[%c0_83, %c0_84] : memref<1x128xf32, #tpu.memory_space<vmem>>, vector<1x128xf32>
    %60 = vector.broadcast %59 : vector<1x128xf32> to vector<64x128xf32>
    %61 = arith.addf %58, %60 : vector<64x128xf32>
    %cst_85 = arith.constant 0.000000e+00 : f32
    %62 = vector.broadcast %cst_85 : f32 to vector<64x128xf32>
    %63 = arith.subf %62, %61 : vector<64x128xf32>
    %64 = math.exp %63 : vector<64x128xf32>
    %cst_86 = arith.constant 1.000000e+00 : f32
    %65 = vector.broadcast %cst_86 : f32 to vector<64x128xf32>
    %66 = arith.addf %65, %64 : vector<64x128xf32>
    %67 = tpu.reciprocal %66 {approx = true} : vector<64x128xf32> -> vector<64x128xf32>
    %68 = arith.mulf %61, %67 : vector<64x128xf32>
    %cst_87 = arith.constant 0.000000e+00 : f32
    %69 = vector.broadcast %cst_87 : f32 to vector<1x10x128xf32>
    %c0_88 = arith.constant 0 : index
    %c0_89 = arith.constant 0 : index
    %c0_90 = arith.constant 0 : index
    %70 = vector.load %arg24[%c0_88, %c0_89, %c0_90] : memref<10x10x128xf32, #tpu.memory_space<vmem>>, vector<1x10x128xf32>
    tpu.vector_store %arg24[%c0_88, %c0_89, %c0_90], %69 {strides = array<i32>} : memref<10x10x128xf32, #tpu.memory_space<vmem>>, vector<1x10x128xf32>,
    %cst_91 = arith.constant 0.000000e+00 : f32
    %71 = vector.broadcast %cst_91 : f32 to vector<1x10x128xf32>
    %c9_92 = arith.constant 9 : index
    %c0_93 = arith.constant 0 : index
    %c0_94 = arith.constant 0 : index
    %72 = vector.load %arg24[%c9_92, %c0_93, %c0_94] : memref<10x10x128xf32, #tpu.memory_space<vmem>>, vector<1x10x128xf32>
    tpu.vector_store %arg24[%c9_92, %c0_93, %c0_94], %71 {strides = array<i32>} : memref<10x10x128xf32, #tpu.memory_space<vmem>>, vector<1x10x128xf32>,
    %cst_95 = arith.constant 0.000000e+00 : f32
    %73 = vector.broadcast %cst_95 : f32 to vector<10x1x128xf32>
    %c0_96 = arith.constant 0 : index
    %c0_97 = arith.constant 0 : index
    %c0_98 = arith.constant 0 : index
    %74 = vector.load %arg24[%c0_96, %c0_97, %c0_98] : memref<10x10x128xf32, #tpu.memory_space<vmem>>, vector<10x1x128xf32>
    tpu.vector_store %arg24[%c0_96, %c0_97, %c0_98], %73 {strides = array<i32>} : memref<10x10x128xf32, #tpu.memory_space<vmem>>, vector<10x1x128xf32>,
    %cst_99 = arith.constant 0.000000e+00 : f32
    %75 = vector.broadcast %cst_99 : f32 to vector<10x1x128xf32>
    %c0_100 = arith.constant 0 : index
    %c9_101 = arith.constant 9 : index
    %c0_102 = arith.constant 0 : index
    %76 = vector.load %arg24[%c0_100, %c9_101, %c0_102] : memref<10x10x128xf32, #tpu.memory_space<vmem>>, vector<10x1x128xf32>
    tpu.vector_store %arg24[%c0_100, %c9_101, %c0_102], %75 {strides = array<i32>} : memref<10x10x128xf32, #tpu.memory_space<vmem>>, vector<10x1x128xf32>,
    %77 = vector.shape_cast %68 : vector<64x128xf32> to vector<8x8x128xf32>
    %c1_103 = arith.constant 1 : index
    %c1_104 = arith.constant 1 : index
    %c0_105 = arith.constant 0 : index
    %78 = vector.load %arg24[%c1_103, %c1_104, %c0_105] : memref<10x10x128xf32, #tpu.memory_space<vmem>>, vector<8x8x128xf32>
    tpu.vector_store %arg24[%c1_103, %c1_104, %c0_105], %77 {strides = array<i32>} : memref<10x10x128xf32, #tpu.memory_space<vmem>>, vector<8x8x128xf32>,
    %cst_106 = arith.constant 0.000000e+00 : f32
    %79 = vector.broadcast %cst_106 : f32 to vector<8x8x128xf32>
    %c0_107 = arith.constant 0 : index
    %c0_108 = arith.constant 0 : index
    %c0_109 = arith.constant 0 : index
    %80 = vector.load %arg24[%c0_107, %c0_108, %c0_109] : memref<10x10x128xf32, #tpu.memory_space<vmem>>, vector<8x8x128xf32>
    %c0_110 = arith.constant 0 : index
    %c0_111 = arith.constant 0 : index
    %81 = vector.load %arg6[%c0_110, %c0_111] : memref<9x128xf32, #tpu.memory_space<vmem>>, vector<1x128xf32>
    %82 = vector.shape_cast %81 : vector<1x128xf32> to vector<1x1x128xf32>
    %83 = vector.broadcast %82 : vector<1x1x128xf32> to vector<8x8x128xf32>
    %84 = arith.mulf %80, %83 : vector<8x8x128xf32>
    %85 = arith.addf %79, %84 : vector<8x8x128xf32>
    %c0_112 = arith.constant 0 : index
    %c1_113 = arith.constant 1 : index
    %c0_114 = arith.constant 0 : index
    %86 = vector.load %arg24[%c0_112, %c1_113, %c0_114] : memref<10x10x128xf32, #tpu.memory_space<vmem>>, vector<8x8x128xf32>
    %c1_115 = arith.constant 1 : index
    %c0_116 = arith.constant 0 : index
    %87 = vector.load %arg6[%c1_115, %c0_116] : memref<9x128xf32, #tpu.memory_space<vmem>>, vector<1x128xf32>
    %88 = vector.shape_cast %87 : vector<1x128xf32> to vector<1x1x128xf32>
    %89 = vector.broadcast %88 : vector<1x1x128xf32> to vector<8x8x128xf32>
    %90 = arith.mulf %86, %89 : vector<8x8x128xf32>
    %91 = arith.addf %85, %90 : vector<8x8x128xf32>
    %c0_117 = arith.constant 0 : index
    %c2_118 = arith.constant 2 : index
    %c0_119 = arith.constant 0 : index
    %92 = vector.load %arg24[%c0_117, %c2_118, %c0_119] : memref<10x10x128xf32, #tpu.memory_space<vmem>>, vector<8x8x128xf32>
    %c2_120 = arith.constant 2 : index
    %c0_121 = arith.constant 0 : index
    %93 = vector.load %arg6[%c2_120, %c0_121] : memref<9x128xf32, #tpu.memory_space<vmem>>, vector<1x128xf32>
    %94 = vector.shape_cast %93 : vector<1x128xf32> to vector<1x1x128xf32>
    %95 = vector.broadcast %94 : vector<1x1x128xf32> to vector<8x8x128xf32>
    %96 = arith.mulf %92, %95 : vector<8x8x128xf32>
    %97 = arith.addf %91, %96 : vector<8x8x128xf32>
    %c1_122 = arith.constant 1 : index
    %c0_123 = arith.constant 0 : index
    %c0_124 = arith.constant 0 : index
    %98 = vector.load %arg24[%c1_122, %c0_123, %c0_124] : memref<10x10x128xf32, #tpu.memory_space<vmem>>, vector<8x8x128xf32>
    %c3_125 = arith.constant 3 : index
    %c0_126 = arith.constant 0 : index
    %99 = vector.load %arg6[%c3_125, %c0_126] : memref<9x128xf32, #tpu.memory_space<vmem>>, vector<1x128xf32>
    %100 = vector.shape_cast %99 : vector<1x128xf32> to vector<1x1x128xf32>
    %101 = vector.broadcast %100 : vector<1x1x128xf32> to vector<8x8x128xf32>
    %102 = arith.mulf %98, %101 : vector<8x8x128xf32>
    %103 = arith.addf %97, %102 : vector<8x8x128xf32>
    %c1_127 = arith.constant 1 : index
    %c1_128 = arith.constant 1 : index
    %c0_129 = arith.constant 0 : index
    %104 = vector.load %arg24[%c1_127, %c1_128, %c0_129] : memref<10x10x128xf32, #tpu.memory_space<vmem>>, vector<8x8x128xf32>
    %c4 = arith.constant 4 : index
    %c0_130 = arith.constant 0 : index
    %105 = vector.load %arg6[%c4, %c0_130] : memref<9x128xf32, #tpu.memory_space<vmem>>, vector<1x128xf32>
    %106 = vector.shape_cast %105 : vector<1x128xf32> to vector<1x1x128xf32>
    %107 = vector.broadcast %106 : vector<1x1x128xf32> to vector<8x8x128xf32>
    %108 = arith.mulf %104, %107 : vector<8x8x128xf32>
    %109 = arith.addf %103, %108 : vector<8x8x128xf32>
    %c1_131 = arith.constant 1 : index
    %c2_132 = arith.constant 2 : index
    %c0_133 = arith.constant 0 : index
    %110 = vector.load %arg24[%c1_131, %c2_132, %c0_133] : memref<10x10x128xf32, #tpu.memory_space<vmem>>, vector<8x8x128xf32>
    %c5 = arith.constant 5 : index
    %c0_134 = arith.constant 0 : index
    %111 = vector.load %arg6[%c5, %c0_134] : memref<9x128xf32, #tpu.memory_space<vmem>>, vector<1x128xf32>
    %112 = vector.shape_cast %111 : vector<1x128xf32> to vector<1x1x128xf32>
    %113 = vector.broadcast %112 : vector<1x1x128xf32> to vector<8x8x128xf32>
    %114 = arith.mulf %110, %113 : vector<8x8x128xf32>
    %115 = arith.addf %109, %114 : vector<8x8x128xf32>
    %c2_135 = arith.constant 2 : index
    %c0_136 = arith.constant 0 : index
    %c0_137 = arith.constant 0 : index
    %116 = vector.load %arg24[%c2_135, %c0_136, %c0_137] : memref<10x10x128xf32, #tpu.memory_space<vmem>>, vector<8x8x128xf32>
    %c6_138 = arith.constant 6 : index
    %c0_139 = arith.constant 0 : index
    %117 = vector.load %arg6[%c6_138, %c0_139] : memref<9x128xf32, #tpu.memory_space<vmem>>, vector<1x128xf32>
    %118 = vector.shape_cast %117 : vector<1x128xf32> to vector<1x1x128xf32>
    %119 = vector.broadcast %118 : vector<1x1x128xf32> to vector<8x8x128xf32>
    %120 = arith.mulf %116, %119 : vector<8x8x128xf32>
    %121 = arith.addf %115, %120 : vector<8x8x128xf32>
    %c2_140 = arith.constant 2 : index
    %c1_141 = arith.constant 1 : index
    %c0_142 = arith.constant 0 : index
    %122 = vector.load %arg24[%c2_140, %c1_141, %c0_142] : memref<10x10x128xf32, #tpu.memory_space<vmem>>, vector<8x8x128xf32>
    %c7 = arith.constant 7 : index
    %c0_143 = arith.constant 0 : index
    %123 = vector.load %arg6[%c7, %c0_143] : memref<9x128xf32, #tpu.memory_space<vmem>>, vector<1x128xf32>
    %124 = vector.shape_cast %123 : vector<1x128xf32> to vector<1x1x128xf32>
    %125 = vector.broadcast %124 : vector<1x1x128xf32> to vector<8x8x128xf32>
    %126 = arith.mulf %122, %125 : vector<8x8x128xf32>
    %127 = arith.addf %121, %126 : vector<8x8x128xf32>
    %c2_144 = arith.constant 2 : index
    %c2_145 = arith.constant 2 : index
    %c0_146 = arith.constant 0 : index
    %128 = vector.load %arg24[%c2_144, %c2_145, %c0_146] : memref<10x10x128xf32, #tpu.memory_space<vmem>>, vector<8x8x128xf32>
    %c8_147 = arith.constant 8 : index
    %c0_148 = arith.constant 0 : index
    %129 = vector.load %arg6[%c8_147, %c0_148] : memref<9x128xf32, #tpu.memory_space<vmem>>, vector<1x128xf32>
    %130 = vector.shape_cast %129 : vector<1x128xf32> to vector<1x1x128xf32>
    %131 = vector.broadcast %130 : vector<1x1x128xf32> to vector<8x8x128xf32>
    %132 = arith.mulf %128, %131 : vector<8x8x128xf32>
    %133 = arith.addf %127, %132 : vector<8x8x128xf32>
    %134 = vector.shape_cast %133 : vector<8x8x128xf32> to vector<64x128xf32>
    %c0_149 = arith.constant 0 : index
    %c0_150 = arith.constant 0 : index
    %135 = vector.load %arg7[%c0_149, %c0_150] : memref<1x128xf32, #tpu.memory_space<vmem>>, vector<1x128xf32>
    %136 = vector.broadcast %135 : vector<1x128xf32> to vector<64x128xf32>
    %137 = arith.addf %134, %136 : vector<64x128xf32>
    %cst_151 = arith.constant 0.000000e+00 : f32
    %138 = vector.broadcast %cst_151 : f32 to vector<64x128xf32>
    %139 = arith.subf %138, %137 : vector<64x128xf32>
    %140 = math.exp %139 : vector<64x128xf32>
    %cst_152 = arith.constant 1.000000e+00 : f32
    %141 = vector.broadcast %cst_152 : f32 to vector<64x128xf32>
    %142 = arith.addf %141, %140 : vector<64x128xf32>
    %143 = tpu.reciprocal %142 {approx = true} : vector<64x128xf32> -> vector<64x128xf32>
    %144 = arith.mulf %137, %143 : vector<64x128xf32>
    %cst_153 = arith.constant dense<0.000000e+00> : vector<128xf32>
    %145 = vector.multi_reduction <add>, %144, %cst_153 [0] : vector<64x128xf32> to vector<128xf32>
    %146 = vector.shape_cast %145 : vector<128xf32> to vector<1x128xf32>
    %cst_154 = arith.constant 6.400000e+01 : f32
    %147 = vector.broadcast %cst_154 : f32 to vector<1x128xf32>
    %148 = arith.divf %146, %147 : vector<1x128xf32>
    %c0_155 = arith.constant 0 : index
    %c0_156 = arith.constant 0 : index
    %149 = vector.load %arg8[%c0_155, %c0_156] : memref<128x8xf32, #tpu.memory_space<vmem>>, vector<128x8xf32>
    %cst_157 = arith.constant dense<0.000000e+00> : vector<1x8xf32>
    %150 = tpu.matmul %148, %149, %cst_157 {dimension_numbers = #tpu.dot_dimension_numbers<[1], [0], [0], [1], [0, 0, 1, 1], [], []>} : vector<1x128xf32>, vector<128x8xf32>, vector<1x8xf32> -> vector<1x8xf32>
    %c0_158 = arith.constant 0 : index
    %c0_159 = arith.constant 0 : index
    %151 = vector.load %arg9[%c0_158, %c0_159] : memref<1x8xf32, #tpu.memory_space<vmem>>, vector<1x8xf32>
    %152 = arith.addf %150, %151 : vector<1x8xf32>
    %cst_160 = arith.constant 0.000000e+00 : f32
    %153 = vector.broadcast %cst_160 : f32 to vector<1x8xf32>
    %154 = arith.subf %153, %152 : vector<1x8xf32>
    %155 = math.exp %154 : vector<1x8xf32>
    %cst_161 = arith.constant 1.000000e+00 : f32
    %156 = vector.broadcast %cst_161 : f32 to vector<1x8xf32>
    %157 = arith.addf %156, %155 : vector<1x8xf32>
    %158 = tpu.reciprocal %157 {approx = true} : vector<1x8xf32> -> vector<1x8xf32>
    %159 = arith.mulf %152, %158 : vector<1x8xf32>
    %c0_162 = arith.constant 0 : index
    %c0_163 = arith.constant 0 : index
    %160 = vector.load %arg10[%c0_162, %c0_163] : memref<8x128xf32, #tpu.memory_space<vmem>>, vector<8x128xf32>
    %cst_164 = arith.constant dense<0.000000e+00> : vector<1x128xf32>
    %161 = tpu.matmul %159, %160, %cst_164 {dimension_numbers = #tpu.dot_dimension_numbers<[1], [0], [0], [1], [0, 0, 1, 1], [], []>} : vector<1x8xf32>, vector<8x128xf32>, vector<1x128xf32> -> vector<1x128xf32>
    %c0_165 = arith.constant 0 : index
    %c0_166 = arith.constant 0 : index
    %162 = vector.load %arg11[%c0_165, %c0_166] : memref<1x128xf32, #tpu.memory_space<vmem>>, vector<1x128xf32>
    %163 = arith.addf %161, %162 : vector<1x128xf32>
    %cst_167 = arith.constant 0.000000e+00 : f32
    %164 = vector.broadcast %cst_167 : f32 to vector<1x128xf32>
    %165 = arith.subf %164, %163 : vector<1x128xf32>
    %166 = math.exp %165 : vector<1x128xf32>
    %cst_168 = arith.constant 1.000000e+00 : f32
    %167 = vector.broadcast %cst_168 : f32 to vector<1x128xf32>
    %168 = arith.addf %167, %166 : vector<1x128xf32>
    %169 = tpu.reciprocal %168 {approx = true} : vector<1x128xf32> -> vector<1x128xf32>
    %170 = vector.broadcast %169 : vector<1x128xf32> to vector<64x128xf32>
    %171 = arith.mulf %144, %170 : vector<64x128xf32>
    %c0_169 = arith.constant 0 : index
    %c0_170 = arith.constant 0 : index
    %172 = vector.load %arg12[%c0_169, %c0_170] : memref<128x32xf32, #tpu.memory_space<vmem>>, vector<128x32xf32>
    %cst_171 = arith.constant dense<0.000000e+00> : vector<64x32xf32>
    %173 = tpu.matmul %171, %172, %cst_171 {dimension_numbers = #tpu.dot_dimension_numbers<[1], [0], [0], [1], [0, 0, 1, 1], [], []>} : vector<64x128xf32>, vector<128x32xf32>, vector<64x32xf32> -> vector<64x32xf32>
    %c0_172 = arith.constant 0 : index
    %c0_173 = arith.constant 0 : index
    %174 = vector.load %arg13[%c0_172, %c0_173] : memref<1x32xf32, #tpu.memory_space<vmem>>, vector<1x32xf32>
    %175 = vector.broadcast %174 : vector<1x32xf32> to vector<64x32xf32>
    %176 = arith.addf %173, %175 : vector<64x32xf32>
    %177 = arith.addf %176, %56 : vector<64x32xf32>
    %178 = arith.truncf %177 : vector<64x32xf32> to vector<64x32xbf16>
    %c0_174 = arith.constant 0 : index
    %c0_175 = arith.constant 0 : index
    %179 = vector.load %arg14[%c0_174, %c0_175] : memref<32x2048xbf16, #tpu.memory_space<vmem>>, vector<32x2048xbf16>
    %cst_176 = arith.constant dense<0.000000e+00> : vector<64x2048xf32>
    %180 = tpu.matmul %178, %179, %cst_176 {dimension_numbers = #tpu.dot_dimension_numbers<[1], [0], [0], [1], [0, 0, 1, 1], [], []>} : vector<64x32xbf16>, vector<32x2048xbf16>, vector<64x2048xf32> -> vector<64x2048xf32>
    %c0_177 = arith.constant 0 : index
    %c0_178 = arith.constant 0 : index
    %181 = vector.load %arg15[%c0_177, %c0_178] : memref<1x2048xf32, #tpu.memory_space<vmem>>, vector<1x2048xf32>
    %182 = vector.broadcast %181 : vector<1x2048xf32> to vector<64x2048xf32>
    %183 = arith.addf %180, %182 : vector<64x2048xf32>
    %cst_179 = arith.constant 0.000000e+00 : f32
    %184 = vector.broadcast %cst_179 : f32 to vector<64x2048xf32>
    %185 = arith.subf %184, %183 : vector<64x2048xf32>
    %186 = math.exp %185 : vector<64x2048xf32>
    %cst_180 = arith.constant 1.000000e+00 : f32
    %187 = vector.broadcast %cst_180 : f32 to vector<64x2048xf32>
    %188 = arith.addf %187, %186 : vector<64x2048xf32>
    %189 = tpu.reciprocal %188 {approx = true} : vector<64x2048xf32> -> vector<64x2048xf32>
    %190 = arith.mulf %183, %189 : vector<64x2048xf32>
    %cst_181 = arith.constant dense<0.000000e+00> : vector<2048xf32>
    %191 = vector.multi_reduction <add>, %190, %cst_181 [0] : vector<64x2048xf32> to vector<2048xf32>
    %192 = vector.shape_cast %191 : vector<2048xf32> to vector<1x2048xf32>
    %cst_182 = arith.constant 6.400000e+01 : f32
    %193 = vector.broadcast %cst_182 : f32 to vector<1x2048xf32>
    %194 = arith.divf %192, %193 : vector<1x2048xf32>
    tpu.wait_dma2 semaphore(%arg26 : memref<!tpu.dma_semaphore, #tpu.memory_space<semaphore_mem>>) src(%arg16 : memref<2048x256xbf16, #tpu.memory_space<any>>) dst(%arg25 : memref<2048x256xbf16, #tpu.memory_space<vmem>>)
    %195 = arith.truncf %194 : vector<1x2048xf32> to vector<1x2048xbf16>
    %c0_183 = arith.constant 0 : index
    %c0_184 = arith.constant 0 : index
    %196 = vector.load %arg25[%c0_183, %c0_184] : memref<2048x256xbf16, #tpu.memory_space<vmem>>, vector<2048x256xbf16>
    %cst_185 = arith.constant dense<0.000000e+00> : vector<1x256xf32>
    %197 = tpu.matmul %195, %196, %cst_185 {dimension_numbers = #tpu.dot_dimension_numbers<[1], [0], [0], [1], [0, 0, 1, 1], [], []>} : vector<1x2048xbf16>, vector<2048x256xbf16>, vector<1x256xf32> -> vector<1x256xf32>
    %c0_186 = arith.constant 0 : index
    %c0_187 = arith.constant 0 : index
    %198 = vector.load %arg17[%c0_186, %c0_187] : memref<1x256xf32, #tpu.memory_space<vmem>>, vector<1x256xf32>
    %199 = arith.addf %197, %198 : vector<1x256xf32>
    %cst_188 = arith.constant 0.000000e+00 : f32
    %200 = vector.broadcast %cst_188 : f32 to vector<1x256xf32>
    %201 = arith.maximumf %199, %200 : vector<1x256xf32>
    %202 = arith.truncf %201 : vector<1x256xf32> to vector<1x256xbf16>
    %c0_189 = arith.constant 0 : index
    %c0_190 = arith.constant 0 : index
    %203 = vector.load %arg18[%c0_189, %c0_190] : memref<256x10xbf16, #tpu.memory_space<vmem>>, vector<256x10xbf16>
    %cst_191 = arith.constant dense<0.000000e+00> : vector<1x10xf32>
    %204 = tpu.matmul %202, %203, %cst_191 {dimension_numbers = #tpu.dot_dimension_numbers<[1], [0], [0], [1], [0, 0, 1, 1], [], []>} : vector<1x256xbf16>, vector<256x10xbf16>, vector<1x10xf32> -> vector<1x10xf32>
    %c0_192 = arith.constant 0 : index
    %c0_193 = arith.constant 0 : index
    %205 = vector.load %arg19[%c0_192, %c0_193] : memref<1x10xf32, #tpu.memory_space<vmem>>, vector<1x10xf32>
    %206 = arith.addf %204, %205 : vector<1x10xf32>
    %cst_194 = arith.constant dense<0xFF800000> : vector<1xf32>
    %207 = vector.multi_reduction <maximumf>, %206, %cst_194 [1] : vector<1x10xf32> to vector<1xf32>
    %208 = vector.shape_cast %207 : vector<1xf32> to vector<1x1xf32>
    %209 = vector.broadcast %208 : vector<1x1xf32> to vector<1x10xf32>
    %210 = arith.subf %206, %209 : vector<1x10xf32>
    %211 = math.exp %210 : vector<1x10xf32>
    %cst_195 = arith.constant dense<0.000000e+00> : vector<1xf32>
    %212 = vector.multi_reduction <add>, %211, %cst_195 [1] : vector<1x10xf32> to vector<1xf32>
    %213 = vector.shape_cast %212 : vector<1xf32> to vector<1x1xf32>
    %214 = math.log %213 : vector<1x1xf32>
    %215 = vector.broadcast %214 : vector<1x1xf32> to vector<1x10xf32>
    %216 = arith.subf %210, %215 : vector<1x10xf32>
    %217 = vector.shape_cast %216 : vector<1x10xf32> to vector<1x1x10xf32>
    %c0_196 = arith.constant 0 : index
    %c0_197 = arith.constant 0 : index
    %c0_198 = arith.constant 0 : index
    %218 = vector.load %arg20[%c0_196, %c0_197, %c0_198] : memref<1x1x10xf32, #tpu.memory_space<vmem>>, vector<1x1x10xf32>
    tpu.vector_store %arg20[%c0_196, %c0_197, %c0_198], %217 {strides = array<i32>} : memref<1x1x10xf32, #tpu.memory_space<vmem>>, vector<1x1x10xf32>,
    return
  }
  func.func @transform_0(%arg0: i32) -> (i32, i32, i32, i32) {
    %c0_i32 = arith.constant 0 : i32
    %c0_i32_0 = arith.constant 0 : i32
    %c0_i32_1 = arith.constant 0 : i32
    %c0_i32_2 = arith.constant 0 : i32
    return %arg0, %c0_i32, %c0_i32_0, %c0_i32_1 : i32, i32, i32, i32
  }
  func.func @transform_1(%arg0: i32) -> (i32, i32) {
    %c0_i32 = arith.constant 0 : i32
    %c0_i32_0 = arith.constant 0 : i32
    %c0_i32_1 = arith.constant 0 : i32
    return %c0_i32, %c0_i32_0 : i32, i32
  }
  func.func @transform_2(%arg0: i32) -> (i32, i32) {
    %c0_i32 = arith.constant 0 : i32
    %c0_i32_0 = arith.constant 0 : i32
    %c0_i32_1 = arith.constant 0 : i32
    return %c0_i32, %c0_i32_0 : i32, i32
  }
  func.func @transform_3(%arg0: i32) -> (i32, i32) {
    %c0_i32 = arith.constant 0 : i32
    %c0_i32_0 = arith.constant 0 : i32
    %c0_i32_1 = arith.constant 0 : i32
    return %c0_i32, %c0_i32_0 : i32, i32
  }
  func.func @transform_4(%arg0: i32) -> (i32, i32) {
    %c0_i32 = arith.constant 0 : i32
    %c0_i32_0 = arith.constant 0 : i32
    %c0_i32_1 = arith.constant 0 : i32
    return %c0_i32, %c0_i32_0 : i32, i32
  }
  func.func @transform_5(%arg0: i32) -> (i32, i32) {
    %c0_i32 = arith.constant 0 : i32
    %c0_i32_0 = arith.constant 0 : i32
    %c0_i32_1 = arith.constant 0 : i32
    return %c0_i32, %c0_i32_0 : i32, i32
  }
  func.func @transform_6(%arg0: i32) -> (i32, i32) {
    %c0_i32 = arith.constant 0 : i32
    %c0_i32_0 = arith.constant 0 : i32
    %c0_i32_1 = arith.constant 0 : i32
    return %c0_i32, %c0_i32_0 : i32, i32
  }
  func.func @transform_7(%arg0: i32) -> (i32, i32) {
    %c0_i32 = arith.constant 0 : i32
    %c0_i32_0 = arith.constant 0 : i32
    %c0_i32_1 = arith.constant 0 : i32
    return %c0_i32, %c0_i32_0 : i32, i32
  }
  func.func @transform_8(%arg0: i32) -> (i32, i32) {
    %c0_i32 = arith.constant 0 : i32
    %c0_i32_0 = arith.constant 0 : i32
    %c0_i32_1 = arith.constant 0 : i32
    return %c0_i32, %c0_i32_0 : i32, i32
  }
  func.func @transform_9(%arg0: i32) -> (i32, i32) {
    %c0_i32 = arith.constant 0 : i32
    %c0_i32_0 = arith.constant 0 : i32
    %c0_i32_1 = arith.constant 0 : i32
    return %c0_i32, %c0_i32_0 : i32, i32
  }
  func.func @transform_10(%arg0: i32) -> (i32, i32) {
    %c0_i32 = arith.constant 0 : i32
    %c0_i32_0 = arith.constant 0 : i32
    %c0_i32_1 = arith.constant 0 : i32
    return %c0_i32, %c0_i32_0 : i32, i32
  }
  func.func @transform_11(%arg0: i32) -> (i32, i32) {
    %c0_i32 = arith.constant 0 : i32
    %c0_i32_0 = arith.constant 0 : i32
    %c0_i32_1 = arith.constant 0 : i32
    return %c0_i32, %c0_i32_0 : i32, i32
  }
  func.func @transform_12(%arg0: i32) -> (i32, i32) {
    %c0_i32 = arith.constant 0 : i32
    %c0_i32_0 = arith.constant 0 : i32
    %c0_i32_1 = arith.constant 0 : i32
    return %c0_i32, %c0_i32_0 : i32, i32
  }
  func.func @transform_13(%arg0: i32) -> (i32, i32) {
    %c0_i32 = arith.constant 0 : i32
    %c0_i32_0 = arith.constant 0 : i32
    %c0_i32_1 = arith.constant 0 : i32
    return %c0_i32, %c0_i32_0 : i32, i32
  }
  func.func @transform_14(%arg0: i32) -> (i32, i32) {
    %c0_i32 = arith.constant 0 : i32
    %c0_i32_0 = arith.constant 0 : i32
    %c0_i32_1 = arith.constant 0 : i32
    return %c0_i32, %c0_i32_0 : i32, i32
  }
  func.func @transform_16(%arg0: i32) -> (i32, i32) {
    %c0_i32 = arith.constant 0 : i32
    %c0_i32_0 = arith.constant 0 : i32
    %c0_i32_1 = arith.constant 0 : i32
    return %c0_i32, %c0_i32_0 : i32, i32
  }
  func.func @transform_17(%arg0: i32) -> (i32, i32) {
    %c0_i32 = arith.constant 0 : i32
    %c0_i32_0 = arith.constant 0 : i32
    %c0_i32_1 = arith.constant 0 : i32
    return %c0_i32, %c0_i32_0 : i32, i32
  }
  func.func @transform_18(%arg0: i32) -> (i32, i32) {
    %c0_i32 = arith.constant 0 : i32
    %c0_i32_0 = arith.constant 0 : i32
    %c0_i32_1 = arith.constant 0 : i32
    return %c0_i32, %c0_i32_0 : i32, i32
  }
  func.func @transform_19(%arg0: i32) -> (i32, i32, i32) {
    %c0_i32 = arith.constant 0 : i32
    %c0_i32_0 = arith.constant 0 : i32
    %c0_i32_1 = arith.constant 0 : i32
    return %arg0, %c0_i32, %c0_i32_0 : i32, i32, i32
  }
}

</mosaic_0001>

<bundles_post_ra>
// kernel: effnetb5_forward.1
= control target key start
LH: loop header
LB: loop body
LE: loop exit
PB: predicated region body
PF: predicated region fallthrough
CT: control target
= control target key end

     0   :  { %s14351_s0 = inlined_call_operand.vmem [shape: f32[2,16,16,3], index: 0, kind: input, shape index: {}]   ;;  %s14352_s1 = inlined_call_operand.vmem [shape: f32[27,32], index: 1, kind: input, shape index: {}]   ;;  %s14353_s2 = inlined_call_operand.vmem [shape: f32[1,32], index: 2, kind: input, shape index: {}]   ;;  %s14354_s3 = inlined_call_operand.vmem [shape: f32[32,128], index: 3, kind: input, shape index: {}]   ;;  %s14355_s4 = inlined_call_operand.vmem [shape: f32[1,128], index: 4, kind: input, shape index: {}]   ;;  %s14356_s5 = inlined_call_operand.vmem [shape: f32[9,128], index: 5, kind: input, shape index: {}]   ;;  %s14357_s6 = inlined_call_operand.vmem [shape: f32[1,128], index: 6, kind: input, shape index: {}]   ;;  %s14358_s7 = inlined_call_operand.vmem [shape: f32[128,8], index: 7, kind: input, shape index: {}]   ;;  %s14359_s8 = inlined_call_operand.vmem [shape: f32[1,8], index: 8, kind: input, shape index: {}]   ;;  %s14360_s9 = inlined_call_operand.vmem [shape: f32[8,128], index: 9, kind: input, shape index: {}]   ;;  %s14361_s10 = inlined_call_operand.vmem [shape: f32[1,128], index: 10, kind: input, shape index: {}]   ;;  %s14362_s11 = inlined_call_operand.vmem [shape: f32[128,32], index: 11, kind: input, shape index: {}]   ;;  %s14363_s12 = inlined_call_operand.vmem [shape: f32[1,32], index: 12, kind: input, shape index: {}]   ;;  %s14364_s13 = inlined_call_operand.vmem [shape: bf16[32,2048], index: 13, kind: input, shape index: {}]   ;;  %s14365_s14 = inlined_call_operand.vmem [shape: f32[1,2048], index: 14, kind: input, shape index: {}]   ;;  %s14366_s15 = inlined_call_operand.vmem [shape: bf16[2048,256], index: 15, kind: input, shape index: {}]   ;;  %s14367_s16 = inlined_call_operand.vmem [shape: f32[1,256], index: 16, kind: input, shape index: {}]   ;;  %s14368_s17 = inlined_call_operand.vmem [shape: bf16[256,10], index: 17, kind: input, shape index: {}]   ;;  %s14369_s18 = inlined_call_operand.vmem [shape: f32[1,10], index: 18, kind: input, shape index: {}]   ;;  %s14370_s19 = inlined_call_operand.hbm [shape: f32[2,1,10], index: 19, kind: output, shape index: {}]  }
   0x1   :  { %14418 = sst [smem:[#allocation64_spill]] %s14351_s0 }
   0x2   :  { %14419 = sst [smem:[#allocation65_spill]] %s14352_s1 }
   0x3   :  { %14420 = sst [smem:[#allocation66_spill]] %s14353_s2 }
   0x4   :  { %14421 = sst [smem:[#allocation67_spill]] %s14354_s3 }
   0x5   :  { %14422 = sst [smem:[#allocation68_spill]] %s14370_s19 }
   0x6   :  { %24 = vsyncpa [#allocation9], 0 }
   0x7   :  { %26 = vsyncpa [#allocation9 + $0x1], 0  ;;  %s10720_s0 = smov 0   ;;  %s10722_s30 = smov 0  }
   0x8   :  { %s10724_s20 = smov 0   ;;  %s10726_s21 = smov 0  }
   0x9 LB: > { %14423 = sst [smem:[#allocation13_spill]] %s10592_s0  ;;  %s10741_s1 = sadd.s32 4294967295, %s10604_s21   ;;  %s10604_s21 = sphi %s10726_s21, %s14604_s21   ;;  %s10600_s20 = sphi %s10724_s20, %s14606_s20   ;;  %s10596_s30 = sphi %s10722_s30, %s14608_s30   ;;  %s10592_s0 = sphi %s10720_s0, %s14607_s0  }
   0xa   : > { %14424 = sst [smem:[#allocation14_spill]] %s10600_s20  ;;  %s9410_s22 = sadd.s32 4294967294, %s10604_s21  }
   0xb   : > { %14425 = sst [smem:[#allocation15_spill]] %s10604_s21  ;;  %s10745_s2 = sadd.s32 1, %s10604_s21  }
   0xc   : > { %14426 = sst [smem:[#allocation16_spill]] %s10745_s2  ;;  %s422_s23 = sadd.s32 1, %s10600_s20 }
   0xd   : > { %s419_s24 = ssub.s32 %s10604_s21, %s10745_s2  ;;  %p432_p0 = scmp.ne.s32.totalorder %s10600_s20, %s10596_s30 }
   0xe   : > { %p420_p1 = scmp.eq.s32.totalorder %s419_s24, 0  ;;  %p433_p2 = scmp.eq.s32.totalorder %s10741_s1, 1 }
   0xf   : > { %p438_p3 = scmp.ne.s32.totalorder %s10596_s30, %s10592_s0  ;;  %p439_p4 = scmp.eq.s32.totalorder %s9410_s22, 1 }
  0x10   : > { %s10756_s25 = scalar_select %p420_p1, %s10600_s20, %s422_s23  }
  0x11   : > { %p10758_p5 = por %p433_p2, %p432_p0  ;;  %p10762_p6 = por %p439_p4, %p438_p3 }
  0x12   : > { %14427 = sst [smem:[#allocation17_spill]] %s10756_s25  ;;  %p9413_p7 = scmp.ge.s32.totalorder %s10604_s21, 1 }
  0x13   : > { %s14429_s26 = scalar_select %p10762_p6, 1, 0 }
  0x14   : > { %p516_p8 = scmp.lt.s32.totalorder %s10604_s21, 3 }
  0x15   : > { %14430 = sst [smem:[#allocation18_spill]] %s14429_s26 }
  0x16   : > { %p517_p9 = pnand %p9413_p7, %p516_p8 }
  0x18   : > { %520 = sbr.rel (%p517_p9) target bundleno = 3452 (0xd7c), region = 92 }
  0x1f   : > { %p569_p10 = scmp.lt.s32.totalorder %s10741_s1, 1  ;;  %v592_v0 = vld [vmem:[%s14366_s15] sm:$0xf]  ;;  %v594_v1 = vld [vmem:[%s14366_s15 + $0x8] sm:$0xf]  ;;  %v598_v3 = vld [vmem:[%s14366_s15 + $0xc] sm:$0xff]  }
  0x20   : > { %593 = vst [vmem:[#allocation6] sm:$0xf] %v592_v0  ;;  %595 = vst [vmem:[#allocation6 + $0x4] sm:$0xf] %v594_v1  ;;  %v596_v2 = vld [vmem:[%s14366_s15 + $0x4] sm:$0xf] }
  0x21   : > { %v602_v4 = vld [vmem:[%s14366_s15 + $0x18] sm:$0xf]  ;;  %s570_s28 = scalar_select %p569_p10, %s10741_s1, 1  ;;  %597 = vst [vmem:[#allocation6 + $0x8] sm:$0xf] %v596_v2  ;;  %599 = vst [vmem:[#allocation6 + $0xc] sm:$0xff] %v598_v3  }
  0x22   : > { %603 = vst [vmem:[#allocation6 + $0x14] sm:$0xf] %v602_v4  ;;  %v604_v5 = vld [vmem:[%s14366_s15 + $0x14] sm:$0xf]  ;;  %v606_v6 = vld [vmem:[%s14366_s15 + $0x1c] sm:$0xff]   ;;  %v614_v9 = vld [vmem:[%s14366_s15 + $0x2c] sm:$0xff]  }
  0x23   : > { %v610_v7 = vld [vmem:[%s14366_s15 + $0x28] sm:$0xf]  ;;  %605 = vst [vmem:[#allocation6 + $0x18] sm:$0xf] %v604_v5  ;;  %607 = vst [vmem:[#allocation6 + $0x1c] sm:$0xff] %v606_v6   ;;  %s9535_s0 = sshll.u32 %s570_s28, 8 }
  0x24   : > { %611 = vst [vmem:[#allocation6 + $0x24] sm:$0xf] %v610_v7  ;;  %v612_v8 = vld [vmem:[%s14366_s15 + $0x24] sm:$0xf]  ;;  %v618_v10 = vld [vmem:[%s14366_s15 + $0x38] sm:$0xf] }
  0x25   : > { %613 = vst [vmem:[#allocation6 + $0x28] sm:$0xf] %v612_v8  ;;  %615 = vst [vmem:[#allocation6 + $0x2c] sm:$0xff] %v614_v9   ;;  %v620_v11 = vld [vmem:[%s14366_s15 + $0x34] sm:$0xf]  ;;  %v622_v12 = vld [vmem:[%s14366_s15 + $0x3c] sm:$0xff]  }
  0x26   : > { %619 = vst [vmem:[#allocation6 + $0x34] sm:$0xf] %v618_v10  ;;  %v626_v13 = vld [vmem:[%s14366_s15 + $0x48] sm:$0xf]  ;;  %s14431_s29 = sld [smem:[#allocation64_spill]]  ;;  %623 = vst [vmem:[#allocation6 + $0x3c] sm:$0xff] %v622_v12  }
  0x27   : > { %621 = vst [vmem:[#allocation6 + $0x38] sm:$0xf] %v620_v11  ;;  %627 = vst [vmem:[#allocation6 + $0x44] sm:$0xf] %v626_v13  ;;  %v628_v14 = vld [vmem:[%s14366_s15 + $0x44] sm:$0xf] }
  0x28   : > { %v630_v15 = vld [vmem:[%s14366_s15 + $0x4c] sm:$0xff]   ;;  %v634_v16 = vld [vmem:[%s14366_s15 + $0x58] sm:$0xf]  ;;  %629 = vst [vmem:[#allocation6 + $0x48] sm:$0xf] %v628_v14  ;;  %v638_v18 = vld [vmem:[%s14366_s15 + $0x5c] sm:$0xff]  }
  0x29   : > { %631 = vst [vmem:[#allocation6 + $0x4c] sm:$0xff] %v630_v15   ;;  %635 = vst [vmem:[#allocation6 + $0x54] sm:$0xf] %v634_v16  ;;  %v636_v17 = vld [vmem:[%s14366_s15 + $0x54] sm:$0xf]  ;;  %v646_v21 = vld [vmem:[%s14366_s15 + $0x6c] sm:$0xff]  }
  0x2a   : > { %v642_v19 = vld [vmem:[%s14366_s15 + $0x68] sm:$0xf]  ;;  %637 = vst [vmem:[#allocation6 + $0x58] sm:$0xf] %v636_v17  ;;  %639 = vst [vmem:[#allocation6 + $0x5c] sm:$0xff] %v638_v18   ;;  %v654_v24 = vld [vmem:[%s14366_s15 + $0x7c] sm:$0xff]  }
  0x2b   : > { %643 = vst [vmem:[#allocation6 + $0x64] sm:$0xf] %v642_v19  ;;  %v644_v20 = vld [vmem:[%s14366_s15 + $0x64] sm:$0xf]  ;;  %v650_v22 = vld [vmem:[%s14366_s15 + $0x78] sm:$0xf] }
  0x2c   : > { %s10816_s22 = scalar_lea.vmem %s14431_s29, %s9535_s0  ;;  %645 = vst [vmem:[#allocation6 + $0x68] sm:$0xf] %v644_v20  ;;  %647 = vst [vmem:[#allocation6 + $0x6c] sm:$0xff] %v646_v21   ;;  %v652_v23 = vld [vmem:[%s14366_s15 + $0x74] sm:$0xf]  ;;  %v662_v27 = vld [vmem:[%s14366_s15 + $0x8c] sm:$0xff]  }
  0x2d   : > { %651 = vst [vmem:[#allocation6 + $0x74] sm:$0xf] %v650_v22  ;;  %v658_v25 = vld [vmem:[%s14366_s15 + $0x88] sm:$0xf]  ;;  %653 = vst [vmem:[#allocation6 + $0x78] sm:$0xf] %v652_v23 }
  0x2e   : > { %655 = vst [vmem:[#allocation6 + $0x7c] sm:$0xff] %v654_v24   ;;  %659 = vst [vmem:[#allocation6 + $0x84] sm:$0xf] %v658_v25  ;;  %v660_v26 = vld [vmem:[%s14366_s15 + $0x84] sm:$0xf]  ;;  %v670_v30 = vld [vmem:[%s14366_s15 + $0x9c] sm:$0xff]  }
  0x2f   : > { %v666_v28 = vld [vmem:[%s14366_s15 + $0x98] sm:$0xf]  ;;  %661 = vst [vmem:[#allocation6 + $0x88] sm:$0xf] %v660_v26  ;;  %663 = vst [vmem:[#allocation6 + $0x8c] sm:$0xff] %v662_v27   ;;  %v678_v33 = vld [vmem:[%s14366_s15 + $0xac] sm:$0xff]  }
  0x30   : > { %667 = vst [vmem:[#allocation6 + $0x94] sm:$0xf] %v666_v28  ;;  %v668_v29 = vld [vmem:[%s14366_s15 + $0x94] sm:$0xf]  ;;  %v674_v31 = vld [vmem:[%s14366_s15 + $0xa8] sm:$0xf] }
  0x31   : > { %669 = vst [vmem:[#allocation6 + $0x98] sm:$0xf] %v668_v29  ;;  %671 = vst [vmem:[#allocation6 + $0x9c] sm:$0xff] %v670_v30   ;;  %v676_v32 = vld [vmem:[%s14366_s15 + $0xa4] sm:$0xf]  ;;  %v686_v36 = vld [vmem:[%s14366_s15 + $0xbc] sm:$0xff]  }
  0x32   : > { %675 = vst [vmem:[#allocation6 + $0xa4] sm:$0xf] %v674_v31  ;;  %v682_v34 = vld [vmem:[%s14366_s15 + $0xb8] sm:$0xf]  ;;  %677 = vst [vmem:[#allocation6 + $0xa8] sm:$0xf] %v676_v32 }
  0x33   : > { %679 = vst [vmem:[#allocation6 + $0xac] sm:$0xff] %v678_v33   ;;  %683 = vst [vmem:[#allocation6 + $0xb4] sm:$0xf] %v682_v34  ;;  %v684_v35 = vld [vmem:[%s14366_s15 + $0xb4] sm:$0xf]  ;;  %v694_v39 = vld [vmem:[%s14366_s15 + $0xcc] sm:$0xff]  }
  0x34   : > { %v690_v37 = vld [vmem:[%s14366_s15 + $0xc8] sm:$0xf]  ;;  %685 = vst [vmem:[#allocation6 + $0xb8] sm:$0xf] %v684_v35  ;;  %687 = vst [vmem:[#allocation6 + $0xbc] sm:$0xff] %v686_v36   ;;  %v702_v42 = vld [vmem:[%s14366_s15 + $0xdc] sm:$0xff]  }
  0x35   : > { %691 = vst [vmem:[#allocation6 + $0xc4] sm:$0xf] %v690_v37  ;;  %v692_v38 = vld [vmem:[%s14366_s15 + $0xc4] sm:$0xf]  ;;  %v698_v40 = vld [vmem:[%s14366_s15 + $0xd8] sm:$0xf] }
  0x36   : > { %693 = vst [vmem:[#allocation6 + $0xc8] sm:$0xf] %v692_v38  ;;  %695 = vst [vmem:[#allocation6 + $0xcc] sm:$0xff] %v694_v39   ;;  %v700_v41 = vld [vmem:[%s14366_s15 + $0xd4] sm:$0xf]  ;;  %v710_v45 = vld [vmem:[%s14366_s15 + $0xec] sm:$0xff]  }
  0x37   : > { %699 = vst [vmem:[#allocation6 + $0xd4] sm:$0xf] %v698_v40  ;;  %v706_v43 = vld [vmem:[%s14366_s15 + $0xe8] sm:$0xf]  ;;  %701 = vst [vmem:[#allocation6 + $0xd8] sm:$0xf] %v700_v41 }
  0x38   : > { %703 = vst [vmem:[#allocation6 + $0xdc] sm:$0xff] %v702_v42   ;;  %707 = vst [vmem:[#allocation6 + $0xe4] sm:$0xf] %v706_v43  ;;  %v708_v44 = vld [vmem:[%s14366_s15 + $0xe4] sm:$0xf]  ;;  %v718_v48 = vld [vmem:[%s14366_s15 + $0xfc] sm:$0xff]  }
  0x39   : > { %v714_v46 = vld [vmem:[%s14366_s15 + $0xf8] sm:$0xf]  ;;  %709 = vst [vmem:[#allocation6 + $0xe8] sm:$0xf] %v708_v44  ;;  %711 = vst [vmem:[#allocation6 + $0xec] sm:$0xff] %v710_v45   ;;  %v726_v51 = vld [vmem:[%s14366_s15 + $0x10c] sm:$0xff]  }
  0x3a   : > { %715 = vst [vmem:[#allocation6 + $0xf4] sm:$0xf] %v714_v46  ;;  %v716_v47 = vld [vmem:[%s14366_s15 + $0xf4] sm:$0xf]  ;;  %v722_v49 = vld [vmem:[%s14366_s15 + $0x108] sm:$0xf] }
  0x3b   : > { %717 = vst [vmem:[#allocation6 + $0xf8] sm:$0xf] %v716_v47  ;;  %719 = vst [vmem:[#allocation6 + $0xfc] sm:$0xff] %v718_v48   ;;  %v724_v50 = vld [vmem:[%s14366_s15 + $0x104] sm:$0xf]  ;;  %v734_v54 = vld [vmem:[%s14366_s15 + $0x11c] sm:$0xff]  }
  0x3c   : > { %723 = vst [vmem:[#allocation6 + $0x104] sm:$0xf] %v722_v49  ;;  %v730_v52 = vld [vmem:[%s14366_s15 + $0x118] sm:$0xf]  ;;  %725 = vst [vmem:[#allocation6 + $0x108] sm:$0xf] %v724_v50 }
  0x3d   : > { %727 = vst [vmem:[#allocation6 + $0x10c] sm:$0xff] %v726_v51   ;;  %731 = vst [vmem:[#allocation6 + $0x114] sm:$0xf] %v730_v52  ;;  %v732_v53 = vld [vmem:[%s14366_s15 + $0x114] sm:$0xf]  ;;  %v742_v57 = vld [vmem:[%s14366_s15 + $0x12c] sm:$0xff]  }
  0x3e   : > { %v738_v55 = vld [vmem:[%s14366_s15 + $0x128] sm:$0xf]  ;;  %733 = vst [vmem:[#allocation6 + $0x118] sm:$0xf] %v732_v53  ;;  %735 = vst [vmem:[#allocation6 + $0x11c] sm:$0xff] %v734_v54   ;;  %v750_v60 = vld [vmem:[%s14366_s15 + $0x13c] sm:$0xff]  }
  0x3f   : > { %739 = vst [vmem:[#allocation6 + $0x124] sm:$0xf] %v738_v55  ;;  %v740_v56 = vld [vmem:[%s14366_s15 + $0x124] sm:$0xf]  ;;  %v746_v58 = vld [vmem:[%s14366_s15 + $0x138] sm:$0xf] }
  0x40   : > { %741 = vst [vmem:[#allocation6 + $0x128] sm:$0xf] %v740_v56  ;;  %743 = vst [vmem:[#allocation6 + $0x12c] sm:$0xff] %v742_v57   ;;  %v748_v59 = vld [vmem:[%s14366_s15 + $0x134] sm:$0xf]  ;;  %v758_v63 = vld [vmem:[%s14366_s15 + $0x14c] sm:$0xff]  }
  0x41   : > { %747 = vst [vmem:[#allocation6 + $0x134] sm:$0xf] %v746_v58  ;;  %v754_v61 = vld [vmem:[%s14366_s15 + $0x148] sm:$0xf]  ;;  %749 = vst [vmem:[#allocation6 + $0x138] sm:$0xf] %v748_v59 }
  0x42   : > { %751 = vst [vmem:[#allocation6 + $0x13c] sm:$0xff] %v750_v60   ;;  %755 = vst [vmem:[#allocation6 + $0x144] sm:$0xf] %v754_v61  ;;  %v756_v62 = vld [vmem:[%s14366_s15 + $0x144] sm:$0xf]  ;;  %v766_v2 = vld [vmem:[%s14366_s15 + $0x15c] sm:$0xff]  }
  0x43   : > { %v762_v0 = vld [vmem:[%s14366_s15 + $0x158] sm:$0xf]  ;;  %757 = vst [vmem:[#allocation6 + $0x148] sm:$0xf] %v756_v62  ;;  %759 = vst [vmem:[#allocation6 + $0x14c] sm:$0xff] %v758_v63   ;;  %v774_v5 = vld [vmem:[%s14366_s15 + $0x16c] sm:$0xff]  }
  0x44   : > { %763 = vst [vmem:[#allocation6 + $0x154] sm:$0xf] %v762_v0  ;;  %v764_v1 = vld [vmem:[%s14366_s15 + $0x154] sm:$0xf]  ;;  %v770_v3 = vld [vmem:[%s14366_s15 + $0x168] sm:$0xf] }
  0x45   : > { %765 = vst [vmem:[#allocation6 + $0x158] sm:$0xf] %v764_v1  ;;  %767 = vst [vmem:[#allocation6 + $0x15c] sm:$0xff] %v766_v2   ;;  %v772_v4 = vld [vmem:[%s14366_s15 + $0x164] sm:$0xf]  ;;  %v782_v8 = vld [vmem:[%s14366_s15 + $0x17c] sm:$0xff]  }
  0x46   : > { %771 = vst [vmem:[#allocation6 + $0x164] sm:$0xf] %v770_v3  ;;  %v778_v6 = vld [vmem:[%s14366_s15 + $0x178] sm:$0xf]  ;;  %773 = vst [vmem:[#allocation6 + $0x168] sm:$0xf] %v772_v4 }
  0x47   : > { %775 = vst [vmem:[#allocation6 + $0x16c] sm:$0xff] %v774_v5   ;;  %779 = vst [vmem:[#allocation6 + $0x174] sm:$0xf] %v778_v6  ;;  %v780_v7 = vld [vmem:[%s14366_s15 + $0x174] sm:$0xf]  ;;  %v790_v11 = vld [vmem:[%s14366_s15 + $0x18c] sm:$0xff]  }
  0x48   : > { %v786_v9 = vld [vmem:[%s14366_s15 + $0x188] sm:$0xf]  ;;  %781 = vst [vmem:[#allocation6 + $0x178] sm:$0xf] %v780_v7  ;;  %783 = vst [vmem:[#allocation6 + $0x17c] sm:$0xff] %v782_v8   ;;  %v798_v14 = vld [vmem:[%s14366_s15 + $0x19c] sm:$0xff]  }
  0x49   : > { %787 = vst [vmem:[#allocation6 + $0x184] sm:$0xf] %v786_v9  ;;  %v788_v10 = vld [vmem:[%s14366_s15 + $0x184] sm:$0xf]  ;;  %v794_v12 = vld [vmem:[%s14366_s15 + $0x198] sm:$0xf] }
  0x4a   : > { %789 = vst [vmem:[#allocation6 + $0x188] sm:$0xf] %v788_v10  ;;  %791 = vst [vmem:[#allocation6 + $0x18c] sm:$0xff] %v790_v11   ;;  %v796_v13 = vld [vmem:[%s14366_s15 + $0x194] sm:$0xf]  ;;  %v806_v17 = vld [vmem:[%s14366_s15 + $0x1ac] sm:$0xff]  }
  0x4b   : > { %795 = vst [vmem:[#allocation6 + $0x194] sm:$0xf] %v794_v12  ;;  %v802_v15 = vld [vmem:[%s14366_s15 + $0x1a8] sm:$0xf]  ;;  %797 = vst [vmem:[#allocation6 + $0x198] sm:$0xf] %v796_v13 }
  0x4c   : > { %799 = vst [vmem:[#allocation6 + $0x19c] sm:$0xff] %v798_v14   ;;  %803 = vst [vmem:[#allocation6 + $0x1a4] sm:$0xf] %v802_v15  ;;  %v804_v16 = vld [vmem:[%s14366_s15 + $0x1a4] sm:$0xf]  ;;  %v814_v20 = vld [vmem:[%s14366_s15 + $0x1bc] sm:$0xff]  }
  0x4d   : > { %v810_v18 = vld [vmem:[%s14366_s15 + $0x1b8] sm:$0xf]  ;;  %805 = vst [vmem:[#allocation6 + $0x1a8] sm:$0xf] %v804_v16  ;;  %807 = vst [vmem:[#allocation6 + $0x1ac] sm:$0xff] %v806_v17   ;;  %v822_v23 = vld [vmem:[%s14366_s15 + $0x1cc] sm:$0xff]  }
  0x4e   : > { %811 = vst [vmem:[#allocation6 + $0x1b4] sm:$0xf] %v810_v18  ;;  %v812_v19 = vld [vmem:[%s14366_s15 + $0x1b4] sm:$0xf]  ;;  %v818_v21 = vld [vmem:[%s14366_s15 + $0x1c8] sm:$0xf] }
  0x4f   : > { %813 = vst [vmem:[#allocation6 + $0x1b8] sm:$0xf] %v812_v19  ;;  %815 = vst [vmem:[#allocation6 + $0x1bc] sm:$0xff] %v814_v20   ;;  %v820_v22 = vld [vmem:[%s14366_s15 + $0x1c4] sm:$0xf]  ;;  %v830_v26 = vld [vmem:[%s14366_s15 + $0x1dc] sm:$0xff]  }
  0x50   : > { %819 = vst [vmem:[#allocation6 + $0x1c4] sm:$0xf] %v818_v21  ;;  %v826_v24 = vld [vmem:[%s14366_s15 + $0x1d8] sm:$0xf]  ;;  %821 = vst [vmem:[#allocation6 + $0x1c8] sm:$0xf] %v820_v22 }
  0x51   : > { %823 = vst [vmem:[#allocation6 + $0x1cc] sm:$0xff] %v822_v23   ;;  %827 = vst [vmem:[#allocation6 + $0x1d4] sm:$0xf] %v826_v24  ;;  %v828_v25 = vld [vmem:[%s14366_s15 + $0x1d4] sm:$0xf]  ;;  %v838_v29 = vld [vmem:[%s14366_s15 + $0x1ec] sm:$0xff]  }
  0x52   : > { %v834_v27 = vld [vmem:[%s14366_s15 + $0x1e8] sm:$0xf]  ;;  %829 = vst [vmem:[#allocation6 + $0x1d8] sm:$0xf] %v828_v25  ;;  %831 = vst [vmem:[#allocation6 + $0x1dc] sm:$0xff] %v830_v26   ;;  %v846_v32 = vld [vmem:[%s14366_s15 + $0x1fc] sm:$0xff]  }
  0x53   : > { %835 = vst [vmem:[#allocation6 + $0x1e4] sm:$0xf] %v834_v27  ;;  %v836_v28 = vld [vmem:[%s14366_s15 + $0x1e4] sm:$0xf]  ;;  %v842_v30 = vld [vmem:[%s14366_s15 + $0x1f8] sm:$0xf] }
  0x54   : > { %837 = vst [vmem:[#allocation6 + $0x1e8] sm:$0xf] %v836_v28  ;;  %839 = vst [vmem:[#allocation6 + $0x1ec] sm:$0xff] %v838_v29   ;;  %v844_v31 = vld [vmem:[%s14366_s15 + $0x1f4] sm:$0xf]  ;;  %v854_v35 = vld [vmem:[%s14366_s15 + $0x20c] sm:$0xff]  }
  0x55   : > { %843 = vst [vmem:[#allocation6 + $0x1f4] sm:$0xf] %v842_v30  ;;  %v850_v33 = vld [vmem:[%s14366_s15 + $0x208] sm:$0xf]  ;;  %845 = vst [vmem:[#allocation6 + $0x1f8] sm:$0xf] %v844_v31 }
  0x56   : > { %847 = vst [vmem:[#allocation6 + $0x1fc] sm:$0xff] %v846_v32   ;;  %851 = vst [vmem:[#allocation6 + $0x204] sm:$0xf] %v850_v33  ;;  %v852_v34 = vld [vmem:[%s14366_s15 + $0x204] sm:$0xf]  ;;  %v862_v38 = vld [vmem:[%s14366_s15 + $0x21c] sm:$0xff]  }
  0x57   : > { %v858_v36 = vld [vmem:[%s14366_s15 + $0x218] sm:$0xf]  ;;  %853 = vst [vmem:[#allocation6 + $0x208] sm:$0xf] %v852_v34  ;;  %855 = vst [vmem:[#allocation6 + $0x20c] sm:$0xff] %v854_v35   ;;  %v870_v41 = vld [vmem:[%s14366_s15 + $0x22c] sm:$0xff]  }
  0x58   : > { %859 = vst [vmem:[#allocation6 + $0x214] sm:$0xf] %v858_v36  ;;  %v860_v37 = vld [vmem:[%s14366_s15 + $0x214] sm:$0xf]  ;;  %v866_v39 = vld [vmem:[%s14366_s15 + $0x228] sm:$0xf] }
  0x59   : > { %861 = vst [vmem:[#allocation6 + $0x218] sm:$0xf] %v860_v37  ;;  %863 = vst [vmem:[#allocation6 + $0x21c] sm:$0xff] %v862_v38   ;;  %v868_v40 = vld [vmem:[%s14366_s15 + $0x224] sm:$0xf]  ;;  %v878_v44 = vld [vmem:[%s14366_s15 + $0x23c] sm:$0xff]  }
  0x5a   : > { %867 = vst [vmem:[#allocation6 + $0x224] sm:$0xf] %v866_v39  ;;  %v874_v42 = vld [vmem:[%s14366_s15 + $0x238] sm:$0xf]  ;;  %869 = vst [vmem:[#allocation6 + $0x228] sm:$0xf] %v868_v40 }
  0x5b   : > { %871 = vst [vmem:[#allocation6 + $0x22c] sm:$0xff] %v870_v41   ;;  %875 = vst [vmem:[#allocation6 + $0x234] sm:$0xf] %v874_v42  ;;  %v876_v43 = vld [vmem:[%s14366_s15 + $0x234] sm:$0xf]  ;;  %v886_v47 = vld [vmem:[%s14366_s15 + $0x24c] sm:$0xff]  }
  0x5c   : > { %v882_v45 = vld [vmem:[%s14366_s15 + $0x248] sm:$0xf]  ;;  %877 = vst [vmem:[#allocation6 + $0x238] sm:$0xf] %v876_v43  ;;  %879 = vst [vmem:[#allocation6 + $0x23c] sm:$0xff] %v878_v44   ;;  %v894_v50 = vld [vmem:[%s14366_s15 + $0x25c] sm:$0xff]  }
  0x5d   : > { %883 = vst [vmem:[#allocation6 + $0x244] sm:$0xf] %v882_v45  ;;  %v884_v46 = vld [vmem:[%s14366_s15 + $0x244] sm:$0xf]  ;;  %v890_v48 = vld [vmem:[%s14366_s15 + $0x258] sm:$0xf] }
  0x5e   : > { %885 = vst [vmem:[#allocation6 + $0x248] sm:$0xf] %v884_v46  ;;  %887 = vst [vmem:[#allocation6 + $0x24c] sm:$0xff] %v886_v47   ;;  %v892_v49 = vld [vmem:[%s14366_s15 + $0x254] sm:$0xf]  ;;  %v902_v53 = vld [vmem:[%s14366_s15 + $0x26c] sm:$0xff]  }
  0x5f   : > { %891 = vst [vmem:[#allocation6 + $0x254] sm:$0xf] %v890_v48  ;;  %v898_v51 = vld [vmem:[%s14366_s15 + $0x268] sm:$0xf]  ;;  %893 = vst [vmem:[#allocation6 + $0x258] sm:$0xf] %v892_v49 }
  0x60   : > { %895 = vst [vmem:[#allocation6 + $0x25c] sm:$0xff] %v894_v50   ;;  %899 = vst [vmem:[#allocation6 + $0x264] sm:$0xf] %v898_v51  ;;  %v900_v52 = vld [vmem:[%s14366_s15 + $0x264] sm:$0xf]  ;;  %v910_v56 = vld [vmem:[%s14366_s15 + $0x27c] sm:$0xff]  }
  0x61   : > { %v906_v54 = vld [vmem:[%s14366_s15 + $0x278] sm:$0xf]  ;;  %901 = vst [vmem:[#allocation6 + $0x268] sm:$0xf] %v900_v52  ;;  %903 = vst [vmem:[#allocation6 + $0x26c] sm:$0xff] %v902_v53   ;;  %v918_v59 = vld [vmem:[%s14366_s15 + $0x28c] sm:$0xff]  }
  0x62   : > { %907 = vst [vmem:[#allocation6 + $0x274] sm:$0xf] %v906_v54  ;;  %v908_v55 = vld [vmem:[%s14366_s15 + $0x274] sm:$0xf]  ;;  %v914_v57 = vld [vmem:[%s14366_s15 + $0x288] sm:$0xf] }
  0x63   : > { %909 = vst [vmem:[#allocation6 + $0x278] sm:$0xf] %v908_v55  ;;  %911 = vst [vmem:[#allocation6 + $0x27c] sm:$0xff] %v910_v56   ;;  %v916_v58 = vld [vmem:[%s14366_s15 + $0x284] sm:$0xf]  ;;  %v926_v62 = vld [vmem:[%s14366_s15 + $0x29c] sm:$0xff]  }
  0x64   : > { %915 = vst [vmem:[#allocation6 + $0x284] sm:$0xf] %v914_v57  ;;  %v922_v60 = vld [vmem:[%s14366_s15 + $0x298] sm:$0xf]  ;;  %917 = vst [vmem:[#allocation6 + $0x288] sm:$0xf] %v916_v58 }
  0x65   : > { %919 = vst [vmem:[#allocation6 + $0x28c] sm:$0xff] %v918_v59   ;;  %923 = vst [vmem:[#allocation6 + $0x294] sm:$0xf] %v922_v60  ;;  %v924_v61 = vld [vmem:[%s14366_s15 + $0x294] sm:$0xf]  ;;  %v934_v1 = vld [vmem:[%s14366_s15 + $0x2ac] sm:$0xff]  }
  0x66   : > { %v930_v63 = vld [vmem:[%s14366_s15 + $0x2a8] sm:$0xf]  ;;  %925 = vst [vmem:[#allocation6 + $0x298] sm:$0xf] %v924_v61  ;;  %927 = vst [vmem:[#allocation6 + $0x29c] sm:$0xff] %v926_v62   ;;  %v942_v4 = vld [vmem:[%s14366_s15 + $0x2bc] sm:$0xff]  }
  0x67   : > { %931 = vst [vmem:[#allocation6 + $0x2a4] sm:$0xf] %v930_v63  ;;  %v932_v0 = vld [vmem:[%s14366_s15 + $0x2a4] sm:$0xf]  ;;  %v938_v2 = vld [vmem:[%s14366_s15 + $0x2b8] sm:$0xf] }
  0x68   : > { %933 = vst [vmem:[#allocation6 + $0x2a8] sm:$0xf] %v932_v0  ;;  %935 = vst [vmem:[#allocation6 + $0x2ac] sm:$0xff] %v934_v1   ;;  %v940_v3 = vld [vmem:[%s14366_s15 + $0x2b4] sm:$0xf]  ;;  %v950_v7 = vld [vmem:[%s14366_s15 + $0x2cc] sm:$0xff]  }
  0x69   : > { %939 = vst [vmem:[#allocation6 + $0x2b4] sm:$0xf] %v938_v2  ;;  %v946_v5 = vld [vmem:[%s14366_s15 + $0x2c8] sm:$0xf]  ;;  %941 = vst [vmem:[#allocation6 + $0x2b8] sm:$0xf] %v940_v3 }
  0x6a   : > { %943 = vst [vmem:[#allocation6 + $0x2bc] sm:$0xff] %v942_v4   ;;  %947 = vst [vmem:[#allocation6 + $0x2c4] sm:$0xf] %v946_v5  ;;  %v948_v6 = vld [vmem:[%s14366_s15 + $0x2c4] sm:$0xf]  ;;  %v958_v10 = vld [vmem:[%s14366_s15 + $0x2dc] sm:$0xff]  }
  0x6b   : > { %v954_v8 = vld [vmem:[%s14366_s15 + $0x2d8] sm:$0xf]  ;;  %949 = vst [vmem:[#allocation6 + $0x2c8] sm:$0xf] %v948_v6  ;;  %951 = vst [vmem:[#allocation6 + $0x2cc] sm:$0xff] %v950_v7   ;;  %v966_v13 = vld [vmem:[%s14366_s15 + $0x2ec] sm:$0xff]  }
  0x6c   : > { %955 = vst [vmem:[#allocation6 + $0x2d4] sm:$0xf] %v954_v8  ;;  %v956_v9 = vld [vmem:[%s14366_s15 + $0x2d4] sm:$0xf]  ;;  %v962_v11 = vld [vmem:[%s14366_s15 + $0x2e8] sm:$0xf] }
  0x6d   : > { %957 = vst [vmem:[#allocation6 + $0x2d8] sm:$0xf] %v956_v9  ;;  %959 = vst [vmem:[#allocation6 + $0x2dc] sm:$0xff] %v958_v10   ;;  %v964_v12 = vld [vmem:[%s14366_s15 + $0x2e4] sm:$0xf]  ;;  %v974_v16 = vld [vmem:[%s14366_s15 + $0x2fc] sm:$0xff]  }
  0x6e   : > { %963 = vst [vmem:[#allocation6 + $0x2e4] sm:$0xf] %v962_v11  ;;  %v970_v14 = vld [vmem:[%s14366_s15 + $0x2f8] sm:$0xf]  ;;  %965 = vst [vmem:[#allocation6 + $0x2e8] sm:$0xf] %v964_v12 }
  0x6f   : > { %967 = vst [vmem:[#allocation6 + $0x2ec] sm:$0xff] %v966_v13   ;;  %971 = vst [vmem:[#allocation6 + $0x2f4] sm:$0xf] %v970_v14  ;;  %v972_v15 = vld [vmem:[%s14366_s15 + $0x2f4] sm:$0xf]  ;;  %v982_v19 = vld [vmem:[%s14366_s15 + $0x30c] sm:$0xff]  }
  0x70   : > { %v978_v17 = vld [vmem:[%s14366_s15 + $0x308] sm:$0xf]  ;;  %973 = vst [vmem:[#allocation6 + $0x2f8] sm:$0xf] %v972_v15  ;;  %975 = vst [vmem:[#allocation6 + $0x2fc] sm:$0xff] %v974_v16   ;;  %v990_v22 = vld [vmem:[%s14366_s15 + $0x31c] sm:$0xff]  }
  0x71   : > { %979 = vst [vmem:[#allocation6 + $0x304] sm:$0xf] %v978_v17  ;;  %v980_v18 = vld [vmem:[%s14366_s15 + $0x304] sm:$0xf]  ;;  %v986_v20 = vld [vmem:[%s14366_s15 + $0x318] sm:$0xf] }
  0x72   : > { %981 = vst [vmem:[#allocation6 + $0x308] sm:$0xf] %v980_v18  ;;  %983 = vst [vmem:[#allocation6 + $0x30c] sm:$0xff] %v982_v19   ;;  %v988_v21 = vld [vmem:[%s14366_s15 + $0x314] sm:$0xf]  ;;  %v998_v25 = vld [vmem:[%s14366_s15 + $0x32c] sm:$0xff]  }
  0x73   : > { %987 = vst [vmem:[#allocation6 + $0x314] sm:$0xf] %v986_v20  ;;  %v994_v23 = vld [vmem:[%s14366_s15 + $0x328] sm:$0xf]  ;;  %989 = vst [vmem:[#allocation6 + $0x318] sm:$0xf] %v988_v21 }
  0x74   : > { %991 = vst [vmem:[#allocation6 + $0x31c] sm:$0xff] %v990_v22   ;;  %995 = vst [vmem:[#allocation6 + $0x324] sm:$0xf] %v994_v23  ;;  %v996_v24 = vld [vmem:[%s14366_s15 + $0x324] sm:$0xf]  ;;  %v1006_v28 = vld [vmem:[%s14366_s15 + $0x33c] sm:$0xff]  }
  0x75   : > { %v1002_v26 = vld [vmem:[%s14366_s15 + $0x338] sm:$0xf]  ;;  %997 = vst [vmem:[#allocation6 + $0x328] sm:$0xf] %v996_v24  ;;  %999 = vst [vmem:[#allocation6 + $0x32c] sm:$0xff] %v998_v25   ;;  %v1014_v31 = vld [vmem:[%s14366_s15 + $0x34c] sm:$0xff]  }
  0x76   : > { %1003 = vst [vmem:[#allocation6 + $0x334] sm:$0xf] %v1002_v26  ;;  %v1004_v27 = vld [vmem:[%s14366_s15 + $0x334] sm:$0xf]  ;;  %v1010_v29 = vld [vmem:[%s14366_s15 + $0x348] sm:$0xf] }
  0x77   : > { %1005 = vst [vmem:[#allocation6 + $0x338] sm:$0xf] %v1004_v27  ;;  %1007 = vst [vmem:[#allocation6 + $0x33c] sm:$0xff] %v1006_v28   ;;  %v1012_v30 = vld [vmem:[%s14366_s15 + $0x344] sm:$0xf]  ;;  %v1022_v34 = vld [vmem:[%s14366_s15 + $0x35c] sm:$0xff]  }
  0x78   : > { %1011 = vst [vmem:[#allocation6 + $0x344] sm:$0xf] %v1010_v29  ;;  %v1018_v32 = vld [vmem:[%s14366_s15 + $0x358] sm:$0xf]  ;;  %1013 = vst [vmem:[#allocation6 + $0x348] sm:$0xf] %v1012_v30 }
  0x79   : > { %1015 = vst [vmem:[#allocation6 + $0x34c] sm:$0xff] %v1014_v31   ;;  %1019 = vst [vmem:[#allocation6 + $0x354] sm:$0xf] %v1018_v32  ;;  %v1020_v33 = vld [vmem:[%s14366_s15 + $0x354] sm:$0xf]  ;;  %v1030_v37 = vld [vmem:[%s14366_s15 + $0x36c] sm:$0xff]  }
  0x7a   : > { %v1026_v35 = vld [vmem:[%s14366_s15 + $0x368] sm:$0xf]  ;;  %1021 = vst [vmem:[#allocation6 + $0x358] sm:$0xf] %v1020_v33  ;;  %1023 = vst [vmem:[#allocation6 + $0x35c] sm:$0xff] %v1022_v34   ;;  %v1038_v40 = vld [vmem:[%s14366_s15 + $0x37c] sm:$0xff]  }
  0x7b   : > { %1027 = vst [vmem:[#allocation6 + $0x364] sm:$0xf] %v1026_v35  ;;  %v1028_v36 = vld [vmem:[%s14366_s15 + $0x364] sm:$0xf]  ;;  %v1034_v38 = vld [vmem:[%s14366_s15 + $0x378] sm:$0xf] }
  0x7c   : > { %1029 = vst [vmem:[#allocation6 + $0x368] sm:$0xf] %v1028_v36  ;;  %1031 = vst [vmem:[#allocation6 + $0x36c] sm:$0xff] %v1030_v37   ;;  %v1036_v39 = vld [vmem:[%s14366_s15 + $0x374] sm:$0xf]  ;;  %v1046_v43 = vld [vmem:[%s14366_s15 + $0x38c] sm:$0xff]  }
  0x7d   : > { %1035 = vst [vmem:[#allocation6 + $0x374] sm:$0xf] %v1034_v38  ;;  %v1042_v41 = vld [vmem:[%s14366_s15 + $0x388] sm:$0xf]  ;;  %1037 = vst [vmem:[#allocation6 + $0x378] sm:$0xf] %v1036_v39 }
  0x7e   : > { %1039 = vst [vmem:[#allocation6 + $0x37c] sm:$0xff] %v1038_v40   ;;  %1043 = vst [vmem:[#allocation6 + $0x384] sm:$0xf] %v1042_v41  ;;  %v1044_v42 = vld [vmem:[%s14366_s15 + $0x384] sm:$0xf]  ;;  %v1054_v46 = vld [vmem:[%s14366_s15 + $0x39c] sm:$0xff]  }
  0x7f   : > { %v1050_v44 = vld [vmem:[%s14366_s15 + $0x398] sm:$0xf]  ;;  %1045 = vst [vmem:[#allocation6 + $0x388] sm:$0xf] %v1044_v42  ;;  %1047 = vst [vmem:[#allocation6 + $0x38c] sm:$0xff] %v1046_v43   ;;  %v1062_v49 = vld [vmem:[%s14366_s15 + $0x3ac] sm:$0xff]  }
  0x80   : > { %1051 = vst [vmem:[#allocation6 + $0x394] sm:$0xf] %v1050_v44  ;;  %v1052_v45 = vld [vmem:[%s14366_s15 + $0x394] sm:$0xf]  ;;  %v1058_v47 = vld [vmem:[%s14366_s15 + $0x3a8] sm:$0xf] }
  0x81   : > { %1053 = vst [vmem:[#allocation6 + $0x398] sm:$0xf] %v1052_v45  ;;  %1055 = vst [vmem:[#allocation6 + $0x39c] sm:$0xff] %v1054_v46   ;;  %v1060_v48 = vld [vmem:[%s14366_s15 + $0x3a4] sm:$0xf]  ;;  %v1070_v52 = vld [vmem:[%s14366_s15 + $0x3bc] sm:$0xff]  }
  0x82   : > { %1059 = vst [vmem:[#allocation6 + $0x3a4] sm:$0xf] %v1058_v47  ;;  %v1066_v50 = vld [vmem:[%s14366_s15 + $0x3b8] sm:$0xf]  ;;  %1061 = vst [vmem:[#allocation6 + $0x3a8] sm:$0xf] %v1060_v48 }
  0x83   : > { %1063 = vst [vmem:[#allocation6 + $0x3ac] sm:$0xff] %v1062_v49   ;;  %1067 = vst [vmem:[#allocation6 + $0x3b4] sm:$0xf] %v1066_v50  ;;  %v1068_v51 = vld [vmem:[%s14366_s15 + $0x3b4] sm:$0xf]  ;;  %v1078_v55 = vld [vmem:[%s14366_s15 + $0x3cc] sm:$0xff]  }
  0x84   : > { %v1074_v53 = vld [vmem:[%s14366_s15 + $0x3c8] sm:$0xf]  ;;  %1069 = vst [vmem:[#allocation6 + $0x3b8] sm:$0xf] %v1068_v51  ;;  %1071 = vst [vmem:[#allocation6 + $0x3bc] sm:$0xff] %v1070_v52   ;;  %v1086_v58 = vld [vmem:[%s14366_s15 + $0x3dc] sm:$0xff]  }
  0x85   : > { %1075 = vst [vmem:[#allocation6 + $0x3c4] sm:$0xf] %v1074_v53  ;;  %v1076_v54 = vld [vmem:[%s14366_s15 + $0x3c4] sm:$0xf]  ;;  %v1082_v56 = vld [vmem:[%s14366_s15 + $0x3d8] sm:$0xf] }
  0x86   : > { %1077 = vst [vmem:[#allocation6 + $0x3c8] sm:$0xf] %v1076_v54  ;;  %1079 = vst [vmem:[#allocation6 + $0x3cc] sm:$0xff] %v1078_v55   ;;  %v1084_v57 = vld [vmem:[%s14366_s15 + $0x3d4] sm:$0xf]  ;;  %v1094_v61 = vld [vmem:[%s14366_s15 + $0x3ec] sm:$0xff]  }
  0x87   : > { %1083 = vst [vmem:[#allocation6 + $0x3d4] sm:$0xf] %v1082_v56  ;;  %v1090_v59 = vld [vmem:[%s14366_s15 + $0x3e8] sm:$0xf]  ;;  %1085 = vst [vmem:[#allocation6 + $0x3d8] sm:$0xf] %v1084_v57 }
  0x88   : > { %1087 = vst [vmem:[#allocation6 + $0x3dc] sm:$0xff] %v1086_v58   ;;  %1091 = vst [vmem:[#allocation6 + $0x3e4] sm:$0xf] %v1090_v59  ;;  %v1092_v60 = vld [vmem:[%s14366_s15 + $0x3e4] sm:$0xf]  ;;  %v1102_v0 = vld [vmem:[%s14366_s15 + $0x3fc] sm:$0xff]  }
  0x89   : > { %v1098_v62 = vld [vmem:[%s14366_s15 + $0x3f8] sm:$0xf]  ;;  %1093 = vst [vmem:[#allocation6 + $0x3e8] sm:$0xf] %v1092_v60  ;;  %1095 = vst [vmem:[#allocation6 + $0x3ec] sm:$0xff] %v1094_v61   ;;  %v1110_v3 = vld [vmem:[%s14366_s15 + $0x40c] sm:$0xff]  }
  0x8a   : > { %1099 = vst [vmem:[#allocation6 + $0x3f4] sm:$0xf] %v1098_v62  ;;  %v1100_v63 = vld [vmem:[%s14366_s15 + $0x3f4] sm:$0xf]  ;;  %v1106_v1 = vld [vmem:[%s14366_s15 + $0x408] sm:$0xf] }
  0x8b   : > { %1101 = vst [vmem:[#allocation6 + $0x3f8] sm:$0xf] %v1100_v63  ;;  %1103 = vst [vmem:[#allocation6 + $0x3fc] sm:$0xff] %v1102_v0   ;;  %v1108_v2 = vld [vmem:[%s14366_s15 + $0x404] sm:$0xf]  ;;  %v1118_v6 = vld [vmem:[%s14366_s15 + $0x41c] sm:$0xff]  }
  0x8c   : > { %1107 = vst [vmem:[#allocation6 + $0x404] sm:$0xf] %v1106_v1  ;;  %v1114_v4 = vld [vmem:[%s14366_s15 + $0x418] sm:$0xf]  ;;  %1109 = vst [vmem:[#allocation6 + $0x408] sm:$0xf] %v1108_v2 }
  0x8d   : > { %1111 = vst [vmem:[#allocation6 + $0x40c] sm:$0xff] %v1110_v3   ;;  %1115 = vst [vmem:[#allocation6 + $0x414] sm:$0xf] %v1114_v4  ;;  %v1116_v5 = vld [vmem:[%s14366_s15 + $0x414] sm:$0xf]  ;;  %v1126_v9 = vld [vmem:[%s14366_s15 + $0x42c] sm:$0xff]  }
  0x8e   : > { %v1122_v7 = vld [vmem:[%s14366_s15 + $0x428] sm:$0xf]  ;;  %1117 = vst [vmem:[#allocation6 + $0x418] sm:$0xf] %v1116_v5  ;;  %1119 = vst [vmem:[#allocation6 + $0x41c] sm:$0xff] %v1118_v6   ;;  %v1134_v12 = vld [vmem:[%s14366_s15 + $0x43c] sm:$0xff]  }
  0x8f   : > { %1123 = vst [vmem:[#allocation6 + $0x424] sm:$0xf] %v1122_v7  ;;  %v1124_v8 = vld [vmem:[%s14366_s15 + $0x424] sm:$0xf]  ;;  %v1130_v10 = vld [vmem:[%s14366_s15 + $0x438] sm:$0xf] }
  0x90   : > { %1125 = vst [vmem:[#allocation6 + $0x428] sm:$0xf] %v1124_v8  ;;  %1127 = vst [vmem:[#allocation6 + $0x42c] sm:$0xff] %v1126_v9   ;;  %v1132_v11 = vld [vmem:[%s14366_s15 + $0x434] sm:$0xf]  ;;  %v1142_v15 = vld [vmem:[%s14366_s15 + $0x44c] sm:$0xff]  }
  0x91   : > { %1131 = vst [vmem:[#allocation6 + $0x434] sm:$0xf] %v1130_v10  ;;  %v1138_v13 = vld [vmem:[%s14366_s15 + $0x448] sm:$0xf]  ;;  %1133 = vst [vmem:[#allocation6 + $0x438] sm:$0xf] %v1132_v11 }
  0x92   : > { %1135 = vst [vmem:[#allocation6 + $0x43c] sm:$0xff] %v1134_v12   ;;  %1139 = vst [vmem:[#allocation6 + $0x444] sm:$0xf] %v1138_v13  ;;  %v1140_v14 = vld [vmem:[%s14366_s15 + $0x444] sm:$0xf]  ;;  %v1150_v18 = vld [vmem:[%s14366_s15 + $0x45c] sm:$0xff]  }
  0x93   : > { %v1146_v16 = vld [vmem:[%s14366_s15 + $0x458] sm:$0xf]  ;;  %1141 = vst [vmem:[#allocation6 + $0x448] sm:$0xf] %v1140_v14  ;;  %1143 = vst [vmem:[#allocation6 + $0x44c] sm:$0xff] %v1142_v15   ;;  %v1158_v21 = vld [vmem:[%s14366_s15 + $0x46c] sm:$0xff]  }
  0x94   : > { %1147 = vst [vmem:[#allocation6 + $0x454] sm:$0xf] %v1146_v16  ;;  %v1148_v17 = vld [vmem:[%s14366_s15 + $0x454] sm:$0xf]  ;;  %v1154_v19 = vld [vmem:[%s14366_s15 + $0x468] sm:$0xf] }
  0x95   : > { %1149 = vst [vmem:[#allocation6 + $0x458] sm:$0xf] %v1148_v17  ;;  %1151 = vst [vmem:[#allocation6 + $0x45c] sm:$0xff] %v1150_v18   ;;  %v1156_v20 = vld [vmem:[%s14366_s15 + $0x464] sm:$0xf]  ;;  %v1166_v24 = vld [vmem:[%s14366_s15 + $0x47c] sm:$0xff]  }
  0x96   : > { %1155 = vst [vmem:[#allocation6 + $0x464] sm:$0xf] %v1154_v19  ;;  %v1162_v22 = vld [vmem:[%s14366_s15 + $0x478] sm:$0xf]  ;;  %1157 = vst [vmem:[#allocation6 + $0x468] sm:$0xf] %v1156_v20 }
  0x97   : > { %1159 = vst [vmem:[#allocation6 + $0x46c] sm:$0xff] %v1158_v21   ;;  %1163 = vst [vmem:[#allocation6 + $0x474] sm:$0xf] %v1162_v22  ;;  %v1164_v23 = vld [vmem:[%s14366_s15 + $0x474] sm:$0xf]  ;;  %v1174_v27 = vld [vmem:[%s14366_s15 + $0x48c] sm:$0xff]  }
  0x98   : > { %v1170_v25 = vld [vmem:[%s14366_s15 + $0x488] sm:$0xf]  ;;  %1165 = vst [vmem:[#allocation6 + $0x478] sm:$0xf] %v1164_v23  ;;  %1167 = vst [vmem:[#allocation6 + $0x47c] sm:$0xff] %v1166_v24   ;;  %v1182_v30 = vld [vmem:[%s14366_s15 + $0x49c] sm:$0xff]  }
  0x99   : > { %1171 = vst [vmem:[#allocation6 + $0x484] sm:$0xf] %v1170_v25  ;;  %v1172_v26 = vld [vmem:[%s14366_s15 + $0x484] sm:$0xf]  ;;  %v1178_v28 = vld [vmem:[%s14366_s15 + $0x498] sm:$0xf] }
  0x9a   : > { %1173 = vst [vmem:[#allocation6 + $0x488] sm:$0xf] %v1172_v26  ;;  %1175 = vst [vmem:[#allocation6 + $0x48c] sm:$0xff] %v1174_v27   ;;  %v1180_v29 = vld [vmem:[%s14366_s15 + $0x494] sm:$0xf]  ;;  %v1190_v33 = vld [vmem:[%s14366_s15 + $0x4ac] sm:$0xff]  }
  0x9b   : > { %1179 = vst [vmem:[#allocation6 + $0x494] sm:$0xf] %v1178_v28  ;;  %v1186_v31 = vld [vmem:[%s14366_s15 + $0x4a8] sm:$0xf]  ;;  %1181 = vst [vmem:[#allocation6 + $0x498] sm:$0xf] %v1180_v29 }
  0x9c   : > { %1183 = vst [vmem:[#allocation6 + $0x49c] sm:$0xff] %v1182_v30   ;;  %1187 = vst [vmem:[#allocation6 + $0x4a4] sm:$0xf] %v1186_v31  ;;  %v1188_v32 = vld [vmem:[%s14366_s15 + $0x4a4] sm:$0xf]  ;;  %v1198_v36 = vld [vmem:[%s14366_s15 + $0x4bc] sm:$0xff]  }
  0x9d   : > { %v1194_v34 = vld [vmem:[%s14366_s15 + $0x4b8] sm:$0xf]  ;;  %1189 = vst [vmem:[#allocation6 + $0x4a8] sm:$0xf] %v1188_v32  ;;  %1191 = vst [vmem:[#allocation6 + $0x4ac] sm:$0xff] %v1190_v33   ;;  %v1206_v39 = vld [vmem:[%s14366_s15 + $0x4cc] sm:$0xff]  }
  0x9e   : > { %1195 = vst [vmem:[#allocation6 + $0x4b4] sm:$0xf] %v1194_v34  ;;  %v1196_v35 = vld [vmem:[%s14366_s15 + $0x4b4] sm:$0xf]  ;;  %v1202_v37 = vld [vmem:[%s14366_s15 + $0x4c8] sm:$0xf] }
  0x9f   : > { %1197 = vst [vmem:[#allocation6 + $0x4b8] sm:$0xf] %v1196_v35  ;;  %1199 = vst [vmem:[#allocation6 + $0x4bc] sm:$0xff] %v1198_v36   ;;  %v1204_v38 = vld [vmem:[%s14366_s15 + $0x4c4] sm:$0xf]  ;;  %v1214_v42 = vld [vmem:[%s14366_s15 + $0x4dc] sm:$0xff]  }
  0xa0   : > { %1203 = vst [vmem:[#allocation6 + $0x4c4] sm:$0xf] %v1202_v37  ;;  %v1210_v40 = vld [vmem:[%s14366_s15 + $0x4d8] sm:$0xf]  ;;  %1205 = vst [vmem:[#allocation6 + $0x4c8] sm:$0xf] %v1204_v38 }
  0xa1   : > { %1207 = vst [vmem:[#allocation6 + $0x4cc] sm:$0xff] %v1206_v39   ;;  %1211 = vst [vmem:[#allocation6 + $0x4d4] sm:$0xf] %v1210_v40  ;;  %v1212_v41 = vld [vmem:[%s14366_s15 + $0x4d4] sm:$0xf]  ;;  %v1222_v45 = vld [vmem:[%s14366_s15 + $0x4ec] sm:$0xff]  }
  0xa2   : > { %v1218_v43 = vld [vmem:[%s14366_s15 + $0x4e8] sm:$0xf]  ;;  %1213 = vst [vmem:[#allocation6 + $0x4d8] sm:$0xf] %v1212_v41  ;;  %1215 = vst [vmem:[#allocation6 + $0x4dc] sm:$0xff] %v1214_v42   ;;  %v1230_v48 = vld [vmem:[%s14366_s15 + $0x4fc] sm:$0xff]  }
  0xa3   : > { %1219 = vst [vmem:[#allocation6 + $0x4e4] sm:$0xf] %v1218_v43  ;;  %v1220_v44 = vld [vmem:[%s14366_s15 + $0x4e4] sm:$0xf]  ;;  %v1226_v46 = vld [vmem:[%s14366_s15 + $0x4f8] sm:$0xf] }
  0xa4   : > { %1221 = vst [vmem:[#allocation6 + $0x4e8] sm:$0xf] %v1220_v44  ;;  %1223 = vst [vmem:[#allocation6 + $0x4ec] sm:$0xff] %v1222_v45   ;;  %v1228_v47 = vld [vmem:[%s14366_s15 + $0x4f4] sm:$0xf]  ;;  %v1238_v51 = vld [vmem:[%s14366_s15 + $0x50c] sm:$0xff]  }
  0xa5   : > { %1227 = vst [vmem:[#allocation6 + $0x4f4] sm:$0xf] %v1226_v46  ;;  %v1234_v49 = vld [vmem:[%s14366_s15 + $0x508] sm:$0xf]  ;;  %1229 = vst [vmem:[#allocation6 + $0x4f8] sm:$0xf] %v1228_v47 }
  0xa6   : > { %1231 = vst [vmem:[#allocation6 + $0x4fc] sm:$0xff] %v1230_v48   ;;  %1235 = vst [vmem:[#allocation6 + $0x504] sm:$0xf] %v1234_v49  ;;  %v1236_v50 = vld [vmem:[%s14366_s15 + $0x504] sm:$0xf]  ;;  %v1246_v54 = vld [vmem:[%s14366_s15 + $0x51c] sm:$0xff]  }
  0xa7   : > { %v1242_v52 = vld [vmem:[%s14366_s15 + $0x518] sm:$0xf]  ;;  %1237 = vst [vmem:[#allocation6 + $0x508] sm:$0xf] %v1236_v50  ;;  %1239 = vst [vmem:[#allocation6 + $0x50c] sm:$0xff] %v1238_v51   ;;  %v1254_v57 = vld [vmem:[%s14366_s15 + $0x52c] sm:$0xff]  }
  0xa8   : > { %1243 = vst [vmem:[#allocation6 + $0x514] sm:$0xf] %v1242_v52  ;;  %v1244_v53 = vld [vmem:[%s14366_s15 + $0x514] sm:$0xf]  ;;  %v1250_v55 = vld [vmem:[%s14366_s15 + $0x528] sm:$0xf] }
  0xa9   : > { %1245 = vst [vmem:[#allocation6 + $0x518] sm:$0xf] %v1244_v53  ;;  %1247 = vst [vmem:[#allocation6 + $0x51c] sm:$0xff] %v1246_v54   ;;  %v1252_v56 = vld [vmem:[%s14366_s15 + $0x524] sm:$0xf]  ;;  %v1262_v60 = vld [vmem:[%s14366_s15 + $0x53c] sm:$0xff]  }
  0xaa   : > { %1251 = vst [vmem:[#allocation6 + $0x524] sm:$0xf] %v1250_v55  ;;  %v1258_v58 = vld [vmem:[%s14366_s15 + $0x538] sm:$0xf]  ;;  %1253 = vst [vmem:[#allocation6 + $0x528] sm:$0xf] %v1252_v56 }
  0xab   : > { %1255 = vst [vmem:[#allocation6 + $0x52c] sm:$0xff] %v1254_v57   ;;  %1259 = vst [vmem:[#allocation6 + $0x534] sm:$0xf] %v1258_v58  ;;  %v1260_v59 = vld [vmem:[%s14366_s15 + $0x534] sm:$0xf]  ;;  %v1270_v63 = vld [vmem:[%s14366_s15 + $0x54c] sm:$0xff]  }
  0xac   : > { %v1266_v61 = vld [vmem:[%s14366_s15 + $0x548] sm:$0xf]  ;;  %1261 = vst [vmem:[#allocation6 + $0x538] sm:$0xf] %v1260_v59  ;;  %1263 = vst [vmem:[#allocation6 + $0x53c] sm:$0xff] %v1262_v60   ;;  %v1278_v2 = vld [vmem:[%s14366_s15 + $0x55c] sm:$0xff]  }
  0xad   : > { %1267 = vst [vmem:[#allocation6 + $0x544] sm:$0xf] %v1266_v61  ;;  %v1268_v62 = vld [vmem:[%s14366_s15 + $0x544] sm:$0xf]  ;;  %v1274_v0 = vld [vmem:[%s14366_s15 + $0x558] sm:$0xf] }
  0xae   : > { %1269 = vst [vmem:[#allocation6 + $0x548] sm:$0xf] %v1268_v62  ;;  %1271 = vst [vmem:[#allocation6 + $0x54c] sm:$0xff] %v1270_v63   ;;  %v1276_v1 = vld [vmem:[%s14366_s15 + $0x554] sm:$0xf]  ;;  %v1286_v5 = vld [vmem:[%s14366_s15 + $0x56c] sm:$0xff]  }
  0xaf   : > { %1275 = vst [vmem:[#allocation6 + $0x554] sm:$0xf] %v1274_v0  ;;  %v1282_v3 = vld [vmem:[%s14366_s15 + $0x568] sm:$0xf]  ;;  %1277 = vst [vmem:[#allocation6 + $0x558] sm:$0xf] %v1276_v1 }
  0xb0   : > { %1279 = vst [vmem:[#allocation6 + $0x55c] sm:$0xff] %v1278_v2   ;;  %1283 = vst [vmem:[#allocation6 + $0x564] sm:$0xf] %v1282_v3  ;;  %v1284_v4 = vld [vmem:[%s14366_s15 + $0x564] sm:$0xf]  ;;  %v1294_v8 = vld [vmem:[%s14366_s15 + $0x57c] sm:$0xff]  }
  0xb1   : > { %v1290_v6 = vld [vmem:[%s14366_s15 + $0x578] sm:$0xf]  ;;  %1285 = vst [vmem:[#allocation6 + $0x568] sm:$0xf] %v1284_v4  ;;  %1287 = vst [vmem:[#allocation6 + $0x56c] sm:$0xff] %v1286_v5   ;;  %v1302_v11 = vld [vmem:[%s14366_s15 + $0x58c] sm:$0xff]  }
  0xb2   : > { %1291 = vst [vmem:[#allocation6 + $0x574] sm:$0xf] %v1290_v6  ;;  %v1292_v7 = vld [vmem:[%s14366_s15 + $0x574] sm:$0xf]  ;;  %v1298_v9 = vld [vmem:[%s14366_s15 + $0x588] sm:$0xf] }
  0xb3   : > { %1293 = vst [vmem:[#allocation6 + $0x578] sm:$0xf] %v1292_v7  ;;  %1295 = vst [vmem:[#allocation6 + $0x57c] sm:$0xff] %v1294_v8   ;;  %v1300_v10 = vld [vmem:[%s14366_s15 + $0x584] sm:$0xf]  ;;  %v1310_v14 = vld [vmem:[%s14366_s15 + $0x59c] sm:$0xff]  }
  0xb4   : > { %1299 = vst [vmem:[#allocation6 + $0x584] sm:$0xf] %v1298_v9  ;;  %v1306_v12 = vld [vmem:[%s14366_s15 + $0x598] sm:$0xf]  ;;  %1301 = vst [vmem:[#allocation6 + $0x588] sm:$0xf] %v1300_v10 }
  0xb5   : > { %1303 = vst [vmem:[#allocation6 + $0x58c] sm:$0xff] %v1302_v11   ;;  %1307 = vst [vmem:[#allocation6 + $0x594] sm:$0xf] %v1306_v12  ;;  %v1308_v13 = vld [vmem:[%s14366_s15 + $0x594] sm:$0xf]  ;;  %v1318_v17 = vld [vmem:[%s14366_s15 + $0x5ac] sm:$0xff]  }
  0xb6   : > { %v1314_v15 = vld [vmem:[%s14366_s15 + $0x5a8] sm:$0xf]  ;;  %1309 = vst [vmem:[#allocation6 + $0x598] sm:$0xf] %v1308_v13  ;;  %1311 = vst [vmem:[#allocation6 + $0x59c] sm:$0xff] %v1310_v14   ;;  %v1326_v20 = vld [vmem:[%s14366_s15 + $0x5bc] sm:$0xff]  }
  0xb7   : > { %1315 = vst [vmem:[#allocation6 + $0x5a4] sm:$0xf] %v1314_v15  ;;  %v1316_v16 = vld [vmem:[%s14366_s15 + $0x5a4] sm:$0xf]  ;;  %v1322_v18 = vld [vmem:[%s14366_s15 + $0x5b8] sm:$0xf] }
  0xb8   : > { %1317 = vst [vmem:[#allocation6 + $0x5a8] sm:$0xf] %v1316_v16  ;;  %1319 = vst [vmem:[#allocation6 + $0x5ac] sm:$0xff] %v1318_v17   ;;  %v1324_v19 = vld [vmem:[%s14366_s15 + $0x5b4] sm:$0xf]  ;;  %v1334_v23 = vld [vmem:[%s14366_s15 + $0x5cc] sm:$0xff]  }
  0xb9   : > { %1323 = vst [vmem:[#allocation6 + $0x5b4] sm:$0xf] %v1322_v18  ;;  %v1330_v21 = vld [vmem:[%s14366_s15 + $0x5c8] sm:$0xf]  ;;  %1325 = vst [vmem:[#allocation6 + $0x5b8] sm:$0xf] %v1324_v19 }
  0xba   : > { %1327 = vst [vmem:[#allocation6 + $0x5bc] sm:$0xff] %v1326_v20   ;;  %1331 = vst [vmem:[#allocation6 + $0x5c4] sm:$0xf] %v1330_v21  ;;  %v1332_v22 = vld [vmem:[%s14366_s15 + $0x5c4] sm:$0xf]  ;;  %v1342_v26 = vld [vmem:[%s14366_s15 + $0x5dc] sm:$0xff]  }
  0xbb   : > { %v1338_v24 = vld [vmem:[%s14366_s15 + $0x5d8] sm:$0xf]  ;;  %1333 = vst [vmem:[#allocation6 + $0x5c8] sm:$0xf] %v1332_v22  ;;  %1335 = vst [vmem:[#allocation6 + $0x5cc] sm:$0xff] %v1334_v23   ;;  %v1350_v29 = vld [vmem:[%s14366_s15 + $0x5ec] sm:$0xff]  }
  0xbc   : > { %1339 = vst [vmem:[#allocation6 + $0x5d4] sm:$0xf] %v1338_v24  ;;  %v1340_v25 = vld [vmem:[%s14366_s15 + $0x5d4] sm:$0xf]  ;;  %v1346_v27 = vld [vmem:[%s14366_s15 + $0x5e8] sm:$0xf] }
  0xbd   : > { %1341 = vst [vmem:[#allocation6 + $0x5d8] sm:$0xf] %v1340_v25  ;;  %1343 = vst [vmem:[#allocation6 + $0x5dc] sm:$0xff] %v1342_v26   ;;  %v1348_v28 = vld [vmem:[%s14366_s15 + $0x5e4] sm:$0xf]  ;;  %v1358_v32 = vld [vmem:[%s14366_s15 + $0x5fc] sm:$0xff]  }
  0xbe   : > { %1347 = vst [vmem:[#allocation6 + $0x5e4] sm:$0xf] %v1346_v27  ;;  %v1354_v30 = vld [vmem:[%s14366_s15 + $0x5f8] sm:$0xf]  ;;  %1349 = vst [vmem:[#allocation6 + $0x5e8] sm:$0xf] %v1348_v28 }
  0xbf   : > { %1351 = vst [vmem:[#allocation6 + $0x5ec] sm:$0xff] %v1350_v29   ;;  %1355 = vst [vmem:[#allocation6 + $0x5f4] sm:$0xf] %v1354_v30  ;;  %v1356_v31 = vld [vmem:[%s14366_s15 + $0x5f4] sm:$0xf]  ;;  %v1366_v35 = vld [vmem:[%s14366_s15 + $0x60c] sm:$0xff]  }
  0xc0   : > { %v1362_v33 = vld [vmem:[%s14366_s15 + $0x608] sm:$0xf]  ;;  %1357 = vst [vmem:[#allocation6 + $0x5f8] sm:$0xf] %v1356_v31  ;;  %1359 = vst [vmem:[#allocation6 + $0x5fc] sm:$0xff] %v1358_v32   ;;  %v1374_v38 = vld [vmem:[%s14366_s15 + $0x61c] sm:$0xff]  }
  0xc1   : > { %1363 = vst [vmem:[#allocation6 + $0x604] sm:$0xf] %v1362_v33  ;;  %v1364_v34 = vld [vmem:[%s14366_s15 + $0x604] sm:$0xf]  ;;  %v1370_v36 = vld [vmem:[%s14366_s15 + $0x618] sm:$0xf] }
  0xc2   : > { %1365 = vst [vmem:[#allocation6 + $0x608] sm:$0xf] %v1364_v34  ;;  %1367 = vst [vmem:[#allocation6 + $0x60c] sm:$0xff] %v1366_v35   ;;  %v1372_v37 = vld [vmem:[%s14366_s15 + $0x614] sm:$0xf]  ;;  %v1382_v41 = vld [vmem:[%s14366_s15 + $0x62c] sm:$0xff]  }
  0xc3   : > { %1371 = vst [vmem:[#allocation6 + $0x614] sm:$0xf] %v1370_v36  ;;  %v1378_v39 = vld [vmem:[%s14366_s15 + $0x628] sm:$0xf]  ;;  %1373 = vst [vmem:[#allocation6 + $0x618] sm:$0xf] %v1372_v37 }
  0xc4   : > { %1375 = vst [vmem:[#allocation6 + $0x61c] sm:$0xff] %v1374_v38   ;;  %1379 = vst [vmem:[#allocation6 + $0x624] sm:$0xf] %v1378_v39  ;;  %v1380_v40 = vld [vmem:[%s14366_s15 + $0x624] sm:$0xf]  ;;  %v1390_v44 = vld [vmem:[%s14366_s15 + $0x63c] sm:$0xff]  }
  0xc5   : > { %v1386_v42 = vld [vmem:[%s14366_s15 + $0x638] sm:$0xf]  ;;  %1381 = vst [vmem:[#allocation6 + $0x628] sm:$0xf] %v1380_v40  ;;  %1383 = vst [vmem:[#allocation6 + $0x62c] sm:$0xff] %v1382_v41   ;;  %v1398_v47 = vld [vmem:[%s14366_s15 + $0x64c] sm:$0xff]  }
  0xc6   : > { %1387 = vst [vmem:[#allocation6 + $0x634] sm:$0xf] %v1386_v42  ;;  %v1388_v43 = vld [vmem:[%s14366_s15 + $0x634] sm:$0xf]  ;;  %v1394_v45 = vld [vmem:[%s14366_s15 + $0x648] sm:$0xf] }
  0xc7   : > { %1389 = vst [vmem:[#allocation6 + $0x638] sm:$0xf] %v1388_v43  ;;  %1391 = vst [vmem:[#allocation6 + $0x63c] sm:$0xff] %v1390_v44   ;;  %v1396_v46 = vld [vmem:[%s14366_s15 + $0x644] sm:$0xf]  ;;  %v1406_v50 = vld [vmem:[%s14366_s15 + $0x65c] sm:$0xff]  }
  0xc8   : > { %1395 = vst [vmem:[#allocation6 + $0x644] sm:$0xf] %v1394_v45  ;;  %v1402_v48 = vld [vmem:[%s14366_s15 + $0x658] sm:$0xf]  ;;  %1397 = vst [vmem:[#allocation6 + $0x648] sm:$0xf] %v1396_v46 }
  0xc9   : > { %1399 = vst [vmem:[#allocation6 + $0x64c] sm:$0xff] %v1398_v47   ;;  %1403 = vst [vmem:[#allocation6 + $0x654] sm:$0xf] %v1402_v48  ;;  %v1404_v49 = vld [vmem:[%s14366_s15 + $0x654] sm:$0xf]  ;;  %v1414_v53 = vld [vmem:[%s14366_s15 + $0x66c] sm:$0xff]  }
  0xca   : > { %v1410_v51 = vld [vmem:[%s14366_s15 + $0x668] sm:$0xf]  ;;  %1405 = vst [vmem:[#allocation6 + $0x658] sm:$0xf] %v1404_v49  ;;  %1407 = vst [vmem:[#allocation6 + $0x65c] sm:$0xff] %v1406_v50   ;;  %v1422_v56 = vld [vmem:[%s14366_s15 + $0x67c] sm:$0xff]  }
  0xcb   : > { %1411 = vst [vmem:[#allocation6 + $0x664] sm:$0xf] %v1410_v51  ;;  %v1412_v52 = vld [vmem:[%s14366_s15 + $0x664] sm:$0xf]  ;;  %v1418_v54 = vld [vmem:[%s14366_s15 + $0x678] sm:$0xf] }
  0xcc   : > { %1413 = vst [vmem:[#allocation6 + $0x668] sm:$0xf] %v1412_v52  ;;  %1415 = vst [vmem:[#allocation6 + $0x66c] sm:$0xff] %v1414_v53   ;;  %v1420_v55 = vld [vmem:[%s14366_s15 + $0x674] sm:$0xf]  ;;  %v1430_v59 = vld [vmem:[%s14366_s15 + $0x68c] sm:$0xff]  }
  0xcd   : > { %1419 = vst [vmem:[#allocation6 + $0x674] sm:$0xf] %v1418_v54  ;;  %v1426_v57 = vld [vmem:[%s14366_s15 + $0x688] sm:$0xf]  ;;  %1421 = vst [vmem:[#allocation6 + $0x678] sm:$0xf] %v1420_v55 }
  0xce   : > { %1423 = vst [vmem:[#allocation6 + $0x67c] sm:$0xff] %v1422_v56   ;;  %1427 = vst [vmem:[#allocation6 + $0x684] sm:$0xf] %v1426_v57  ;;  %v1428_v58 = vld [vmem:[%s14366_s15 + $0x684] sm:$0xf]  ;;  %v1438_v62 = vld [vmem:[%s14366_s15 + $0x69c] sm:$0xff]  }
  0xcf   : > { %v1434_v60 = vld [vmem:[%s14366_s15 + $0x698] sm:$0xf]  ;;  %1429 = vst [vmem:[#allocation6 + $0x688] sm:$0xf] %v1428_v58  ;;  %1431 = vst [vmem:[#allocation6 + $0x68c] sm:$0xff] %v1430_v59   ;;  %v1446_v1 = vld [vmem:[%s14366_s15 + $0x6ac] sm:$0xff]  }
  0xd0   : > { %1435 = vst [vmem:[#allocation6 + $0x694] sm:$0xf] %v1434_v60  ;;  %v1436_v61 = vld [vmem:[%s14366_s15 + $0x694] sm:$0xf]  ;;  %v1442_v63 = vld [vmem:[%s14366_s15 + $0x6a8] sm:$0xf] }
  0xd1   : > { %1437 = vst [vmem:[#allocation6 + $0x698] sm:$0xf] %v1436_v61  ;;  %1439 = vst [vmem:[#allocation6 + $0x69c] sm:$0xff] %v1438_v62   ;;  %v1444_v0 = vld [vmem:[%s14366_s15 + $0x6a4] sm:$0xf]  ;;  %v1454_v4 = vld [vmem:[%s14366_s15 + $0x6bc] sm:$0xff]  }
  0xd2   : > { %1443 = vst [vmem:[#allocation6 + $0x6a4] sm:$0xf] %v1442_v63  ;;  %v1450_v2 = vld [vmem:[%s14366_s15 + $0x6b8] sm:$0xf]  ;;  %1445 = vst [vmem:[#allocation6 + $0x6a8] sm:$0xf] %v1444_v0 }
  0xd3   : > { %1447 = vst [vmem:[#allocation6 + $0x6ac] sm:$0xff] %v1446_v1   ;;  %1451 = vst [vmem:[#allocation6 + $0x6b4] sm:$0xf] %v1450_v2  ;;  %v1452_v3 = vld [vmem:[%s14366_s15 + $0x6b4] sm:$0xf]  ;;  %v1462_v7 = vld [vmem:[%s14366_s15 + $0x6cc] sm:$0xff]  }
  0xd4   : > { %v1458_v5 = vld [vmem:[%s14366_s15 + $0x6c8] sm:$0xf]  ;;  %1453 = vst [vmem:[#allocation6 + $0x6b8] sm:$0xf] %v1452_v3  ;;  %1455 = vst [vmem:[#allocation6 + $0x6bc] sm:$0xff] %v1454_v4   ;;  %v1470_v10 = vld [vmem:[%s14366_s15 + $0x6dc] sm:$0xff]  }
  0xd5   : > { %1459 = vst [vmem:[#allocation6 + $0x6c4] sm:$0xf] %v1458_v5  ;;  %v1460_v6 = vld [vmem:[%s14366_s15 + $0x6c4] sm:$0xf]  ;;  %v1466_v8 = vld [vmem:[%s14366_s15 + $0x6d8] sm:$0xf] }
  0xd6   : > { %1461 = vst [vmem:[#allocation6 + $0x6c8] sm:$0xf] %v1460_v6  ;;  %1463 = vst [vmem:[#allocation6 + $0x6cc] sm:$0xff] %v1462_v7   ;;  %v1468_v9 = vld [vmem:[%s14366_s15 + $0x6d4] sm:$0xf]  ;;  %v1478_v13 = vld [vmem:[%s14366_s15 + $0x6ec] sm:$0xff]  }
  0xd7   : > { %1467 = vst [vmem:[#allocation6 + $0x6d4] sm:$0xf] %v1466_v8  ;;  %v1474_v11 = vld [vmem:[%s14366_s15 + $0x6e8] sm:$0xf]  ;;  %1469 = vst [vmem:[#allocation6 + $0x6d8] sm:$0xf] %v1468_v9 }
  0xd8   : > { %1471 = vst [vmem:[#allocation6 + $0x6dc] sm:$0xff] %v1470_v10   ;;  %1475 = vst [vmem:[#allocation6 + $0x6e4] sm:$0xf] %v1474_v11  ;;  %v1476_v12 = vld [vmem:[%s14366_s15 + $0x6e4] sm:$0xf]  ;;  %v1486_v16 = vld [vmem:[%s14366_s15 + $0x6fc] sm:$0xff]  }
  0xd9   : > { %v1482_v14 = vld [vmem:[%s14366_s15 + $0x6f8] sm:$0xf]  ;;  %1477 = vst [vmem:[#allocation6 + $0x6e8] sm:$0xf] %v1476_v12  ;;  %1479 = vst [vmem:[#allocation6 + $0x6ec] sm:$0xff] %v1478_v13   ;;  %v1494_v19 = vld [vmem:[%s14366_s15 + $0x70c] sm:$0xff]  }
  0xda   : > { %1483 = vst [vmem:[#allocation6 + $0x6f4] sm:$0xf] %v1482_v14  ;;  %v1484_v15 = vld [vmem:[%s14366_s15 + $0x6f4] sm:$0xf]  ;;  %v1490_v17 = vld [vmem:[%s14366_s15 + $0x708] sm:$0xf] }
  0xdb   : > { %1485 = vst [vmem:[#allocation6 + $0x6f8] sm:$0xf] %v1484_v15  ;;  %1487 = vst [vmem:[#allocation6 + $0x6fc] sm:$0xff] %v1486_v16   ;;  %v1492_v18 = vld [vmem:[%s14366_s15 + $0x704] sm:$0xf]  ;;  %v1502_v22 = vld [vmem:[%s14366_s15 + $0x71c] sm:$0xff]  }
  0xdc   : > { %1491 = vst [vmem:[#allocation6 + $0x704] sm:$0xf] %v1490_v17  ;;  %v1498_v20 = vld [vmem:[%s14366_s15 + $0x718] sm:$0xf]  ;;  %1493 = vst [vmem:[#allocation6 + $0x708] sm:$0xf] %v1492_v18 }
  0xdd   : > { %1495 = vst [vmem:[#allocation6 + $0x70c] sm:$0xff] %v1494_v19   ;;  %1499 = vst [vmem:[#allocation6 + $0x714] sm:$0xf] %v1498_v20  ;;  %v1500_v21 = vld [vmem:[%s14366_s15 + $0x714] sm:$0xf]  ;;  %v1510_v25 = vld [vmem:[%s14366_s15 + $0x72c] sm:$0xff]  }
  0xde   : > { %v1506_v23 = vld [vmem:[%s14366_s15 + $0x728] sm:$0xf]  ;;  %1501 = vst [vmem:[#allocation6 + $0x718] sm:$0xf] %v1500_v21  ;;  %1503 = vst [vmem:[#allocation6 + $0x71c] sm:$0xff] %v1502_v22   ;;  %v1518_v28 = vld [vmem:[%s14366_s15 + $0x73c] sm:$0xff]  }
  0xdf   : > { %1507 = vst [vmem:[#allocation6 + $0x724] sm:$0xf] %v1506_v23  ;;  %v1508_v24 = vld [vmem:[%s14366_s15 + $0x724] sm:$0xf]  ;;  %v1514_v26 = vld [vmem:[%s14366_s15 + $0x738] sm:$0xf] }
  0xe0   : > { %1509 = vst [vmem:[#allocation6 + $0x728] sm:$0xf] %v1508_v24  ;;  %1511 = vst [vmem:[#allocation6 + $0x72c] sm:$0xff] %v1510_v25   ;;  %v1516_v27 = vld [vmem:[%s14366_s15 + $0x734] sm:$0xf]  ;;  %v1526_v31 = vld [vmem:[%s14366_s15 + $0x74c] sm:$0xff]  }
  0xe1   : > { %1515 = vst [vmem:[#allocation6 + $0x734] sm:$0xf] %v1514_v26  ;;  %v1522_v29 = vld [vmem:[%s14366_s15 + $0x748] sm:$0xf]  ;;  %1517 = vst [vmem:[#allocation6 + $0x738] sm:$0xf] %v1516_v27 }
  0xe2   : > { %1519 = vst [vmem:[#allocation6 + $0x73c] sm:$0xff] %v1518_v28   ;;  %1523 = vst [vmem:[#allocation6 + $0x744] sm:$0xf] %v1522_v29  ;;  %v1524_v30 = vld [vmem:[%s14366_s15 + $0x744] sm:$0xf]  ;;  %v1534_v34 = vld [vmem:[%s14366_s15 + $0x75c] sm:$0xff]  }
  0xe3   : > { %v1530_v32 = vld [vmem:[%s14366_s15 + $0x758] sm:$0xf]  ;;  %1525 = vst [vmem:[#allocation6 + $0x748] sm:$0xf] %v1524_v30  ;;  %1527 = vst [vmem:[#allocation6 + $0x74c] sm:$0xff] %v1526_v31   ;;  %v1542_v37 = vld [vmem:[%s14366_s15 + $0x76c] sm:$0xff]  }
  0xe4   : > { %1531 = vst [vmem:[#allocation6 + $0x754] sm:$0xf] %v1530_v32  ;;  %v1532_v33 = vld [vmem:[%s14366_s15 + $0x754] sm:$0xf]  ;;  %v1538_v35 = vld [vmem:[%s14366_s15 + $0x768] sm:$0xf] }
  0xe5   : > { %1533 = vst [vmem:[#allocation6 + $0x758] sm:$0xf] %v1532_v33  ;;  %1535 = vst [vmem:[#allocation6 + $0x75c] sm:$0xff] %v1534_v34   ;;  %v1540_v36 = vld [vmem:[%s14366_s15 + $0x764] sm:$0xf]  ;;  %v1550_v40 = vld [vmem:[%s14366_s15 + $0x77c] sm:$0xff]  }
  0xe6   : > { %1539 = vst [vmem:[#allocation6 + $0x764] sm:$0xf] %v1538_v35  ;;  %v1546_v38 = vld [vmem:[%s14366_s15 + $0x778] sm:$0xf]  ;;  %1541 = vst [vmem:[#allocation6 + $0x768] sm:$0xf] %v1540_v36 }
  0xe7   : > { %1543 = vst [vmem:[#allocation6 + $0x76c] sm:$0xff] %v1542_v37   ;;  %1547 = vst [vmem:[#allocation6 + $0x774] sm:$0xf] %v1546_v38  ;;  %v1548_v39 = vld [vmem:[%s14366_s15 + $0x774] sm:$0xf]  ;;  %v1558_v43 = vld [vmem:[%s14366_s15 + $0x78c] sm:$0xff]  }
  0xe8   : > { %v1554_v41 = vld [vmem:[%s14366_s15 + $0x788] sm:$0xf]  ;;  %1549 = vst [vmem:[#allocation6 + $0x778] sm:$0xf] %v1548_v39  ;;  %1551 = vst [vmem:[#allocation6 + $0x77c] sm:$0xff] %v1550_v40   ;;  %v1566_v46 = vld [vmem:[%s14366_s15 + $0x79c] sm:$0xff]  }
  0xe9   : > { %1555 = vst [vmem:[#allocation6 + $0x784] sm:$0xf] %v1554_v41  ;;  %v1556_v42 = vld [vmem:[%s14366_s15 + $0x784] sm:$0xf]  ;;  %v1562_v44 = vld [vmem:[%s14366_s15 + $0x798] sm:$0xf] }
  0xea   : > { %1557 = vst [vmem:[#allocation6 + $0x788] sm:$0xf] %v1556_v42  ;;  %1559 = vst [vmem:[#allocation6 + $0x78c] sm:$0xff] %v1558_v43   ;;  %v1564_v45 = vld [vmem:[%s14366_s15 + $0x794] sm:$0xf]  ;;  %v1574_v49 = vld [vmem:[%s14366_s15 + $0x7ac] sm:$0xff]  }
  0xeb   : > { %1563 = vst [vmem:[#allocation6 + $0x794] sm:$0xf] %v1562_v44  ;;  %v1570_v47 = vld [vmem:[%s14366_s15 + $0x7a8] sm:$0xf]  ;;  %1565 = vst [vmem:[#allocation6 + $0x798] sm:$0xf] %v1564_v45 }
  0xec   : > { %1567 = vst [vmem:[#allocation6 + $0x79c] sm:$0xff] %v1566_v46   ;;  %1571 = vst [vmem:[#allocation6 + $0x7a4] sm:$0xf] %v1570_v47  ;;  %v1572_v48 = vld [vmem:[%s14366_s15 + $0x7a4] sm:$0xf]  ;;  %v1582_v52 = vld [vmem:[%s14366_s15 + $0x7bc] sm:$0xff]  }
  0xed   : > { %v1578_v50 = vld [vmem:[%s14366_s15 + $0x7b8] sm:$0xf]  ;;  %1573 = vst [vmem:[#allocation6 + $0x7a8] sm:$0xf] %v1572_v48  ;;  %1575 = vst [vmem:[#allocation6 + $0x7ac] sm:$0xff] %v1574_v49   ;;  %v1590_v55 = vld [vmem:[%s14366_s15 + $0x7cc] sm:$0xff]  }
  0xee   : > { %1579 = vst [vmem:[#allocation6 + $0x7b4] sm:$0xf] %v1578_v50  ;;  %v1580_v51 = vld [vmem:[%s14366_s15 + $0x7b4] sm:$0xf]  ;;  %v1586_v53 = vld [vmem:[%s14366_s15 + $0x7c8] sm:$0xf] }
  0xef   : > { %1581 = vst [vmem:[#allocation6 + $0x7b8] sm:$0xf] %v1580_v51  ;;  %1583 = vst [vmem:[#allocation6 + $0x7bc] sm:$0xff] %v1582_v52   ;;  %v1588_v54 = vld [vmem:[%s14366_s15 + $0x7c4] sm:$0xf]  ;;  %v1598_v58 = vld [vmem:[%s14366_s15 + $0x7dc] sm:$0xff]  }
  0xf0   : > { %1587 = vst [vmem:[#allocation6 + $0x7c4] sm:$0xf] %v1586_v53  ;;  %v1594_v56 = vld [vmem:[%s14366_s15 + $0x7d8] sm:$0xf]  ;;  %1589 = vst [vmem:[#allocation6 + $0x7c8] sm:$0xf] %v1588_v54 }
  0xf1   : > { %1591 = vst [vmem:[#allocation6 + $0x7cc] sm:$0xff] %v1590_v55   ;;  %1595 = vst [vmem:[#allocation6 + $0x7d4] sm:$0xf] %v1594_v56  ;;  %v1596_v57 = vld [vmem:[%s14366_s15 + $0x7d4] sm:$0xf]  ;;  %v1606_v61 = vld [vmem:[%s14366_s15 + $0x7ec] sm:$0xff]  }
  0xf2   : > { %v1602_v59 = vld [vmem:[%s14366_s15 + $0x7e8] sm:$0xf]  ;;  %1597 = vst [vmem:[#allocation6 + $0x7d8] sm:$0xf] %v1596_v57  ;;  %1599 = vst [vmem:[#allocation6 + $0x7dc] sm:$0xff] %v1598_v58   ;;  %s14432_s19 = sand.u32 1, %s10596_s30  }
  0xf3   : > { %1603 = vst [vmem:[#allocation6 + $0x7e4] sm:$0xf] %v1602_v59  ;;  %v1604_v60 = vld [vmem:[%s14366_s15 + $0x7e4] sm:$0xf]  ;;  %v1610_v62 = vld [vmem:[%s14366_s15 + $0x7f8] sm:$0xf] }
  0xf4   : > { %1605 = vst [vmem:[#allocation6 + $0x7e8] sm:$0xf] %v1604_v60  ;;  %1607 = vst [vmem:[#allocation6 + $0x7ec] sm:$0xff] %v1606_v61   ;;  %v1612_v63 = vld [vmem:[%s14366_s15 + $0x7f4] sm:$0xf]  ;;  %s11933_s27 = scalar_lea.vmem [#allocation8], %s14432_s19 }
  0xf5   : > { %1611 = vst [vmem:[#allocation6 + $0x7f4] sm:$0xf] %v1610_v62  ;;  %v1614_v0 = vld [vmem:[%s14366_s15 + $0x7fc] sm:$0xf]  ;;  %1613 = vst [vmem:[#allocation6 + $0x7f8] sm:$0xf] %v1612_v63 }
  0xf6   : > { %1615 = vst [vmem:[#allocation6 + $0x7fc] sm:$0xf] %v1614_v0  ;;  %vm4752_vm0 = vcmask 23552   ;;  %vm4755_vm1 = vcmask 17408   ;;  %vm4761_vm2 = vcmask 16384   ;;  %v4800_v1 = vld [vmem:[%s10816_s22 + $0x10] sm:$0xff] }
  0xf7   : > { %v4801_v2 = vld [vmem:[%s10816_s22 + $0x18] sm:$0xff]  ;;  %v10606_v3 = vmov 0.0   ;;  %4833 = vst.msk [vmem:[#allocation2 + $0x31] sm:$0xff] %vm4752_vm0, %v4800_v1  ;;  %v4802_v4 = vld [vmem:[%s10816_s22 + $0x20] sm:$0xff]  ;;  %v4803_v5 = vld [vmem:[%s10816_s22 + $0x28] sm:$0xff]  ;;  %s14382_s29 = smov 6  }
  0xf8   : > { %4764 = vst.msk [vmem:[#allocation2 + $0x30] sm:$0x1] %vm4761_vm2, %v10606_v3  ;;  %4782 = vst.msk [vmem:[#allocation2 + $0x41] sm:$0x1] %vm4761_vm2, %v10606_v3  ;;  %v4798_v6 = vld [vmem:[%s10816_s22] sm:$0xff]  ;;  %v4799_v7 = vld [vmem:[%s10816_s22 + $0x8] sm:$0xff] }
  0xf9   : > { %4834 = vst.msk [vmem:[#allocation2 + $0x39] sm:$0xff] %vm4752_vm0, %v4801_v2  ;;  %4753 = vst.msk [vmem:[#allocation2] sm:$0xff] %vm4752_vm0, %v10606_v3  ;;  %v4804_v8 = vld [vmem:[%s10816_s22 + $0x30] sm:$0xff]  ;;  %v4805_v9 = vld [vmem:[%s10816_s22 + $0x38] sm:$0xff]  ;;  %s14386_s28 = smov 3   ;;  %s10609_s23 = smov 9  }
  0xfa   : > { %4754 = vst.msk [vmem:[#allocation2 + $0x8] sm:$0xff] %vm4752_vm0, %v10606_v3  ;;  %5877 = vst [vmem:[#allocation5] sm:$0xff] %v10606_v3  ;;  %v4808_v10 = vld [vmem:[%s10816_s22 + $0x50] sm:$0xff]  ;;  %v4809_v11 = vld [vmem:[%s10816_s22 + $0x58] sm:$0xff]  ;;  %s10610_s25 = smov 12   ;;  %s14384_s21 = smov 15  }
  0xfb   : > { %4756 = vst.msk [vmem:[#allocation2 + $0x10] sm:$0x3] %vm4755_vm1, %v10606_v3  ;;  %5878 = vst [vmem:[#allocation5 + $0x8] sm:$0x3] %v10606_v3  ;;  %v4806_v12 = vld [vmem:[%s10816_s22 + $0x40] sm:$0xff]  ;;  %v4807_v13 = vld [vmem:[%s10816_s22 + $0x48] sm:$0xff] }
  0xfc   : > { %4763 = vst.msk [vmem:[#allocation2 + $0x18] sm:$0x1] %vm4761_vm2, %v10606_v3  ;;  %4765 = vst.msk [vmem:[#allocation2 + $0x48] sm:$0x1] %vm4761_vm2, %v10606_v3  ;;  %v4810_v14 = vld [vmem:[%s10816_s22 + $0x60] sm:$0xff]  ;;  %v4811_v15 = vld [vmem:[%s10816_s22 + $0x68] sm:$0xff] }
  0xfd   : > { %4766 = vst.msk [vmem:[#allocation2 + $0x60] sm:$0x1] %vm4761_vm2, %v10606_v3  ;;  %4767 = vst.msk [vmem:[#allocation2 + $0x78] sm:$0x1] %vm4761_vm2, %v10606_v3  ;;  %v4812_v16 = vld [vmem:[%s10816_s22 + $0x70] sm:$0xff]  ;;  %v4813_v17 = vld [vmem:[%s10816_s22 + $0x78] sm:$0xff] }
  0xfe   : > { %4768 = vst.msk [vmem:[#allocation2 + $0x90] sm:$0x1] %vm4761_vm2, %v10606_v3  ;;  %4769 = vst.msk [vmem:[#allocation2 + $0xa8] sm:$0x1] %vm4761_vm2, %v10606_v3  ;;  %v4816_v18 = vld [vmem:[%s10816_s22 + $0x90] sm:$0xff]  ;;  %v4817_v19 = vld [vmem:[%s10816_s22 + $0x98] sm:$0xff] }
  0xff   : > { %4770 = vst.msk [vmem:[#allocation2 + $0xc0] sm:$0x1] %vm4761_vm2, %v10606_v3  ;;  %4771 = vst.msk [vmem:[#allocation2 + $0xd8] sm:$0x1] %vm4761_vm2, %v10606_v3  ;;  %v4814_v20 = vld [vmem:[%s10816_s22 + $0x80] sm:$0xff]  ;;  %v4815_v21 = vld [vmem:[%s10816_s22 + $0x88] sm:$0xff] }
 0x100   : > { %4772 = vst.msk [vmem:[#allocation2 + $0xf0] sm:$0x1] %vm4761_vm2, %v10606_v3  ;;  %4773 = vst.msk [vmem:[#allocation2 + $0x108] sm:$0x1] %vm4761_vm2, %v10606_v3  ;;  %v4818_v22 = vld [vmem:[%s10816_s22 + $0xa0] sm:$0xff]  ;;  %v4819_v23 = vld [vmem:[%s10816_s22 + $0xa8] sm:$0xff] }
 0x101   : > { %4774 = vst.msk [vmem:[#allocation2 + $0x120] sm:$0x1] %vm4761_vm2, %v10606_v3  ;;  %4775 = vst.msk [vmem:[#allocation2 + $0x138] sm:$0x1] %vm4761_vm2, %v10606_v3  ;;  %v4820_v24 = vld [vmem:[%s10816_s22 + $0xb0] sm:$0xff]  ;;  %v4867_v26 = vld [vmem:[#allocation2 + $0x38] sm:$0xff] }
 0x102   : > { %4776 = vst.msk [vmem:[#allocation2 + $0x150] sm:$0x1] %vm4761_vm2, %v10606_v3  ;;  %4777 = vst.msk [vmem:[#allocation2 + $0x168] sm:$0x1] %vm4761_vm2, %v10606_v3  ;;  %v4866_v25 = vld [vmem:[#allocation2 + $0x30] sm:$0xff]  ;;  %v4864_v36 = vld [vmem:[#allocation2 + $0x8] sm:$0xff] }
 0x103   : > { %4778 = vst.msk [vmem:[#allocation2 + $0x180] sm:$0x1] %vm4761_vm2, %v10606_v3  ;;  %4781 = vst.msk [vmem:[#allocation2 + $0x29] sm:$0x1] %vm4761_vm2, %v10606_v3  ;;  %v4868_v27 = vld [vmem:[#allocation2 + $0x40] sm:$0x3] }
 0x104   : > { %4783 = vst.msk [vmem:[#allocation2 + $0x59] sm:$0x1] %vm4761_vm2, %v10606_v3  ;;  %4784 = vst.msk [vmem:[#allocation2 + $0x71] sm:$0x1] %vm4761_vm2, %v10606_v3  ;;  %v4963_v47 = vld [vmem:[#allocation2 + $0x40] sm:$0x3] }
 0x105   : > { %4785 = vst.msk [vmem:[#allocation2 + $0x89] sm:$0x1] %vm4761_vm2, %v10606_v3  ;;  %4786 = vst.msk [vmem:[#allocation2 + $0xa1] sm:$0x1] %vm4761_vm2, %v10606_v3  ;;  %s14380_s24 = smov 18  }
 0x106   : > { %4787 = vst.msk [vmem:[#allocation2 + $0xb9] sm:$0x1] %vm4761_vm2, %v10606_v3  ;;  %4788 = vst.msk [vmem:[#allocation2 + $0xd1] sm:$0x1] %vm4761_vm2, %v10606_v3 }
 0x107   : > { %4789 = vst.msk [vmem:[#allocation2 + $0xe9] sm:$0x1] %vm4761_vm2, %v10606_v3  ;;  %4790 = vst.msk [vmem:[#allocation2 + $0x101] sm:$0x1] %vm4761_vm2, %v10606_v3 }
 0x108   : > { %4791 = vst.msk [vmem:[#allocation2 + $0x119] sm:$0x1] %vm4761_vm2, %v10606_v3  ;;  %4792 = vst.msk [vmem:[#allocation2 + $0x131] sm:$0x1] %vm4761_vm2, %v10606_v3 }
 0x109   : > { %4793 = vst.msk [vmem:[#allocation2 + $0x149] sm:$0x1] %vm4761_vm2, %v10606_v3  ;;  %4794 = vst.msk [vmem:[#allocation2 + $0x161] sm:$0x1] %vm4761_vm2, %v10606_v3 }
 0x10a   : > { %4795 = vst.msk [vmem:[#allocation2 + $0x179] sm:$0x1] %vm4761_vm2, %v10606_v3  ;;  %4796 = vst.msk [vmem:[#allocation2 + $0x191] sm:$0x1] %vm4761_vm2, %v10606_v3 }
 0x10b   : > { %5880 = vst [vmem:[#allocation5 + $0x90] sm:$0xff] %v10606_v3  ;;  %5881 = vst [vmem:[#allocation5 + $0x98] sm:$0x3] %v10606_v3 }
 0x10c   : > { %5883 = vst [vmem:[#allocation5 + $0x10] sm:$0x1] %v10606_v3  ;;  %5884 = vst [vmem:[#allocation5 + $0x20] sm:$0x1] %v10606_v3 }
 0x10d   : > { %5885 = vst [vmem:[#allocation5 + $0x30] sm:$0x1] %v10606_v3  ;;  %5886 = vst [vmem:[#allocation5 + $0x40] sm:$0x1] %v10606_v3 }
 0x10e   : > { %5887 = vst [vmem:[#allocation5 + $0x50] sm:$0x1] %v10606_v3  ;;  %5888 = vst [vmem:[#allocation5 + $0x60] sm:$0x1] %v10606_v3 }
 0x10f   : > { %5889 = vst [vmem:[#allocation5 + $0x70] sm:$0x1] %v10606_v3  ;;  %5890 = vst [vmem:[#allocation5 + $0x80] sm:$0x1] %v10606_v3 }
 0x110   : > { %5893 = vst [vmem:[#allocation5 + $0x19] sm:$0x1] %v10606_v3  ;;  %5894 = vst [vmem:[#allocation5 + $0x29] sm:$0x1] %v10606_v3 }
 0x111   : > { %5895 = vst [vmem:[#allocation5 + $0x39] sm:$0x1] %v10606_v3  ;;  %5896 = vst [vmem:[#allocation5 + $0x49] sm:$0x1] %v10606_v3 }
 0x112   : > { %5897 = vst [vmem:[#allocation5 + $0x59] sm:$0x1] %v10606_v3  ;;  %5898 = vst [vmem:[#allocation5 + $0x69] sm:$0x1] %v10606_v3 }
 0x113   : > { %5899 = vst [vmem:[#allocation5 + $0x79] sm:$0x1] %v10606_v3  ;;  %5900 = vst [vmem:[#allocation5 + $0x89] sm:$0x1] %v10606_v3 }
 0x114   : > { %4762 = vst.msk [vmem:[#allocation2] sm:$0x1] %vm4761_vm2, %v10606_v3  ;;  %4780 = vst.msk [vmem:[#allocation2 + $0x11] sm:$0x1] %vm4761_vm2, %v10606_v3 }
 0x115   : > { %5882 = vst [vmem:[#allocation5] sm:$0x1] %v10606_v3  ;;  %5891 = vst [vmem:[#allocation5 + $0x90] sm:$0x1] %v10606_v3 }
 0x116   : > { %5892 = vst [vmem:[#allocation5 + $0x9] sm:$0x1] %v10606_v3  ;;  %5901 = vst [vmem:[#allocation5 + $0x99] sm:$0x1] %v10606_v3 }
 0x117   : > { %4835 = vst.msk [vmem:[#allocation2 + $0x49] sm:$0xff] %vm4752_vm0, %v4802_v4  ;;  %4836 = vst.msk [vmem:[#allocation2 + $0x51] sm:$0xff] %vm4752_vm0, %v4803_v5 }
 0x118   : > { %4831 = vst.msk [vmem:[#allocation2 + $0x19] sm:$0xff] %vm4752_vm0, %v4798_v6  ;;  %4832 = vst.msk [vmem:[#allocation2 + $0x21] sm:$0xff] %vm4752_vm0, %v4799_v7  ;;  %v4821_v7 = vld [vmem:[%s10816_s22 + $0xb8] sm:$0xff] }
 0x119   : > { %4837 = vst.msk [vmem:[#allocation2 + $0x61] sm:$0xff] %vm4752_vm0, %v4804_v8  ;;  %4838 = vst.msk [vmem:[#allocation2 + $0x69] sm:$0xff] %vm4752_vm0, %v4805_v9 }
 0x11a   : > { %4841 = vst.msk [vmem:[#allocation2 + $0x91] sm:$0xff] %vm4752_vm0, %v4808_v10  ;;  %4842 = vst.msk [vmem:[#allocation2 + $0x99] sm:$0xff] %vm4752_vm0, %v4809_v11 }
 0x11b   : > { %4839 = vst.msk [vmem:[#allocation2 + $0x79] sm:$0xff] %vm4752_vm0, %v4806_v12  ;;  %4840 = vst.msk [vmem:[#allocation2 + $0x81] sm:$0xff] %vm4752_vm0, %v4807_v13  ;;  %v4863_v35 = vld [vmem:[#allocation2] sm:$0xff]  ;;  %v4865_v37 = vld [vmem:[#allocation2 + $0x10] sm:$0x3] }
 0x11c   : > { %4843 = vst.msk [vmem:[#allocation2 + $0xa9] sm:$0xff] %vm4752_vm0, %v4810_v14  ;;  %4844 = vst.msk [vmem:[#allocation2 + $0xb1] sm:$0xff] %vm4752_vm0, %v4811_v15  ;;  %v4824_v13 = vld [vmem:[%s10816_s22 + $0xd0] sm:$0xff]  ;;  %v4825_v14 = vld [vmem:[%s10816_s22 + $0xd8] sm:$0xff] }
 0x11d   : > { %4845 = vst.msk [vmem:[#allocation2 + $0xc1] sm:$0xff] %vm4752_vm0, %v4812_v16  ;;  %4846 = vst.msk [vmem:[#allocation2 + $0xc9] sm:$0xff] %vm4752_vm0, %v4813_v17  ;;  %v4822_v16 = vld [vmem:[%s10816_s22 + $0xc0] sm:$0xff] }
 0x11e   : > { %4849 = vst.msk [vmem:[#allocation2 + $0xf1] sm:$0xff] %vm4752_vm0, %v4816_v18  ;;  %4850 = vst.msk [vmem:[#allocation2 + $0xf9] sm:$0xff] %vm4752_vm0, %v4817_v19  ;;  %v4914_v28 = vld [vmem:[#allocation2 + $0x48] sm:$0xff]  ;;  %v4915_v29 = vld [vmem:[#allocation2 + $0x50] sm:$0xff] }
 0x11f   : > { %4847 = vst.msk [vmem:[#allocation2 + $0xd9] sm:$0xff] %vm4752_vm0, %v4814_v20  ;;  %4848 = vst.msk [vmem:[#allocation2 + $0xe1] sm:$0xff] %vm4752_vm0, %v4815_v21  ;;  %v4911_v30 = vld [vmem:[#allocation2 + $0x18] sm:$0xff]  ;;  %v4912_v31 = vld [vmem:[#allocation2 + $0x20] sm:$0xff] }
 0x120   : > { %4851 = vst.msk [vmem:[#allocation2 + $0x109] sm:$0xff] %vm4752_vm0, %v4818_v22  ;;  %4852 = vst.msk [vmem:[#allocation2 + $0x111] sm:$0xff] %vm4752_vm0, %v4819_v23  ;;  %v4869_v32 = vld [vmem:[#allocation2 + $0x60] sm:$0xff]  ;;  %v4870_v33 = vld [vmem:[#allocation2 + $0x68] sm:$0xff] }
 0x121   : > { %4853 = vst.msk [vmem:[#allocation2 + $0x121] sm:$0xff] %vm4752_vm0, %v4820_v24  ;;  %4890 = vst.msk [vmem:[#allocation3 + $0x18] sm:$0xff] %vm4752_vm0, %v4866_v25  ;;  %v4913_v34 = vld [vmem:[#allocation2 + $0x28] sm:$0x3]  ;;  %v4871_v38 = vld [vmem:[#allocation2 + $0x70] sm:$0x3] }
 0x122   : > { %4891 = vst.msk [vmem:[#allocation3 + $0x20] sm:$0xff] %vm4752_vm0, %v4867_v26  ;;  %4986 = vst.msk [vmem:[#allocation3 + $0x180] sm:$0xff] %vm4752_vm0, %v4866_v25  ;;  %v4872_v39 = vld [vmem:[#allocation2 + $0x90] sm:$0xff]  ;;  %v4873_v40 = vld [vmem:[#allocation2 + $0x98] sm:$0xff] }
 0x123   : > { %4892 = vst.msk [vmem:[#allocation3 + $0x28] sm:$0x3] %vm4755_vm1, %v4868_v27  ;;  %4938 = vst.msk [vmem:[#allocation3 + $0xd0] sm:$0x3] %vm4755_vm1, %v4913_v34  ;;  %v4916_v41 = vld [vmem:[#allocation2 + $0x58] sm:$0x3] }
 0x124   : > { %4987 = vst.msk [vmem:[#allocation3 + $0x188] sm:$0xff] %vm4752_vm0, %v4867_v26  ;;  %4939 = vst.msk [vmem:[#allocation3 + $0xd8] sm:$0xff] %vm4752_vm0, %v4914_v28  ;;  %v4917_v42 = vld [vmem:[#allocation2 + $0x78] sm:$0xff]  ;;  %v4918_v43 = vld [vmem:[#allocation2 + $0x80] sm:$0xff] }
 0x125   : > { %4940 = vst.msk [vmem:[#allocation3 + $0xe0] sm:$0xff] %vm4752_vm0, %v4915_v29  ;;  %4936 = vst.msk [vmem:[#allocation3 + $0xc0] sm:$0xff] %vm4752_vm0, %v4911_v30  ;;  %v4874_v44 = vld [vmem:[#allocation2 + $0xa0] sm:$0x3]  ;;  %v4920_v45 = vld [vmem:[#allocation2 + $0xa8] sm:$0xff] }
 0x126   : > { %4937 = vst.msk [vmem:[#allocation3 + $0xc8] sm:$0xff] %vm4752_vm0, %v4912_v31  ;;  %4893 = vst.msk [vmem:[#allocation3 + $0x30] sm:$0xff] %vm4752_vm0, %v4869_v32  ;;  %v4921_v46 = vld [vmem:[#allocation2 + $0xb0] sm:$0xff]  ;;  %v4875_v48 = vld [vmem:[#allocation2 + $0xc0] sm:$0xff] }
 0x127   : > { %4894 = vst.msk [vmem:[#allocation3 + $0x38] sm:$0xff] %vm4752_vm0, %v4870_v33  ;;  %4989 = vst.msk [vmem:[#allocation3 + $0x198] sm:$0xff] %vm4752_vm0, %v4869_v32  ;;  %v4876_v53 = vld [vmem:[#allocation2 + $0xc8] sm:$0xff]  ;;  %v4966_v57 = vld [vmem:[#allocation2 + $0x70] sm:$0x3] }
 0x128   : > { %4990 = vst.msk [vmem:[#allocation3 + $0x1a0] sm:$0xff] %vm4752_vm0, %v4870_v33  ;;  %4887 = vst.msk [vmem:[#allocation3] sm:$0xff] %vm4752_vm0, %v4863_v35  ;;  %v4919_v58 = vld [vmem:[#allocation2 + $0x88] sm:$0x3]  ;;  %v4877_v59 = vld [vmem:[#allocation2 + $0xd0] sm:$0x3] }
 0x129   : > { %4888 = vst.msk [vmem:[#allocation3 + $0x8] sm:$0xff] %vm4752_vm0, %v4864_v36  ;;  %4896 = vst.msk [vmem:[#allocation3 + $0x48] sm:$0xff] %vm4752_vm0, %v4872_v39  ;;  %v5036_v50 = vld [vmem:[#allocation3 + $0x19] ss:$2 sm:$0xff]  ;;  %v4879_v62 = vld [vmem:[#allocation2 + $0xf8] sm:$0xff] }
 0x12a   : > { %4889 = vst.msk [vmem:[#allocation3 + $0x10] sm:$0x3] %vm4755_vm1, %v4865_v37  ;;  %4895 = vst.msk [vmem:[#allocation3 + $0x40] sm:$0x3] %vm4755_vm1, %v4871_v38  ;;  %v5093_v49 = vld [vmem:[#allocation3 + $0x1a] ss:$2 sm:$0xff]  ;;  %5059 = vrot.lane.b32.xlu0 %v5036_v50, %s14386_s28 }
 0x12b   : > { %4992 = vst.msk [vmem:[#allocation3 + $0x1b0] sm:$0xff] %vm4752_vm0, %v4872_v39  ;;  %4897 = vst.msk [vmem:[#allocation3 + $0x50] sm:$0xff] %vm4752_vm0, %v4873_v40  ;;  %5116 = vrot.lane.b32.xlu1 %v5093_v49, %s14382_s29  ;;  %v4878_v61 = vld [vmem:[#allocation2 + $0xf0] sm:$0xff]  ;;  %v4922_v63 = vld [vmem:[#allocation2 + $0xb8] sm:$0x3] }
 0x12c   : > { %4941 = vst.msk [vmem:[#allocation3 + $0xe8] sm:$0x3] %vm4755_vm1, %v4916_v41  ;;  %4898 = vst.msk [vmem:[#allocation3 + $0x58] sm:$0x3] %vm4755_vm1, %v4874_v44  ;;  %v5149_v51 = vld [vmem:[#allocation3 + $0xd8] ss:$2 sm:$0xff] }
 0x12d   : > { %4942 = vst.msk [vmem:[#allocation3 + $0xf0] sm:$0xff] %vm4752_vm0, %v4917_v42  ;;  %4993 = vst.msk [vmem:[#allocation3 + $0x1b8] sm:$0xff] %vm4752_vm0, %v4873_v40  ;;  %v5147_v52 = vld [vmem:[#allocation3 + $0xc0] ss:$2 sm:$0xff]  ;;  %v5204_v55 = vld [vmem:[#allocation3 + $0xc1] ss:$2 sm:$0xff] }
 0x12e   : > { %4943 = vst.msk [vmem:[#allocation3 + $0xf8] sm:$0xff] %vm4752_vm0, %v4918_v43  ;;  %4945 = vst.msk [vmem:[#allocation3 + $0x108] sm:$0xff] %vm4752_vm0, %v4920_v45  ;;  %5170 = vrot.lane.b32.xlu0 %v5147_v52, %s10609_s23  ;;  %v5038_v54 = vld [vmem:[#allocation3 + $0x31] ss:$2 sm:$0xff]  ;;  %v5261_v60 = vld [vmem:[#allocation3 + $0xc2] ss:$2 sm:$0xff] }
 0x12f   : > { %4946 = vst.msk [vmem:[#allocation3 + $0x110] sm:$0xff] %vm4752_vm0, %v4921_v46  ;;  %4899 = vst.msk [vmem:[#allocation3 + $0x60] sm:$0xff] %vm4752_vm0, %v4875_v48  ;;  %5172 = vrot.lane.b32.xlu1 %v5149_v51, %s10609_s23  ;;  %v5206_v56 = vld [vmem:[#allocation3 + $0xd9] ss:$2 sm:$0xff]  ;;  %v4923_v0 = vld [vmem:[#allocation2 + $0xd8] sm:$0xff] }
 0x130   : > { %4988 = vst.msk [vmem:[#allocation3 + $0x190] sm:$0x3] %vm4755_vm1, %v4963_v47  ;;  %4991 = vst.msk [vmem:[#allocation3 + $0x1a8] sm:$0x3] %vm4755_vm1, %v4966_v57  ;;  %v4924_v1 = vld [vmem:[#allocation2 + $0xe0] sm:$0xff]  ;;  %v4926_v4 = vld [vmem:[#allocation2 + $0x108] sm:$0xff] }
 0x131   : > { %4995 = vst.msk [vmem:[#allocation3 + $0x1c8] sm:$0xff] %vm4752_vm0, %v4875_v48  ;;  %4900 = vst.msk [vmem:[#allocation3 + $0x68] sm:$0xff] %vm4752_vm0, %v4876_v53  ;;  %v4880_v2 = vld [vmem:[#allocation2 + $0x100] sm:$0x3]  ;;  %v4927_v5 = vld [vmem:[#allocation2 + $0x110] sm:$0xff] }
 0x132   : > { %4996 = vst.msk [vmem:[#allocation3 + $0x1d0] sm:$0xff] %vm4752_vm0, %v4876_v53  ;;  %5227 = vrot.lane.b32.xlu0 %v5204_v55, %s10610_s25  ;;  %4902 = vst.msk [vmem:[#allocation3 + $0x78] sm:$0xff] %vm4752_vm0, %v4878_v61  ;;  %v4969_v6 = vld [vmem:[#allocation2 + $0xa0] sm:$0x3]  ;;  %v5034_v9 = vld [vmem:[#allocation3 + $0x1] ss:$2 sm:$0xff] }
 0x133   : > { %5061 = vrot.lane.b32.xlu1 %v5038_v54, %s14386_s28  ;;  %4944 = vst.msk [vmem:[#allocation3 + $0x100] sm:$0x3] %vm4755_vm1, %v4919_v58  ;;  %4901 = vst.msk [vmem:[#allocation3 + $0x70] sm:$0x3] %vm4755_vm1, %v4877_v59  ;;  %v5091_v8 = vld [vmem:[#allocation3 + $0x2] ss:$2 sm:$0xff] }
 0x134   : > { %4903 = vst.msk [vmem:[#allocation3 + $0x80] sm:$0xff] %vm4752_vm0, %v4879_v62  ;;  %4998 = vst.msk [vmem:[#allocation3 + $0x1e0] sm:$0xff] %vm4752_vm0, %v4878_v61  ;;  %v4881_v10 = vld [vmem:[#allocation2 + $0x120] sm:$0xff]  ;;  %v4972_v11 = vld [vmem:[#allocation2 + $0xd0] sm:$0x3] }
 0x135   : > { %4999 = vst.msk [vmem:[#allocation3 + $0x1e8] sm:$0xff] %vm4752_vm0, %v4879_v62  ;;  %4948 = vst.msk [vmem:[#allocation3 + $0x120] sm:$0xff] %vm4752_vm0, %v4923_v0  ;;  %v4925_v12 = vld [vmem:[#allocation2 + $0xe8] sm:$0x3]  ;;  %v4928_v15 = vld [vmem:[#allocation2 + $0x118] sm:$0x3] }
 0x136   : > { %4947 = vst.msk [vmem:[#allocation3 + $0x118] sm:$0x3] %vm4755_vm1, %v4922_v63  ;;  %4904 = vst.msk [vmem:[#allocation3 + $0x88] sm:$0x3] %vm4755_vm1, %v4880_v2  ;;  %5229 = vrot.lane.b32.xlu0 %v5206_v56, %s10610_s25  ;;  %v5095_v17 = vld [vmem:[#allocation3 + $0x32] ss:$2 sm:$0xff] }
 0x137   : > { %4949 = vst.msk [vmem:[#allocation3 + $0x128] sm:$0xff] %vm4752_vm0, %v4924_v1  ;;  %4951 = vst.msk [vmem:[#allocation3 + $0x138] sm:$0xff] %vm4752_vm0, %v4926_v4  ;;  %5284 = vrot.lane.b32.xlu1 %v5261_v60, %s14384_s21  ;;  %v5040_v18 = vld [vmem:[#allocation3 + $0x49] ss:$2 sm:$0xff]  ;;  %v4823_v19 = vld [vmem:[%s10816_s22 + $0xc8] sm:$0xff] }
 0x138   : > { %4952 = vst.msk [vmem:[#allocation3 + $0x140] sm:$0xff] %vm4752_vm0, %v4927_v5  ;;  %4854 = vst.msk [vmem:[#allocation2 + $0x129] sm:$0xff] %vm4752_vm0, %v4821_v7  ;;  %v4826_v22 = vld [vmem:[%s10816_s22 + $0xe0] sm:$0xff]  ;;  %v5317_v23 = vld [vmem:[#allocation3 + $0x180] ss:$2 sm:$0xff] }
 0x139   : > { %4994 = vst.msk [vmem:[#allocation3 + $0x1c0] sm:$0x3] %vm4755_vm1, %v4969_v6  ;;  %4997 = vst.msk [vmem:[#allocation3 + $0x1d8] sm:$0x3] %vm4755_vm1, %v4972_v11  ;;  %v5263_v24 = vld [vmem:[#allocation3 + $0xda] ss:$2 sm:$0xff] }
 0x13a   : > { %4905 = vst.msk [vmem:[#allocation3 + $0x90] sm:$0xff] %vm4752_vm0, %v4881_v10  ;;  %5001 = vst.msk [vmem:[#allocation3 + $0x1f8] sm:$0xff] %vm4752_vm0, %v4881_v10  ;;  %5057 = vrot.lane.b32.xlu0 %v5034_v9, %s14386_s28  ;;  %v4827_v25 = vld [vmem:[%s10816_s22 + $0xe8] sm:$0xff]  ;;  %v4975_v31 = vld [vmem:[#allocation2 + $0x100] sm:$0x3] }
 0x13b   : > { %4950 = vst.msk [vmem:[#allocation3 + $0x130] sm:$0x3] %vm4755_vm1, %v4925_v12  ;;  %4953 = vst.msk [vmem:[#allocation3 + $0x148] sm:$0x3] %vm4755_vm1, %v4928_v15  ;;  %5114 = vrot.lane.b32.xlu1 %v5091_v8, %s14382_s29  ;;  %v5151_v28 = vld [vmem:[#allocation3 + $0xf0] ss:$2 sm:$0xff] }
 0x13c   : > { %4857 = vst.msk [vmem:[#allocation2 + $0x151] sm:$0xff] %vm4752_vm0, %v4824_v13  ;;  %4858 = vst.msk [vmem:[#allocation2 + $0x159] sm:$0xff] %vm4752_vm0, %v4825_v14  ;;  %v5097_v29 = vld [vmem:[#allocation3 + $0x4a] ss:$2 sm:$0xff]  ;;  %v4828_v35 = vld [vmem:[%s10816_s22 + $0xf0] sm:$0xff] }
 0x13d   : > { %4855 = vst.msk [vmem:[#allocation2 + $0x139] sm:$0xff] %vm4752_vm0, %v4822_v16  ;;  %4856 = vst.msk [vmem:[#allocation2 + $0x141] sm:$0xff] %vm4752_vm0, %v4823_v19  ;;  %v5012_v34 = vld [vmem:[#allocation3 + $0x18] ss:$2 sm:$0xff]  ;;  %v4829_v36 = vld [vmem:[%s10816_s22 + $0xf8] sm:$0xff] }
 0x13e   : > { %5063 = vrot.lane.b32.xlu0 %v5040_v18, %s14386_s28  ;;  %4859 = vst.msk [vmem:[#allocation2 + $0x169] sm:$0xff] %vm4752_vm0, %v4826_v22  ;;  %4860 = vst.msk [vmem:[#allocation2 + $0x171] sm:$0xff] %vm4752_vm0, %v4827_v25  ;;  %v5014_v37 = vld [vmem:[#allocation3 + $0x30] ss:$2 sm:$0xff]  ;;  %v5010_v41 = vld [vmem:[#allocation3] ss:$2 sm:$0xff] }
 0x13f   : > { %5118 = vrot.lane.b32.xlu1 %v5095_v17, %s14382_s29  ;;  %v4882_v20 = vld [vmem:[#allocation2 + $0x128] sm:$0xff]  ;;  %v4883_v21 = vld [vmem:[#allocation2 + $0x130] sm:$0x3]  ;;  %5000 = vst.msk [vmem:[#allocation3 + $0x1f0] sm:$0x3] %vm4755_vm1, %v4975_v31 }
 0x140   : > { %4906 = vst.msk [vmem:[#allocation3 + $0x98] sm:$0xff] %vm4752_vm0, %v4882_v20  ;;  %5002 = vst.msk [vmem:[#allocation3 + $0x200] sm:$0xff] %vm4752_vm0, %v4882_v20  ;;  %v4978_v32 = vld [vmem:[#allocation2 + $0x130] sm:$0x3]  ;;  %v5016_v42 = vld [vmem:[#allocation3 + $0x48] ss:$2 sm:$0xff] }
 0x141   : > { %4907 = vst.msk [vmem:[#allocation3 + $0xa0] sm:$0x3] %vm4755_vm1, %v4883_v21  ;;  %5003 = vst.msk [vmem:[#allocation3 + $0x208] sm:$0x3] %vm4755_vm1, %v4978_v32 }
 0x142   : > { %5286 = vrot.lane.b32.xlu0 %v5263_v24, %s14384_s21  ;;  %5026 = vst.msk [vmem:[#allocation4 + $0x8] sm:$0xff] %vm4752_vm0, %v5012_v34  ;;  %4861 = vst.msk [vmem:[#allocation2 + $0x181] sm:$0xff] %vm4752_vm0, %v4828_v35 }
 0x143   : > { %v4884_v26 = vld [vmem:[#allocation2 + $0x150] sm:$0xff]  ;;  %v4885_v27 = vld [vmem:[#allocation2 + $0x158] sm:$0xff]  ;;  %v4886_v30 = vld [vmem:[#allocation2 + $0x160] sm:$0x3]  ;;  %5340 = vrot.lane.b32.xlu1 %v5317_v23, %s14380_s24  ;;  %4862 = vst.msk [vmem:[#allocation2 + $0x189] sm:$0xff] %vm4752_vm0, %v4829_v36 }
 0x144   : > { %4908 = vst.msk [vmem:[#allocation3 + $0xa8] sm:$0xff] %vm4752_vm0, %v4884_v26  ;;  %4909 = vst.msk [vmem:[#allocation3 + $0xb0] sm:$0xff] %vm4752_vm0, %v4885_v27  ;;  %v4929_v33 = vld [vmem:[#allocation2 + $0x138] sm:$0xff]  ;;  %v4981_v38 = vld [vmem:[#allocation2 + $0x160] sm:$0x3] }
 0x145   : > { %5004 = vst.msk [vmem:[#allocation3 + $0x210] sm:$0xff] %vm4752_vm0, %v4884_v26  ;;  %5005 = vst.msk [vmem:[#allocation3 + $0x218] sm:$0xff] %vm4752_vm0, %v4885_v27  ;;  %v4930_v39 = vld [vmem:[#allocation2 + $0x140] sm:$0xff]  ;;  %v4931_v40 = vld [vmem:[#allocation2 + $0x148] sm:$0x3] }
 0x146   : > { %4910 = vst.msk [vmem:[#allocation3 + $0xb8] sm:$0x3] %vm4755_vm1, %v4886_v30  ;;  %5006 = vst.msk [vmem:[#allocation3 + $0x220] sm:$0x3] %vm4755_vm1, %v4981_v38 }
 0x147   : > { %4954 = vst.msk [vmem:[#allocation3 + $0x150] sm:$0xff] %vm4752_vm0, %v4929_v33  ;;  %5027 = vst.msk [vmem:[#allocation4 + $0x10] sm:$0xff] %vm4752_vm0, %v5014_v37 }
 0x148   : > { %4955 = vst.msk [vmem:[#allocation3 + $0x158] sm:$0xff] %vm4752_vm0, %v4930_v39  ;;  %5025 = vst.msk [vmem:[#allocation4] sm:$0xff] %vm4752_vm0, %v5010_v41 }
 0x149   : > { %4956 = vst.msk [vmem:[#allocation3 + $0x160] sm:$0x3] %vm4755_vm1, %v4931_v40 }
 0x14a   : > { %4751 = vsyncadd [#allocation7], 32768  ;;  %5174 = vrot.lane.b32.xlu1 %v5151_v28, %s10609_s23  ;;  %5120 = vrot.lane.b32.xlu0 %v5097_v29, %s14382_s29  ;;  %v5374_v43 = vld [vmem:[#allocation3 + $0x181] ss:$2 sm:$0xff]  ;;  %5028 = vst.msk [vmem:[#allocation4 + $0x18] sm:$0xff] %vm4752_vm0, %v5016_v42  ;;  %v4932_v45 = vld [vmem:[#allocation2 + $0x168] sm:$0xff] }
 0x14b   : > { %v5319_v44 = vld [vmem:[#allocation3 + $0x198] ss:$2 sm:$0xff]  ;;  %4957 = vst.msk [vmem:[#allocation3 + $0x168] sm:$0xff] %vm4752_vm0, %v4932_v45  ;;  %v4934_v47 = vld [vmem:[#allocation2 + $0x178] sm:$0x3]  ;;  %s10613_s22 = smov 21  }
 0x14c   : > { %v4933_v46 = vld [vmem:[#allocation2 + $0x170] sm:$0xff]  ;;  %4959 = vst.msk [vmem:[#allocation3 + $0x178] sm:$0x3] %vm4755_vm1, %v4934_v47  ;;  %v5208_v48 = vld [vmem:[#allocation3 + $0xf1] ss:$2 sm:$0xff]  ;;  %s14433_s2 = sld [smem:[#allocation65_spill]] }
 0x14d   : > { %4958 = vst.msk [vmem:[#allocation3 + $0x170] sm:$0xff] %vm4752_vm0, %v4933_v46  ;;  %v4982_v49 = vld [vmem:[#allocation2 + $0x180] sm:$0xff]  ;;  %v5018_v50 = vld [vmem:[#allocation3 + $0x60] ss:$2 sm:$0xff]  ;;  %v4983_v52 = vld [vmem:[#allocation2 + $0x188] sm:$0xff]  ;;  %vm5531_vm3 = vcmask 1042432  }
 0x14e   : > { %5397 = vrot.lane.b32.xlu1 %v5374_v43, %s10613_s22  ;;  %5342 = vrot.lane.b32.xlu0 %v5319_v44, %s14380_s24  ;;  %v5153_v51 = vld [vmem:[#allocation3 + $0x108] ss:$2 sm:$0xff]  ;;  %5007 = vst.msk [vmem:[#allocation3 + $0x228] sm:$0xff] %vm4752_vm0, %v4982_v49  ;;  %v4984_v53 = vld [vmem:[#allocation2 + $0x190] sm:$0x3]  ;;  %5029 = vst.msk [vmem:[#allocation4 + $0x20] sm:$0xff] %vm4752_vm0, %v5018_v50 }
 0x14f   : > { %5008 = vst.msk [vmem:[#allocation3 + $0x230] sm:$0xff] %vm4752_vm0, %v4983_v52  ;;  %v5431_v59 = vld [vmem:[#allocation3 + $0x182] ss:$2 sm:$0xff]  ;;  %v5376_v60 = vld [vmem:[#allocation3 + $0x199] ss:$2 sm:$0xff]  ;;  %vm10614_vm4 = vmmov 1  }
 0x150   : > { %5009 = vst.msk [vmem:[#allocation3 + $0x238] sm:$0x3] %vm4755_vm1, %v4984_v53  ;;  %v5020_v61 = vld [vmem:[#allocation3 + $0x78] ss:$2 sm:$0xff]  ;;  %vm9754_vm5 = vmpackc.low %vm5531_vm3, %vm10614_vm4  ;;  %s10615_s0 = smov 24   ;;  %s14434_s29 = smov 3  }
 0x151   : > { %5030 = vst.msk [vmem:[#allocation4 + $0x28] sm:$0xff] %vm4752_vm0, %v5020_v61  ;;  %v5210_v63 = vld [vmem:[#allocation3 + $0x109] ss:$2 sm:$0xff]  ;;  %v5433_v1 = vld [vmem:[#allocation3 + $0x19a] ss:$2 sm:$0xff]  ;;  %s14435_s28 = smov 15  }
 0x152   : > { %v5495_v54 = vld [vmem:[%s14433_s2] sm:$0xff]  ;;  %v5496_v55 = vld [vmem:[%s14433_s2 + $0x8] sm:$0xff]  ;;  %5231 = vrot.lane.b32.xlu1 %v5208_v48, %s10610_s25  ;;  %5176 = vrot.lane.b32.xlu0 %v5153_v51, %s10609_s23  ;;  %v5042_v0 = vld [vmem:[#allocation3 + $0x61] ss:$2 sm:$0xff]  ;;  %s14436_s21 = smov 6   ;;  %s14437_s24 = smov 18  }
 0x153   : > { %v9749_v56 = vpack.c.bf16 %v5496_v55, %v5495_v54  ;;  %v5497_v57 = vld [vmem:[%s14433_s2 + $0x10] sm:$0xff]  ;;  %v5498_v58 = vld [vmem:[%s14433_s2 + $0x18] sm:$0x7]  ;;  %v5321_v6 = vld [vmem:[#allocation3 + $0x1b0] ss:$2 sm:$0xff]  ;;  %vm5081_vm6 = vcmask 48152  }
 0x154   : > { %v9753_v62 = vpack.c.bf16 %v5498_v58, %v5497_v57  ;;  %v5265_v2 = vld [vmem:[#allocation3 + $0xf2] ss:$2 sm:$0xff]  ;;  %v5099_v4 = vld [vmem:[#allocation3 + $0x62] ss:$2 sm:$0xff]  ;;  %v5044_v5 = vld [vmem:[#allocation3 + $0x79] ss:$2 sm:$0xff] }
 0x155   : > { %9750 = vmatprep.subr.bf16.mxu0 %v9749_v56  ;;  %v5267_v7 = vld [vmem:[#allocation3 + $0x10a] ss:$2 sm:$0xff]  ;;  %v5101_v9 = vld [vmem:[#allocation3 + $0x7a] ss:$2 sm:$0xff]  ;;  %v5378_v10 = vld [vmem:[#allocation3 + $0x1b1] ss:$2 sm:$0xff] }
 0x156   : > { %9752 = vmatpush3.bf16.msra.mxu0 %v9749_v56  ;;  %5454 = vrot.lane.b32.xlu1 %v5431_v59, %s10615_s0  ;;  %v5155_v8 = vld [vmem:[#allocation3 + $0x120] ss:$2 sm:$0xff]  ;;  %v5022_v12 = vld [vmem:[#allocation3 + $0x90] ss:$2 sm:$0xff]  ;;  %v5212_v13 = vld [vmem:[#allocation3 + $0x121] ss:$2 sm:$0xff] }
 0x157   : > { %5399 = vrot.lane.b32.xlu0 %v5376_v60, %s10613_s22  ;;  %9755 = vmatprep.subr.msk.bf16.mxu0 %vm9754_vm5, %v9753_v62  ;;  %v5323_v11 = vld [vmem:[#allocation3 + $0x1c8] ss:$2 sm:$0xff]  ;;  %5031 = vst.msk [vmem:[#allocation4 + $0x30] sm:$0xff] %vm4752_vm0, %v5022_v12  ;;  %v5157_v14 = vld [vmem:[#allocation3 + $0x138] ss:$2 sm:$0xff]  ;;  %vm5138_vm7 = vcmask 72752  }
 0x158   : > { %v5024_v15 = vld [vmem:[#allocation3 + $0xa8] ss:$2 sm:$0xff]  ;;  %v5380_v17 = vld [vmem:[#allocation3 + $0x1c9] ss:$2 sm:$0xff]  ;;  %v5214_v18 = vld [vmem:[#allocation3 + $0x139] ss:$2 sm:$0xff] }
 0x159   : > { %5032 = vst.msk [vmem:[#allocation4 + $0x38] sm:$0xff] %vm4752_vm0, %v5024_v15  ;;  %v5435_v16 = vld [vmem:[#allocation3 + $0x1b2] ss:$2 sm:$0xff]  ;;  %v5046_v19 = vld [vmem:[#allocation3 + $0x91] ss:$2 sm:$0xff]  ;;  %vm5194_vm8 = vcmask 97352  }
 0x15a   : > { %9758 = vmatpush3.bf16.msk.msra.mxu0 %vm9754_vm5, %v9753_v62  ;;  %5233 = vrot.lane.b32.xlu1 %v5210_v63, %s10610_s25  ;;  %v5437_v20 = vld [vmem:[#allocation3 + $0x1ca] ss:$2 sm:$0xff]  ;;  %v5048_v22 = vld [vmem:[#allocation3 + $0xa9] ss:$2 sm:$0xff]  ;;  %v5271_v24 = vld [vmem:[#allocation3 + $0x13a] ss:$2 sm:$0xff] }
 0x15b   : > { %5065 = vrot.lane.b32.xlu0 %v5042_v0, %s14434_s29  ;;  %v5269_v21 = vld [vmem:[#allocation3 + $0x122] ss:$2 sm:$0xff]  ;;  %v5103_v23 = vld [vmem:[#allocation3 + $0x92] ss:$2 sm:$0xff]  ;;  %v5382_v29 = vld [vmem:[#allocation3 + $0x1e1] ss:$2 sm:$0xff] }
 0x15c   : > { %v5325_v25 = vld [vmem:[#allocation3 + $0x1e0] ss:$2 sm:$0xff]  ;;  %v5159_v27 = vld [vmem:[#allocation3 + $0x150] ss:$2 sm:$0xff]  ;;  %v5216_v31 = vld [vmem:[#allocation3 + $0x151] ss:$2 sm:$0xff] }
 0x15d   : > { %v5105_v26 = vld [vmem:[#allocation3 + $0xaa] ss:$2 sm:$0xff]  ;;  %v5384_v32 = vld [vmem:[#allocation3 + $0x1f9] ss:$2 sm:$0xff]  ;;  %v5218_v34 = vld [vmem:[#allocation3 + $0x169] ss:$2 sm:$0xff] }
 0x15e   : > { %5456 = vrot.lane.b32.xlu1 %v5433_v1, %s10615_s0  ;;  %v5327_v28 = vld [vmem:[#allocation3 + $0x1f8] ss:$2 sm:$0xff]  ;;  %v5161_v30 = vld [vmem:[#allocation3 + $0x168] ss:$2 sm:$0xff]  ;;  %v5386_v42 = vld [vmem:[#allocation3 + $0x211] ss:$2 sm:$0xff] }
 0x15f   : > { %5288 = vrot.lane.b32.xlu0 %v5265_v2, %s14435_s28  ;;  %v5439_v33 = vld [vmem:[#allocation3 + $0x1e2] ss:$2 sm:$0xff]  ;;  %v5273_v35 = vld [vmem:[#allocation3 + $0x152] ss:$2 sm:$0xff]  ;;  %v5388_v43 = vld [vmem:[#allocation3 + $0x229] ss:$2 sm:$0xff] }
 0x160   : > { %v5441_v36 = vld [vmem:[#allocation3 + $0x1fa] ss:$2 sm:$0xff]  ;;  %v5275_v37 = vld [vmem:[#allocation3 + $0x16a] ss:$2 sm:$0xff]  ;;  %vm5251_vm9 = vcmask 121952   ;;  %vm5308_vm10 = vcmask 146552  }
 0x161   : > { %v5329_v38 = vld [vmem:[#allocation3 + $0x210] ss:$2 sm:$0xff]  ;;  %vm5364_vm11 = vcmask 171152   ;;  %vm5421_vm12 = vcmask 195752   ;;  %vm5478_vm13 = vcmask 220352   ;;  %vm5506_vm14 = vcmask 220160  }
 0x162   : > { %5122 = vrot.lane.b32.xlu1 %v5099_v4, %s14436_s21  ;;  %v5331_v39 = vld [vmem:[#allocation3 + $0x228] ss:$2 sm:$0xff]  ;;  %vm5699_vm15 = vcmask 261120   ;;  %vm10617_vm0 = vmmov 0   ;;  %vm6346_vm1 = vcmask 64512  }
 0x163   : > { %5067 = vrot.lane.b32.xlu0 %v5044_v5, %s14434_s29  ;;  %v5443_v46 = vld [vmem:[#allocation3 + $0x212] ss:$2 sm:$0xff] }
 0x164   : > { %v5445_v47 = vld [vmem:[#allocation3 + $0x22a] ss:$2 sm:$0xff] }
 0x166   : > { %5344 = vrot.lane.b32.xlu1 %v5321_v6, %s14437_s24 }
 0x167   : > { %5290 = vrot.lane.b32.xlu0 %v5267_v7, %s14435_s28 }
 0x16a   : > { %5178 = vrot.lane.b32.xlu1 %v5155_v8, %s10609_s23 }
 0x16b   : > { %5124 = vrot.lane.b32.xlu0 %v5101_v9, %s14436_s21 }
 0x16e   : > { %5401 = vrot.lane.b32.xlu1 %v5378_v10, %s10613_s22 }
 0x16f   : > { %5346 = vrot.lane.b32.xlu0 %v5323_v11, %s14437_s24 }
 0x172   : > { %5235 = vrot.lane.b32.xlu1 %v5212_v13, %s10610_s25 }
 0x173   : > { %5180 = vrot.lane.b32.xlu0 %v5157_v14, %s10609_s23 }
 0x176   : > { %5458 = vrot.lane.b32.xlu1 %v5435_v16, %s10615_s0 }
 0x177   : > { %5403 = vrot.lane.b32.xlu0 %v5380_v17, %s10613_s22 }
 0x17a   : > { %5237 = vrot.lane.b32.xlu1 %v5214_v18, %s10610_s25 }
 0x17b   : > { %5069 = vrot.lane.b32.xlu0 %v5046_v19, %s14434_s29 }
 0x17e   : > { %5460 = vrot.lane.b32.xlu1 %v5437_v20, %s10615_s0 }
 0x17f   : > { %5292 = vrot.lane.b32.xlu0 %v5269_v21, %s14435_s28 }
 0x182   : > { %5126 = vrot.lane.b32.xlu1 %v5103_v23, %s14436_s21 }
 0x183   : > { %5071 = vrot.lane.b32.xlu0 %v5048_v22, %s14434_s29 }
 0x186   : > { %5348 = vrot.lane.b32.xlu1 %v5325_v25, %s14437_s24 }
 0x187   : > { %5294 = vrot.lane.b32.xlu0 %v5271_v24, %s14435_s28 }
 0x18a   : > { %5182 = vrot.lane.b32.xlu1 %v5159_v27, %s10609_s23 }
 0x18b   : > { %5128 = vrot.lane.b32.xlu0 %v5105_v26, %s14436_s21 }
 0x18e   : > { %5405 = vrot.lane.b32.xlu1 %v5382_v29, %s10613_s22 }
 0x18f   : > { %5350 = vrot.lane.b32.xlu0 %v5327_v28, %s14437_s24 }
 0x192   : > { %5239 = vrot.lane.b32.xlu1 %v5216_v31, %s10610_s25 }
 0x193   : > { %5184 = vrot.lane.b32.xlu0 %v5161_v30, %s10609_s23  ;;  %s14439_s23 = sld [smem:[#allocation66_spill]] }
 0x196   : > { %5462 = vrot.lane.b32.xlu1 %v5439_v33, %s10615_s0 }
 0x197   : > { %5407 = vrot.lane.b32.xlu0 %v5384_v32, %s10613_s22 }
 0x19a   : > { %5296 = vrot.lane.b32.xlu1 %v5273_v35, %s14435_s28 }
 0x19b   : > { %5241 = vrot.lane.b32.xlu0 %v5218_v34, %s10610_s25 }
 0x19c   : > { %v5060_v41 = vpop.permute.xlu0 %5059 }
 0x19d   : > { %v5117_v40 = vpop.permute.xlu1 %5116  ;;  %5083 = vst.msk [vmem:[#allocation4 + $0x8] sm:$0xff] %vm5081_vm6, %v5060_v41 }
 0x19e   : > { %5298 = vrot.lane.b32.xlu1 %v5275_v37, %s14435_s28  ;;  %5140 = vst.msk [vmem:[#allocation4 + $0x8] sm:$0xff] %vm5138_vm7, %v5117_v40 }
 0x19f   : > { %5464 = vrot.lane.b32.xlu0 %v5441_v36, %s10615_s0 }
 0x1a0   : > { %v5171_v45 = vpop.permute.xlu0 %5170 }
 0x1a1   : > { %v5173_v44 = vpop.permute.xlu1 %5172 }
 0x1a2   : > { %5354 = vrot.lane.b32.xlu1 %v5331_v39, %s14437_s24  ;;  %5196 = vst.msk [vmem:[#allocation4 + $0x8] sm:$0xff] %vm5194_vm8, %v5173_v44 }
 0x1a3   : > { %5352 = vrot.lane.b32.xlu0 %v5329_v38, %s14437_s24 }
 0x1a4   : > { %v5228_v49 = vpop.permute.xlu0 %5227 }
 0x1a5   : > { %v5062_v48 = vpop.permute.xlu1 %5061 }
 0x1a6   : > { %5411 = vrot.lane.b32.xlu1 %v5388_v43, %s10613_s22  ;;  %5084 = vst.msk [vmem:[#allocation4 + $0x10] sm:$0xff] %vm5081_vm6, %v5062_v48 }
 0x1a7   : > { %5409 = vrot.lane.b32.xlu0 %v5386_v42, %s10613_s22  ;;  %s14438_s22 = sld [smem:[#allocation67_spill]] }
 0x1a8   : > { %v5230_v51 = vpop.permute.xlu0 %5229 }
 0x1a9   : > { %v5285_v50 = vpop.permute.xlu1 %5284  ;;  %5253 = vst.msk [vmem:[#allocation4 + $0x8] sm:$0xff] %vm5251_vm9, %v5230_v51 }
 0x1aa   : > { %5468 = vrot.lane.b32.xlu1 %v5445_v47, %s10615_s0 }
 0x1ab   : > { %5466 = vrot.lane.b32.xlu0 %v5443_v46, %s10615_s0 }
 0x1ac   : > { %v5058_v53 = vpop.permute.xlu0 %5057 }
 0x1ad   : > { %v5115_v52 = vpop.permute.xlu1 %5114  ;;  %5082 = vst.msk [vmem:[#allocation4] sm:$0xff] %vm5081_vm6, %v5058_v53  ;;  %v5688_v53 = vld [vmem:[%s14438_s22] sm:$0xff] }
 0x1ae   : > { %5139 = vst.msk [vmem:[#allocation4] sm:$0xff] %vm5138_vm7, %v5115_v52 }
 0x1af   : > { %5195 = vst.msk [vmem:[#allocation4] sm:$0xff] %vm5194_vm8, %v5171_v45 }
 0x1b0   : > { %5252 = vst.msk [vmem:[#allocation4] sm:$0xff] %vm5251_vm9, %v5228_v49  ;;  %v5064_v55 = vpop.permute.xlu0 %5063 }
 0x1b1   : > { %v5119_v54 = vpop.permute.xlu1 %5118  ;;  %5085 = vst.msk [vmem:[#allocation4 + $0x18] sm:$0xff] %vm5081_vm6, %v5064_v55 }
 0x1b2   : > { %5141 = vst.msk [vmem:[#allocation4 + $0x10] sm:$0xff] %vm5138_vm7, %v5119_v54  ;;  %v5689_v54 = vld [vmem:[%s14438_s22 + $0x8] sm:$0xff] }
 0x1b3   : > { %5309 = vst.msk [vmem:[#allocation4] sm:$0xff] %vm5308_vm10, %v5285_v50  ;;  %v9759_v55 = vpack.c.bf16 %v5689_v54, %v5688_v53 }
 0x1b4   : > { %v5287_v57 = vpop.permute.xlu0 %5286 }
 0x1b5   : > { %v5341_v56 = vpop.permute.xlu1 %5340  ;;  %5310 = vst.msk [vmem:[#allocation4 + $0x8] sm:$0xff] %vm5308_vm10, %v5287_v57  ;;  %9760 = vmatprep.subr.bf16.mxu1 %v9759_v55  ;;  %v5691_v57 = vld [vmem:[%s14438_s22 + $0x18] sm:$0xff] }
 0x1b6   : > { %5365 = vst.msk [vmem:[#allocation4] sm:$0xff] %vm5364_vm11, %v5341_v56  ;;  %9762 = vmatpush3.bf16.msra.mxu1 %v9759_v55  ;;  %v5690_v56 = vld [vmem:[%s14438_s22 + $0x10] sm:$0xff] }
 0x1bc   : > { %v5175_v58 = vpop.permute.xlu1 %5174  ;;  %v5121_v59 = vpop.permute.xlu0 %5120 }
 0x1bd   : > { %5197 = vst.msk [vmem:[#allocation4 + $0x10] sm:$0xff] %vm5194_vm8, %v5175_v58  ;;  %v9763_v58 = vpack.c.bf16 %v5691_v57, %v5690_v56 }
 0x1be   : > { %5142 = vst.msk [vmem:[#allocation4 + $0x18] sm:$0xff] %vm5138_vm7, %v5121_v59  ;;  %v9420_v59 = vld [vmem:[%s14439_s23] ss:$0 sm:$0xff] }
 0x1bf   : > { %9764 = vmatprep.subr.bf16.mxu1 %v9763_v58 }
 0x1c0   : > { %v5398_v60 = vpop.permute.xlu1 %5397  ;;  %v5343_v61 = vpop.permute.xlu0 %5342  ;;  %9766 = vmatpush3.bf16.msra.mxu1 %v9763_v58 }
 0x1c1   : > { %5422 = vst.msk [vmem:[#allocation4] sm:$0xff] %vm5421_vm12, %v5398_v60  ;;  %9700 = vmatprep.subr.mxu1 %v10606_v3 }
 0x1c2   : > { %5366 = vst.msk [vmem:[#allocation4 + $0x8] sm:$0xff] %vm5364_vm11, %v5343_v61 }
 0x1c4   : > { %v5232_v62 = vpop.permute.xlu1 %5231  ;;  %v5177_v63 = vpop.permute.xlu0 %5176 }
 0x1c5   : > { %5254 = vst.msk [vmem:[#allocation4 + $0x10] sm:$0xff] %vm5251_vm9, %v5232_v62 }
 0x1c6   : > { %5198 = vst.msk [vmem:[#allocation4 + $0x18] sm:$0xff] %vm5194_vm8, %v5177_v63 }
 0x1c8   : > { %v5455_v0 = vpop.permute.xlu1 %5454 }
 0x1c9   : > { %v5400_v1 = vpop.permute.xlu0 %5399  ;;  %5479 = vst.msk [vmem:[#allocation4] sm:$0xff] %vm5478_vm13, %v5455_v0 }
 0x1ca   : > { %5423 = vst.msk [vmem:[#allocation4 + $0x8] sm:$0xff] %vm5421_vm12, %v5400_v1 }
 0x1cc   : > { %v5234_v2 = vpop.permute.xlu1 %5233 }
 0x1cd   : > { %v5066_v4 = vpop.permute.xlu0 %5065  ;;  %5255 = vst.msk [vmem:[#allocation4 + $0x18] sm:$0xff] %vm5251_vm9, %v5234_v2 }
 0x1ce   : > { %5086 = vst.msk [vmem:[#allocation4 + $0x20] sm:$0xff] %vm5081_vm6, %v5066_v4 }
 0x1d0   : > { %v5457_v5 = vpop.permute.xlu1 %5456  ;;  %v5487_v7 = vld [vmem:[#allocation4] sm:$0xff] }
 0x1d1   : > { %v5289_v6 = vpop.permute.xlu0 %5288  ;;  %5480 = vst.msk [vmem:[#allocation4 + $0x8] sm:$0xff] %vm5478_vm13, %v5457_v5  ;;  %9633 = vmatprep.mubr.msk.f32.mxu0 %vm5506_vm14, %v5487_v7 }
 0x1d2   : > { %5311 = vst.msk [vmem:[#allocation4 + $0x10] sm:$0xff] %vm5308_vm10, %v5289_v6 }
 0x1d4   : > { %v5123_v8 = vpop.permute.xlu1 %5122 }
 0x1d5   : > { %v5068_v9 = vpop.permute.xlu0 %5067  ;;  %5143 = vst.msk [vmem:[#allocation4 + $0x20] sm:$0xff] %vm5138_vm7, %v5123_v8 }
 0x1d6   : > { %5087 = vst.msk [vmem:[#allocation4 + $0x28] sm:$0xff] %vm5081_vm6, %v5068_v9 }
 0x1d8   : > { %v5345_v10 = vpop.permute.xlu1 %5344  ;;  %v5488_v12 = vld [vmem:[#allocation4 + $0x8] sm:$0xff] }
 0x1d9   : > { %v5291_v11 = vpop.permute.xlu0 %5290  ;;  %5367 = vst.msk [vmem:[#allocation4 + $0x10] sm:$0xff] %vm5364_vm11, %v5345_v10  ;;  %9634 = vmatmul.mubr.msk.f32.vlgmr.msra.gmra.mrb[0].mxu0 %vm5506_vm14, %v5488_v12 }
 0x1da   : > { %5312 = vst.msk [vmem:[#allocation4 + $0x18] sm:$0xff] %vm5308_vm10, %v5291_v11 }
 0x1dc   : > { %v5179_v13 = vpop.permute.xlu1 %5178 }
 0x1dd   : > { %v5125_v14 = vpop.permute.xlu0 %5124  ;;  %5199 = vst.msk [vmem:[#allocation4 + $0x20] sm:$0xff] %vm5194_vm8, %v5179_v13 }
 0x1de   : > { %5144 = vst.msk [vmem:[#allocation4 + $0x28] sm:$0xff] %vm5138_vm7, %v5125_v14 }
 0x1e0   : > { %v5402_v15 = vpop.permute.xlu1 %5401 }
 0x1e1   : > { %v5347_v16 = vpop.permute.xlu0 %5346  ;;  %5424 = vst.msk [vmem:[#allocation4 + $0x10] sm:$0xff] %vm5421_vm12, %v5402_v15 }
 0x1e2   : > { %5368 = vst.msk [vmem:[#allocation4 + $0x18] sm:$0xff] %vm5364_vm11, %v5347_v16 }
 0x1e4   : > { %v5236_v17 = vpop.permute.xlu1 %5235 }
 0x1e5   : > { %v5181_v18 = vpop.permute.xlu0 %5180  ;;  %5256 = vst.msk [vmem:[#allocation4 + $0x20] sm:$0xff] %vm5251_vm9, %v5236_v17 }
 0x1e6   : > { %5200 = vst.msk [vmem:[#allocation4 + $0x28] sm:$0xff] %vm5194_vm8, %v5181_v18 }
 0x1e8   : > { %v5459_v19 = vpop.permute.xlu1 %5458 }
 0x1e9   : > { %v5404_v20 = vpop.permute.xlu0 %5403  ;;  %5481 = vst.msk [vmem:[#allocation4 + $0x10] sm:$0xff] %vm5478_vm13, %v5459_v19 }
 0x1ea   : > { %5425 = vst.msk [vmem:[#allocation4 + $0x18] sm:$0xff] %vm5421_vm12, %v5404_v20 }
 0x1ec   : > { %v5238_v21 = vpop.permute.xlu1 %5237 }
 0x1ed   : > { %v5070_v22 = vpop.permute.xlu0 %5069  ;;  %5257 = vst.msk [vmem:[#allocation4 + $0x28] sm:$0xff] %vm5251_vm9, %v5238_v21 }
 0x1ee   : > { %5088 = vst.msk [vmem:[#allocation4 + $0x30] sm:$0xff] %vm5081_vm6, %v5070_v22 }
 0x1f0   : > { %v5461_v23 = vpop.permute.xlu1 %5460  ;;  %v5489_v25 = vld [vmem:[#allocation4 + $0x10] sm:$0xff] }
 0x1f1   : > { %v5293_v24 = vpop.permute.xlu0 %5292  ;;  %5482 = vst.msk [vmem:[#allocation4 + $0x18] sm:$0xff] %vm5478_vm13, %v5461_v23  ;;  %9636 = vmatprep.mubr.msk.f32.mxu0 %vm5506_vm14, %v5489_v25 }
 0x1f2   : > { %5313 = vst.msk [vmem:[#allocation4 + $0x20] sm:$0xff] %vm5308_vm10, %v5293_v24 }
 0x1f4   : > { %v5127_v27 = vpop.permute.xlu1 %5126 }
 0x1f5   : > { %v5072_v26 = vpop.permute.xlu0 %5071  ;;  %5145 = vst.msk [vmem:[#allocation4 + $0x30] sm:$0xff] %vm5138_vm7, %v5127_v27 }
 0x1f6   : > { %5089 = vst.msk [vmem:[#allocation4 + $0x38] sm:$0xff] %vm5081_vm6, %v5072_v26 }
 0x1f8   : > { %v5349_v29 = vpop.permute.xlu1 %5348  ;;  %v5490_v30 = vld [vmem:[#allocation4 + $0x18] sm:$0xff] }
 0x1f9   : > { %v5295_v28 = vpop.permute.xlu0 %5294  ;;  %5369 = vst.msk [vmem:[#allocation4 + $0x20] sm:$0xff] %vm5364_vm11, %v5349_v29  ;;  %9637 = vmatmul.mubr.msk.f32.gmra.mrb[2].mxu0 %vm5506_vm14, %v5490_v30 }
 0x1fa   : > { %5314 = vst.msk [vmem:[#allocation4 + $0x28] sm:$0xff] %vm5308_vm10, %v5295_v28 }
 0x1fc   : > { %v5183_v32 = vpop.permute.xlu1 %5182 }
 0x1fd   : > { %v5129_v31 = vpop.permute.xlu0 %5128  ;;  %5201 = vst.msk [vmem:[#allocation4 + $0x30] sm:$0xff] %vm5194_vm8, %v5183_v32 }
 0x1fe   : > { %5146 = vst.msk [vmem:[#allocation4 + $0x38] sm:$0xff] %vm5138_vm7, %v5129_v31 }
 0x200   : > { %v5406_v34 = vpop.permute.xlu1 %5405 }
 0x201   : > { %v5351_v33 = vpop.permute.xlu0 %5350  ;;  %5426 = vst.msk [vmem:[#allocation4 + $0x20] sm:$0xff] %vm5421_vm12, %v5406_v34 }
 0x202   : > { %5370 = vst.msk [vmem:[#allocation4 + $0x28] sm:$0xff] %vm5364_vm11, %v5351_v33 }
 0x204   : > { %v5240_v36 = vpop.permute.xlu1 %5239 }
 0x205   : > { %v5185_v35 = vpop.permute.xlu0 %5184  ;;  %5258 = vst.msk [vmem:[#allocation4 + $0x30] sm:$0xff] %vm5251_vm9, %v5240_v36 }
 0x206   : > { %5202 = vst.msk [vmem:[#allocation4 + $0x38] sm:$0xff] %vm5194_vm8, %v5185_v35 }
 0x208   : > { %v5463_v38 = vpop.permute.xlu1 %5462 }
 0x209   : > { %v5408_v37 = vpop.permute.xlu0 %5407  ;;  %5483 = vst.msk [vmem:[#allocation4 + $0x20] sm:$0xff] %vm5478_vm13, %v5463_v38 }
 0x20a   : > { %5427 = vst.msk [vmem:[#allocation4 + $0x28] sm:$0xff] %vm5421_vm12, %v5408_v37 }
 0x20c   : > { %v5297_v40 = vpop.permute.xlu1 %5296 }
 0x20d   : > { %v5242_v39 = vpop.permute.xlu0 %5241  ;;  %5315 = vst.msk [vmem:[#allocation4 + $0x30] sm:$0xff] %vm5308_vm10, %v5297_v40 }
 0x20e   : > { %5259 = vst.msk [vmem:[#allocation4 + $0x38] sm:$0xff] %vm5251_vm9, %v5242_v39 }
 0x210   : > { %v5299_v42 = vpop.permute.xlu1 %5298  ;;  %v5491_v43 = vld [vmem:[#allocation4 + $0x20] sm:$0xff] }
 0x211   : > { %v5465_v41 = vpop.permute.xlu0 %5464  ;;  %5316 = vst.msk [vmem:[#allocation4 + $0x38] sm:$0xff] %vm5308_vm10, %v5299_v42  ;;  %9639 = vmatprep.mubr.msk.f32.mxu0 %vm5506_vm14, %v5491_v43 }
 0x212   : > { %5484 = vst.msk [vmem:[#allocation4 + $0x28] sm:$0xff] %vm5478_vm13, %v5465_v41 }
 0x214   : > { %v5355_v45 = vpop.permute.xlu1 %5354 }
 0x215   : > { %v5353_v44 = vpop.permute.xlu0 %5352  ;;  %5372 = vst.msk [vmem:[#allocation4 + $0x38] sm:$0xff] %vm5364_vm11, %v5355_v45 }
 0x216   : > { %5371 = vst.msk [vmem:[#allocation4 + $0x30] sm:$0xff] %vm5364_vm11, %v5353_v44 }
 0x218   : > { %v5412_v47 = vpop.permute.xlu1 %5411 }
 0x219   : > { %v5410_v46 = vpop.permute.xlu0 %5409  ;;  %v5492_v48 = vld [vmem:[#allocation4 + $0x28] sm:$0xff]  ;;  %5429 = vst.msk [vmem:[#allocation4 + $0x38] sm:$0xff] %vm5421_vm12, %v5412_v47 }
 0x21a   : > { %5428 = vst.msk [vmem:[#allocation4 + $0x30] sm:$0xff] %vm5421_vm12, %v5410_v46  ;;  %9640 = vmatmul.mubr.msk.f32.gmra.mrb[4].mxu0 %vm5506_vm14, %v5492_v48 }
 0x21c   : > { %v5469_v50 = vpop.permute.xlu1 %5468 }
 0x21d   : > { %v5467_v49 = vpop.permute.xlu0 %5466  ;;  %5486 = vst.msk [vmem:[#allocation4 + $0x38] sm:$0xff] %vm5478_vm13, %v5469_v50 }
 0x21e   : > { %5485 = vst.msk [vmem:[#allocation4 + $0x30] sm:$0xff] %vm5478_vm13, %v5467_v49 }
 0x224   : > { %v5494_v52 = vld [vmem:[#allocation4 + $0x38] sm:$0xff] }
 0x225   : > { %v5493_v51 = vld [vmem:[#allocation4 + $0x30] sm:$0xff] }
 0x226   : > { %9642 = vmatprep.mubr.msk.f32.mxu0 %vm5506_vm14, %v5493_v51 }
 0x227   : > { %9643 = vmatmul.mubr.msk.f32.gmra.mrb[6].mxu0 %vm5506_vm14, %v5494_v52 }
 0x228   : > { %9697 = vmatprep.mubr.msk.f32.mxu0 %vm10617_vm0, %v10606_v3 }
 0x2ac   : > { %v9635_v60 = vpop.f32.mrb[0].mxu0 }
 0x2ad   : > { %v5607_v61 = vadd.f32 %v9635_v60, %v9420_v59  ;;  %v5601_v62 = vpop.f32.mrb[1].mxu0 }
 0x2ae   : > { %v5602_v63 = vadd.f32 %v9420_v59, %v5601_v62  ;;  %v6252_v62 = vld [vmem:[%s14358_s7 + $0x8] sm:$0xff] }
 0x2af   : > { %v5641_v0 = vsub.f32 0.0, %v5607_v61 }
 0x2b0   : > { %v5640_v1 = vsub.f32 0.0, %v5602_v63 }
 0x2b1   : > { %v5650_v2 = vmul.f32 1.442695, %v5641_v0  ;;  %v10616_v0 = vmov 0.0|0.0  }
 0x2b2   : > { %v5648_v4 = vmul.f32 1.442695, %v5640_v1  ;;  %9767 = vmatprep.subr.bf16.mxu0 %v10616_v0 }
 0x2b3   : > { %9903 = vpow2.f32 %v5650_v2  ;;  %v6254_v2 = vld [vmem:[%s14358_s7 + $0x18] sm:$0xff] }
 0x2b4   : > { %9905 = vpow2.f32 %v5648_v4  ;;  %v12390_v4 = vld [vmem:[%s14355_s4] ss:$0 sm:$0xff] }
 0x2bd   : > { %v9904_v5 = vpop.eup %9903 }
 0x2be   : > { %v9906_v6 = vpop.eup %9905  ;;  %v5665_v7 = vadd.f32 1.0, %v9904_v5 }
 0x2bf   : > { %v5664_v8 = vadd.f32 1.0, %v9906_v6  ;;  %v6255_v6 = vld [vmem:[%s14358_s7 + $0x20] sm:$0xff] }
 0x2c0   : > { %9907 = vrcp.f32 %v5665_v7  ;;  %v6256_v7 = vld [vmem:[%s14358_s7 + $0x28] sm:$0xff] }
 0x2c1   : > { %9909 = vrcp.f32 %v5664_v8 }
 0x2ca   : > { %v9908_v9 = vpop.eup %9907 }
 0x2cb   : > { %v9910_v10 = vpop.eup %9909  ;;  %v12343_v13 = vmul.f32 %v9908_v9, %v5607_v61  ;;  %v6251_v61 = vld [vmem:[%s14358_s7] sm:$0xff] }
 0x2cc   : > { %v9638_v11 = vpop.f32.mrb[2].mxu0  ;;  %v12341_v12 = vmul.f32 %v9910_v10, %v5602_v63  ;;  %v6253_v63 = vld [vmem:[%s14358_s7 + $0x10] sm:$0xff]  ;;  %v9768_v1 = vpack.c.bf16 %v6252_v62, %v6251_v61 }
 0x2cd   : > { %v5617_v14 = vadd.f32 %v9638_v11, %v9420_v59  ;;  %v5611_v15 = vpop.f32.mrb[3].mxu0  ;;  %v9771_v5 = vpack.c.bf16 %v6254_v2, %v6253_v63  ;;  %v9774_v11 = vpack.c.bf16 %v6256_v7, %v6255_v6  ;;  %v12461_v7 = vld [vmem:[%s14356_s5 + $0x4] ss:$0 sm:$0xff] }
 0x2ce   : > { %v5612_v16 = vadd.f32 %v9420_v59, %v5611_v15  ;;  %9653 = vmatprep.mubr.msk.f32.mxu1 %vm5699_vm15, %v12341_v12  ;;  %9769 = vmatpush3.bf16.msra.mxu0 %v9768_v1  ;;  %v6257_v15 = vld [vmem:[%s14358_s7 + $0x30] sm:$0xff]  ;;  %v12456_v1 = vld [vmem:[%s14356_s5 + $0x3] ss:$0 sm:$0xff] }
 0x2cf   : > { %v5643_v17 = vsub.f32 0.0, %v5617_v14  ;;  %9654 = vmatmul.mubr.msk.f32.vlgmr.msra.gmra.mrb[0].mxu1 %vm5699_vm15, %v12343_v13  ;;  %9770 = vmatprep.subr.bf16.mxu0 %v10616_v0 }
 0x2d0   : > { %v5642_v18 = vsub.f32 0.0, %v5612_v16 }
 0x2d1   : > { %v5654_v19 = vmul.f32 1.442695, %v5643_v17 }
 0x2d2   : > { %v5652_v20 = vmul.f32 1.442695, %v5642_v18  ;;  %9772 = vmatpush3.bf16.msra.mxu0 %v9771_v5 }
 0x2d3   : > { %9911 = vpow2.f32 %v5654_v19  ;;  %9773 = vmatprep.subr.bf16.mxu0 %v10616_v0 }
 0x2d4   : > { %9913 = vpow2.f32 %v5652_v20 }
 0x2d6   : > { %9775 = vmatpush3.bf16.msra.mxu0 %v9774_v11  ;;  %v12469_v11 = vld [vmem:[%s14356_s5 + $0x5] ss:$0 sm:$0xff] }
 0x2d7   : > { %9776 = vmatprep.subr.bf16.mxu0 %v10616_v0 }
 0x2dd   : > { %v9912_v21 = vpop.eup %9911 }
 0x2de   : > { %v9914_v22 = vpop.eup %9913  ;;  %v5667_v23 = vadd.f32 1.0, %v9912_v21  ;;  %v6259_v21 = vld [vmem:[%s14358_s7 + $0x40] sm:$0xff] }
 0x2df   : > { %v5666_v24 = vadd.f32 1.0, %v9914_v22  ;;  %v6260_v22 = vld [vmem:[%s14358_s7 + $0x48] sm:$0xff] }
 0x2e0   : > { %9915 = vrcp.f32 %v5667_v23  ;;  %v9780_v23 = vpack.c.bf16 %v6260_v22, %v6259_v21 }
 0x2e1   : > { %9917 = vrcp.f32 %v5666_v24  ;;  %v6261_v24 = vld [vmem:[%s14358_s7 + $0x50] sm:$0xff] }
 0x2ea   : > { %v9916_v25 = vpop.eup %9915 }
 0x2eb   : > { %v9918_v26 = vpop.eup %9917  ;;  %v12351_v29 = vmul.f32 %v9916_v25, %v5617_v14  ;;  %v6262_v25 = vld [vmem:[%s14358_s7 + $0x58] sm:$0xff] }
 0x2ec   : > { %v12349_v27 = vmul.f32 %v9918_v26, %v5612_v16  ;;  %v6258_v16 = vld [vmem:[%s14358_s7 + $0x38] sm:$0xff]  ;;  %v9783_v26 = vpack.c.bf16 %v6262_v25, %v6261_v24  ;;  %v12485_v24 = vld [vmem:[%s14356_s5 + $0x7] ss:$0 sm:$0xff] }
 0x2ed   : > { %v9641_v28 = vpop.f32.mrb[4].mxu0  ;;  %v9777_v20 = vpack.c.bf16 %v6258_v16, %v6257_v15 }
 0x2ee   : > { %v5627_v30 = vadd.f32 %v9641_v28, %v9420_v59  ;;  %v5621_v31 = vpop.f32.mrb[5].mxu0  ;;  %9656 = vmatprep.mubr.msk.f32.mxu1 %vm5699_vm15, %v12349_v27  ;;  %v6263_v28 = vld [vmem:[%s14358_s7 + $0x60] sm:$0xff] }
 0x2ef   : > { %v5622_v32 = vadd.f32 %v9420_v59, %v5621_v31  ;;  %9657 = vmatmul.mubr.msk.f32.gmra.mrb[2].mxu1 %vm5699_vm15, %v12351_v29  ;;  %9778 = vmatpush3.bf16.msra.mxu0 %v9777_v20 }
 0x2f0   : > { %v5645_v33 = vsub.f32 0.0, %v5627_v30  ;;  %9779 = vmatprep.subr.bf16.mxu0 %v10616_v0 }
 0x2f1   : > { %v5644_v34 = vsub.f32 0.0, %v5622_v32 }
 0x2f2   : > { %v5658_v35 = vmul.f32 1.442695, %v5645_v33 }
 0x2f3   : > { %v5656_v36 = vmul.f32 1.442695, %v5644_v34  ;;  %9781 = vmatpush3.bf16.msra.mxu0 %v9780_v23 }
 0x2f4   : > { %9919 = vpow2.f32 %v5658_v35  ;;  %9782 = vmatprep.subr.bf16.mxu0 %v10616_v0 }
 0x2f5   : > { %9921 = vpow2.f32 %v5656_v36  ;;  %v6265_v36 = vld [vmem:[%s14358_s7 + $0x70] sm:$0xff] }
 0x2f7   : > { %9784 = vmatpush3.bf16.msra.mxu0 %v9783_v26 }
 0x2f8   : > { %9785 = vmatprep.subr.bf16.mxu0 %v10616_v0 }
 0x2fa   : > { %v9644_v37 = vpop.f32.mrb[6].mxu0 }
 0x2fb   : > { %v5637_v38 = vadd.f32 %v9644_v37, %v9420_v59  ;;  %v5631_v39 = vpop.f32.mrb[7].mxu0  ;;  %v6266_v37 = vld [vmem:[%s14358_s7 + $0x78] sm:$0xff] }
 0x2fc   : > { %v5632_v40 = vadd.f32 %v9420_v59, %v5631_v39 }
 0x2fd   : > { %v5647_v41 = vsub.f32 0.0, %v5637_v38 }
 0x2fe   : > { %v9920_v42 = vpop.eup %9919  ;;  %v5646_v43 = vsub.f32 0.0, %v5632_v40 }
 0x2ff   : > { %v9922_v44 = vpop.eup %9921  ;;  %v5669_v45 = vadd.f32 1.0, %v9920_v42  ;;  %v5662_v46 = vmul.f32 1.442695, %v5647_v41  ;;  %v5911_v41 = vld [vmem:[#allocation5] sm:$0xff] }
 0x300   : > { %v5668_v47 = vadd.f32 1.0, %v9922_v44  ;;  %v5660_v48 = vmul.f32 1.442695, %v5646_v43  ;;  %v5940_v42 = vld [vmem:[#allocation5 + $0x1] sm:$0xff] }
 0x301   : > { %9923 = vrcp.f32 %v5669_v45  ;;  %v12440_v45 = vld [vmem:[%s14356_s5 + $0x1] ss:$0 sm:$0xff] }
 0x302   : > { %9925 = vrcp.f32 %v5668_v47 }
 0x303   : > { %9927 = vpow2.f32 %v5662_v46 }
 0x304   : > { %9929 = vpow2.f32 %v5660_v48 }
 0x30b   : > { %v9924_v49 = vpop.eup %9923 }
 0x30c   : > { %v9926_v50 = vpop.eup %9925  ;;  %v12359_v54 = vmul.f32 %v9924_v49, %v5627_v30  ;;  %v6264_v30 = vld [vmem:[%s14358_s7 + $0x68] sm:$0xff]  ;;  %v5953_v49 = vmul.f32 %v12440_v45, %v5940_v42 }
 0x30d   : > { %v9928_v51 = vpop.eup %9927  ;;  %v12357_v52 = vmul.f32 %v9926_v50, %v5622_v32  ;;  %v9786_v34 = vpack.c.bf16 %v6264_v30, %v6263_v28 }
 0x30e   : > { %v9930_v53 = vpop.eup %9929  ;;  %v5671_v55 = vadd.f32 1.0, %v9928_v51 }
 0x30f   : > { %v5670_v56 = vadd.f32 1.0, %v9930_v53  ;;  %9659 = vmatprep.mubr.msk.f32.mxu1 %vm5699_vm15, %v12357_v52  ;;  %9787 = vmatpush3.bf16.msra.mxu0 %v9786_v34  ;;  %v12449_v53 = vld [vmem:[%s14356_s5 + $0x2] ss:$0 sm:$0xff] }
 0x310   : > { %9931 = vrcp.f32 %v5671_v55  ;;  %9660 = vmatmul.mubr.msk.f32.gmra.mrb[4].mxu1 %vm5699_vm15, %v12359_v54  ;;  %9788 = vmatprep.subr.bf16.mxu0 %v10616_v0  ;;  %v5969_v55 = vld [vmem:[#allocation5 + $0x2] sm:$0xff] }
 0x311   : > { %9933 = vrcp.f32 %v5670_v56  ;;  %v5982_v62 = vmul.f32 %v12449_v53, %v5969_v55 }
 0x31a   : > { %v9932_v57 = vpop.eup %9931 }
 0x31b   : > { %v9934_v58 = vpop.eup %9933  ;;  %v12367_v60 = vmul.f32 %v9932_v57, %v5637_v38  ;;  %v9789_v38 = vpack.c.bf16 %v6266_v37, %v6265_v36 }
 0x31c   : > { %v12365_v59 = vmul.f32 %v9934_v58, %v5632_v40  ;;  %v12433_v40 = vld [vmem:[%s14356_s5] ss:$0 sm:$0xff] }
 0x31d   : > { %9790 = vmatpush3.bf16.msra.mxu0 %v9789_v38  ;;  %v5924_v48 = vmul.f32 %v12433_v40, %v5911_v41 }
 0x31e   : > { %9662 = vmatprep.mubr.msk.f32.mxu1 %vm5699_vm15, %v12365_v59 }
 0x31f   : > { %9663 = vmatmul.mubr.msk.f32.gmra.mrb[6].mxu1 %vm5699_vm15, %v12367_v60  ;;  %v5961_v61 = vadd.f32 %v5953_v49, %v5924_v48 }
 0x320   : > { %9702 = vmatprep.mubr.msk.f32.mxu1 %vm10617_vm0, %v10606_v3 }
 0x321   : > { %v5990_v6 = vadd.f32 %v5982_v62, %v5961_v61 }
 0x3a2   : > { %v9655_v8 = vpop.f32.mrb[0].mxu1 }
 0x3a3   : > { %v5796_v9 = vadd.f32 %v9655_v8, %v12390_v4  ;;  %v5790_v3 = vpop.f32.mrb[1].mxu1 }
 0x3a4   : > { %v5791_v10 = vadd.f32 %v12390_v4, %v5790_v3 }
 0x3a5   : > { %v5830_v14 = vsub.f32 0.0, %v5796_v9 }
 0x3a6   : > { %v5829_v17 = vsub.f32 0.0, %v5791_v10 }
 0x3a7   : > { %v5839_v18 = vmul.f32 1.442695, %v5830_v14 }
 0x3a8   : > { %v5837_v19 = vmul.f32 1.442695, %v5829_v17 }
 0x3a9   : > { %9935 = vpow2.f32 %v5839_v18 }
 0x3aa   : > { %9937 = vpow2.f32 %v5837_v19  ;;  %v12477_v19 = vld [vmem:[%s14356_s5 + $0x6] ss:$0 sm:$0xff] }
 0x3b3   : > { %v9936_v31 = vpop.eup %9935 }
 0x3b4   : > { %v9938_v32 = vpop.eup %9937  ;;  %v5854_v33 = vadd.f32 1.0, %v9936_v31 }
 0x3b5   : > { %v5853_v35 = vadd.f32 1.0, %v9938_v32 }
 0x3b6   : > { %9939 = vrcp.f32 %v5854_v33 }
 0x3b7   : > { %9941 = vrcp.f32 %v5853_v35 }
 0x3c0   : > { %v9940_v39 = vpop.eup %9939 }
 0x3c1   : > { %v9942_v43 = vpop.eup %9941  ;;  %v12435_v44 = vmul.f32 %v9940_v39, %v5796_v9 }
 0x3c2   : > { %v5869_v46 = vmul.f32 %v9942_v43, %v5791_v10  ;;  %v9658_v47 = vpop.f32.mrb[2].mxu1 }
 0x3c3   : > { %5904 = vst [vmem:[#allocation5 + $0x21] sm:$0xff] %v12435_v44  ;;  %v5806_v50 = vadd.f32 %v9658_v47, %v12390_v4  ;;  %v5800_v51 = vpop.f32.mrb[3].mxu1  ;;  %v6041_v23 = vmul.f32 %v12461_v7, %v12435_v44  ;;  %v6128_v34 = vmul.f32 %v12485_v24, %v12435_v44 }
 0x3c4   : > { %5903 = vst [vmem:[#allocation5 + $0x11] sm:$0xff] %v5869_v46  ;;  %v5801_v56 = vadd.f32 %v12390_v4, %v5800_v51  ;;  %v5954_v9 = vmul.f32 %v12440_v45, %v5869_v46  ;;  %v6040_v17 = vmul.f32 %v12461_v7, %v5869_v46 }
 0x3c5   : > { %v5832_v57 = vsub.f32 0.0, %v5806_v50 }
 0x3c6   : > { %v5831_v58 = vsub.f32 0.0, %v5801_v56 }
 0x3c7   : > { %v5843_v63 = vmul.f32 1.442695, %v5832_v57 }
 0x3c8   : > { %v5841_v0 = vmul.f32 1.442695, %v5831_v58 }
 0x3c9   : > { %9943 = vpow2.f32 %v5843_v63 }
 0x3ca   : > { %9945 = vpow2.f32 %v5841_v0  ;;  %v5913_v3 = vld [vmem:[#allocation5 + $0x20] sm:$0xff] }
 0x3cb   : > { %v5912_v2 = vld [vmem:[#allocation5 + $0x10] sm:$0xff]  ;;  %v6012_v18 = vmul.f32 %v12456_v1, %v5913_v3  ;;  %v6099_v28 = vmul.f32 %v12477_v19, %v5913_v3  ;;  %v5926_v49 = vmul.f32 %v12433_v40, %v5913_v3  ;;  %v5971_v57 = vld [vmem:[#allocation5 + $0x22] sm:$0xff] }
 0x3cc   : > { %v5970_v5 = vld [vmem:[#allocation5 + $0x12] sm:$0xff]  ;;  %v5925_v8 = vmul.f32 %v12433_v40, %v5912_v2  ;;  %v6011_v10 = vmul.f32 %v12456_v1, %v5912_v2  ;;  %v5984_v62 = vmul.f32 %v12449_v53, %v5971_v57  ;;  %v6070_v63 = vmul.f32 %v12469_v11, %v5971_v57 }
 0x3cd   : > { %v5983_v15 = vmul.f32 %v12449_v53, %v5970_v5  ;;  %v6069_v22 = vmul.f32 %v12469_v11, %v5970_v5 }
 0x3ce   : > { %v5962_v14 = vadd.f32 %v5954_v9, %v5925_v8  ;;  %v6019_v16 = vadd.f32 %v6011_v10, %v5990_v6 }
 0x3d0   : > { %v5991_v20 = vadd.f32 %v5983_v15, %v5962_v14  ;;  %v6048_v21 = vadd.f32 %v6040_v17, %v6019_v16 }
 0x3d2   : > { %v6020_v25 = vadd.f32 %v6012_v18, %v5991_v20  ;;  %v6077_v30 = vadd.f32 %v6069_v22, %v6048_v21 }
 0x3d3   : > { %v9944_v26 = vpop.eup %9943 }
 0x3d4   : > { %v9946_v31 = vpop.eup %9945  ;;  %v5856_v32 = vadd.f32 1.0, %v9944_v26  ;;  %v6049_v33 = vadd.f32 %v6041_v23, %v6020_v25  ;;  %v6107_v35 = vadd.f32 %v6099_v28, %v6077_v30 }
 0x3d5   : > { %v5855_v36 = vadd.f32 1.0, %v9946_v31 }
 0x3d6   : > { %9947 = vrcp.f32 %v5856_v32  ;;  %v12490_v37 = vadd.f32 %v6128_v34, %v6107_v35  ;;  %v6078_v3 = vadd.f32 %v6070_v63, %v6049_v33 }
 0x3d7   : > { %9949 = vrcp.f32 %v5855_v36 }
 0x3e0   : > { %v9948_v38 = vpop.eup %9947 }
 0x3e1   : > { %v9950_v39 = vpop.eup %9949  ;;  %v12492_v41 = vmul.f32 %v9948_v38, %v5806_v50  ;;  %v5955_v50 = vmul.f32 %v12440_v45, %v12435_v44 }
 0x3e2   : > { %v5871_v42 = vmul.f32 %v9950_v39, %v5801_v56 }
 0x3e3   : > { %v9661_v43 = vpop.f32.mrb[4].mxu1  ;;  %5906 = vst [vmem:[#allocation5 + $0x41] sm:$0xff] %v12492_v41  ;;  %v5963_v61 = vadd.f32 %v5955_v50, %v5926_v49  ;;  %v6043_v30 = vmul.f32 %v12461_v7, %v12492_v41  ;;  %v6130_v49 = vmul.f32 %v12485_v24, %v12492_v41 }
 0x3e4   : > { %v12496_v46 = vadd.f32 %v9661_v43, %v12390_v4  ;;  %v5810_v47 = vpop.f32.mrb[5].mxu1  ;;  %5905 = vst [vmem:[#allocation5 + $0x31] sm:$0xff] %v5871_v42  ;;  %v5956_v6 = vmul.f32 %v12440_v45, %v5871_v42  ;;  %v6042_v17 = vmul.f32 %v12461_v7, %v5871_v42  ;;  %v6129_v20 = vmul.f32 %v12485_v24, %v5871_v42 }
 0x3e5   : > { %v12499_v48 = vadd.f32 %v12390_v4, %v5810_v47  ;;  %v5992_v8 = vadd.f32 %v5984_v62, %v5963_v61 }
 0x3e6   : > { %v5834_v51 = vsub.f32 0.0, %v12496_v46 }
 0x3e7   : > { %v5833_v55 = vsub.f32 0.0, %v12499_v48 }
 0x3e8   : > { %v5847_v56 = vmul.f32 1.442695, %v5834_v51 }
 0x3e9   : > { %v5845_v58 = vmul.f32 1.442695, %v5833_v55 }
 0x3ea   : > { %9951 = vpow2.f32 %v5847_v56  ;;  %v5915_v9 = vld [vmem:[#allocation5 + $0x40] sm:$0xff] }
 0x3eb   : > { %9953 = vpow2.f32 %v5845_v58  ;;  %v5914_v0 = vld [vmem:[#allocation5 + $0x30] sm:$0xff]  ;;  %v6014_v21 = vmul.f32 %v12456_v1, %v5915_v9  ;;  %v6101_v35 = vmul.f32 %v12477_v19, %v5915_v9 }
 0x3ec   : > { %v5972_v2 = vld [vmem:[#allocation5 + $0x32] sm:$0xff]  ;;  %v5927_v5 = vmul.f32 %v12433_v40, %v5914_v0  ;;  %v6013_v44 = vmul.f32 %v12456_v1, %v5914_v0  ;;  %v6100_v10 = vmul.f32 %v12477_v19, %v5914_v0 }
 0x3ed   : > { %v5985_v15 = vmul.f32 %v12449_v53, %v5972_v2  ;;  %v6071_v25 = vmul.f32 %v12469_v11, %v5972_v2 }
 0x3ee   : > { %v5964_v14 = vadd.f32 %v5956_v6, %v5927_v5  ;;  %v6021_v16 = vadd.f32 %v6013_v44, %v5992_v8  ;;  %v6108_v18 = vadd.f32 %v6100_v10, %v6078_v3 }
 0x3f0   : > { %v5993_v22 = vadd.f32 %v5985_v15, %v5964_v14  ;;  %v6050_v23 = vadd.f32 %v6042_v17, %v6021_v16  ;;  %v6137_v26 = vadd.f32 %v6129_v20, %v6108_v18  ;;  %v5928_v14 = vmul.f32 %v12433_v40, %v5915_v9 }
 0x3f2   : > { %v9664_v28 = vpop.f32.mrb[6].mxu1  ;;  %v6022_v31 = vadd.f32 %v6014_v21, %v5993_v22  ;;  %v6079_v36 = vadd.f32 %v6071_v25, %v6050_v23 }
 0x3f3   : > { %v12520_v32 = vadd.f32 %v9664_v28, %v12390_v4  ;;  %v5820_v33 = vpop.f32.mrb[7].mxu1 }
 0x3f4   : > { %v9952_v34 = vpop.eup %9951  ;;  %v12524_v38 = vadd.f32 %v12390_v4, %v5820_v33  ;;  %v6051_v47 = vadd.f32 %v6043_v30, %v6022_v31  ;;  %v6109_v50 = vadd.f32 %v6101_v35, %v6079_v36  ;;  %v12533_v4 = vld [vmem:[%s14356_s5 + $0x8] ss:$0 sm:$0xff] }
 0x3f5   : > { %v9954_v39 = vpop.eup %9953  ;;  %v5858_v42 = vadd.f32 1.0, %v9952_v34  ;;  %v5836_v43 = vsub.f32 0.0, %v12520_v32  ;;  %v6157_v0 = vmul.f32 %v12533_v4, %v5971_v57  ;;  %v12546_v57 = vld [vmem:[%s14357_s6] ss:$0 sm:$0xff]  ;;  %v6158_v16 = vmul.f32 %v12533_v4, %v5972_v2 }
 0x3f6   : > { %v5857_v51 = vadd.f32 1.0, %v9954_v39  ;;  %v5835_v55 = vsub.f32 0.0, %v12524_v38  ;;  %v6138_v61 = vadd.f32 %v6130_v49, %v6109_v50 }
 0x3f7   : > { %9955 = vrcp.f32 %v5858_v42  ;;  %v5851_v56 = vmul.f32 1.442695, %v5836_v43  ;;  %v6165_v10 = vadd.f32 %v6157_v0, %v12490_v37  ;;  %v6166_v9 = vadd.f32 %v6158_v16, %v6137_v26 }
 0x3f8   : > { %9957 = vrcp.f32 %v5857_v51  ;;  %v5849_v58 = vmul.f32 1.442695, %v5835_v55 }
 0x3f9   : > { %9959 = vpow2.f32 %v5851_v56  ;;  %v12552_v17 = vadd.f32 %v12546_v57, %v6165_v10  ;;  %v12563_v34 = vadd.f32 %v12546_v57, %v6166_v9 }
 0x3fa   : > { %9961 = vpow2.f32 %v5849_v58 }
 0x3fb   : > { %v6188_v23 = vsub.f32 0.0, %v12552_v17 }
 0x401   : > { %v9956_v62 = vpop.eup %9955 }
 0x402   : > { %v9958_v63 = vpop.eup %9957  ;;  %v12537_v5 = vmul.f32 %v9956_v62, %v12496_v46  ;;  %v5957_v46 = vmul.f32 %v12440_v45, %v12492_v41 }
 0x403   : > { %v9960_v6 = vpop.eup %9959  ;;  %v5873_v8 = vmul.f32 %v9958_v63, %v12499_v48  ;;  %v5973_v48 = vld [vmem:[#allocation5 + $0x42] sm:$0xff] }
 0x404   : > { %v9962_v44 = vpop.eup %9961  ;;  %5908 = vst [vmem:[#allocation5 + $0x61] sm:$0xff] %v12537_v5  ;;  %v5860_v3 = vadd.f32 1.0, %v9960_v6  ;;  %v5965_v37 = vadd.f32 %v5957_v46, %v5928_v14  ;;  %v5986_v18 = vmul.f32 %v12449_v53, %v5973_v48  ;;  %v6072_v20 = vmul.f32 %v12469_v11, %v5973_v48 }
 0x405   : > { %5907 = vst [vmem:[#allocation5 + $0x51] sm:$0xff] %v5873_v8  ;;  %v5859_v15 = vadd.f32 1.0, %v9962_v44  ;;  %v5958_v30 = vmul.f32 %v12440_v45, %v5873_v8  ;;  %v6159_v31 = vmul.f32 %v12533_v4, %v5973_v48  ;;  %v6044_v42 = vmul.f32 %v12461_v7, %v5873_v8 }
 0x406   : > { %9963 = vrcp.f32 %v5860_v3  ;;  %v5994_v25 = vadd.f32 %v5986_v18, %v5965_v37  ;;  %v6080_v33 = vadd.f32 %v6072_v20, %v6051_v47  ;;  %v6131_v51 = vmul.f32 %v12485_v24, %v5873_v8 }
 0x407   : > { %9965 = vrcp.f32 %v5859_v15  ;;  %v6167_v50 = vadd.f32 %v6159_v31, %v6138_v61  ;;  %v6189_v3 = vsub.f32 0.0, %v12563_v34  ;;  %v6045_v8 = vmul.f32 %v12461_v7, %v12537_v5 }
 0x408   : > { %v6132_v16 = vmul.f32 %v12485_v24, %v12537_v5  ;;  %v5959_v9 = vmul.f32 %v12440_v45, %v12537_v5  ;;  %v6196_v18 = vmul.f32 1.442695, %v6188_v23 }
 0x409   : > { %v12584_v37 = vadd.f32 %v12546_v57, %v6167_v50 }
 0x40a   : > { %9967 = vpow2.f32 %v6196_v18 }
 0x40b   : > { %v5917_v28 = vld [vmem:[#allocation5 + $0x60] sm:$0xff] }
 0x40c   : > { %v5916_v21 = vld [vmem:[#allocation5 + $0x50] sm:$0xff]  ;;  %v6016_v49 = vmul.f32 %v12456_v1, %v5917_v28  ;;  %v6103_v61 = vmul.f32 %v12477_v19, %v5917_v28  ;;  %v5930_v15 = vmul.f32 %v12433_v40, %v5917_v28 }
 0x40d   : > { %v5974_v22 = vld [vmem:[#allocation5 + $0x52] sm:$0xff]  ;;  %v5929_v41 = vmul.f32 %v12433_v40, %v5916_v21  ;;  %v6015_v2 = vmul.f32 %v12456_v1, %v5916_v21  ;;  %v6102_v26 = vmul.f32 %v12477_v19, %v5916_v21 }
 0x40e   : > { %v5987_v36 = vmul.f32 %v12449_v53, %v5974_v22  ;;  %v6073_v47 = vmul.f32 %v12469_v11, %v5974_v22  ;;  %v6160_v44 = vmul.f32 %v12533_v4, %v5974_v22  ;;  %v5967_v28 = vadd.f32 %v5959_v9, %v5930_v15 }
 0x40f   : > { %v5966_v35 = vadd.f32 %v5958_v30, %v5929_v41  ;;  %v6023_v39 = vadd.f32 %v6015_v2, %v5994_v25  ;;  %v6110_v55 = vadd.f32 %v6102_v26, %v6080_v33  ;;  %v6198_v25 = vmul.f32 1.442695, %v6189_v3 }
 0x410   : > { %v9964_v43 = vpop.eup %9963  ;;  %v6190_v30 = vsub.f32 0.0, %v12584_v37 }
 0x411   : > { %v9966_v56 = vpop.eup %9965  ;;  %v5995_v58 = vadd.f32 %v5987_v36, %v5966_v35  ;;  %v6052_v62 = vadd.f32 %v6044_v42, %v6023_v39  ;;  %v12571_v63 = vmul.f32 %v9964_v43, %v12520_v32  ;;  %v6139_v6 = vadd.f32 %v6131_v51, %v6110_v55  ;;  %v5975_v32 = vld [vmem:[#allocation5 + $0x62] sm:$0xff] }
 0x412   : > { %v5875_v0 = vmul.f32 %v9966_v56, %v12524_v38  ;;  %v6161_v21 = vmul.f32 %v12533_v4, %v5975_v32  ;;  %v5988_v2 = vmul.f32 %v12449_v53, %v5975_v32  ;;  %v6074_v31 = vmul.f32 %v12469_v11, %v5975_v32 }
 0x413   : > { %5910 = vst [vmem:[#allocation5 + $0x81] sm:$0xff] %v12571_v63  ;;  %v6024_v10 = vadd.f32 %v6016_v49, %v5995_v58  ;;  %v6081_v14 = vadd.f32 %v6073_v47, %v6052_v62  ;;  %v6168_v46 = vadd.f32 %v6160_v44, %v6139_v6  ;;  %9969 = vpow2.f32 %v6198_v25 }
 0x414   : > { %5909 = vst [vmem:[#allocation5 + $0x71] sm:$0xff] %v5875_v0  ;;  %v5996_v23 = vadd.f32 %v5988_v2, %v5967_v28  ;;  %v5960_v36 = vmul.f32 %v12440_v45, %v5875_v0  ;;  %v6200_v55 = vmul.f32 1.442695, %v6190_v30  ;;  %v6046_v58 = vmul.f32 %v12461_v7, %v5875_v0  ;;  %v6151_v30 = vld [vmem:[#allocation5 + $0x92] sm:$0xff] }
 0x415   : > { %v6053_v38 = vadd.f32 %v6045_v8, %v6024_v10  ;;  %v6111_v48 = vadd.f32 %v6103_v61, %v6081_v14  ;;  %v12590_v22 = vadd.f32 %v12546_v57, %v6168_v46  ;;  %v6093_v10 = vld [vmem:[#allocation5 + $0x90] sm:$0xff]  ;;  %v6047_v14 = vmul.f32 %v12461_v7, %v12571_v63 }
 0x416   : > { %9971 = vpow2.f32 %v6200_v55  ;;  %v6134_v9 = vmul.f32 %v12485_v24, %v12571_v63 }
 0x417   : > { %v6140_v20 = vadd.f32 %v6132_v16, %v6111_v48  ;;  %v6191_v5 = vsub.f32 0.0, %v12590_v22  ;;  %v6082_v43 = vadd.f32 %v6074_v31, %v6053_v38  ;;  %v6122_v48 = vld [vmem:[#allocation5 + $0x91] sm:$0xff] }
 0x419   : > { %v6169_v41 = vadd.f32 %v6161_v21, %v6140_v20  ;;  %v6202_v6 = vmul.f32 1.442695, %v6191_v5  ;;  %v9968_v20 = vpop.eup %9967  ;;  %v6164_v5 = vmul.f32 %v12533_v4, %v6151_v30 }
 0x41a   : > { %v6005_v42 = vld [vmem:[#allocation5 + $0x80] sm:$0xff] }
 0x41b   : > { %v5918_v26 = vld [vmem:[#allocation5 + $0x70] sm:$0xff]  ;;  %v12601_v51 = vadd.f32 %v12546_v57, %v6169_v41  ;;  %v6018_v44 = vmul.f32 %v12456_v1, %v6005_v42  ;;  %v6105_v38 = vmul.f32 %v12477_v19, %v6005_v42  ;;  %9973 = vpow2.f32 %v6202_v6 }
 0x41c   : > { %v5976_v33 = vld [vmem:[#allocation5 + $0x72] sm:$0xff]  ;;  %v5931_v35 = vmul.f32 %v12433_v40, %v5918_v26  ;;  %v6017_v39 = vmul.f32 %v12456_v1, %v5918_v26  ;;  %v6104_v49 = vmul.f32 %v12477_v19, %v5918_v26  ;;  %v6133_v40 = vmul.f32 %v12485_v24, %v5875_v0 }
 0x41d   : > { %v5989_v56 = vmul.f32 %v12449_v53, %v5976_v33  ;;  %v6192_v45 = vsub.f32 0.0, %v12601_v51  ;;  %v6075_v61 = vmul.f32 %v12469_v11, %v5976_v33  ;;  %v6063_v53 = vld [vmem:[#allocation5 + $0x82] sm:$0xff]  ;;  %v6162_v32 = vmul.f32 %v12533_v4, %v5976_v33  ;;  %v9970_v28 = vpop.eup %9969 }
 0x41e   : > { %v5968_v50 = vadd.f32 %v5960_v36, %v5931_v35  ;;  %v6025_v62 = vadd.f32 %v6017_v39, %v5996_v23  ;;  %v6112_v47 = vadd.f32 %v6104_v49, %v6082_v43  ;;  %v6106_v1 = vmul.f32 %v12477_v19, %v6093_v10 }
 0x41f   : > { %v6204_v16 = vmul.f32 1.442695, %v6192_v45  ;;  %v6076_v7 = vmul.f32 %v12469_v11, %v6063_v53  ;;  %v6135_v41 = vmul.f32 %v12485_v24, %v6122_v48  ;;  %v6163_v19 = vmul.f32 %v12533_v4, %v6063_v53 }
 0x420   : > { %v5997_v3 = vadd.f32 %v5989_v56, %v5968_v50  ;;  %v6054_v8 = vadd.f32 %v6046_v58, %v6025_v62  ;;  %v6141_v15 = vadd.f32 %v6133_v40, %v6112_v47  ;;  %v9972_v39 = vpop.eup %9971  ;;  %v6213_v43 = vadd.f32 1.0, %v9970_v28 }
 0x421   : > { %9975 = vpow2.f32 %v6204_v16  ;;  %v6212_v56 = vadd.f32 1.0, %v9968_v20  ;;  %v6214_v58 = vadd.f32 1.0, %v9972_v39 }
 0x422   : > { %v6026_v46 = vadd.f32 %v6018_v44, %v5997_v3  ;;  %v6083_v0 = vadd.f32 %v6075_v61, %v6054_v8  ;;  %v6170_v18 = vadd.f32 %v6162_v32, %v6141_v15 }
 0x424   : > { %v6055_v21 = vadd.f32 %v6047_v14, %v6026_v46  ;;  %v6113_v25 = vadd.f32 %v6105_v38, %v6083_v0  ;;  %v6185_v2 = vadd.f32 %v12546_v57, %v6170_v18 }
 0x425   : > { %v9974_v49 = vpop.eup %9973 }
 0x426   : > { %v6084_v31 = vadd.f32 %v6076_v7, %v6055_v21  ;;  %v6142_v26 = vadd.f32 %v6134_v9, %v6113_v25  ;;  %v6193_v33 = vsub.f32 0.0, %v6185_v2  ;;  %v6215_v4 = vadd.f32 1.0, %v9974_v49 }
 0x428   : > { %v6114_v63 = vadd.f32 %v6106_v1, %v6084_v31  ;;  %v6171_v23 = vadd.f32 %v6163_v19, %v6142_v26  ;;  %v6206_v35 = vmul.f32 1.442695, %v6193_v33 }
 0x42a   : > { %v6143_v11 = vadd.f32 %v6135_v41, %v6114_v63  ;;  %v6186_v36 = vadd.f32 %v12546_v57, %v6171_v23  ;;  %9977 = vpow2.f32 %v6206_v35  ;;  %v6344_v63 = vld [vmem:[%s14360_s9] sm:$0xff] }
 0x42b   : > { %v9976_v62 = vpop.eup %9975  ;;  %9701 = vmatpush3.msra.mxu1 %v6344_v63 }
 0x42c   : > { %v6172_v24 = vadd.f32 %v6164_v5, %v6143_v11  ;;  %v6194_v42 = vsub.f32 0.0, %v6186_v36  ;;  %v6216_v45 = vadd.f32 1.0, %v9976_v62  ;;  %v6267_v5 = vld [vmem:[%s14359_s8] sm:$0x1]  ;;  %v6440_v62 = vld [vmem:[%s14362_s11 + $0x18] sm:$0xff] }
 0x42e   : > { %v6187_v55 = vadd.f32 %v12546_v57, %v6172_v24  ;;  %v6208_v50 = vmul.f32 1.442695, %v6194_v42 }
 0x430   : > { %v6195_v47 = vsub.f32 0.0, %v6187_v55  ;;  %9979 = vpow2.f32 %v6208_v50  ;;  %v6438_v50 = vld [vmem:[%s14362_s11 + $0x8] sm:$0xff] }
 0x431   : > { %9981 = vrcp.f32 %v6213_v43 }
 0x432   : > { %v6210_v40 = vmul.f32 1.442695, %v6195_v47  ;;  %9983 = vrcp.f32 %v6212_v56 }
 0x433   : > { %9985 = vrcp.f32 %v6214_v58  ;;  %v6439_v58 = vld [vmem:[%s14362_s11 + $0x10] sm:$0xff] }
 0x434   : > { %9987 = vpow2.f32 %v6210_v40  ;;  %v9978_v6 = vpop.eup %9977  ;;  %v9795_v47 = vpack.c.bf16 %v6440_v62, %v6439_v58  ;;  %v6442_v40 = vld [vmem:[%s14362_s11 + $0x28] sm:$0xff] }
 0x435   : > { %9989 = vrcp.f32 %v6215_v4  ;;  %v6217_v44 = vadd.f32 1.0, %v9978_v6  ;;  %v6441_v4 = vld [vmem:[%s14362_s11 + $0x20] sm:$0xff]  ;;  %v6443_v6 = vld [vmem:[%s14362_s11 + $0x30] sm:$0xff] }
 0x436   : > { %9991 = vrcp.f32 %v6216_v45  ;;  %v9799_v45 = vpack.c.bf16 %v6442_v40, %v6441_v4  ;;  %v6578_v4 = vld [vmem:[%s14364_s13 + $0x8] sm:$0xff] }
 0x437   : > { %9993 = vrcp.f32 %v6217_v44  ;;  %v6444_v44 = vld [vmem:[%s14362_s11 + $0x38] sm:$0xff]  ;;  %v6586_v40 = vld [vmem:[%s14364_s13 + $0x48] sm:$0xff] }
 0x43a   : > { %v9980_v3 = vpop.eup %9979 }
 0x43b   : > { %v9982_v57 = vpop.eup %9981  ;;  %v6218_v8 = vadd.f32 1.0, %v9980_v3  ;;  %v9803_v3 = vpack.c.bf16 %v6444_v44, %v6443_v6  ;;  %v9454_v6 = vcombine.high %v6578_v4, %v6586_v40  ;;  %v6581_v44 = vld [vmem:[%s14364_s13 + $0x20] sm:$0xff] }
 0x43c   : > { %v9984_v61 = vpop.eup %9983  ;;  %v12624_v53 = vmul.f32 %v9982_v57, %v12563_v34  ;;  %v6445_v57 = vld [vmem:[%s14362_s11 + $0x40] sm:$0xff] }
 0x43d   : > { %v9986_v10 = vpop.eup %9985  ;;  %9995 = vrcp.f32 %v6218_v8  ;;  %v12627_v46 = vmul.f32 %v9984_v61, %v12552_v17  ;;  %v6446_v8 = vld [vmem:[%s14362_s11 + $0x48] sm:$0xff] }
 0x43e   : > { %v9988_v14 = vpop.eup %9987  ;;  %v12630_v0 = vmul.f32 %v9986_v10, %v12584_v37  ;;  %v9807_v61 = vpack.c.bf16 %v6446_v8, %v6445_v57  ;;  %v6447_v10 = vld [vmem:[%s14362_s11 + $0x50] sm:$0xff] }
 0x43f   : > { %v9990_v15 = vpop.eup %9989  ;;  %v6219_v32 = vadd.f32 1.0, %v9988_v14  ;;  %v6236_v16 = vadd.f32 %v12624_v53, %v12627_v46  ;;  %v6448_v14 = vld [vmem:[%s14362_s11 + $0x58] sm:$0xff] }
 0x440   : > { %v9992_v38 = vpop.eup %9991  ;;  %v12633_v48 = vmul.f32 %v9990_v15, %v12590_v22  ;;  %v9811_v15 = vpack.c.bf16 %v6448_v14, %v6447_v10 }
 0x441   : > { %9997 = vrcp.f32 %v6219_v32  ;;  %v9994_v1 = vpop.eup %9993  ;;  %v12638_v34 = vmul.f32 %v9992_v38, %v12601_v51  ;;  %v6237_v9 = vadd.f32 %v6236_v16, %v12630_v0  ;;  %v6449_v32 = vld [vmem:[%s14362_s11 + $0x60] sm:$0xff]  ;;  %v6450_v38 = vld [vmem:[%s14362_s11 + $0x68] sm:$0xff] }
 0x442   : > { %v12641_v18 = vmul.f32 %v9994_v1, %v6185_v2  ;;  %v9815_v16 = vpack.c.bf16 %v6450_v38, %v6449_v32  ;;  %v6451_v1 = vld [vmem:[%s14362_s11 + $0x70] sm:$0xff] }
 0x443   : > { %v6238_v17 = vadd.f32 %v6237_v9, %v12633_v48  ;;  %v6452_v9 = vld [vmem:[%s14362_s11 + $0x78] sm:$0xff] }
 0x445   : > { %v6239_v21 = vadd.f32 %v6238_v17, %v12638_v34  ;;  %v9819_v17 = vpack.c.bf16 %v6452_v9, %v6451_v1  ;;  %v6602_v1 = vld [vmem:[%s14364_s13 + $0xc8] sm:$0xff] }
 0x447   : > { %v9996_v37 = vpop.eup %9995  ;;  %v6240_v22 = vadd.f32 %v6239_v21, %v12641_v18  ;;  %v6585_v21 = vld [vmem:[%s14364_s13 + $0x40] sm:$0xff] }
 0x448   : > { %v12644_v20 = vmul.f32 %v9996_v37, %v6186_v36  ;;  %v6577_v37 = vld [vmem:[%s14364_s13] sm:$0xff] }
 0x44a   : > { %v6241_v28 = vadd.f32 %v6240_v22, %v12644_v20  ;;  %v9451_v22 = vcombine.low %v6577_v37, %v6585_v21 }
 0x44b   : > { %v9998_v7 = vpop.eup %9997 }
 0x44c   : > { %v12648_v25 = vmul.f32 %v9998_v7, %v6187_v55  ;;  %v6437_v55 = vld [vmem:[%s14362_s11] sm:$0xff]  ;;  %v9452_v7 = vcombine.high %v6577_v37, %v6585_v21 }
 0x44d   : > { %v9791_v56 = vpack.c.bf16 %v6438_v50, %v6437_v55 }
 0x44e   : > { %v6242_v51 = vadd.f32 %v6241_v28, %v12648_v25  ;;  %v6345_v28 = vld [vmem:[%s14361_s10] sm:$0x1] }
 0x44f   : > { %9792 = vmatprep.subr.bf16.mxu1 %v9791_v56 }
 0x450   : > { %v6243_v41 = vrot.slane %v6242_v51, 4 }
 0x452   : > { %v6244_v30 = vadd.f32 %v6243_v41, %v6242_v51 }
 0x454   : > { %v6245_v2 = vrot.slane %v6244_v30, 2 }
 0x456   : > { %v6246_v31 = vadd.f32 %v6245_v2, %v6244_v30 }
 0x458   : > { %v6247_v26 = vrot.slane %v6246_v31, 1 }
 0x45a   : > { %v6248_v19 = vadd.f32 %v6247_v26, %v6246_v31 }
 0x45c   : > { %v6250_v33 = vmul.f32 0.015625, %v6248_v19 }
 0x45e   : > { %9698 = vmatmul.mubr.f32.vlgmr.msra.gmra.mrb[8].mxu0 %v6250_v33  ;;  %v6425_v33 = vlaneseq }
 0x460   : > { %v12715_v63 = vshrl.u32 %v6425_v33, 7 }
 0x462   : > { %14440 = vst [vmem:[#allocation19_spill] sm:$0xff] %v12715_v63 }
 0x531   : > { %v6334_v23 = vpop.f32.mrb[8].mxu0 }
 0x532   : > { %v6335_v35 = vadd.f32 %v6334_v23, %v6267_v5  ;;  %v9699_v11 = vpop.f32.mrb[9].mxu0  ;;  %v12718_v5 = vsub.s32 0, %v12715_v63 }
 0x533   : > { %v6593_v11 = vld [vmem:[%s14364_s13 + $0x80] sm:$0xff] }
 0x534   : > { %v6338_v36 = vsub.f32 0.0, %v6335_v35  ;;  %14441 = vst [vmem:[#allocation20_spill] sm:$0xff] %v12718_v5 }
 0x536   : > { %v6339_v39 = vmul.f32 1.442695, %v6338_v36  ;;  %v6601_v36 = vld [vmem:[%s14364_s13 + $0xc0] sm:$0xff] }
 0x538   : > { %9999 = vpow2.f32 %v6339_v39 }
 0x542   : > { %v10000_v24 = vpop.eup %9999 }
 0x543   : > { %v6341_v42 = vadd.f32 1.0, %v10000_v24 }
 0x545   : > { %10001 = vrcp.f32 %v6341_v42  ;;  %v9468_v42 = vcombine.high %v6593_v11, %v6601_v36 }
 0x54f   : > { %v10002_v43 = vpop.eup %10001 }
 0x550   : > { %v6343_v49 = vmul.f32 %v10002_v43, %v6335_v35 }
 0x552   : > { %9703 = vmatmul.mubr.msk.f32.vlgmr.msra.gmra.mrb[8].mxu1 %vm6346_vm1, %v6343_v49  ;;  %v9467_v49 = vcombine.low %v6593_v11, %v6601_v36 }
 0x553   : > { %9794 = vmatpush3.bf16.msra.mxu1 %v9791_v56  ;;  %v6579_v56 = vld [vmem:[%s14364_s13 + $0x10] sm:$0xff] }
 0x554   : > { %9796 = vmatprep.subr.bf16.mxu1 %v9795_v47 }
 0x557   : > { %9798 = vmatpush3.bf16.msra.mxu1 %v9795_v47  ;;  %v10618_v47 = vmov 0  }
 0x558   : > { %9800 = vmatprep.subr.bf16.mxu1 %v9799_v45  ;;  %7043 = vmatprep.mubr.bf16.mxu0 %v10618_v47 }
 0x55b   : > { %9802 = vmatpush3.bf16.msra.mxu1 %v9799_v45  ;;  %v9453_v45 = vcombine.low %v6578_v4, %v6586_v40 }
 0x55c   : > { %9804 = vmatprep.subr.bf16.mxu1 %v9803_v3 }
 0x55f   : > { %9806 = vmatpush3.bf16.msra.mxu1 %v9803_v3  ;;  %v6589_v3 = vld [vmem:[%s14364_s13 + $0x60] sm:$0xff] }
 0x560   : > { %9808 = vmatprep.subr.bf16.mxu1 %v9807_v61  ;;  %v9459_v57 = vcombine.low %v6581_v44, %v6589_v3  ;;  %v9460_v8 = vcombine.high %v6581_v44, %v6589_v3  ;;  %v6606_v44 = vld [vmem:[%s14364_s13 + $0xe8] sm:$0xff] }
 0x563   : > { %9810 = vmatpush3.bf16.msra.mxu1 %v9807_v61  ;;  %v9450_v61 = vld [vmem:[%s14363_s12] ss:$0 sm:$0xff] }
 0x564   : > { %9812 = vmatprep.subr.bf16.mxu1 %v9811_v15 }
 0x567   : > { %9814 = vmatpush3.bf16.msra.mxu1 %v9811_v15 }
 0x568   : > { %9816 = vmatprep.subr.bf16.mxu1 %v9815_v16 }
 0x56b   : > { %9818 = vmatpush3.bf16.msra.mxu1 %v9815_v16  ;;  %v6594_v16 = vld [vmem:[%s14364_s13 + $0x88] sm:$0xff] }
 0x56c   : > { %9820 = vmatprep.subr.bf16.mxu1 %v9819_v17  ;;  %v9469_v33 = vcombine.low %v6594_v16, %v6602_v1 }
 0x56f   : > { %9822 = vmatpush3.bf16.msra.mxu1 %v9819_v17 }
 0x570   : > { %6865 = vmatprep.subr.bf16.mxu1 %v9452_v7 }
 0x625   : > { %v6416_v51 = vpop.f32.mrb[8].mxu1 }
 0x626   : > { %v6417_v41 = vadd.f32 %v6416_v51, %v6345_v28  ;;  %v9704_v30 = vpop.f32.mrb[9].mxu1  ;;  %v9470_v51 = vcombine.high %v6594_v16, %v6602_v1 }
 0x627   : > { %v6588_v30 = vld [vmem:[%s14364_s13 + $0x58] sm:$0xff] }
 0x628   : > { %v6420_v2 = vsub.f32 0.0, %v6417_v41 }
 0x62a   : > { %v6421_v31 = vmul.f32 1.442695, %v6420_v2 }
 0x62c   : > { %10003 = vpow2.f32 %v6421_v31 }
 0x636   : > { %v10004_v26 = vpop.eup %10003 }
 0x637   : > { %v6423_v19 = vadd.f32 1.0, %v10004_v26 }
 0x639   : > { %10005 = vrcp.f32 %v6423_v19 }
 0x643   : > { %v10006_v23 = vpop.eup %10005 }
 0x644   : > { %v6428_v35 = vrot.slane %v10006_v23, %v12718_v5 }
 0x646   : > { %v6429_v39 = vmul.f32 %v6428_v35, %v12627_v46  ;;  %v6430_v24 = vmul.f32 %v6428_v35, %v12624_v53  ;;  %v6431_v43 = vmul.f32 %v6428_v35, %v12630_v0  ;;  %v6432_v55 = vmul.f32 %v6428_v35, %v12633_v48  ;;  %v6587_v48 = vld [vmem:[%s14364_s13 + $0x50] sm:$0xff] }
 0x647   : > { %v6433_v50 = vmul.f32 %v6428_v35, %v12638_v34  ;;  %v6434_v46 = vmul.f32 %v6428_v35, %v12641_v18  ;;  %v6435_v53 = vmul.f32 %v6428_v35, %v12644_v20  ;;  %v6436_v0 = vmul.f32 %v6428_v35, %v12648_v25  ;;  %v6595_v18 = vld [vmem:[%s14364_s13 + $0x90] sm:$0xff] }
 0x648   : > { %9737 = vmatprep.mubr.f32.mxu1 %v6429_v39  ;;  %v9456_v34 = vcombine.high %v6579_v56, %v6587_v48  ;;  %v9455_v58 = vcombine.low %v6579_v56, %v6587_v48  ;;  %v6603_v20 = vld [vmem:[%s14364_s13 + $0xd0] sm:$0xff] }
 0x649   : > { %9738 = vmatmul.mubr.f32.vlgmr.msra.gmra.mrb[10].mxu1 %v6430_v24  ;;  %v9472_v25 = vcombine.high %v6595_v18, %v6603_v20  ;;  %v9471_v62 = vcombine.low %v6595_v18, %v6603_v20  ;;  %v6583_v39 = vld [vmem:[%s14364_s13 + $0x30] sm:$0xff]  ;;  %v6582_v20 = vld [vmem:[%s14364_s13 + $0x28] sm:$0xff] }
 0x64a   : > { %9740 = vmatprep.mubr.f32.mxu1 %v6431_v43  ;;  %6866 = vmatpush1.bf16.msra.mxu1 %v9451_v22  ;;  %v6597_v22 = vld [vmem:[%s14364_s13 + $0xa0] sm:$0xff]  ;;  %v6591_v24 = vld [vmem:[%s14364_s13 + $0x70] sm:$0xff] }
 0x64b   : > { %6867 = vmatprep.subr.bf16.mxu1 %v9468_v42  ;;  %7011 = vmatprep.subr.bf16.mxu0 %v9456_v34  ;;  %v6599_v48 = vld [vmem:[%s14364_s13 + $0xb0] sm:$0xff]  ;;  %v9463_v18 = vcombine.low %v6583_v39, %v6591_v24 }
 0x64c   : > { %7012 = vmatpush1.bf16.msra.mxu0 %v9455_v58  ;;  %v6607_v34 = vld [vmem:[%s14364_s13 + $0xf0] sm:$0xff] }
 0x64d   : > { %9741 = vmatmul.mubr.f32.gmra.mrb[12].mxu1 %v6432_v55  ;;  %7013 = vmatprep.subr.bf16.mxu0 %v9472_v25  ;;  %v6590_v25 = vld [vmem:[%s14364_s13 + $0x68] sm:$0xff] }
 0x64e   : > { %9743 = vmatprep.mubr.f32.mxu1 %v6433_v50  ;;  %6868 = vmatpush1.bf16.msra.mxu1 %v9467_v49  ;;  %v9462_v40 = vcombine.high %v6582_v20, %v6590_v25  ;;  %v9461_v3 = vcombine.low %v6582_v20, %v6590_v25 }
 0x64f   : > { %6938 = vmatprep.subr.bf16.mxu1 %v9454_v6  ;;  %v6598_v6 = vld [vmem:[%s14364_s13 + $0xa8] sm:$0xff] }
 0x650   : > { %7014 = vmatpush1.bf16.msra.mxu0 %v9471_v62  ;;  %v9480_v62 = vcombine.high %v6599_v48, %v6607_v34 }
 0x651   : > { %9744 = vmatmul.mubr.f32.gmra.mrb[14].mxu1 %v6434_v46  ;;  %7157 = vmatprep.subr.bf16.mxu0 %v9460_v8  ;;  %v9464_v46 = vcombine.high %v6583_v39, %v6591_v24  ;;  %v6584_v8 = vld [vmem:[%s14364_s13 + $0x38] sm:$0xff]  ;;  %v14389_v39 = vsub.s32 6, %v12715_v63 }
 0x652   : > { %9746 = vmatprep.mubr.f32.mxu1 %v6435_v53 }
 0x655   : > { %9747 = vmatmul.mubr.f32.gmra.mrb[16].mxu1 %v6436_v0 }
 0x656   : > { %6897 = vmatprep.mubr.bf16.mxu1 %v10618_v47 }
 0x71c   : > { %v9739_v10 = vpop.f32.mrb[10].mxu1 }
 0x71d   : > { %v6532_v14 = vadd.f32 %v9739_v10, %v9450_v61  ;;  %v6526_v15 = vpop.f32.mrb[11].mxu1  ;;  %v9477_v10 = vcombine.low %v6598_v6, %v6606_v44 }
 0x71e   : > { %v6527_v32 = vadd.f32 %v9450_v61, %v6526_v15  ;;  %v6600_v15 = vld [vmem:[%s14364_s13 + $0xb8] sm:$0xff] }
 0x71f   : > { %v6566_v38 = vadd.f32 %v6532_v14, %v12343_v13  ;;  %v6605_v13 = vld [vmem:[%s14364_s13 + $0xe0] sm:$0xff] }
 0x720   : > { %v6565_v9 = vadd.f32 %v6527_v32, %v12341_v12  ;;  %v9742_v17 = vpop.f32.mrb[12].mxu1  ;;  %v6580_v12 = vld [vmem:[%s14364_s13 + $0x18] sm:$0xff]  ;;  %v9476_v26 = vcombine.high %v6597_v22, %v6605_v13  ;;  %v9475_v36 = vcombine.low %v6597_v22, %v6605_v13  ;;  %v14391_v13 = vsub.s32 2, %v12715_v63 }
 0x721   : > { %v6542_v37 = vadd.f32 %v9742_v17, %v9450_v61  ;;  %v6536_v21 = vpop.f32.mrb[13].mxu1  ;;  %v9457_v56 = vcombine.low %v6580_v12, %v6588_v30  ;;  %v6608_v32 = vld [vmem:[%s14364_s13 + $0xf8] sm:$0xff]  ;;  %v12938_v17 = vld [vmem:[%s14365_s14] sm:$0xff] }
 0x722   : > { %v12778_v7 = vpack.c.bf16 %v6566_v38, %v6565_v9  ;;  %v6537_v28 = vadd.f32 %v9450_v61, %v6536_v21  ;;  %v9482_v16 = vcombine.high %v6600_v15, %v6608_v32  ;;  %v9481_v1 = vcombine.low %v6600_v15, %v6608_v32 }
 0x723   : > { %v6568_v41 = vadd.f32 %v6542_v37, %v12351_v29  ;;  %v6631_v9 = vsub.s32 4, %v12715_v63  ;;  %v12941_v37 = vsub.s32 1, %v12715_v63  ;;  %v6635_v21 = vsub.s32 5, %v12715_v63 }
 0x724   : > { %v6567_v2 = vadd.f32 %v6537_v28, %v12349_v27  ;;  %v9745_v31 = vpop.f32.mrb[14].mxu1  ;;  %9483 = vmatmul.mubr.msk.bf16.vlgmr.msra.gmra.mrb[20].mxu1 %vm5699_vm15, %v12778_v7  ;;  %9491 = vmatmul.mubr.msk.bf16.vlgmr.msra.gmra.mrb[12].mxu0 %vm5699_vm15, %v12778_v7  ;;  %v9458_v27 = vcombine.high %v6580_v12, %v6588_v30  ;;  %v12946_v22 = vrot.slane %v12938_v17, %v12718_v5 }
 0x725   : > { %v6552_v19 = vadd.f32 %v9745_v31, %v9450_v61  ;;  %6939 = vmatpush1.bf16.msra.mxu1 %v9453_v45  ;;  %v6546_v29 = vpop.f32.mrb[15].mxu1  ;;  %6907 = vmatprep.mubr.bf16.mxu1 %v10618_v47  ;;  %v9479_v45 = vcombine.low %v6599_v48, %v6607_v34  ;;  %14442 = vst [vmem:[#allocation21_spill] sm:$0xff] %v12941_v37 }
 0x726   : > { %v12793_v23 = vpack.c.bf16 %v6568_v41, %v6567_v2  ;;  %v6547_v35 = vadd.f32 %v9450_v61, %v6546_v29  ;;  %7053 = vmatprep.mubr.bf16.mxu0 %v10618_v47  ;;  %6940 = vmatprep.subr.bf16.mxu1 %v9470_v51  ;;  %v12959_v28 = vrot.slane %v12938_v17, %v12941_v37  ;;  %v14390_v41 = vsub.s32 3, %v12715_v63 }
 0x727   : > { %v6570_v11 = vadd.f32 %v6552_v19, %v12359_v54  ;;  %7158 = vmatpush1.bf16.msra.mxu0 %v9459_v57  ;;  %v9478_v57 = vcombine.high %v6598_v6, %v6606_v44  ;;  %v12964_v51 = vrot.slane %v12938_v17, %v6635_v21  ;;  %v13021_v44 = vrot.slane %v12938_v17, %v14389_v39 }
 0x728   : > { %v6569_v42 = vadd.f32 %v6547_v35, %v12357_v52  ;;  %v9748_v43 = vpop.f32.mrb[16].mxu1  ;;  %7159 = vmatprep.subr.bf16.mxu0 %v9476_v26 }
 0x729   : > { %v6562_v49 = vadd.f32 %v9748_v43, %v9450_v61  ;;  %v6556_v55 = vpop.f32.mrb[17].mxu1  ;;  %6941 = vmatpush1.bf16.msra.mxu1 %v9469_v33  ;;  %v12980_v33 = vrot.slane %v12938_v17, %v14391_v13  ;;  %14443 = vst [vmem:[#allocation22_spill] sm:$0xff] %v13021_v44 }
 0x72a   : > { %v12804_v50 = vpack.c.bf16 %v6570_v11, %v6569_v42  ;;  %v6557_v54 = vadd.f32 %v9450_v61, %v6556_v55  ;;  %7084 = vmatprep.subr.bf16.mxu1 %v9458_v27  ;;  %v6592_v61 = vld [vmem:[%s14364_s13 + $0x78] sm:$0xff] }
 0x72b   : > { %v6572_v53 = vadd.f32 %v6562_v49, %v12367_v60  ;;  %7160 = vmatpush1.bf16.msra.mxu0 %v9475_v36  ;;  %v6604_v60 = vld [vmem:[%s14364_s13 + $0xd8] sm:$0xff]  ;;  %v9466_v14 = vcombine.high %v6584_v8, %v6592_v61  ;;  %v9465_v38 = vcombine.low %v6584_v8, %v6592_v61  ;;  %v12991_v36 = vrot.slane %v12938_v17, %v14390_v41 }
 0x72c   : > { %v6571_v0 = vadd.f32 %v6557_v54, %v12365_v59  ;;  %9484 = vmatmul.mubr.msk.bf16.gmra.mrb[24].mxu1 %vm5699_vm15, %v12793_v23  ;;  %9492 = vmatmul.mubr.msk.bf16.gmra.mrb[16].mxu0 %vm5699_vm15, %v12793_v23  ;;  %v6596_v59 = vld [vmem:[%s14364_s13 + $0x98] sm:$0xff] }
 0x72d   : > { %6917 = vmatprep.mubr.bf16.mxu1 %v10618_v47  ;;  %7063 = vmatprep.mubr.bf16.mxu0 %v10618_v47  ;;  %v9474_v58 = vcombine.high %v6596_v59, %v6604_v60  ;;  %v9473_v4 = vcombine.low %v6596_v59, %v6604_v60 }
 0x72e   : > { %v12814_v52 = vpack.c.bf16 %v6572_v53, %v6571_v0  ;;  %7303 = vmatprep.subr.bf16.mxu0 %v9464_v46 }
 0x734   : > { %9485 = vmatmul.mubr.msk.bf16.gmra.mrb[28].mxu1 %vm5699_vm15, %v12804_v50  ;;  %9493 = vmatmul.mubr.msk.bf16.gmra.mrb[20].mxu0 %vm5699_vm15, %v12804_v50 }
 0x735   : > { %6927 = vmatprep.mubr.bf16.mxu1 %v10618_v47  ;;  %7073 = vmatprep.mubr.bf16.mxu0 %v10618_v47 }
 0x73c   : > { %9486 = vmatmul.mubr.msk.bf16.gmra.mrb[32].mxu1 %vm5699_vm15, %v12814_v52  ;;  %9494 = vmatmul.mubr.msk.bf16.gmra.mrb[24].mxu0 %vm5699_vm15, %v12814_v52 }
 0x73d   : > { %6970 = vmatprep.mubr.bf16.mxu1 %v10618_v47  ;;  %7189 = vmatprep.mubr.bf16.mxu0 %v10618_v47 }
 0x744   : > { %9487 = vmatmul.mubr.msk.bf16.vlgmr.msra.gmra.mrb[36].mxu1 %vm5699_vm15, %v12778_v7  ;;  %9499 = vmatmul.mubr.msk.bf16.vlgmr.msra.gmra.mrb[28].mxu0 %vm5699_vm15, %v12778_v7 }
 0x745   : > { %7085 = vmatpush1.bf16.msra.mxu1 %v9457_v56  ;;  %6980 = vmatprep.mubr.bf16.mxu1 %v10618_v47 }
 0x746   : > { %7199 = vmatprep.mubr.bf16.mxu0 %v10618_v47  ;;  %7086 = vmatprep.subr.bf16.mxu1 %v9474_v58 }
 0x747   : > { %7304 = vmatpush1.bf16.msra.mxu0 %v9463_v18 }
 0x748   : > { %7305 = vmatprep.subr.bf16.mxu0 %v9480_v62 }
 0x749   : > { %7087 = vmatpush1.bf16.msra.mxu1 %v9473_v4 }
 0x74a   : > { %7230 = vmatprep.subr.bf16.mxu1 %v9462_v40 }
 0x74b   : > { %7306 = vmatpush1.bf16.msra.mxu0 %v9479_v45 }
 0x74c   : > { %9488 = vmatmul.mubr.msk.bf16.gmra.mrb[40].mxu1 %vm5699_vm15, %v12793_v23  ;;  %9500 = vmatmul.mubr.msk.bf16.gmra.mrb[32].mxu0 %vm5699_vm15, %v12793_v23 }
 0x74d   : > { %6990 = vmatprep.mubr.bf16.mxu1 %v10618_v47  ;;  %7209 = vmatprep.mubr.bf16.mxu0 %v10618_v47 }
 0x754   : > { %9489 = vmatmul.mubr.msk.bf16.gmra.mrb[44].mxu1 %vm5699_vm15, %v12804_v50  ;;  %9501 = vmatmul.mubr.msk.bf16.gmra.mrb[36].mxu0 %vm5699_vm15, %v12804_v50 }
 0x755   : > { %7000 = vmatprep.mubr.bf16.mxu1 %v10618_v47  ;;  %7219 = vmatprep.mubr.bf16.mxu0 %v10618_v47 }
 0x75c   : > { %9490 = vmatmul.mubr.msk.bf16.gmra.mrb[48].mxu1 %vm5699_vm15, %v12814_v52  ;;  %9502 = vmatmul.mubr.msk.bf16.gmra.mrb[40].mxu0 %vm5699_vm15, %v12814_v52 }
 0x75d   : > { %7116 = vmatprep.mubr.bf16.mxu1 %v10618_v47  ;;  %7335 = vmatprep.mubr.bf16.mxu0 %v10618_v47 }
 0x764   : > { %9495 = vmatmul.mubr.msk.bf16.vlgmr.msra.gmra.mrb[52].mxu1 %vm5699_vm15, %v12778_v7  ;;  %9507 = vmatmul.mubr.msk.bf16.vlgmr.msra.gmra.mrb[44].mxu0 %vm5699_vm15, %v12778_v7 }
 0x765   : > { %7231 = vmatpush1.bf16.msra.mxu1 %v9461_v3  ;;  %7126 = vmatprep.mubr.bf16.mxu1 %v10618_v47 }
 0x766   : > { %7345 = vmatprep.mubr.bf16.mxu0 %v10618_v47  ;;  %7232 = vmatprep.subr.bf16.mxu1 %v9478_v57 }
 0x769   : > { %7233 = vmatpush1.bf16.msra.mxu1 %v9477_v10 }
 0x76a   : > { %7376 = vmatprep.subr.bf16.mxu1 %v9466_v14 }
 0x76c   : > { %9496 = vmatmul.mubr.msk.bf16.gmra.mrb[56].mxu1 %vm5699_vm15, %v12793_v23  ;;  %9508 = vmatmul.mubr.msk.bf16.gmra.mrb[48].mxu0 %vm5699_vm15, %v12793_v23 }
 0x76d   : > { %7136 = vmatprep.mubr.bf16.mxu1 %v10618_v47  ;;  %7355 = vmatprep.mubr.bf16.mxu0 %v10618_v47 }
 0x774   : > { %9497 = vmatmul.mubr.msk.bf16.gmra.mrb[60].mxu1 %vm5699_vm15, %v12804_v50  ;;  %9509 = vmatmul.mubr.msk.bf16.gmra.mrb[52].mxu0 %vm5699_vm15, %v12804_v50 }
 0x775   : > { %7146 = vmatprep.mubr.bf16.mxu1 %v10618_v47  ;;  %7365 = vmatprep.mubr.bf16.mxu0 %v10618_v47 }
 0x77c   : > { %9498 = vmatmul.mubr.msk.bf16.gmra.mrb[64].mxu1 %vm5699_vm15, %v12814_v52  ;;  %9510 = vmatmul.mubr.msk.bf16.gmra.mrb[56].mxu0 %vm5699_vm15, %v12814_v52 }
 0x77d   : > { %7262 = vmatprep.mubr.bf16.mxu1 %v10618_v47 }
 0x784   : > { %9503 = vmatmul.mubr.msk.bf16.vlgmr.msra.gmra.mrb[68].mxu1 %vm5699_vm15, %v12778_v7 }
 0x785   : > { %7377 = vmatpush1.bf16.msra.mxu1 %v9465_v38  ;;  %7272 = vmatprep.mubr.bf16.mxu1 %v10618_v47 }
 0x786   : > { %7378 = vmatprep.subr.bf16.mxu1 %v9482_v16  ;;  %v14388_v16 = vsub.s32 7, %v12715_v63 }
 0x789   : > { %7379 = vmatpush1.bf16.msra.mxu1 %v9481_v1 }
 0x78c   : > { %9504 = vmatmul.mubr.msk.bf16.gmra.mrb[72].mxu1 %vm5699_vm15, %v12793_v23 }
 0x78d   : > { %7282 = vmatprep.mubr.bf16.mxu1 %v10618_v47 }
 0x794   : > { %9505 = vmatmul.mubr.msk.bf16.gmra.mrb[76].mxu1 %vm5699_vm15, %v12804_v50 }
 0x795   : > { %7292 = vmatprep.mubr.bf16.mxu1 %v10618_v47 }
 0x79c   : > { %9506 = vmatmul.mubr.msk.bf16.gmra.mrb[80].mxu1 %vm5699_vm15, %v12814_v52 }
 0x79d   : > { %7408 = vmatprep.mubr.bf16.mxu1 %v10618_v47 }
 0x7a4   : > { %9511 = vmatmul.mubr.msk.bf16.vlgmr.msra.gmra.mrb[84].mxu1 %vm5699_vm15, %v12778_v7  ;;  %v12955_v7 = vld [vmem:[%s14365_s14 + $0x8] sm:$0xff] }
 0x7a5   : > { %7418 = vmatprep.mubr.bf16.mxu1 %v10618_v47  ;;  %v12969_v2 = vrot.slane %v12955_v7, %v12718_v5  ;;  %v13016_v62 = vrot.slane %v12955_v7, %v12941_v37  ;;  %v13030_v10 = vrot.slane %v12955_v7, %v6631_v9 }
 0x7a7   : > { %14444 = vst [vmem:[#allocation23_spill] sm:$0xff] %v13030_v10 }
 0x7ac   : > { %9512 = vmatmul.mubr.msk.bf16.gmra.mrb[88].mxu1 %vm5699_vm15, %v12793_v23 }
 0x7ad   : > { %7428 = vmatprep.mubr.bf16.mxu1 %v10618_v47 }
 0x7b4   : > { %9513 = vmatmul.mubr.msk.bf16.gmra.mrb[92].mxu1 %vm5699_vm15, %v12804_v50 }
 0x7b5   : > { %7438 = vmatprep.mubr.bf16.mxu1 %v10618_v47  ;;  %v12949_v47 = vrot.slane %v12938_v17, %v6631_v9 }
 0x7bc   : > { %9514 = vmatmul.mubr.msk.bf16.gmra.mrb[96].mxu1 %vm5699_vm15, %v12814_v52 }
 0x7f7   : > { %v6899_v12 = vpop.f32.mrb[20].mxu1  ;;  %v7045_v30 = vpop.f32.mrb[12].mxu0 }
 0x7f8   : > { %v12972_v31 = vadd.f32 %v6899_v12, %v12946_v22  ;;  %v12975_v26 = vadd.f32 %v7045_v30, %v12949_v47  ;;  %v6901_v19 = vpop.f32.mrb[21].mxu1  ;;  %v7047_v29 = vpop.f32.mrb[13].mxu0 }
 0x7f9   : > { %v12983_v23 = vadd.f32 %v6901_v19, %v12959_v28  ;;  %v12986_v35 = vadd.f32 %v7047_v29, %v12964_v51  ;;  %v6903_v27 = vpop.f32.mrb[22].mxu1  ;;  %v7049_v11 = vpop.f32.mrb[14].mxu0 }
 0x7fa   : > { %v7449_v24 = vsub.f32 0.0, %v12972_v31  ;;  %v7453_v42 = vsub.f32 0.0, %v12975_v26  ;;  %v12997_v43 = vadd.f32 %v6903_v27, %v12946_v22  ;;  %v13000_v49 = vadd.f32 %v7049_v11, %v12949_v47  ;;  %v6905_v55 = vpop.f32.mrb[23].mxu1  ;;  %v7051_v50 = vpop.f32.mrb[15].mxu0 }
 0x7fb   : > { %v7450_v54 = vsub.f32 0.0, %v12983_v23  ;;  %v7454_v46 = vsub.f32 0.0, %v12986_v35  ;;  %v13005_v53 = vadd.f32 %v6905_v55, %v12959_v28  ;;  %v13008_v0 = vadd.f32 %v7051_v50, %v12964_v51 }
 0x7fc   : > { %v7577_v52 = vmul.f32 1.442695, %v7449_v24  ;;  %v7585_v59 = vmul.f32 1.442695, %v7453_v42  ;;  %v7465_v60 = vsub.f32 0.0, %v12997_v43  ;;  %v7469_v56 = vsub.f32 0.0, %v13000_v49 }
 0x7fd   : > { %v7579_v48 = vmul.f32 1.442695, %v7450_v54  ;;  %v7587_v34 = vmul.f32 1.442695, %v7454_v46  ;;  %v7466_v58 = vsub.f32 0.0, %v13005_v53  ;;  %v7470_v18 = vsub.f32 0.0, %v13008_v0 }
 0x7fe   : > { %10007 = vpow2.f32 %v7577_v52  ;;  %v7609_v20 = vmul.f32 1.442695, %v7465_v60  ;;  %v7617_v25 = vmul.f32 1.442695, %v7469_v56 }
 0x7ff   : > { %10009 = vpow2.f32 %v7585_v59  ;;  %v7611_v4 = vmul.f32 1.442695, %v7466_v58  ;;  %v7619_v40 = vmul.f32 1.442695, %v7470_v18  ;;  %v6909_v45 = vpop.f32.mrb[24].mxu1  ;;  %v7055_v6 = vpop.f32.mrb[16].mxu0  ;;  %v13062_v58 = vrot.slane %v12938_v17, %v14388_v16 }
 0x800   : > { %10011 = vpow2.f32 %v7579_v48  ;;  %v13024_v3 = vadd.f32 %v6909_v45, %v12946_v22  ;;  %v13027_v57 = vadd.f32 %v7055_v6, %v12949_v47  ;;  %v6911_v8 = vpop.f32.mrb[25].mxu1  ;;  %v7057_v61 = vpop.f32.mrb[17].mxu0  ;;  %v13067_v18 = vrot.slane %v12955_v7, %v6635_v21 }
 0x801   : > { %10013 = vpow2.f32 %v7587_v34  ;;  %v13033_v14 = vadd.f32 %v6911_v8, %v12959_v28  ;;  %v13036_v15 = vadd.f32 %v7057_v61, %v12964_v51  ;;  %v6913_v32 = vpop.f32.mrb[26].mxu1  ;;  %v7059_v38 = vpop.f32.mrb[18].mxu0  ;;  %14445 = vst [vmem:[#allocation24_spill] sm:$0xff] %v13062_v58 }
 0x802   : > { %10015 = vpow2.f32 %v7609_v20  ;;  %v7481_v1 = vsub.f32 0.0, %v13024_v3  ;;  %v7485_v12 = vsub.f32 0.0, %v13027_v57  ;;  %v13042_v30 = vadd.f32 %v6913_v32, %v12946_v22  ;;  %v6915_v9 = vpop.f32.mrb[27].mxu1  ;;  %v7061_v19 = vpop.f32.mrb[19].mxu0  ;;  %14446 = vst [vmem:[#allocation25_spill] sm:$0xff] %v13067_v18 }
 0x803   : > { %10017 = vpow2.f32 %v7617_v25  ;;  %v7482_v29 = vsub.f32 0.0, %v13033_v14  ;;  %v7486_v27 = vsub.f32 0.0, %v13036_v15  ;;  %v13047_v11 = vadd.f32 %v7059_v38, %v12949_v47 }
 0x804   : > { %10019 = vpow2.f32 %v7611_v4  ;;  %v7641_v24 = vmul.f32 1.442695, %v7481_v1  ;;  %v7649_v42 = vmul.f32 1.442695, %v7485_v12  ;;  %v7497_v55 = vsub.f32 0.0, %v13042_v30 }
 0x805   : > { %10021 = vpow2.f32 %v7619_v40  ;;  %v7643_v50 = vmul.f32 1.442695, %v7482_v29  ;;  %v7651_v54 = vmul.f32 1.442695, %v7486_v27  ;;  %v7501_v46 = vsub.f32 0.0, %v13047_v11 }
 0x806   : > { %10023 = vpow2.f32 %v7641_v24  ;;  %v7673_v52 = vmul.f32 1.442695, %v7497_v55  ;;  %v13052_v59 = vadd.f32 %v6915_v9, %v12959_v28  ;;  %v13055_v60 = vadd.f32 %v7061_v19, %v12964_v51 }
 0x807   : > { %10025 = vpow2.f32 %v7649_v42  ;;  %v13057_v56 = vmul.f32 1.442695, %v7501_v46  ;;  %v6919_v48 = vpop.f32.mrb[28].mxu1  ;;  %v7065_v34 = vpop.f32.mrb[20].mxu0 }
 0x808   : > { %v10008_v20 = vpop.eup %10007  ;;  %10027 = vpow2.f32 %v7643_v50  ;;  %v7498_v25 = vsub.f32 0.0, %v13052_v59  ;;  %v7502_v4 = vsub.f32 0.0, %v13055_v60  ;;  %v13072_v40 = vadd.f32 %v6919_v48, %v12946_v22  ;;  %v6921_v45 = vpop.f32.mrb[29].mxu1 }
 0x809   : > { %v7067_v6 = vpop.f32.mrb[21].mxu0  ;;  %v10010_v8 = vpop.eup %10009  ;;  %v7833_v61 = vadd.f32 1.0, %v10008_v20  ;;  %10029 = vpow2.f32 %v7651_v54  ;;  %v13075_v17 = vadd.f32 %v7065_v34, %v12949_v47  ;;  %v13078_v21 = vadd.f32 %v6921_v45, %v12959_v28 }
 0x80a   : > { %v6923_v7 = vpop.f32.mrb[30].mxu1  ;;  %v7069_v32 = vpop.f32.mrb[22].mxu0  ;;  %v7837_v1 = vadd.f32 1.0, %v10010_v8  ;;  %10031 = vpow2.f32 %v7673_v52  ;;  %v13080_v12 = vmul.f32 1.442695, %v7498_v25  ;;  %v7513_v24 = vsub.f32 0.0, %v13072_v40 }
 0x80b   : > { %v10012_v38 = vpop.eup %10011  ;;  %v13082_v9 = vmul.f32 1.442695, %v7502_v4  ;;  %v6925_v19 = vpop.f32.mrb[31].mxu1  ;;  %10033 = vrcp.f32 %v7833_v61  ;;  %v7517_v42 = vsub.f32 0.0, %v13075_v17  ;;  %v7514_v46 = vsub.f32 0.0, %v13078_v21 }
 0x80c   : > { %v10014_v29 = vpop.eup %10013  ;;  %v7834_v27 = vadd.f32 1.0, %v10012_v38  ;;  %v7071_v55 = vpop.f32.mrb[23].mxu0  ;;  %10035 = vrcp.f32 %v7837_v1  ;;  %v13088_v52 = vadd.f32 %v7067_v6, %v12964_v51  ;;  %v13090_v20 = vmul.f32 1.442695, %v7513_v24 }
 0x80d   : > { %v10016_v50 = vpop.eup %10015  ;;  %v7838_v54 = vadd.f32 1.0, %v10014_v29  ;;  %v13092_v25 = vmul.f32 1.442695, %v7517_v42  ;;  %v13094_v8 = vmul.f32 1.442695, %v7514_v46  ;;  %v13098_v6 = vadd.f32 %v6923_v7, %v12946_v22 }
 0x80e   : > { %v10018_v48 = vpop.eup %10017  ;;  %10037 = vrcp.f32 %v7834_v27  ;;  %v7849_v34 = vadd.f32 1.0, %v10016_v50  ;;  %v7518_v61 = vsub.f32 0.0, %v13088_v52  ;;  %v13101_v29 = vadd.f32 %v7069_v32, %v12949_v47 }
 0x80f   : > { %v10020_v4 = vpop.eup %10019  ;;  %10039 = vrcp.f32 %v7838_v54  ;;  %v7853_v45 = vadd.f32 1.0, %v10018_v48  ;;  %v6929_v27 = vpop.f32.mrb[32].mxu1  ;;  %v13106_v46 = vadd.f32 %v6925_v19, %v12959_v28  ;;  %v7529_v7 = vsub.f32 0.0, %v13098_v6 }
 0x810   : > { %v10022_v38 = vpop.eup %10021  ;;  %10041 = vrcp.f32 %v7849_v34  ;;  %v7850_v1 = vadd.f32 1.0, %v10020_v4  ;;  %14447 = vst [vmem:[#allocation26_spill] sm:$0xff] %v13101_v29  ;;  %v7075_v24 = vpop.f32.mrb[24].mxu0  ;;  %v13103_v54 = vmul.f32 1.442695, %v7518_v61  ;;  %v7533_v32 = vsub.f32 0.0, %v13101_v29 }
 0x811   : > { %v10024_v42 = vpop.eup %10023  ;;  %10043 = vrcp.f32 %v7853_v45  ;;  %v7854_v50 = vadd.f32 1.0, %v10022_v38  ;;  %14448 = vst [vmem:[#allocation27_spill] sm:$0xff] %v13106_v46  ;;  %v6931_v48 = vpop.f32.mrb[33].mxu1  ;;  %v7530_v61 = vsub.f32 0.0, %v13106_v46  ;;  %v13112_v38 = vadd.f32 %v7071_v55, %v12964_v51 }
 0x812   : > { %v7077_v16 = vpop.f32.mrb[25].mxu0  ;;  %v10026_v34 = vpop.eup %10025  ;;  %10045 = vrcp.f32 %v7850_v1  ;;  %v7865_v4 = vadd.f32 1.0, %v10024_v42  ;;  %v13118_v5 = vmul.f32 1.442695, %v7529_v7  ;;  %v13120_v63 = vmul.f32 1.442695, %v7533_v32 }
 0x813   : > { %v6933_v39 = vpop.f32.mrb[34].mxu1  ;;  %v7079_v41 = vpop.f32.mrb[26].mxu0  ;;  %10047 = vrcp.f32 %v7854_v50  ;;  %v7869_v45 = vadd.f32 1.0, %v10026_v34  ;;  %14449 = vst [vmem:[#allocation28_spill] sm:$0xff] %v13112_v38  ;;  %v13122_v34 = vmul.f32 1.442695, %v7530_v61  ;;  %v13126_v44 = vadd.f32 %v6929_v27, %v12946_v22 }
 0x814   : > { %v10028_v13 = vpop.eup %10027  ;;  %v13114_v19 = vpop.f32.mrb[35].mxu1  ;;  %10049 = vrcp.f32 %v7865_v4  ;;  %v7534_v58 = vsub.f32 0.0, %v13112_v38  ;;  %v13129_v4 = vadd.f32 %v7075_v24, %v12949_v47 }
 0x815   : > { %v13116_v37 = vpop.f32.mrb[27].mxu0  ;;  %v10030_v1 = vpop.eup %10029  ;;  %v7866_v42 = vadd.f32 1.0, %v10028_v13  ;;  %10051 = vrcp.f32 %v7869_v45  ;;  %14450 = vst [vmem:[#allocation29_spill] sm:$0xff] %v13126_v44  ;;  %v13135_v45 = vadd.f32 %v6931_v48, %v12959_v28  ;;  %v13148_v48 = vadd.f32 %v7077_v16, %v12964_v51 }
 0x816   : > { %v10032_v18 = vpop.eup %10031  ;;  %v7870_v50 = vadd.f32 1.0, %v10030_v1  ;;  %14451 = vst [vmem:[#allocation30_spill] sm:$0xff] %v13129_v4  ;;  %v13132_v32 = vmul.f32 1.442695, %v7534_v58  ;;  %v7549_v27 = vsub.f32 0.0, %v13129_v4 }
 0x817   : > { %v10034_v55 = vpop.eup %10033  ;;  %10053 = vrcp.f32 %v7866_v42  ;;  %v7881_v10 = vadd.f32 1.0, %v10032_v18  ;;  %14452 = vst [vmem:[#allocation31_spill] sm:$0xff] %v13135_v45  ;;  %v7545_v18 = vsub.f32 0.0, %v13126_v44  ;;  %v13140_v42 = vpop.f32.mrb[36].mxu1  ;;  %v7546_v58 = vsub.f32 0.0, %v13135_v45  ;;  %14453 = vst [vmem:[#allocation32_spill] sm:$0xff] %v13148_v48 }
 0x818   : > { %v10036_v13 = vpop.eup %10035  ;;  %v8089_v7 = vmul.f32 %v10034_v55, %v12972_v31  ;;  %10055 = vrcp.f32 %v7870_v50  ;;  %v13142_v24 = vpop.f32.mrb[28].mxu0  ;;  %v13156_v4 = vmul.f32 1.442695, %v7549_v27  ;;  %v7550_v44 = vsub.f32 0.0, %v13148_v48 }
 0x819   : > { %v10038_v61 = vpop.eup %10037  ;;  %v8093_v1 = vmul.f32 %v10036_v13, %v12975_v26  ;;  %10057 = vrcp.f32 %v7881_v10  ;;  %v13150_v26 = vpop.f32.mrb[37].mxu1  ;;  %v7769_v13 = vmul.f32 1.442695, %v7545_v18  ;;  %v13164_v45 = vmul.f32 1.442695, %v7546_v58 }
 0x81a   : > { %v10040_v38 = vpop.eup %10039  ;;  %v8090_v31 = vmul.f32 %v10038_v61, %v12983_v23  ;;  %10059 = vpow2.f32 %v13057_v56  ;;  %v13152_v10 = vpop.f32.mrb[29].mxu0  ;;  %v13174_v18 = vadd.f32 %v6933_v39, %v12946_v22 }
 0x81b   : > { %v10042_v50 = vpop.eup %10041  ;;  %v8094_v55 = vmul.f32 %v10040_v38, %v12986_v35  ;;  %10061 = vpow2.f32 %v13080_v12  ;;  %v13158_v23 = vpop.f32.mrb[38].mxu1 }
 0x81c   : > { %v13160_v56 = vpop.f32.mrb[30].mxu0  ;;  %v10044_v61 = vpop.eup %10043  ;;  %v8105_v16 = vmul.f32 %v10042_v50, %v12997_v43  ;;  %10063 = vpow2.f32 %v13082_v9  ;;  %v13177_v43 = vadd.f32 %v7079_v41, %v12949_v47  ;;  %v13181_v50 = vmul.f32 1.442695, %v7550_v44 }
 0x81d   : > { %v13167_v46 = vpop.f32.mrb[39].mxu1  ;;  %v13169_v35 = vpop.f32.mrb[31].mxu0  ;;  %v8109_v38 = vmul.f32 %v10044_v61, %v13000_v49  ;;  %10065 = vpow2.f32 %v13090_v20  ;;  %v7561_v22 = vsub.f32 0.0, %v13174_v18 }
 0x81e   : > { %v10046_v12 = vpop.eup %10045  ;;  %v8217_v27 = vadd.f32 %v8105_v16, %v8089_v7  ;;  %10067 = vpow2.f32 %v13092_v25  ;;  %v7565_v41 = vsub.f32 0.0, %v13177_v43  ;;  %v13211_v16 = vadd.f32 %v13114_v19, %v12959_v28 }
 0x81f   : > { %v10048_v9 = vpop.eup %10047  ;;  %v8106_v58 = vmul.f32 %v10046_v12, %v13005_v53  ;;  %v8269_v29 = vadd.f32 %v8109_v38, %v8093_v1  ;;  %10069 = vpow2.f32 %v13094_v8  ;;  %v13191_v7 = vmul.f32 1.442695, %v7561_v22  ;;  %v13195_v8 = vpop.f32.mrb[32].mxu0 }
 0x820   : > { %v10050_v48 = vpop.eup %10049  ;;  %v8110_v49 = vmul.f32 %v10048_v9, %v13008_v0  ;;  %10071 = vpow2.f32 %v13103_v54  ;;  %v13193_v0 = vpop.f32.mrb[40].mxu1  ;;  %v13199_v54 = vmul.f32 1.442695, %v7565_v41 }
 0x821   : > { %v10052_v39 = vpop.eup %10051  ;;  %v8230_v20 = vadd.f32 %v8106_v58, %v8090_v31  ;;  %v8121_v47 = vmul.f32 %v10050_v48, %v13024_v3  ;;  %10073 = vpow2.f32 %v13118_v5  ;;  %v13201_v48 = vpop.f32.mrb[41].mxu1  ;;  %v7562_v58 = vsub.f32 0.0, %v13211_v16 }
 0x822   : > { %v10054_v53 = vpop.eup %10053  ;;  %v8282_v25 = vadd.f32 %v8110_v49, %v8094_v55  ;;  %v8125_v44 = vmul.f32 %v10052_v39, %v13027_v57  ;;  %10075 = vpow2.f32 %v13120_v63  ;;  %v13203_v55 = vpop.f32.mrb[33].mxu0 }
 0x823   : > { %v10056_v1 = vpop.eup %10055  ;;  %v8218_v31 = vadd.f32 %v8217_v27, %v8121_v47  ;;  %v8122_v3 = vmul.f32 %v10054_v53, %v13033_v14  ;;  %10077 = vpow2.f32 %v13122_v34  ;;  %v13213_v14 = vpop.f32.mrb[42].mxu1  ;;  %v13236_v39 = vmul.f32 1.442695, %v7562_v58 }
 0x824   : > { %v10058_v57 = vpop.eup %10057  ;;  %v13205_v5 = vadd.f32 %v8269_v29, %v8125_v44  ;;  %v8126_v61 = vmul.f32 %v10056_v1, %v13036_v15  ;;  %v13215_v63 = vpop.f32.mrb[34].mxu0  ;;  %10079 = vpow2.f32 %v13132_v32  ;;  %v13223_v15 = vadd.f32 %v13116_v37, %v12964_v51 }
 0x825   : > { %v10060_v12 = vpop.eup %10059  ;;  %v13217_v38 = vadd.f32 %v8230_v20, %v8122_v3  ;;  %v8137_v9 = vmul.f32 %v10058_v57, %v13042_v30  ;;  %v13225_v29 = vpop.f32.mrb[43].mxu1  ;;  %10081 = vpow2.f32 %v7769_v13  ;;  %v13240_v20 = vadd.f32 %v13140_v42, %v12980_v33 }
 0x826   : > { %v13227_v34 = vpop.f32.mrb[35].mxu0  ;;  %v10062_v28 = vpop.eup %10061  ;;  %v13229_v19 = vadd.f32 %v8282_v25, %v8126_v61  ;;  %v7885_v27 = vadd.f32 1.0, %v10060_v12  ;;  %10083 = vpow2.f32 %v13156_v4  ;;  %v7566_v37 = vsub.f32 0.0, %v13223_v15 }
 0x827   : > { %v10064_v49 = vpop.eup %10063  ;;  %v13232_v22 = vadd.f32 %v8218_v31, %v8137_v9  ;;  %v7882_v30 = vadd.f32 1.0, %v10062_v28  ;;  %v13246_v53 = vadd.f32 %v13142_v24, %v12969_v2  ;;  %v7451_v44 = vsub.f32 0.0, %v13240_v20  ;;  %v13253_v42 = vpop.f32.mrb[44].mxu1 }
 0x828   : > { %v10066_v51 = vpop.eup %10065  ;;  %10085 = vrcp.f32 %v7885_v27  ;;  %v7886_v32 = vadd.f32 1.0, %v10064_v49  ;;  %v13242_v41 = vmul.f32 1.442695, %v7566_v37  ;;  %v13251_v1 = vadd.f32 %v13150_v26, %v12991_v36  ;;  %v13255_v31 = vpop.f32.mrb[36].mxu0 }
 0x829   : > { %v10068_v13 = vpop.eup %10067  ;;  %10087 = vrcp.f32 %v7882_v30  ;;  %v7897_v47 = vadd.f32 1.0, %v10066_v51  ;;  %14454 = vst [vmem:[#allocation33_spill] sm:$0xff] %v13246_v53  ;;  %v7457_v61 = vsub.f32 0.0, %v13246_v53  ;;  %v13260_v24 = vadd.f32 %v13152_v10, %v13016_v62  ;;  %v13262_v12 = vpop.f32.mrb[45].mxu1 }
 0x82a   : > { %v10070_v4 = vpop.eup %10069  ;;  %10089 = vrcp.f32 %v7886_v32  ;;  %v7901_v25 = vadd.f32 1.0, %v10068_v13  ;;  %14455 = vst [vmem:[#allocation34_spill] sm:$0xff] %v13251_v1  ;;  %v13264_v9 = vpop.f32.mrb[37].mxu0  ;;  %v13266_v27 = vmul.f32 1.442695, %v7451_v44  ;;  %v7452_v58 = vsub.f32 0.0, %v13251_v1 }
 0x82b   : > { %v10072_v3 = vpop.eup %10071  ;;  %10091 = vrcp.f32 %v7897_v47  ;;  %v7898_v57 = vadd.f32 1.0, %v10070_v4  ;;  %14456 = vst [vmem:[#allocation35_spill] sm:$0xff] %v13260_v24  ;;  %v13269_v49 = vpop.f32.mrb[46].mxu1  ;;  %v13273_v10 = vmul.f32 1.442695, %v7457_v61  ;;  %v7458_v32 = vsub.f32 0.0, %v13260_v24 }
 0x82c   : > { %v10074_v28 = vpop.eup %10073  ;;  %10093 = vrcp.f32 %v7901_v25  ;;  %v7902_v26 = vadd.f32 1.0, %v10072_v3  ;;  %v13271_v30 = vpop.f32.mrb[38].mxu0  ;;  %v13280_v44 = vmul.f32 1.442695, %v7452_v58  ;;  %v13284_v3 = vadd.f32 %v13158_v23, %v12980_v33 }
 0x82d   : > { %v10076_v37 = vpop.eup %10075  ;;  %10095 = vrcp.f32 %v7898_v57  ;;  %v7913_v51 = vadd.f32 1.0, %v10074_v28  ;;  %v13276_v13 = vpop.f32.mrb[47].mxu1  ;;  %v13286_v61 = vmul.f32 1.442695, %v7458_v32  ;;  %v13290_v28 = vadd.f32 %v13160_v56, %v12969_v2 }
 0x82e   : > { %v13278_v47 = vpop.f32.mrb[39].mxu0  ;;  %v10078_v4 = vpop.eup %10077  ;;  %10097 = vrcp.f32 %v7902_v26  ;;  %v7917_v25 = vadd.f32 1.0, %v10076_v37  ;;  %14458 = vst [vmem:[#allocation37_spill] sm:$0xff] %v13284_v3  ;;  %v7467_v26 = vsub.f32 0.0, %v13284_v3  ;;  %v13295_v58 = vadd.f32 %v13167_v46, %v12991_v36 }
 0x82f   : > { %14457 = vst [vmem:[#allocation36_spill] sm:$0xff] %v13278_v47  ;;  %v10080_v1 = vpop.eup %10079  ;;  %10099 = vrcp.f32 %v7913_v51  ;;  %v7914_v57 = vadd.f32 1.0, %v10078_v4  ;;  %14459 = vst [vmem:[#allocation38_spill] sm:$0xff] %v13290_v28  ;;  %v7473_v51 = vsub.f32 0.0, %v13290_v28  ;;  %v13300_v32 = vadd.f32 %v13169_v35, %v13016_v62  ;;  %v13305_v3 = vpop.f32.mrb[48].mxu1 }
 0x830   : > { %v10082_v24 = vpop.eup %10081  ;;  %10101 = vrcp.f32 %v7917_v25  ;;  %v7918_v47 = vadd.f32 1.0, %v10080_v1  ;;  %14460 = vst [vmem:[#allocation39_spill] sm:$0xff] %v13295_v58  ;;  %v13302_v25 = vmul.f32 1.442695, %v7467_v26  ;;  %v7468_v1 = vsub.f32 0.0, %v13295_v58  ;;  %v13307_v46 = vpop.f32.mrb[40].mxu0 }
 0x831   : > { %v10084_v23 = vpop.eup %10083  ;;  %10103 = vrcp.f32 %v7914_v57  ;;  %v7929_v37 = vadd.f32 1.0, %v10082_v24  ;;  %14461 = vst [vmem:[#allocation40_spill] sm:$0xff] %v13300_v32  ;;  %14462 = vst [vmem:[#allocation41_spill] sm:$0xff] %v13307_v46  ;;  %v13310_v57 = vmul.f32 1.442695, %v7473_v51  ;;  %v7474_v35 = vsub.f32 0.0, %v13300_v32 }
 0x832   : > { %v10086_v56 = vpop.eup %10085  ;;  %10105 = vrcp.f32 %v7918_v47  ;;  %v7933_v4 = vadd.f32 1.0, %v10084_v23  ;;  %v13313_v28 = vpop.f32.mrb[49].mxu1  ;;  %v13318_v58 = vmul.f32 1.442695, %v7468_v1  ;;  %v13322_v46 = vadd.f32 %v13193_v0, %v12980_v33 }
 0x833   : > { %v10088_v53 = vpop.eup %10087  ;;  %v8141_v24 = vmul.f32 %v10086_v56, %v13047_v11  ;;  %10107 = vrcp.f32 %v7929_v37  ;;  %v13315_v47 = vpop.f32.mrb[41].mxu0 }
 0x834   : > { %14463 = vst [vmem:[#allocation42_spill] sm:$0xff] %v13315_v47  ;;  %v10090_v26 = vpop.eup %10089  ;;  %v8138_v23 = vmul.f32 %v10088_v53, %v13052_v59  ;;  %10109 = vrcp.f32 %v7933_v4  ;;  %v13324_v11 = vpop.f32.mrb[50].mxu1  ;;  %v13331_v47 = vmul.f32 1.442695, %v7474_v35 }
 0x835   : > { %v13326_v37 = vpop.f32.mrb[42].mxu0  ;;  %v10092_v51 = vpop.eup %10091  ;;  %v8271_v56 = vadd.f32 %v13205_v5, %v8141_v24  ;;  %v8142_v32 = vmul.f32 %v10090_v26, %v13055_v60  ;;  %10111 = vpow2.f32 %v13164_v45  ;;  %v13346_v24 = vadd.f32 %v13195_v8, %v12969_v2 }
 0x836   : > { %14464 = vst [vmem:[#allocation43_spill] sm:$0xff] %v13326_v37  ;;  %v13333_v59 = vpop.f32.mrb[51].mxu1  ;;  %v13335_v53 = vpop.f32.mrb[43].mxu0  ;;  %v8232_v0 = vadd.f32 %v13217_v38, %v8138_v23  ;;  %v8153_v1 = vmul.f32 %v10092_v51, %v13072_v40  ;;  %10113 = vpow2.f32 %v13181_v50  ;;  %v7483_v37 = vsub.f32 0.0, %v13322_v46  ;;  %v14465_v51 = vld [vmem:[#allocation26_spill] sm:$0xff] }
 0x837   : > { %v10094_v4 = vpop.eup %10093  ;;  %v8284_v60 = vadd.f32 %v13229_v19, %v8142_v32  ;;  %10115 = vpow2.f32 %v13191_v7 }
 0x838   : > { %v10096_v5 = vpop.eup %10095  ;;  %v8157_v45 = vmul.f32 %v10094_v4, %v13075_v17  ;;  %v8220_v38 = vadd.f32 %v13232_v22, %v8153_v1  ;;  %10117 = vpow2.f32 %v13199_v54  ;;  %v13351_v50 = vmul.f32 1.442695, %v7483_v37  ;;  %v13362_v54 = vpop.f32.mrb[52].mxu1 }
 0x839   : > { %v10098_v35 = vpop.eup %10097  ;;  %v8154_v40 = vmul.f32 %v10096_v5, %v13078_v21  ;;  %10119 = vpow2.f32 %v13236_v39  ;;  %v7489_v17 = vsub.f32 0.0, %v13346_v24  ;;  %v13360_v21 = vadd.f32 %v13201_v48, %v12991_v36  ;;  %v13364_v22 = vpop.f32.mrb[44].mxu0  ;;  %v14466_v48 = vld [vmem:[#allocation27_spill] sm:$0xff] }
 0x83a   : > { %v10100_v26 = vpop.eup %10099  ;;  %v8272_v23 = vadd.f32 %v8271_v56, %v8157_v45  ;;  %v8158_v19 = vmul.f32 %v10098_v35, %v13088_v52  ;;  %10121 = vpow2.f32 %v13242_v41  ;;  %v13370_v4 = vpop.f32.mrb[53].mxu1 }
 0x83b   : > { %v10102_v7 = vpop.eup %10101  ;;  %v8233_v8 = vadd.f32 %v8232_v0, %v8154_v40  ;;  %v8169_v32 = vmul.f32 %v10100_v26, %v13098_v6  ;;  %10123 = vpow2.f32 %v13266_v27  ;;  %v13368_v56 = vmul.f32 1.442695, %v7489_v17  ;;  %v13372_v6 = vpop.f32.mrb[45].mxu0  ;;  %v14467_v40 = vld [vmem:[#allocation28_spill] sm:$0xff] }
 0x83c   : > { %v10104_v37 = vpop.eup %10103  ;;  %v8285_v52 = vadd.f32 %v8284_v60, %v8158_v19  ;;  %v8173_v39 = vmul.f32 %v10102_v7, %v14465_v51  ;;  %10125 = vpow2.f32 %v13273_v10  ;;  %v7484_v5 = vsub.f32 0.0, %v13360_v21  ;;  %v13377_v45 = vpop.f32.mrb[54].mxu1 }
 0x83d   : > { %v10106_v41 = vpop.eup %10105  ;;  %v8221_v0 = vadd.f32 %v8220_v38, %v8169_v32  ;;  %v8170_v1 = vmul.f32 %v10104_v37, %v14466_v48  ;;  %v13379_v60 = vpop.f32.mrb[46].mxu0  ;;  %10127 = vpow2.f32 %v13280_v44  ;;  %v13385_v19 = vadd.f32 %v13203_v55, %v13016_v62  ;;  %v14470_v32 = vld [vmem:[#allocation29_spill] sm:$0xff]  ;;  %v14471_v44 = vld [vmem:[#allocation30_spill] sm:$0xff] }
 0x83e   : > { %v10108_v35 = vpop.eup %10107  ;;  %v8273_v27 = vadd.f32 %v8272_v23, %v8173_v39  ;;  %v8174_v26 = vmul.f32 %v10106_v41, %v14467_v40  ;;  %v13387_v38 = vpop.f32.mrb[55].mxu1  ;;  %10129 = vpow2.f32 %v13286_v61  ;;  %v13395_v23 = vmul.f32 1.442695, %v7484_v5 }
 0x83f   : > { %14468 = vst [vmem:[#allocation26_spill] sm:$0xff] %v13387_v38  ;;  %v13389_v17 = vpop.f32.mrb[47].mxu0  ;;  %v10110_v10 = vpop.eup %10109  ;;  %v13391_v7 = vadd.f32 %v8233_v8, %v8170_v1  ;;  %v8185_v37 = vmul.f32 %v10108_v35, %v14470_v32  ;;  %10131 = vpow2.f32 %v13302_v25  ;;  %v7490_v55 = vsub.f32 0.0, %v13385_v19 }
 0x840   : > { %14469 = vst [vmem:[#allocation27_spill] sm:$0xff] %v13389_v17  ;;  %v10112_v51 = vpop.eup %10111  ;;  %v13397_v39 = vadd.f32 %v8285_v52, %v8174_v26  ;;  %v8189_v41 = vmul.f32 %v10110_v10, %v14471_v44  ;;  %10133 = vpow2.f32 %v13310_v57  ;;  %v13407_v61 = vadd.f32 %v13213_v14, %v12980_v33  ;;  %v13419_v10 = vpop.f32.mrb[56].mxu1 }
 0x841   : > { %v10114_v48 = vpop.eup %10113  ;;  %v13402_v40 = vadd.f32 %v8221_v0, %v8185_v37  ;;  %v7930_v8 = vadd.f32 1.0, %v10112_v51  ;;  %10135 = vpow2.f32 %v13318_v58  ;;  %v13412_v35 = vmul.f32 1.442695, %v7490_v55  ;;  %14472 = vst [vmem:[#allocation28_spill] sm:$0xff] %v13419_v10  ;;  %v13421_v14 = vpop.f32.mrb[48].mxu0 }
 0x842   : > { %v10116_v1 = vpop.eup %10115  ;;  %v13409_v5 = vadd.f32 %v8273_v27, %v8189_v41  ;;  %v7934_v52 = vadd.f32 1.0, %v10114_v48  ;;  %v7499_v0 = vsub.f32 0.0, %v13407_v61  ;;  %v13417_v57 = vadd.f32 %v13215_v63, %v12969_v2  ;;  %14473 = vst [vmem:[#allocation29_spill] sm:$0xff] %v13421_v14  ;;  %v13431_v51 = vpop.f32.mrb[57].mxu1 }
 0x843   : > { %v10118_v25 = vpop.eup %10117  ;;  %10137 = vrcp.f32 %v7930_v8  ;;  %v7945_v26 = vadd.f32 1.0, %v10116_v1  ;;  %v13425_v58 = vadd.f32 %v13225_v29, %v12991_v36  ;;  %v13429_v37 = vadd.f32 %v13227_v34, %v13016_v62  ;;  %14474 = vst [vmem:[#allocation30_spill] sm:$0xff] %v13431_v51  ;;  %v13433_v44 = vpop.f32.mrb[49].mxu0 }
 0x844   : > { %v10120_v27 = vpop.eup %10119  ;;  %10139 = vrcp.f32 %v7934_v52  ;;  %v7949_v32 = vadd.f32 1.0, %v10118_v25  ;;  %14475 = vst [vmem:[#allocation44_spill] sm:$0xff] %v13433_v44  ;;  %v13435_v55 = vmul.f32 1.442695, %v7499_v0  ;;  %v7505_v48 = vsub.f32 0.0, %v13417_v57  ;;  %v13438_v8 = vpop.f32.mrb[58].mxu1 }
 0x845   : > { %v10122_v63 = vpop.eup %10121  ;;  %10141 = vrcp.f32 %v7945_v26  ;;  %v7946_v41 = vadd.f32 1.0, %v10120_v27  ;;  %14476 = vst [vmem:[#allocation45_spill] sm:$0xff] %v13438_v8  ;;  %v13440_v1 = vpop.f32.mrb[50].mxu0  ;;  %v7500_v34 = vsub.f32 0.0, %v13425_v58  ;;  %v7506_v25 = vsub.f32 0.0, %v13429_v37 }
 0x846   : > { %14477 = vst [vmem:[#allocation46_spill] sm:$0xff] %v13440_v1  ;;  %v10124_v29 = vpop.eup %10123  ;;  %10143 = vrcp.f32 %v7949_v32  ;;  %v7950_v52 = vadd.f32 1.0, %v10122_v63  ;;  %v13444_v51 = vpop.f32.mrb[59].mxu1  ;;  %v13448_v27 = vmul.f32 1.442695, %v7505_v48  ;;  %v13452_v8 = vadd.f32 %v13253_v42, %v12980_v33 }
 0x847   : > { %14478 = vst [vmem:[#allocation47_spill] sm:$0xff] %v13444_v51  ;;  %v13446_v44 = vpop.f32.mrb[51].mxu0  ;;  %v10126_v26 = vpop.eup %10125  ;;  %10145 = vrcp.f32 %v7946_v41  ;;  %v7835_v0 = vadd.f32 1.0, %v10124_v29  ;;  %v13454_v63 = vmul.f32 1.442695, %v7500_v34  ;;  %v13461_v41 = vadd.f32 %v13255_v31, %v12969_v2 }
 0x848   : > { %14479 = vst [vmem:[#allocation48_spill] sm:$0xff] %v13446_v44  ;;  %v10128_v1 = vpop.eup %10127  ;;  %10147 = vrcp.f32 %v7950_v52  ;;  %v7841_v32 = vadd.f32 1.0, %v10126_v26  ;;  %v13456_v14 = vmul.f32 1.442695, %v7506_v25  ;;  %v7515_v44 = vsub.f32 0.0, %v13452_v8  ;;  %v13474_v31 = vpop.f32.mrb[60].mxu1 }
 0x849   : > { %v10130_v10 = vpop.eup %10129  ;;  %10149 = vrcp.f32 %v7835_v0  ;;  %v7836_v51 = vadd.f32 1.0, %v10128_v1  ;;  %14480 = vst [vmem:[#allocation49_spill] sm:$0xff] %v13461_v41  ;;  %v13465_v29 = vadd.f32 %v13262_v12, %v12991_v36  ;;  %v13469_v52 = vadd.f32 %v13264_v9, %v13016_v62  ;;  %14483 = vst [vmem:[#allocation52_spill] sm:$0xff] %v13474_v31  ;;  %v13476_v0 = vpop.f32.mrb[52].mxu0 }
 0x84a   : > { %v10132_v48 = vpop.eup %10131  ;;  %10151 = vrcp.f32 %v7841_v32  ;;  %v7842_v42 = vadd.f32 1.0, %v10130_v10  ;;  %v13471_v25 = vmul.f32 1.442695, %v7515_v44  ;;  %v7521_v26 = vsub.f32 0.0, %v13461_v41  ;;  %14484 = vst [vmem:[#allocation53_spill] sm:$0xff] %v13476_v0  ;;  %v13480_v9 = vpop.f32.mrb[61].mxu1 }
 0x84b   : > { %14481 = vst [vmem:[#allocation50_spill] sm:$0xff] %v13465_v29  ;;  %14482 = vst [vmem:[#allocation51_spill] sm:$0xff] %v13469_v52  ;;  %v10134_v34 = vpop.eup %10133  ;;  %10153 = vrcp.f32 %v7836_v51  ;;  %v7851_v1 = vadd.f32 1.0, %v10132_v48  ;;  %v7516_v12 = vsub.f32 0.0, %v13465_v29  ;;  %v7522_v17 = vsub.f32 0.0, %v13469_v52  ;;  %v13482_v38 = vpop.f32.mrb[53].mxu0 }
 0x84c   : > { %v10136_v10 = vpop.eup %10135  ;;  %10155 = vrcp.f32 %v7842_v42  ;;  %v7857_v32 = vadd.f32 1.0, %v10134_v34  ;;  %14485 = vst [vmem:[#allocation54_spill] sm:$0xff] %v13480_v9  ;;  %14486 = vst [vmem:[#allocation55_spill] sm:$0xff] %v13482_v38  ;;  %v13484_v48 = vmul.f32 1.442695, %v7521_v26  ;;  %v13488_v31 = vadd.f32 %v13269_v49, %v12980_v33  ;;  %v13490_v0 = vpop.f32.mrb[62].mxu1 }
 0x84d   : > { %v10138_v51 = vpop.eup %10137  ;;  %10157 = vrcp.f32 %v7851_v1  ;;  %v7852_v44 = vadd.f32 1.0, %v10136_v10  ;;  %14487 = vst [vmem:[#allocation56_spill] sm:$0xff] %v13490_v0  ;;  %v13492_v42 = vpop.f32.mrb[54].mxu0  ;;  %v14489_v29 = vld [vmem:[#allocation31_spill] sm:$0xff]  ;;  %v13495_v9 = vmul.f32 1.442695, %v7516_v12  ;;  %v13514_v12 = vadd.f32 %v13276_v13, %v12991_v36 }
 0x84e   : > { %14488 = vst [vmem:[#allocation57_spill] sm:$0xff] %v13492_v42  ;;  %v10140_v34 = vpop.eup %10139  ;;  %v8186_v52 = vmul.f32 %v10138_v51, %v14489_v29  ;;  %10159 = vrcp.f32 %v7857_v32  ;;  %v13497_v38 = vmul.f32 1.442695, %v7522_v17  ;;  %v13499_v1 = vpop.f32.mrb[63].mxu1  ;;  %v14490_v41 = vld [vmem:[#allocation32_spill] sm:$0xff]  ;;  %v7531_v0 = vsub.f32 0.0, %v13488_v31 }
 0x84f   : > { %v13501_v26 = vpop.f32.mrb[55].mxu0  ;;  %v10142_v10 = vpop.eup %10141  ;;  %v8190_v49 = vmul.f32 %v10140_v34, %v14490_v41  ;;  %10161 = vrcp.f32 %v7852_v44  ;;  %v13507_v42 = vadd.f32 %v13271_v30, %v12969_v2 }
 0x850   : > { %v10144_v29 = vpop.eup %10143  ;;  %v8235_v32 = vadd.f32 %v13391_v7, %v8186_v52  ;;  %v8201_v17 = vmul.f32 %v10142_v10, %v13174_v18  ;;  %10163 = vpow2.f32 %v13331_v47  ;;  %v13519_v30 = vmul.f32 1.442695, %v7531_v0  ;;  %v13531_v0 = vpop.f32.mrb[56].mxu0 }
 0x851   : > { %v10146_v51 = vpop.eup %10145  ;;  %v8287_v41 = vadd.f32 %v13397_v39, %v8190_v49  ;;  %v8205_v44 = vmul.f32 %v10144_v29, %v13177_v43  ;;  %10165 = vpow2.f32 %v13351_v50  ;;  %v13529_v50 = vpop.f32.mrb[64].mxu1  ;;  %14491 = vst [vmem:[#allocation31_spill] sm:$0xff] %v13531_v0 }
 0x852   : > { %v10148_v34 = vpop.eup %10147  ;;  %v8223_v7 = vadd.f32 %v13402_v40, %v8201_v17  ;;  %v8202_v18 = vmul.f32 %v10146_v51, %v13211_v16  ;;  %10167 = vpow2.f32 %v13368_v56  ;;  %v13535_v49 = vpop.f32.mrb[65].mxu1  ;;  %v14494_v17 = vld [vmem:[#allocation33_spill] sm:$0xff] }
 0x853   : > { %v10150_v13 = vpop.eup %10149  ;;  %v8275_v52 = vadd.f32 %v13409_v5, %v8205_v44  ;;  %v8206_v39 = vmul.f32 %v10148_v34, %v13223_v15  ;;  %10169 = vpow2.f32 %v13395_v23  ;;  %14492 = vst [vmem:[#allocation32_spill] sm:$0xff] %v13535_v49  ;;  %v13537_v5 = vpop.f32.mrb[57].mxu0 }
 0x854   : > { %v10152_v40 = vpop.eup %10151  ;;  %v8224_v10 = vrot.slane %v8223_v7, 4  ;;  %v8236_v16 = vadd.f32 %v8235_v32, %v8202_v18  ;;  %v8091_v56 = vmul.f32 %v10150_v13, %v13240_v20  ;;  %10171 = vpow2.f32 %v13412_v35  ;;  %14493 = vst [vmem:[#allocation58_spill] sm:$0xff] %v13537_v5  ;;  %v13541_v44 = vpop.f32.mrb[66].mxu1  ;;  %v14497_v13 = vld [vmem:[#allocation34_spill] sm:$0xff] }
 0x855   : > { %v10154_v15 = vpop.eup %10153  ;;  %v8276_v29 = vrot.slane %v8275_v52, 4  ;;  %v8288_v23 = vadd.f32 %v8287_v41, %v8206_v39  ;;  %v8097_v51 = vmul.f32 %v10152_v40, %v14494_v17  ;;  %10173 = vpow2.f32 %v13435_v55  ;;  %14495 = vst [vmem:[#allocation33_spill] sm:$0xff] %v13541_v44  ;;  %v13543_v34 = vpop.f32.mrb[58].mxu0  ;;  %v14500_v17 = vld [vmem:[#allocation35_spill] sm:$0xff] }
 0x856   : > { %14496 = vst [vmem:[#allocation59_spill] sm:$0xff] %v13543_v34  ;;  %v10156_v32 = vpop.eup %10155  ;;  %v8225_v18 = vadd.f32 %v8224_v10, %v8223_v7  ;;  %v8237_v20 = vrot.slane %v8236_v16, 4  ;;  %v8092_v35 = vmul.f32 %v10154_v15, %v14497_v13  ;;  %10175 = vpow2.f32 %v13448_v27  ;;  %v13547_v43 = vpop.f32.mrb[67].mxu1  ;;  %v14501_v10 = vld [vmem:[#allocation37_spill] sm:$0xff] }
 0x857   : > { %14498 = vst [vmem:[#allocation34_spill] sm:$0xff] %v13547_v43  ;;  %v13549_v47 = vpop.f32.mrb[59].mxu0  ;;  %v10158_v41 = vpop.eup %10157  ;;  %v8277_v39 = vadd.f32 %v8276_v29, %v8275_v52  ;;  %v8289_v40 = vrot.slane %v8288_v23, 4  ;;  %v13552_v55 = vmul.f32 %v10156_v32, %v14500_v17  ;;  %10177 = vpow2.f32 %v13454_v63  ;;  %v14502_v43 = vld [vmem:[#allocation38_spill] sm:$0xff]  ;;  %v14503_v63 = vld [vmem:[#allocation39_spill] sm:$0xff] }
 0x858   : > { %14499 = vst [vmem:[#allocation60_spill] sm:$0xff] %v13549_v47  ;;  %v10160_v34 = vpop.eup %10159  ;;  %v8226_v44 = vrot.slane %v8225_v18, 2  ;;  %v8238_v7 = vadd.f32 %v8237_v20, %v8236_v16  ;;  %v8107_v5 = vmul.f32 %v10158_v41, %v14501_v10  ;;  %10179 = vpow2.f32 %v13456_v14  ;;  %v13564_v10 = vpop.f32.mrb[68].mxu1 }
 0x859   : > { %v10162_v27 = vpop.eup %10161  ;;  %v8278_v15 = vrot.slane %v8277_v39, 2  ;;  %v8290_v13 = vadd.f32 %v8289_v40, %v8288_v23  ;;  %v8113_v47 = vmul.f32 %v10160_v34, %v14502_v43  ;;  %10181 = vpow2.f32 %v13471_v25 }
 0x85a   : > { %v10164_v52 = vpop.eup %10163  ;;  %v8227_v29 = vadd.f32 %v8226_v44, %v8225_v18  ;;  %v8239_v32 = vrot.slane %v8238_v7, 2  ;;  %v13559_v17 = vadd.f32 %v8107_v5, %v8091_v56  ;;  %v8108_v49 = vmul.f32 %v10162_v27, %v14503_v63  ;;  %v13568_v44 = vpop.f32.mrb[69].mxu1 }
 0x85b   : > { %v10166_v0 = vpop.eup %10165  ;;  %v8279_v16 = vadd.f32 %v8278_v15, %v8277_v39  ;;  %v8291_v20 = vrot.slane %v8290_v13, 2  ;;  %v13562_v41 = vadd.f32 %v8113_v47, %v8097_v51  ;;  %v7858_v14 = vadd.f32 1.0, %v10164_v52  ;;  %14504 = vst [vmem:[#allocation35_spill] sm:$0xff] %v13568_v44  ;;  %v13570_v39 = vpop.f32.mrb[70].mxu1 }
 0x85c   : > { %v10168_v23 = vpop.eup %10167  ;;  %v8228_v40 = vrot.slane %v8227_v29, 1  ;;  %v8240_v43 = vadd.f32 %v8239_v32, %v8238_v7  ;;  %v13566_v34 = vadd.f32 %v8108_v49, %v8092_v35  ;;  %v7867_v25 = vadd.f32 1.0, %v10166_v0  ;;  %v13572_v63 = vpop.f32.mrb[71].mxu1 }
 0x85d   : > { %v10170_v56 = vpop.eup %10169  ;;  %v8280_v5 = vrot.slane %v8279_v16, 1  ;;  %v8292_v18 = vadd.f32 %v8291_v20, %v8290_v13  ;;  %10183 = vrcp.f32 %v7858_v14  ;;  %v7873_v27 = vadd.f32 1.0, %v10168_v23 }
 0x85e   : > { %v10172_v47 = vpop.eup %10171  ;;  %v8229_v51 = vadd.f32 %v8228_v40, %v8227_v29  ;;  %v8241_v15 = vrot.slane %v8240_v43, 1  ;;  %10185 = vrcp.f32 %v7867_v25  ;;  %v7868_v52 = vadd.f32 1.0, %v10170_v56 }
 0x85f   : > { %v10174_v7 = vpop.eup %10173  ;;  %v8281_v49 = vadd.f32 %v8280_v5, %v8279_v16  ;;  %v8293_v35 = vrot.slane %v8292_v18, 1  ;;  %10187 = vrcp.f32 %v7873_v27  ;;  %v7874_v0 = vadd.f32 1.0, %v10172_v47 }
 0x860   : > { %v10176_v32 = vpop.eup %10175  ;;  %v13574_v44 = vmul.f32 0.015625, %v8229_v51  ;;  %v8242_v13 = vadd.f32 %v8241_v15, %v8240_v43  ;;  %10189 = vrcp.f32 %v7868_v52  ;;  %v7883_v20 = vadd.f32 1.0, %v10174_v7  ;;  %v13586_v7 = vpop.f32.mrb[72].mxu1 }
 0x861   : > { %v10178_v14 = vpop.eup %10177  ;;  %v13576_v23 = vmul.f32 0.015625, %v8281_v49  ;;  %v8294_v29 = vadd.f32 %v8293_v35, %v8292_v18  ;;  %10191 = vrcp.f32 %v7874_v0  ;;  %v7889_v40 = vadd.f32 1.0, %v10176_v32  ;;  %v14511_v49 = vld [vmem:[#allocation36_spill] sm:$0xff]  ;;  %v13596_v32 = vpop.f32.mrb[73].mxu1 }
 0x862   : > { %14505 = vst [vmem:[#allocation37_spill] sm:$0xff] %v13574_v44  ;;  %v10180_v25 = vpop.eup %10179  ;;  %v13578_v56 = vmul.f32 0.015625, %v8242_v13  ;;  %10193 = vrcp.f32 %v7883_v20  ;;  %v7884_v16 = vadd.f32 1.0, %v10178_v14  ;;  %v14508_v5 = vsub.f32 0.0, %v13507_v42  ;;  %14512 = vst [vmem:[#allocation36_spill] sm:$0xff] %v13596_v32  ;;  %v14513_v13 = vld [vmem:[#allocation41_spill] sm:$0xff] }
 0x863   : > { %14506 = vst [vmem:[#allocation38_spill] sm:$0xff] %v13576_v23  ;;  %v10182_v47 = vpop.eup %10181  ;;  %v13582_v51 = vmul.f32 0.015625, %v8294_v29  ;;  %10195 = vrcp.f32 %v7889_v40  ;;  %v7890_v43 = vadd.f32 1.0, %v10180_v25  ;;  %v14510_v15 = vsub.f32 0.0, %v13514_v12  ;;  %v14514_v29 = vld [vmem:[#allocation42_spill] sm:$0xff]  ;;  %v13610_v25 = vpop.f32.mrb[74].mxu1 }
 0x864   : > { %14507 = vst [vmem:[#allocation39_spill] sm:$0xff] %v13578_v56  ;;  %v7753_v27 = vmul.f32 1.442695, %v14508_v5  ;;  %10197 = vrcp.f32 %v7884_v16  ;;  %v7899_v18 = vadd.f32 1.0, %v10182_v47  ;;  %v13590_v35 = vadd.f32 %v14511_v49, %v13016_v62  ;;  %14515 = vst [vmem:[#allocation41_spill] sm:$0xff] %v13610_v25  ;;  %v13618_v47 = vpop.f32.mrb[75].mxu1 }
 0x865   : > { %14509 = vst [vmem:[#allocation61_spill] sm:$0xff] %v13582_v51  ;;  %v7743_v52 = vmul.f32 1.442695, %v14510_v15  ;;  %v13594_v0 = vadd.f32 %v13305_v3, %v12980_v33  ;;  %10199 = vrcp.f32 %v7890_v43  ;;  %v13600_v20 = vadd.f32 %v14513_v13, %v12969_v2  ;;  %14516 = vst [vmem:[#allocation42_spill] sm:$0xff] %v13618_v47  ;;  %v14517_v13 = vld [vmem:[#allocation40_spill] sm:$0xff] }
 0x866   : > { %v13604_v14 = vadd.f32 %v13313_v28, %v12991_v36  ;;  %v13608_v40 = vadd.f32 %v14514_v29, %v13016_v62  ;;  %10201 = vrcp.f32 %v7899_v18  ;;  %v7538_v3 = vsub.f32 0.0, %v13590_v35 }
 0x867   : > { %v7547_v16 = vsub.f32 0.0, %v13594_v0  ;;  %v13616_v5 = vadd.f32 %v13324_v11, %v12980_v33  ;;  %v10184_v43 = vpop.eup %10183  ;;  %10203 = vpow2.f32 %v13484_v48  ;;  %v7553_v28 = vsub.f32 0.0, %v13600_v20 }
 0x868   : > { %v7548_v15 = vsub.f32 0.0, %v13604_v14  ;;  %v7554_v49 = vsub.f32 0.0, %v13608_v40  ;;  %v10186_v18 = vpop.eup %10185  ;;  %v8114_v29 = vmul.f32 %v10184_v43, %v14517_v13  ;;  %10205 = vpow2.f32 %v13495_v9 }
 0x869   : > { %v7755_v23 = vmul.f32 1.442695, %v7538_v3  ;;  %v7773_v51 = vmul.f32 1.442695, %v7547_v16  ;;  %v10188_v33 = vpop.eup %10187  ;;  %v8123_v11 = vmul.f32 %v10186_v18, %v13322_v46  ;;  %10207 = vpow2.f32 %v13497_v38  ;;  %v13634_v16 = vpop.f32.mrb[76].mxu1 }
 0x86a   : > { %v7785_v44 = vmul.f32 1.442695, %v7553_v28  ;;  %v7775_v48 = vmul.f32 1.442695, %v7548_v15  ;;  %v10190_v56 = vpop.eup %10189  ;;  %v8334_v47 = vadd.f32 %v8114_v29, %v13552_v55  ;;  %v8129_v25 = vmul.f32 %v10188_v33, %v13346_v24  ;;  %v14518_v24 = vld [vmem:[#allocation43_spill] sm:$0xff]  ;;  %v13642_v15 = vpop.f32.mrb[77].mxu1 }
 0x86b   : > { %10209 = vpow2.f32 %v13519_v30  ;;  %v7787_v32 = vmul.f32 1.442695, %v7554_v49  ;;  %v10192_v43 = vpop.eup %10191  ;;  %v8244_v9 = vadd.f32 %v13559_v17, %v8123_v11  ;;  %v8124_v3 = vmul.f32 %v10190_v56, %v13360_v21  ;;  %v13646_v49 = vpop.f32.mrb[78].mxu1 }
 0x86c   : > { %10211 = vpow2.f32 %v7753_v27  ;;  %v7563_v46 = vsub.f32 0.0, %v13616_v5  ;;  %v10194_v38 = vpop.eup %10193  ;;  %v8322_v28 = vadd.f32 %v13562_v41, %v8129_v25  ;;  %v8130_v55 = vmul.f32 %v10192_v43, %v13385_v19  ;;  %14519 = vst [vmem:[#allocation40_spill] sm:$0xff] %v13646_v49 }
 0x86d   : > { %10213 = vpow2.f32 %v7743_v52  ;;  %v13640_v30 = vadd.f32 %v14518_v24, %v12969_v2  ;;  %v10196_v17 = vpop.eup %10195  ;;  %v8257_v21 = vadd.f32 %v13566_v34, %v8124_v3  ;;  %v8139_v56 = vmul.f32 %v10194_v38, %v13407_v61  ;;  %v13650_v2 = vpop.f32.mrb[79].mxu1 }
 0x86e   : > { %10215 = vpow2.f32 %v7755_v23  ;;  %v7805_v27 = vmul.f32 1.442695, %v7563_v46  ;;  %v10198_v18 = vpop.eup %10197  ;;  %v8335_v41 = vadd.f32 %v8334_v47, %v8130_v55  ;;  %v8145_v19 = vmul.f32 %v10196_v17, %v13417_v57  ;;  %14520 = vst [vmem:[#allocation43_spill] sm:$0xff] %v13650_v2  ;;  %v14524_v17 = vld [vmem:[#allocation23_spill] sm:$0xff] }
 0x86f   : > { %10217 = vpow2.f32 %v7773_v51  ;;  %v7569_v52 = vsub.f32 0.0, %v13640_v30  ;;  %v10200_v25 = vpop.eup %10199  ;;  %v8245_v13 = vadd.f32 %v8244_v9, %v8139_v56  ;;  %v8140_v29 = vmul.f32 %v10198_v18, %v13425_v58  ;;  %v14525_v56 = vld [vmem:[#allocation24_spill] sm:$0xff] }
 0x870   : > { %10219 = vpow2.f32 %v7785_v44  ;;  %v13655_v61 = vadd.f32 %v13333_v59, %v12991_v36  ;;  %v10202_v34 = vpop.eup %10201  ;;  %v13657_v23 = vadd.f32 %v8322_v28, %v8145_v19  ;;  %v8146_v47 = vmul.f32 %v10200_v25, %v13429_v37  ;;  %v14522_v28 = vld [vmem:[#allocation22_spill] sm:$0xff] }
 0x871   : > { %10221 = vpow2.f32 %v7775_v48  ;;  %v7817_v57 = vmul.f32 1.442695, %v7569_v52  ;;  %v10204_v51 = vpop.eup %10203  ;;  %v13660_v33 = vadd.f32 %v8257_v21, %v8140_v29  ;;  %v8155_v11 = vmul.f32 %v10202_v34, %v13452_v8  ;;  %v13674_v8 = vpop.f32.mrb[80].mxu1 }
 0x872   : > { %10223 = vpow2.f32 %v7787_v32  ;;  %v7564_v58 = vsub.f32 0.0, %v13655_v61  ;;  %v10206_v44 = vpop.eup %10205  ;;  %v13664_v43 = vadd.f32 %v8335_v41, %v8146_v47  ;;  %v7905_v36 = vadd.f32 1.0, %v10204_v51  ;;  %14521 = vst [vmem:[#allocation62_spill] sm:$0xff] %v13674_v8  ;;  %v14528_v51 = vld [vmem:[#allocation25_spill] sm:$0xff]  ;;  %v14536_v8 = vld [vmem:[#allocation50_spill] sm:$0xff] }
 0x873   : > { %10225 = vpow2.f32 %v7805_v27  ;;  %v13668_v59 = vadd.f32 %v13335_v53, %v13016_v62  ;;  %v10208_v37 = vpop.eup %10207  ;;  %v13670_v48 = vadd.f32 %v8245_v13, %v8155_v11  ;;  %v7900_v9 = vadd.f32 1.0, %v10206_v44  ;;  %v13681_v62 = vpop.f32.mrb[81].mxu1 }
 0x874   : > { %10227 = vpow2.f32 %v7817_v57  ;;  %v13672_v3 = vmul.f32 1.442695, %v7564_v58  ;;  %v7906_v46 = vadd.f32 1.0, %v10208_v37  ;;  %v13679_v55 = vadd.f32 %v13362_v54, %v14522_v28  ;;  %14523 = vst [vmem:[#allocation22_spill] sm:$0xff] %v13681_v62  ;;  %v13691_v18 = vpop.f32.mrb[82].mxu1 }
 0x875   : > { %v10210_v32 = vpop.eup %10209  ;;  %10229 = vrcp.f32 %v7905_v36  ;;  %v7570_v38 = vsub.f32 0.0, %v13668_v59  ;;  %v13685_v21 = vadd.f32 %v13364_v22, %v14524_v17  ;;  %v13689_v27 = vadd.f32 %v13370_v4, %v14525_v56  ;;  %14526 = vst [vmem:[#allocation23_spill] sm:$0xff] %v13691_v18  ;;  %v13696_v25 = vpop.f32.mrb[83].mxu1 }
 0x876   : > { %v10212_v53 = vpop.eup %10211  ;;  %10231 = vrcp.f32 %v7900_v9  ;;  %v7915_v24 = vadd.f32 1.0, %v10210_v32  ;;  %v7455_v52 = vsub.f32 0.0, %v13679_v55  ;;  %14527 = vst [vmem:[#allocation24_spill] sm:$0xff] %v13696_v25  ;;  %v13702_v11 = vadd.f32 %v13372_v6, %v14528_v51  ;;  %v14535_v25 = vld [vmem:[#allocation49_spill] sm:$0xff] }
 0x877   : > { %v10214_v41 = vpop.eup %10213  ;;  %10233 = vrcp.f32 %v7906_v46  ;;  %v7921_v19 = vadd.f32 1.0, %v10212_v53  ;;  %v13693_v54 = vmul.f32 1.442695, %v7570_v38  ;;  %v7461_v22 = vsub.f32 0.0, %v13685_v21 }
 0x878   : > { %v10216_v13 = vpop.eup %10215  ;;  %10235 = vrcp.f32 %v7915_v24  ;;  %v7916_v29 = vadd.f32 1.0, %v10214_v41  ;;  %v7456_v34 = vsub.f32 0.0, %v13689_v27  ;;  %v7589_v57 = vmul.f32 1.442695, %v7455_v52  ;;  %v14529_v41 = vld [vmem:[#allocation26_spill] sm:$0xff]  ;;  %v13719_v52 = vpop.f32.mrb[84].mxu1 }
 0x879   : > { %v10218_v4 = vpop.eup %10217  ;;  %10237 = vrcp.f32 %v7921_v19  ;;  %v7922_v47 = vadd.f32 1.0, %v10216_v13  ;;  %v7601_v36 = vmul.f32 1.442695, %v7461_v22  ;;  %v7462_v46 = vsub.f32 0.0, %v13702_v11  ;;  %14530 = vst [vmem:[#allocation25_spill] sm:$0xff] %v13719_v52 }
 0x87a   : > { %v10220_v58 = vpop.eup %10219  ;;  %10239 = vrcp.f32 %v7916_v29  ;;  %v7931_v44 = vadd.f32 1.0, %v10218_v4  ;;  %v13704_v37 = vmul.f32 1.442695, %v7456_v34  ;;  %v13709_v38 = vadd.f32 %v13377_v45, %v14522_v28  ;;  %v13722_v34 = vpop.f32.mrb[85].mxu1 }
 0x87b   : > { %v10222_v9 = vpop.eup %10221  ;;  %10241 = vrcp.f32 %v7922_v47  ;;  %v7937_v32 = vadd.f32 1.0, %v10220_v58  ;;  %v13713_v6 = vadd.f32 %v13379_v60, %v14524_v17  ;;  %v13717_v19 = vadd.f32 %v14529_v41, %v14525_v56  ;;  %14531 = vst [vmem:[#allocation26_spill] sm:$0xff] %v13722_v34 }
 0x87c   : > { %v10224_v53 = vpop.eup %10223  ;;  %10243 = vrcp.f32 %v7931_v44  ;;  %v7932_v24 = vadd.f32 1.0, %v10222_v9  ;;  %v7603_v22 = vmul.f32 1.442695, %v7462_v46  ;;  %v7471_v45 = vsub.f32 0.0, %v13709_v38  ;;  %v13726_v44 = vpop.f32.mrb[86].mxu1 }
 0x87d   : > { %v10226_v13 = vpop.eup %10225  ;;  %10245 = vrcp.f32 %v7937_v32  ;;  %v7938_v29 = vadd.f32 1.0, %v10224_v53  ;;  %v7477_v60 = vsub.f32 0.0, %v13713_v6  ;;  %v7472_v58 = vsub.f32 0.0, %v13717_v19  ;;  %14532 = vst [vmem:[#allocation63_spill] sm:$0xff] %v13726_v44  ;;  %v14533_v32 = vld [vmem:[#allocation27_spill] sm:$0xff]  ;;  %v13732_v53 = vpop.f32.mrb[87].mxu1 }
 0x87e   : > { %v10228_v4 = vpop.eup %10227  ;;  %10247 = vrcp.f32 %v7932_v24  ;;  %v7947_v47 = vadd.f32 1.0, %v10226_v13  ;;  %v7621_v52 = vmul.f32 1.442695, %v7471_v45  ;;  %v13730_v46 = vadd.f32 %v14533_v32, %v14528_v51  ;;  %14534 = vst [vmem:[#allocation27_spill] sm:$0xff] %v13732_v53  ;;  %v14537_v45 = vld [vmem:[#allocation28_spill] sm:$0xff]  ;;  %v14538_v53 = vld [vmem:[#allocation51_spill] sm:$0xff] }
 0x87f   : > { %v10230_v9 = vpop.eup %10229  ;;  %10249 = vrcp.f32 %v7938_v29  ;;  %v7953_v41 = vadd.f32 1.0, %v10228_v4  ;;  %v7633_v13 = vmul.f32 1.442695, %v7477_v60  ;;  %v7623_v18 = vmul.f32 1.442695, %v7472_v58 }
 0x880   : > { %v10232_v34 = vpop.eup %10231  ;;  %v8161_v24 = vmul.f32 %v10230_v9, %v14535_v25  ;;  %10251 = vrcp.f32 %v7947_v47  ;;  %v7478_v29 = vsub.f32 0.0, %v13730_v46  ;;  %v13739_v4 = vadd.f32 %v14537_v45, %v14522_v28  ;;  %v14539_v25 = vld [vmem:[#allocation29_spill] sm:$0xff] }
 0x881   : > { %v10234_v62 = vpop.eup %10233  ;;  %v8156_v2 = vmul.f32 %v10232_v34, %v14536_v8  ;;  %10253 = vrcp.f32 %v7953_v41  ;;  %v13746_v47 = vadd.f32 %v14539_v25, %v14524_v17 }
 0x882   : > { %v10236_v32 = vpop.eup %10235  ;;  %v8324_v44 = vadd.f32 %v13657_v23, %v8161_v24  ;;  %v8162_v49 = vmul.f32 %v10234_v62, %v14538_v53  ;;  %10255 = vpow2.f32 %v13672_v3  ;;  %v7635_v58 = vmul.f32 1.442695, %v7478_v29  ;;  %v13754_v62 = vpop.f32.mrb[88].mxu1 }
 0x883   : > { %v10238_v60 = vpop.eup %10237  ;;  %v8259_v8 = vadd.f32 %v13660_v33, %v8156_v2  ;;  %v8171_v34 = vmul.f32 %v10236_v32, %v13488_v31  ;;  %10257 = vpow2.f32 %v13693_v54  ;;  %v7487_v3 = vsub.f32 0.0, %v13739_v4  ;;  %v13759_v33 = vpop.f32.mrb[89].mxu1 }
 0x884   : > { %v10240_v9 = vpop.eup %10239  ;;  %v8337_v41 = vadd.f32 %v13664_v43, %v8162_v49  ;;  %v8177_v23 = vmul.f32 %v10238_v60, %v13507_v42  ;;  %10259 = vpow2.f32 %v7589_v57  ;;  %v7493_v31 = vsub.f32 0.0, %v13746_v47  ;;  %v13763_v43 = vpop.f32.mrb[90].mxu1 }
 0x885   : > { %v10242_v53 = vpop.eup %10241  ;;  %v8247_v24 = vadd.f32 %v13670_v48, %v8171_v34  ;;  %v8172_v2 = vmul.f32 %v10240_v9, %v13514_v12  ;;  %10261 = vpow2.f32 %v7601_v36  ;;  %v7653_v42 = vmul.f32 1.442695, %v7487_v3  ;;  %v13766_v36 = vpop.f32.mrb[91].mxu1 }
 0x886   : > { %v10244_v54 = vpop.eup %10243  ;;  %v8325_v29 = vadd.f32 %v8324_v44, %v8177_v23  ;;  %v8178_v49 = vmul.f32 %v10242_v53, %v13590_v35  ;;  %10263 = vpow2.f32 %v13704_v37  ;;  %v7665_v12 = vmul.f32 1.442695, %v7493_v31  ;;  %v14540_v35 = vld [vmem:[#allocation30_spill] sm:$0xff] }
 0x887   : > { %v10246_v57 = vpop.eup %10245  ;;  %v8260_v45 = vadd.f32 %v8259_v8, %v8172_v2  ;;  %v8187_v48 = vmul.f32 %v10244_v54, %v13594_v0  ;;  %10265 = vpow2.f32 %v7603_v22  ;;  %v13771_v44 = vadd.f32 %v14540_v35, %v14525_v56  ;;  %v14541_v0 = vld [vmem:[#allocation44_spill] sm:$0xff]  ;;  %v13787_v54 = vpop.f32.mrb[92].mxu1 }
 0x888   : > { %v10248_v32 = vpop.eup %10247  ;;  %v8338_v25 = vadd.f32 %v8337_v41, %v8178_v49  ;;  %v8193_v60 = vmul.f32 %v10246_v57, %v13600_v20  ;;  %10267 = vpow2.f32 %v7621_v52  ;;  %v13776_v22 = vadd.f32 %v14541_v0, %v14528_v51  ;;  %v13791_v57 = vpop.f32.mrb[93].mxu1 }
 0x889   : > { %v10250_v37 = vpop.eup %10249  ;;  %v8248_v34 = vadd.f32 %v8247_v24, %v8187_v48  ;;  %v8188_v9 = vmul.f32 %v10248_v32, %v13604_v14  ;;  %10269 = vpow2.f32 %v7633_v13  ;;  %v7488_v20 = vsub.f32 0.0, %v13771_v44  ;;  %14542 = vst [vmem:[#allocation49_spill] sm:$0xff] %v13791_v57  ;;  %v14543_v48 = vld [vmem:[#allocation45_spill] sm:$0xff] }
 0x88a   : > { %v10252_v8 = vpop.eup %10251  ;;  %v8326_v23 = vadd.f32 %v8325_v29, %v8193_v60  ;;  %v8194_v41 = vmul.f32 %v10250_v37, %v13608_v40  ;;  %10271 = vpow2.f32 %v7623_v18  ;;  %v7494_v14 = vsub.f32 0.0, %v13776_v22 }
 0x88b   : > { %v10254_v52 = vpop.eup %10253  ;;  %v13780_v3 = vadd.f32 %v8260_v45, %v8188_v9  ;;  %v8203_v53 = vmul.f32 %v10252_v8, %v13616_v5  ;;  %10273 = vpow2.f32 %v7635_v58  ;;  %v7655_v31 = vmul.f32 1.442695, %v7488_v20 }
 0x88c   : > { %v10256_v13 = vpop.eup %10255  ;;  %v13784_v24 = vadd.f32 %v8338_v25, %v8194_v41  ;;  %v8209_v2 = vmul.f32 %v10254_v52, %v13640_v30  ;;  %10275 = vpow2.f32 %v7653_v42  ;;  %v13789_v49 = vmul.f32 1.442695, %v7494_v14  ;;  %v13797_v30 = vpop.f32.mrb[94].mxu1 }
 0x88d   : > { %v10258_v40 = vpop.eup %10257  ;;  %v8249_v18 = vadd.f32 %v8248_v34, %v8203_v53  ;;  %v7948_v29 = vadd.f32 1.0, %v10256_v13  ;;  %10277 = vpow2.f32 %v7665_v12  ;;  %v13795_v32 = vadd.f32 %v14543_v48, %v14522_v28  ;;  %14544 = vst [vmem:[#allocation50_spill] sm:$0xff] %v13797_v30  ;;  %v14545_v12 = vld [vmem:[#allocation46_spill] sm:$0xff]  ;;  %v13803_v37 = vpop.f32.mrb[95].mxu1 }
 0x88e   : > { %v10260_v5 = vpop.eup %10259  ;;  %v8327_v58 = vadd.f32 %v8326_v23, %v8209_v2  ;;  %v7954_v45 = vadd.f32 1.0, %v10258_v40  ;;  %10279 = vpow2.f32 %v7655_v31  ;;  %v13801_v35 = vadd.f32 %v14545_v12, %v14524_v17  ;;  %14546 = vst [vmem:[#allocation28_spill] sm:$0xff] %v13803_v37 }
 0x88f   : > { %v10262_v42 = vpop.eup %10261  ;;  %v8250_v25 = vrot.slane %v8249_v18, 4  ;;  %10281 = vrcp.f32 %v7948_v29  ;;  %v7839_v60 = vadd.f32 1.0, %v10260_v5  ;;  %v7503_v8 = vsub.f32 0.0, %v13795_v32 }
 0x890   : > { %v10264_v34 = vpop.eup %10263  ;;  %v8328_v9 = vrot.slane %v8327_v58, 4  ;;  %10283 = vrcp.f32 %v7954_v45  ;;  %v7845_v0 = vadd.f32 1.0, %v10262_v42  ;;  %v7509_v52 = vsub.f32 0.0, %v13801_v35 }
 0x891   : > { %v10266_v23 = vpop.eup %10265  ;;  %v8251_v41 = vadd.f32 %v8250_v25, %v8249_v18  ;;  %10285 = vrcp.f32 %v7839_v60  ;;  %v7840_v20 = vadd.f32 1.0, %v10264_v34  ;;  %v7685_v2 = vmul.f32 1.442695, %v7503_v8  ;;  %v14547_v18 = vld [vmem:[#allocation47_spill] sm:$0xff]  ;;  %v13811_v60 = vpop.f32.mrb[96].mxu1 }
 0x892   : > { %v10268_v53 = vpop.eup %10267  ;;  %v8329_v14 = vadd.f32 %v8328_v9, %v8327_v58  ;;  %10287 = vrcp.f32 %v7845_v0  ;;  %v7846_v13 = vadd.f32 1.0, %v10266_v23  ;;  %v7697_v5 = vmul.f32 1.442695, %v7509_v52  ;;  %14548 = vst [vmem:[#allocation51_spill] sm:$0xff] %v13811_v60  ;;  %v14549_v9 = vld [vmem:[#allocation48_spill] sm:$0xff]  ;;  %v13817_v8 = vpop.f32.mrb[97].mxu1 }
 0x893   : > { %v10270_v31 = vpop.eup %10269  ;;  %v8252_v40 = vrot.slane %v8251_v41, 2  ;;  %10289 = vrcp.f32 %v7840_v20  ;;  %v7855_v29 = vadd.f32 1.0, %v10268_v53  ;;  %v13809_v25 = vadd.f32 %v14547_v18, %v14525_v56  ;;  %14550 = vst [vmem:[#allocation29_spill] sm:$0xff] %v13817_v8 }
 0x894   : > { %v10272_v45 = vpop.eup %10271  ;;  %v8330_v48 = vrot.slane %v8329_v14, 2  ;;  %10291 = vrcp.f32 %v7846_v13  ;;  %v7861_v42 = vadd.f32 1.0, %v10270_v31  ;;  %v13815_v0 = vadd.f32 %v14549_v9, %v14528_v51  ;;  %v13820_v13 = vpop.f32.mrb[98].mxu1 }
 0x895   : > { %v10274_v12 = vpop.eup %10273  ;;  %v8253_v58 = vadd.f32 %v8252_v40, %v8251_v41  ;;  %10293 = vrcp.f32 %v7855_v29  ;;  %v7856_v34 = vadd.f32 1.0, %v10272_v45  ;;  %v7504_v53 = vsub.f32 0.0, %v13809_v25  ;;  %14551 = vst [vmem:[#allocation30_spill] sm:$0xff] %v13820_v13  ;;  %v13823_v29 = vpop.f32.mrb[99].mxu1 }
 0x896   : > { %v10276_v23 = vpop.eup %10275  ;;  %v8331_v20 = vadd.f32 %v8330_v48, %v8329_v14  ;;  %10295 = vrcp.f32 %v7861_v42  ;;  %v7862_v52 = vadd.f32 1.0, %v10274_v12  ;;  %v7510_v40 = vsub.f32 0.0, %v13815_v0  ;;  %14552 = vst [vmem:[#allocation44_spill] sm:$0xff] %v13823_v29 }
 0x897   : > { %v10278_v31 = vpop.eup %10277  ;;  %v8254_v18 = vrot.slane %v8253_v58, 1  ;;  %10297 = vrcp.f32 %v7856_v34  ;;  %v7871_v41 = vadd.f32 1.0, %v10276_v23  ;;  %v7687_v60 = vmul.f32 1.442695, %v7504_v53  ;;  %v14553_v34 = vld [vmem:[#allocation52_spill] sm:$0xff] }
 0x898   : > { %v10280_v45 = vpop.eup %10279  ;;  %v8332_v9 = vrot.slane %v8331_v20, 1  ;;  %10299 = vrcp.f32 %v7862_v52  ;;  %v7877_v8 = vadd.f32 1.0, %v10278_v31  ;;  %v7699_v12 = vmul.f32 1.442695, %v7510_v40 }
 0x899   : > { %v10282_v14 = vpop.eup %10281  ;;  %v8255_v48 = vadd.f32 %v8254_v18, %v8253_v58  ;;  %10301 = vrcp.f32 %v7871_v41  ;;  %v7872_v42 = vadd.f32 1.0, %v10280_v45  ;;  %v13828_v23 = vadd.f32 %v14553_v34, %v14522_v28  ;;  %v14554_v58 = vld [vmem:[#allocation53_spill] sm:$0xff] }
 0x89a   : > { %v10284_v37 = vpop.eup %10283  ;;  %v8333_v13 = vadd.f32 %v8332_v9, %v8331_v20  ;;  %v8204_v30 = vmul.f32 %v10282_v14, %v13655_v61  ;;  %10303 = vrcp.f32 %v7877_v8  ;;  %v13835_v53 = vadd.f32 %v14554_v58, %v14524_v17 }
 0x89b   : > { %v10286_v29 = vpop.eup %10285  ;;  %v13830_v57 = vmul.f32 0.015625, %v8255_v48  ;;  %v8210_v52 = vmul.f32 %v10284_v37, %v13668_v59  ;;  %10305 = vrcp.f32 %v7872_v42  ;;  %v7519_v59 = vsub.f32 0.0, %v13828_v23 }
 0x89c   : > { %v10288_v31 = vpop.eup %10287  ;;  %v13837_v18 = vmul.f32 0.015625, %v8333_v13  ;;  %v8262_v61 = vadd.f32 %v13780_v3, %v8204_v30  ;;  %v8095_v8 = vmul.f32 %v10286_v29, %v13679_v55  ;;  %10307 = vpow2.f32 %v13789_v49 }
 0x89d   : > { %v10290_v20 = vpop.eup %10289  ;;  %v8340_v41 = vadd.f32 %v13784_v24, %v8210_v52  ;;  %v8101_v40 = vmul.f32 %v10288_v31, %v13685_v21  ;;  %10309 = vpow2.f32 %v7685_v2  ;;  %v7525_v13 = vsub.f32 0.0, %v13835_v53 }
 0x89e   : > { %v10292_v37 = vpop.eup %10291  ;;  %v8263_v45 = vrot.slane %v8262_v61, 4  ;;  %v8096_v9 = vmul.f32 %v10290_v20, %v13689_v27  ;;  %10311 = vpow2.f32 %v7697_v5  ;;  %v7717_v49 = vmul.f32 1.442695, %v7519_v59  ;;  %v14555_v27 = vld [vmem:[#allocation54_spill] sm:$0xff] }
 0x89f   : > { %v10294_v3 = vpop.eup %10293  ;;  %v8341_v30 = vrot.slane %v8340_v41, 4  ;;  %v8102_v55 = vmul.f32 %v10292_v37, %v13702_v11  ;;  %10313 = vpow2.f32 %v7687_v60  ;;  %v7729_v2 = vmul.f32 1.442695, %v7525_v13  ;;  %v14556_v37 = vld [vmem:[#allocation55_spill] sm:$0xff] }
 0x8a0   : > { %v10296_v29 = vpop.eup %10295  ;;  %v8264_v24 = vadd.f32 %v8263_v45, %v8262_v61  ;;  %v8111_v21 = vmul.f32 %v10294_v3, %v13709_v38  ;;  %10315 = vpow2.f32 %v7699_v12  ;;  %v13852_v5 = vadd.f32 %v14555_v27, %v14525_v56 }
 0x8a1   : > { %v10298_v14 = vpop.eup %10297  ;;  %v8342_v48 = vadd.f32 %v8341_v30, %v8340_v41  ;;  %v8117_v42 = vmul.f32 %v10296_v29, %v13713_v6  ;;  %10317 = vpow2.f32 %v7717_v49  ;;  %v13860_v45 = vadd.f32 %v14556_v37, %v14528_v51 }
 0x8a2   : > { %v10300_v34 = vpop.eup %10299  ;;  %v8265_v52 = vrot.slane %v8264_v24, 2  ;;  %v8295_v11 = vadd.f32 %v8111_v21, %v8095_v8  ;;  %v8112_v60 = vmul.f32 %v10298_v14, %v13717_v19  ;;  %10319 = vpow2.f32 %v7729_v2 }
 0x8a3   : > { %v10302_v58 = vpop.eup %10301  ;;  %v8343_v31 = vrot.slane %v8342_v48, 2  ;;  %v8373_v38 = vadd.f32 %v8117_v42, %v8101_v40  ;;  %v8118_v12 = vmul.f32 %v10300_v34, %v13730_v46  ;;  %v7520_v61 = vsub.f32 0.0, %v13852_v5 }
 0x8a4   : > { %v10304_v20 = vpop.eup %10303  ;;  %v8266_v6 = vadd.f32 %v8265_v52, %v8264_v24  ;;  %v8308_v41 = vadd.f32 %v8112_v60, %v8096_v9  ;;  %v8127_v59 = vmul.f32 %v10302_v58, %v13739_v4  ;;  %v7526_v9 = vsub.f32 0.0, %v13860_v45 }
 0x8a5   : > { %v10306_v8 = vpop.eup %10305  ;;  %v8344_v13 = vadd.f32 %v8343_v31, %v8342_v48  ;;  %v13862_v19 = vadd.f32 %v8118_v12, %v8102_v55  ;;  %v8133_v3 = vmul.f32 %v10304_v20, %v13746_v47  ;;  %v7719_v40 = vmul.f32 1.442695, %v7520_v61 }
 0x8a6   : > { %v10308_v30 = vpop.eup %10307  ;;  %v8267_v46 = vrot.slane %v8266_v6, 1  ;;  %v13865_v49 = vadd.f32 %v8295_v11, %v8127_v59  ;;  %v8128_v29 = vmul.f32 %v10306_v8, %v13771_v44  ;;  %v7731_v42 = vmul.f32 1.442695, %v7526_v9  ;;  %v14557_v44 = vld [vmem:[#allocation56_spill] sm:$0xff] }
 0x8a7   : > { %v10310_v4 = vpop.eup %10309  ;;  %v8345_v24 = vrot.slane %v8344_v13, 1  ;;  %v13869_v21 = vadd.f32 %v8373_v38, %v8133_v3  ;;  %v7878_v2 = vadd.f32 1.0, %v10308_v30  ;;  %10321 = vpow2.f32 %v7719_v40  ;;  %v14558_v38 = vld [vmem:[#allocation57_spill] sm:$0xff] }
 0x8a8   : > { %v10312_v14 = vpop.eup %10311  ;;  %v8268_v55 = vadd.f32 %v8267_v46, %v8266_v6  ;;  %v13871_v48 = vadd.f32 %v8308_v41, %v8128_v29  ;;  %v7887_v47 = vadd.f32 1.0, %v10310_v4  ;;  %v13875_v11 = vadd.f32 %v14557_v44, %v14522_v28 }
 0x8a9   : > { %v10314_v27 = vpop.eup %10313  ;;  %v8346_v34 = vadd.f32 %v8345_v24, %v8344_v13  ;;  %10323 = vrcp.f32 %v7878_v2  ;;  %v7893_v52 = vadd.f32 1.0, %v10312_v14  ;;  %v13881_v12 = vadd.f32 %v14558_v38, %v14524_v17  ;;  %v14560_v2 = vld [vmem:[#allocation32_spill] sm:$0xff] }
 0x8aa   : > { %v10316_v60 = vpop.eup %10315  ;;  %v13877_v58 = vmul.f32 0.015625, %v8268_v55  ;;  %10325 = vrcp.f32 %v7887_v47  ;;  %v7888_v31 = vadd.f32 1.0, %v10314_v27  ;;  %v7535_v41 = vsub.f32 0.0, %v13875_v11  ;;  %v14561_v47 = vld [vmem:[#allocation58_spill] sm:$0xff] }
 0x8ab   : > { %v10318_v61 = vpop.eup %10317  ;;  %v13883_v20 = vmul.f32 0.015625, %v8346_v34  ;;  %10327 = vrcp.f32 %v7893_v52  ;;  %v7894_v6 = vadd.f32 1.0, %v10316_v60  ;;  %v7541_v8 = vsub.f32 0.0, %v13881_v12 }
 0x8ac   : > { %v10320_v59 = vpop.eup %10319  ;;  %10329 = vrcp.f32 %v7888_v31  ;;  %v7903_v37 = vadd.f32 1.0, %v10318_v61  ;;  %v13889_v13 = vadd.f32 %v13499_v1, %v14525_v56  ;;  %v7749_v40 = vmul.f32 1.442695, %v7535_v41  ;;  %v14559_v1 = vld [vmem:[#allocation31_spill] sm:$0xff]  ;;  %v14562_v41 = vld [vmem:[#allocation33_spill] sm:$0xff] }
 0x8ad   : > { %10331 = vrcp.f32 %v7894_v6  ;;  %v7909_v3 = vadd.f32 1.0, %v10320_v59  ;;  %v13893_v30 = vadd.f32 %v13501_v26, %v14528_v51  ;;  %v7761_v46 = vmul.f32 1.442695, %v7541_v8 }
 0x8ae   : > { %10333 = vrcp.f32 %v7903_v37  ;;  %v7536_v29 = vsub.f32 0.0, %v13889_v13  ;;  %v13898_v9 = vadd.f32 %v13529_v50, %v14522_v28  ;;  %v13903_v24 = vadd.f32 %v14559_v1, %v14524_v17 }
 0x8af   : > { %10335 = vrcp.f32 %v7909_v3  ;;  %v7542_v4 = vsub.f32 0.0, %v13893_v30  ;;  %v13907_v14 = vadd.f32 %v14560_v2, %v14525_v56  ;;  %v13912_v27 = vadd.f32 %v14561_v47, %v14528_v51  ;;  %v14564_v2 = vld [vmem:[#allocation34_spill] sm:$0xff] }
 0x8b0   : > { %10337 = vpow2.f32 %v7731_v42  ;;  %v7751_v26 = vmul.f32 1.442695, %v7536_v29  ;;  %v7551_v55 = vsub.f32 0.0, %v13898_v9  ;;  %v7557_v52 = vsub.f32 0.0, %v13903_v24 }
 0x8b1   : > { %v10322_v50 = vpop.eup %10321  ;;  %10339 = vpow2.f32 %v7749_v40  ;;  %v7763_v34 = vmul.f32 1.442695, %v7542_v4  ;;  %v7552_v44 = vsub.f32 0.0, %v13907_v14  ;;  %v7558_v38 = vsub.f32 0.0, %v13912_v27  ;;  %v14563_v40 = vld [vmem:[#allocation59_spill] sm:$0xff] }
 0x8b2   : > { %v7904_v60 = vadd.f32 1.0, %v10322_v50  ;;  %10341 = vpow2.f32 %v7761_v46  ;;  %v7781_v31 = vmul.f32 1.442695, %v7551_v55  ;;  %v7793_v61 = vmul.f32 1.442695, %v7557_v52 }
 0x8b3   : > { %v10324_v42 = vpop.eup %10323  ;;  %10343 = vpow2.f32 %v7751_v26  ;;  %v7783_v6 = vmul.f32 1.442695, %v7552_v44  ;;  %v13919_v59 = vadd.f32 %v14562_v41, %v14522_v28  ;;  %v7795_v3 = vmul.f32 1.442695, %v7558_v38 }
 0x8b4   : > { %v10326_v37 = vpop.eup %10325  ;;  %v8134_v8 = vmul.f32 %v10324_v42, %v13776_v22  ;;  %10345 = vrcp.f32 %v7904_v60  ;;  %v13924_v29 = vadd.f32 %v14563_v40, %v14524_v17  ;;  %v13930_v26 = vadd.f32 %v14564_v2, %v14525_v56  ;;  %v14566_v40 = vld [vmem:[#allocation19_spill] sm:$0xff] }
 0x8b5   : > { %v10328_v46 = vpop.eup %10327  ;;  %v8143_v4 = vmul.f32 %v10326_v37, %v13795_v32  ;;  %10347 = vpow2.f32 %v7763_v34  ;;  %v7567_v1 = vsub.f32 0.0, %v13919_v59  ;;  %v14568_v2 = vsub.s32 3, %v14566_v40 }
 0x8b6   : > { %v10330_v28 = vpop.eup %10329  ;;  %v8387_v55 = vadd.f32 %v13862_v19, %v8134_v8  ;;  %v8149_v22 = vmul.f32 %v10328_v46, %v13801_v35  ;;  %10349 = vpow2.f32 %v7781_v31  ;;  %v7573_v47 = vsub.f32 0.0, %v13924_v29 }
 0x8b7   : > { %v10332_v17 = vpop.eup %10331  ;;  %v8297_v50 = vadd.f32 %v13865_v49, %v8143_v4  ;;  %v8144_v32 = vmul.f32 %v10330_v28, %v13809_v25  ;;  %10351 = vpow2.f32 %v7793_v61  ;;  %v7813_v34 = vmul.f32 1.442695, %v7567_v1 }
 0x8b8   : > { %v10334_v52 = vpop.eup %10333  ;;  %v8375_v44 = vadd.f32 %v13869_v21, %v8149_v22  ;;  %v8150_v56 = vmul.f32 %v10332_v17, %v13815_v0  ;;  %10353 = vpow2.f32 %v7783_v6  ;;  %v7825_v60 = vmul.f32 1.442695, %v7573_v47  ;;  %v14565_v21 = vld [vmem:[#allocation60_spill] sm:$0xff] }
 0x8b9   : > { %v10336_v19 = vpop.eup %10335  ;;  %v8310_v35 = vadd.f32 %v13871_v48, %v8144_v32  ;;  %v8159_v31 = vmul.f32 %v10334_v52, %v13828_v23  ;;  %10355 = vpow2.f32 %v7795_v3  ;;  %v7568_v38 = vsub.f32 0.0, %v13930_v26 }
 0x8ba   : > { %v10338_v49 = vpop.eup %10337  ;;  %v13942_v42 = vadd.f32 %v8387_v55, %v8150_v56  ;;  %v8165_v25 = vmul.f32 %v10336_v19, %v13835_v53  ;;  %10357 = vpow2.f32 %v7813_v34  ;;  %v13947_v61 = vadd.f32 %v14565_v21, %v14528_v51  ;;  %v13957_v53 = vld [vmem:[%s14365_s14 + $0x8] sm:$0xff] }
 0x8bb   : > { %v10340_v0 = vpop.eup %10339  ;;  %v13949_v6 = vadd.f32 %v8297_v50, %v8159_v31  ;;  %v7910_v41 = vadd.f32 1.0, %v10338_v49  ;;  %10359 = vpow2.f32 %v7825_v60  ;;  %v7815_v48 = vmul.f32 1.442695, %v7568_v38 }
 0x8bc   : > { %v10342_v23 = vpop.eup %10341  ;;  %v13951_v37 = vadd.f32 %v8375_v44, %v8165_v25  ;;  %v7919_v8 = vadd.f32 1.0, %v10340_v0  ;;  %v7574_v3 = vsub.f32 0.0, %v13947_v61  ;;  %v14567_v51 = vsub.s32 2, %v14566_v40  ;;  %v14570_v44 = vld [vmem:[#allocation35_spill] sm:$0xff] }
 0x8bd   : > { %v10344_v4 = vpop.eup %10343  ;;  %10361 = vrcp.f32 %v7910_v41  ;;  %v7925_v1 = vadd.f32 1.0, %v10342_v23  ;;  %v13967_v28 = vrot.slane %v13957_v53, %v14568_v2  ;;  %v14569_v55 = vsub.s32 6, %v14566_v40 }
 0x8be   : > { %v13962_v46 = vrot.slane %v13957_v53, %v14567_v51  ;;  %v10346_v47 = vpop.eup %10345  ;;  %10363 = vrcp.f32 %v7919_v8  ;;  %v7920_v17 = vadd.f32 1.0, %v10344_v4  ;;  %v7827_v50 = vmul.f32 1.442695, %v7574_v3 }
 0x8bf   : > { %v13972_v22 = vrot.slane %v13957_v53, %v14569_v55  ;;  %v10348_v34 = vpop.eup %10347  ;;  %v8160_v52 = vmul.f32 %v10346_v47, %v13852_v5  ;;  %10365 = vrcp.f32 %v7925_v1  ;;  %v13981_v56 = vadd.f32 %v14570_v44, %v13967_v28 }
 0x8c0   : > { %v13976_v32 = vadd.f32 %v13564_v10, %v13962_v46  ;;  %v13985_v60 = vadd.f32 %v13570_v39, %v13962_v46  ;;  %v10350_v19 = vpop.eup %10349  ;;  %10367 = vrcp.f32 %v7920_v17  ;;  %v7926_v31 = vadd.f32 1.0, %v10348_v34  ;;  %v14571_v17 = vld [vmem:[#allocation36_spill] sm:$0xff] }
 0x8c1   : > { %v13990_v10 = vadd.f32 %v13572_v63, %v13967_v28  ;;  %v10352_v49 = vpop.eup %10351  ;;  %v8311_v5 = vadd.f32 %v8310_v35, %v8160_v52  ;;  %v7935_v25 = vadd.f32 1.0, %v10350_v19  ;;  %10369 = vpow2.f32 %v7815_v48  ;;  %v14572_v19 = vld [vmem:[#allocation41_spill] sm:$0xff] }
 0x8c2   : > { %v7459_v38 = vsub.f32 0.0, %v13976_v32  ;;  %v7460_v21 = vsub.f32 0.0, %v13981_v56  ;;  %v10354_v0 = vpop.eup %10353  ;;  %10371 = vrcp.f32 %v7926_v31  ;;  %v7941_v41 = vadd.f32 1.0, %v10352_v49  ;;  %v14573_v49 = vld [vmem:[#allocation42_spill] sm:$0xff] }
 0x8c3   : > { %v7475_v23 = vsub.f32 0.0, %v13985_v60  ;;  %v10356_v8 = vpop.eup %10355  ;;  %10373 = vrcp.f32 %v7935_v25  ;;  %v7936_v3 = vadd.f32 1.0, %v10354_v0  ;;  %v7476_v4 = vsub.f32 0.0, %v13990_v10 }
 0x8c4   : > { %v7597_v39 = vmul.f32 1.442695, %v7459_v38  ;;  %v7599_v51 = vmul.f32 1.442695, %v7460_v21  ;;  %v10358_v63 = vpop.eup %10357  ;;  %10375 = vrcp.f32 %v7941_v41  ;;  %v7942_v1 = vadd.f32 1.0, %v10356_v8 }
 0x8c5   : > { %v7629_v35 = vmul.f32 1.442695, %v7475_v23  ;;  %v13997_v48 = vadd.f32 %v13586_v7, %v13962_v46  ;;  %v10360_v2 = vpop.eup %10359  ;;  %10377 = vrcp.f32 %v7936_v3  ;;  %v7951_v55 = vadd.f32 1.0, %v10358_v63 }
 0x8c6   : > { %v7631_v47 = vmul.f32 1.442695, %v7476_v4  ;;  %v14001_v34 = vadd.f32 %v14571_v17, %v13967_v28  ;;  %10379 = vrcp.f32 %v7942_v1  ;;  %v7957_v52 = vadd.f32 1.0, %v10360_v2 }
 0x8c7   : > { %v7491_v44 = vsub.f32 0.0, %v13997_v48  ;;  %v14006_v31 = vadd.f32 %v14572_v19, %v13962_v46  ;;  %v10362_v38 = vpop.eup %10361  ;;  %10381 = vrcp.f32 %v7951_v55  ;;  %v14011_v25 = vadd.f32 %v14573_v49, %v13967_v28 }
 0x8c8   : > { %v7492_v7 = vsub.f32 0.0, %v14001_v34  ;;  %v14015_v21 = vadd.f32 %v13634_v16, %v13962_v46  ;;  %v10364_v0 = vpop.eup %10363  ;;  %v8166_v41 = vmul.f32 %v10362_v38, %v13860_v45  ;;  %10383 = vrcp.f32 %v7957_v52 }
 0x8c9   : > { %v7661_v23 = vmul.f32 1.442695, %v7491_v44  ;;  %v7507_v8 = vsub.f32 0.0, %v14006_v31  ;;  %v10366_v3 = vpop.eup %10365  ;;  %v8175_v4 = vmul.f32 %v10364_v0, %v13875_v11  ;;  %10385 = vpow2.f32 %v7827_v50 }
 0x8ca   : > { %v7663_v63 = vmul.f32 1.442695, %v7492_v7  ;;  %v7508_v1 = vsub.f32 0.0, %v14011_v25  ;;  %v10368_v2 = vpop.eup %10367  ;;  %v8389_v55 = vadd.f32 %v13942_v42, %v8166_v41  ;;  %v8181_v16 = vmul.f32 %v10366_v3, %v13881_v12 }
 0x8cb   : > { %10387 = vpow2.f32 %v7597_v39  ;;  %v7693_v17 = vmul.f32 1.442695, %v7507_v8  ;;  %v10370_v19 = vpop.eup %10369  ;;  %v8299_v45 = vadd.f32 %v13949_v6, %v8175_v4  ;;  %v8176_v52 = vmul.f32 %v10368_v2, %v13889_v13 }
 0x8cc   : > { %10389 = vpow2.f32 %v7599_v51  ;;  %v7695_v44 = vmul.f32 1.442695, %v7508_v1  ;;  %v10372_v38 = vpop.eup %10371  ;;  %v8377_v11 = vadd.f32 %v13951_v37, %v8181_v16  ;;  %v7952_v50 = vadd.f32 1.0, %v10370_v19  ;;  %v14574_v37 = vld [vmem:[#allocation40_spill] sm:$0xff] }
 0x8cd   : > { %10391 = vpow2.f32 %v7629_v35  ;;  %v7523_v7 = vsub.f32 0.0, %v14015_v21  ;;  %v10374_v49 = vpop.eup %10373  ;;  %v8312_v42 = vadd.f32 %v8311_v5, %v8176_v52  ;;  %v8182_v12 = vmul.f32 %v10372_v38, %v13893_v30 }
 0x8ce   : > { %10393 = vpow2.f32 %v7631_v47  ;;  %v14030_v39 = vadd.f32 %v13642_v15, %v13967_v28  ;;  %v10376_v6 = vpop.eup %10375  ;;  %v8191_v13 = vmul.f32 %v10374_v49, %v13898_v9  ;;  %v14035_v0 = vadd.f32 %v14574_v37, %v13962_v46 }
 0x8cf   : > { %10395 = vrcp.f32 %v7952_v50  ;;  %v7725_v51 = vmul.f32 1.442695, %v7523_v7  ;;  %v10378_v35 = vpop.eup %10377  ;;  %v8390_v41 = vadd.f32 %v8389_v55, %v8182_v12  ;;  %v8197_v5 = vmul.f32 %v10376_v6, %v13903_v24 }
 0x8d0   : > { %10397 = vpow2.f32 %v7661_v23  ;;  %v7524_v30 = vsub.f32 0.0, %v14030_v39  ;;  %v10380_v47 = vpop.eup %10379  ;;  %v8300_v8 = vadd.f32 %v8299_v45, %v8191_v13  ;;  %v8192_v15 = vmul.f32 %v10378_v35, %v13907_v14 }
 0x8d1   : > { %10399 = vpow2.f32 %v7663_v63  ;;  %v7539_v9 = vsub.f32 0.0, %v14035_v0  ;;  %v10382_v3 = vpop.eup %10381  ;;  %v8378_v4 = vadd.f32 %v8377_v11, %v8197_v5  ;;  %v8198_v1 = vmul.f32 %v10380_v47, %v13912_v27  ;;  %v14575_v63 = vld [vmem:[#allocation43_spill] sm:$0xff]  ;;  %v14576_v11 = vld [vmem:[#allocation62_spill] sm:$0xff] }
 0x8d2   : > { %10401 = vpow2.f32 %v7693_v17  ;;  %v7727_v2 = vmul.f32 1.442695, %v7524_v30  ;;  %v10384_v16 = vpop.eup %10383  ;;  %v8313_v55 = vadd.f32 %v8312_v42, %v8192_v15  ;;  %v8207_v24 = vmul.f32 %v10382_v3, %v13919_v59  ;;  %v14577_v3 = vld [vmem:[#allocation22_spill] sm:$0xff] }
 0x8d3   : > { %10403 = vpow2.f32 %v7695_v44  ;;  %v7757_v23 = vmul.f32 1.442695, %v7539_v9  ;;  %v10386_v19 = vpop.eup %10385  ;;  %v14043_v52 = vadd.f32 %v8390_v41, %v8198_v1  ;;  %v8213_v14 = vmul.f32 %v10384_v16, %v13924_v29 }
 0x8d4   : > { %10405 = vpow2.f32 %v7725_v51  ;;  %v14048_v45 = vadd.f32 %v14575_v63, %v13967_v28  ;;  %v8301_v27 = vadd.f32 %v8300_v8, %v8207_v24  ;;  %v7958_v17 = vadd.f32 1.0, %v10386_v19  ;;  %v14578_v24 = vld [vmem:[#allocation23_spill] sm:$0xff] }
 0x8d5   : > { %v10388_v38 = vpop.eup %10387  ;;  %10407 = vpow2.f32 %v7727_v2  ;;  %v14052_v50 = vadd.f32 %v14576_v11, %v13962_v46  ;;  %v8379_v44 = vadd.f32 %v8378_v4, %v8213_v14  ;;  %v14059_v4 = vadd.f32 %v14577_v3, %v13967_v28 }
 0x8d6   : > { %v10390_v59 = vpop.eup %10389  ;;  %v7843_v7 = vadd.f32 1.0, %v10388_v38  ;;  %10409 = vpow2.f32 %v7757_v23  ;;  %v7540_v49 = vsub.f32 0.0, %v14048_v45  ;;  %v8302_v42 = vrot.slane %v8301_v27, 4 }
 0x8d7   : > { %v10392_v29 = vpop.eup %10391  ;;  %10411 = vrcp.f32 %v7958_v17  ;;  %v7844_v12 = vadd.f32 1.0, %v10390_v59  ;;  %v7555_v6 = vsub.f32 0.0, %v14052_v50  ;;  %v8380_v51 = vrot.slane %v8379_v44, 4 }
 0x8d8   : > { %v10394_v13 = vpop.eup %10393  ;;  %10413 = vrcp.f32 %v7843_v7  ;;  %v7859_v37 = vadd.f32 1.0, %v10392_v29  ;;  %v7759_v35 = vmul.f32 1.442695, %v7540_v49  ;;  %v8303_v5 = vadd.f32 %v8302_v42, %v8301_v27 }
 0x8d9   : > { %v10396_v41 = vpop.eup %10395  ;;  %10415 = vrcp.f32 %v7844_v12  ;;  %v7860_v30 = vadd.f32 1.0, %v10394_v13  ;;  %v7789_v47 = vmul.f32 1.442695, %v7555_v6  ;;  %v8381_v15 = vadd.f32 %v8380_v51, %v8379_v44 }
 0x8da   : > { %v10398_v8 = vpop.eup %10397  ;;  %v8208_v9 = vmul.f32 %v10396_v41, %v13930_v26  ;;  %10417 = vrcp.f32 %v7859_v37  ;;  %v8304_v2 = vrot.slane %v8303_v5, 2  ;;  %v14063_v23 = vadd.f32 %v14578_v24, %v13962_v46 }
 0x8db   : > { %v10400_v1 = vpop.eup %10399  ;;  %10419 = vrcp.f32 %v7860_v30  ;;  %v7875_v16 = vadd.f32 1.0, %v10398_v8  ;;  %v8382_v14 = vrot.slane %v8381_v15, 2  ;;  %v7556_v11 = vsub.f32 0.0, %v14059_v4 }
 0x8dc   : > { %v10402_v19 = vpop.eup %10401  ;;  %v8314_v63 = vadd.f32 %v8313_v55, %v8208_v9  ;;  %v7876_v38 = vadd.f32 1.0, %v10400_v1  ;;  %10421 = vpow2.f32 %v7759_v35  ;;  %v8305_v26 = vadd.f32 %v8304_v2, %v8303_v5 }
 0x8dd   : > { %v10404_v27 = vpop.eup %10403  ;;  %10423 = vrcp.f32 %v7875_v16  ;;  %v7891_v17 = vadd.f32 1.0, %v10402_v19  ;;  %v8383_v44 = vadd.f32 %v8382_v14, %v8381_v15  ;;  %v7791_v12 = vmul.f32 1.442695, %v7556_v11 }
 0x8de   : > { %v10406_v59 = vpop.eup %10405  ;;  %v8315_v7 = vrot.slane %v8314_v63, 4  ;;  %10425 = vrcp.f32 %v7876_v38  ;;  %v7892_v49 = vadd.f32 1.0, %v10404_v27  ;;  %v8306_v42 = vrot.slane %v8305_v26, 1 }
 0x8df   : > { %v10408_v29 = vpop.eup %10407  ;;  %10427 = vrcp.f32 %v7891_v17  ;;  %v7907_v46 = vadd.f32 1.0, %v10406_v59  ;;  %v8384_v55 = vrot.slane %v8383_v44, 1  ;;  %v7571_v5 = vsub.f32 0.0, %v14063_v23 }
 0x8e0   : > { %v10410_v6 = vpop.eup %10409  ;;  %v8316_v13 = vadd.f32 %v8315_v7, %v8314_v63  ;;  %10429 = vrcp.f32 %v7892_v49  ;;  %v7908_v51 = vadd.f32 1.0, %v10408_v29  ;;  %v8307_v35 = vadd.f32 %v8306_v42, %v8305_v26 }
 0x8e1   : > { %v10412_v37 = vpop.eup %10411  ;;  %10431 = vrcp.f32 %v7907_v46  ;;  %v7923_v41 = vadd.f32 1.0, %v10410_v6  ;;  %v8385_v8 = vadd.f32 %v8384_v55, %v8383_v44  ;;  %v7821_v16 = vmul.f32 1.442695, %v7571_v5 }
 0x8e2   : > { %v10414_v30 = vpop.eup %10413  ;;  %v8317_v15 = vrot.slane %v8316_v13, 2  ;;  %v8214_v9 = vmul.f32 %v10412_v37, %v13947_v61  ;;  %10433 = vrcp.f32 %v7908_v51  ;;  %v14068_v1 = vmul.f32 0.015625, %v8307_v35  ;;  %v14579_v61 = vld [vmem:[#allocation24_spill] sm:$0xff] }
 0x8e3   : > { %v10416_v3 = vpop.eup %10415  ;;  %v8099_v2 = vmul.f32 %v10414_v30, %v13976_v32  ;;  %10435 = vrcp.f32 %v7923_v41  ;;  %v14071_v19 = vmul.f32 0.015625, %v8385_v8  ;;  %v14078_v17 = vadd.f32 %v14579_v61, %v13967_v28  ;;  %v14580_v32 = vld [vmem:[#allocation25_spill] sm:$0xff] }
 0x8e4   : > { %v10418_v24 = vpop.eup %10417  ;;  %v8318_v14 = vadd.f32 %v8317_v15, %v8316_v13  ;;  %v8392_v63 = vadd.f32 %v14043_v52, %v8214_v9  ;;  %v8100_v38 = vmul.f32 %v10416_v3, %v13981_v56  ;;  %10437 = vpow2.f32 %v7789_v47 }
 0x8e5   : > { %v10420_v27 = vpop.eup %10419  ;;  %v8115_v26 = vmul.f32 %v10418_v24, %v13985_v60  ;;  %v14082_v11 = vadd.f32 %v14580_v32, %v13972_v22  ;;  %10439 = vpow2.f32 %v7791_v12  ;;  %v7572_v60 = vsub.f32 0.0, %v14078_v17 }
 0x8e6   : > { %v10422_v59 = vpop.eup %10421  ;;  %v8319_v44 = vrot.slane %v8318_v14, 1  ;;  %v8393_v7 = vrot.slane %v8392_v63, 4  ;;  %v8116_v49 = vmul.f32 %v10420_v27, %v13990_v10  ;;  %10441 = vpow2.f32 %v7821_v16 }
 0x8e7   : > { %v10424_v52 = vpop.eup %10423  ;;  %v8347_v56 = vadd.f32 %v8115_v26, %v8099_v2  ;;  %v7924_v29 = vadd.f32 1.0, %v10422_v59  ;;  %v7823_v51 = vmul.f32 1.442695, %v7572_v60  ;;  %v7463_v10 = vsub.f32 0.0, %v14082_v11 }
 0x8e8   : > { %v10426_v47 = vpop.eup %10425  ;;  %v8320_v42 = vadd.f32 %v8319_v44, %v8318_v14  ;;  %v8394_v28 = vadd.f32 %v8393_v7, %v8392_v63  ;;  %v8360_v46 = vadd.f32 %v8116_v49, %v8100_v38  ;;  %v8131_v6 = vmul.f32 %v10424_v52, %v13997_v48  ;;  %v14582_v38 = vld [vmem:[#allocation63_spill] sm:$0xff] }
 0x8e9   : > { %v10428_v55 = vpop.eup %10427  ;;  %v8132_v13 = vmul.f32 %v10426_v47, %v14001_v34  ;;  %10443 = vrcp.f32 %v7924_v29  ;;  %v7605_v48 = vmul.f32 1.442695, %v7463_v10  ;;  %v14581_v16 = vsub.s32 7, %v14566_v40  ;;  %v14584_v44 = vld [vmem:[#allocation27_spill] sm:$0xff] }
 0x8ea   : > { %v10430_v12 = vpop.eup %10429  ;;  %v14089_v37 = vmul.f32 0.015625, %v8320_v42  ;;  %v8395_v35 = vrot.slane %v8394_v28, 2  ;;  %v8348_v41 = vadd.f32 %v8347_v56, %v8131_v6  ;;  %v8147_v5 = vmul.f32 %v10428_v55, %v14006_v31 }
 0x8eb   : > { %v10432_v30 = vpop.eup %10431  ;;  %v8361_v8 = vadd.f32 %v8360_v46, %v8132_v13  ;;  %v8148_v15 = vmul.f32 %v10430_v12, %v14011_v25  ;;  %10445 = vpow2.f32 %v7823_v51  ;;  %v14097_v24 = vrot.slane %v13957_v53, %v14581_v16 }
 0x8ec   : > { %v10434_v9 = vpop.eup %10433  ;;  %v8396_v3 = vadd.f32 %v8395_v35, %v8394_v28  ;;  %v8349_v34 = vadd.f32 %v8348_v41, %v8147_v5  ;;  %v8163_v2 = vmul.f32 %v10432_v30, %v14015_v21  ;;  %10447 = vpow2.f32 %v7605_v48  ;;  %v14583_v21 = vld [vmem:[#allocation26_spill] sm:$0xff] }
 0x8ed   : > { %v10436_v14 = vpop.eup %10435  ;;  %v8362_v63 = vadd.f32 %v8361_v8, %v8148_v15  ;;  %v8164_v31 = vmul.f32 %v10434_v9, %v14030_v39  ;;  %v14102_v25 = vadd.f32 %v14582_v38, %v13972_v22  ;;  %v14107_v32 = vadd.f32 %v14583_v21, %v14097_v24  ;;  %v14588_v21 = vld [vmem:[#allocation51_spill] sm:$0xff] }
 0x8ee   : > { %v8397_v27 = vrot.slane %v8396_v3, 1  ;;  %v8350_v26 = vadd.f32 %v8349_v34, %v8163_v2  ;;  %v8179_v61 = vmul.f32 %v10436_v14, %v14035_v0  ;;  %v10438_v40 = vpop.eup %10437  ;;  %v14112_v39 = vadd.f32 %v14584_v44, %v14097_v24  ;;  %v14589_v44 = vld [vmem:[#allocation29_spill] sm:$0xff] }
 0x8ef   : > { %v8363_v53 = vadd.f32 %v8362_v63, %v8164_v31  ;;  %v7479_v59 = vsub.f32 0.0, %v14102_v25  ;;  %v14116_v7 = vadd.f32 %v13754_v62, %v13972_v22  ;;  %v10440_v49 = vpop.eup %10439  ;;  %v7939_v0 = vadd.f32 1.0, %v10438_v40  ;;  %v14586_v31 = vld [vmem:[#allocation50_spill] sm:$0xff] }
 0x8f0   : > { %v8398_v52 = vadd.f32 %v8397_v27, %v8396_v3  ;;  %v14118_v56 = vadd.f32 %v8350_v26, %v8179_v61  ;;  %v7464_v29 = vsub.f32 0.0, %v14107_v32  ;;  %v10442_v60 = vpop.eup %10441  ;;  %v7940_v47 = vadd.f32 1.0, %v10440_v49  ;;  %v14587_v26 = vld [vmem:[#allocation28_spill] sm:$0xff] }
 0x8f1   : > { %v7637_v42 = vmul.f32 1.442695, %v7479_v59  ;;  %v7480_v28 = vsub.f32 0.0, %v14112_v39  ;;  %v7495_v46 = vsub.f32 0.0, %v14116_v7  ;;  %10449 = vrcp.f32 %v7939_v0 }
 0x8f2   : > { %v14123_v6 = vmul.f32 0.015625, %v8398_v52  ;;  %v7955_v55 = vadd.f32 1.0, %v10442_v60  ;;  %v7607_v62 = vmul.f32 1.442695, %v7464_v29  ;;  %10451 = vrcp.f32 %v7940_v47 }
 0x8f3   : > { %v10444_v13 = vpop.eup %10443  ;;  %v7639_v51 = vmul.f32 1.442695, %v7480_v28  ;;  %v7669_v10 = vmul.f32 1.442695, %v7495_v46  ;;  %v14127_v12 = vadd.f32 %v13759_v33, %v14097_v24  ;;  %v14132_v41 = vadd.f32 %v13763_v43, %v13972_v22  ;;  %v14585_v33 = vld [vmem:[#allocation49_spill] sm:$0xff] }
 0x8f4   : > { %v8180_v35 = vmul.f32 %v10444_v13, %v14048_v45  ;;  %10453 = vrcp.f32 %v7955_v55  ;;  %v14136_v5 = vadd.f32 %v13766_v36, %v14097_v24  ;;  %v14141_v15 = vadd.f32 %v13787_v54, %v13972_v22 }
 0x8f5   : > { %v10446_v30 = vpop.eup %10445  ;;  %10455 = vpow2.f32 %v7607_v62  ;;  %v7496_v8 = vsub.f32 0.0, %v14127_v12  ;;  %v14145_v45 = vadd.f32 %v14585_v33, %v14097_v24  ;;  %v7511_v43 = vsub.f32 0.0, %v14132_v41 }
 0x8f6   : > { %v8364_v48 = vadd.f32 %v8363_v53, %v8180_v35  ;;  %v7956_v9 = vadd.f32 1.0, %v10446_v30  ;;  %10457 = vpow2.f32 %v7637_v42  ;;  %v10448_v3 = vpop.eup %10447  ;;  %v7512_v34 = vsub.f32 0.0, %v14136_v5 }
 0x8f7   : > { %10459 = vpow2.f32 %v7639_v51  ;;  %v7671_v36 = vmul.f32 1.442695, %v7496_v8  ;;  %v7527_v2 = vsub.f32 0.0, %v14141_v15  ;;  %v7847_v16 = vadd.f32 1.0, %v10448_v3 }
 0x8f8   : > { %10461 = vrcp.f32 %v7956_v9  ;;  %v7701_v54 = vmul.f32 1.442695, %v7511_v43  ;;  %v7528_v14 = vsub.f32 0.0, %v14145_v45  ;;  %v7703_v63 = vmul.f32 1.442695, %v7512_v34 }
 0x8f9   : > { %10463 = vpow2.f32 %v7669_v10  ;;  %v14153_v38 = vadd.f32 %v14586_v31, %v13972_v22  ;;  %v7733_v27 = vmul.f32 1.442695, %v7527_v2  ;;  %v14157_v61 = vadd.f32 %v14587_v26, %v14097_v24 }
 0x8fa   : > { %10465 = vrcp.f32 %v7847_v16  ;;  %v14161_v40 = vadd.f32 %v14588_v21, %v13972_v22  ;;  %v7735_v53 = vmul.f32 1.442695, %v7528_v14  ;;  %v14166_v49 = vadd.f32 %v14589_v44, %v14097_v24  ;;  %v14591_v14 = vld [vmem:[#allocation44_spill] sm:$0xff] }
 0x8fb   : > { %10467 = vpow2.f32 %v7671_v36  ;;  %v7543_v59 = vsub.f32 0.0, %v14153_v38  ;;  %v10450_v52 = vpop.eup %10449  ;;  %v7544_v0 = vsub.f32 0.0, %v14157_v61  ;;  %v14590_v36 = vld [vmem:[#allocation30_spill] sm:$0xff] }
 0x8fc   : > { %10469 = vpow2.f32 %v7701_v54  ;;  %v10452_v29 = vpop.eup %10451  ;;  %v8195_v60 = vmul.f32 %v10450_v52, %v14052_v50  ;;  %v7559_v42 = vsub.f32 0.0, %v14161_v40  ;;  %v7560_v10 = vsub.f32 0.0, %v14166_v49 }
 0x8fd   : > { %10471 = vpow2.f32 %v7703_v63  ;;  %v7765_v47 = vmul.f32 1.442695, %v7543_v59  ;;  %v8196_v46 = vmul.f32 %v10452_v29, %v14059_v4  ;;  %v7767_v55 = vmul.f32 1.442695, %v7544_v0 }
 0x8fe   : > { %v10454_v28 = vpop.eup %10453  ;;  %10473 = vpow2.f32 %v7733_v27  ;;  %v8352_v13 = vadd.f32 %v14118_v56, %v8195_v60  ;;  %v7797_v43 = vmul.f32 1.442695, %v7559_v42  ;;  %v14177_v56 = vadd.f32 %v14590_v36, %v13972_v22 }
 0x8ff   : > { %v10456_v62 = vpop.eup %10455  ;;  %v8211_v51 = vmul.f32 %v10454_v28, %v14063_v23  ;;  %10475 = vpow2.f32 %v7735_v53  ;;  %v8365_v30 = vadd.f32 %v8364_v48, %v8196_v46  ;;  %v7799_v48 = vmul.f32 1.442695, %v7560_v10 }
 0x900   : > { %v10458_v35 = vpop.eup %10457  ;;  %v7848_v50 = vadd.f32 1.0, %v10456_v62  ;;  %10477 = vpow2.f32 %v7765_v47  ;;  %v14182_v63 = vadd.f32 %v14591_v14, %v14097_v24  ;;  %v7575_v53 = vsub.f32 0.0, %v14177_v56 }
 0x901   : > { %v10460_v8 = vpop.eup %10459  ;;  %v8353_v33 = vadd.f32 %v8352_v13, %v8211_v51  ;;  %v7863_v9 = vadd.f32 1.0, %v10458_v35  ;;  %10479 = vpow2.f32 %v7767_v55 }
 0x902   : > { %v10462_v4 = vpop.eup %10461  ;;  %10481 = vrcp.f32 %v7848_v50  ;;  %v7864_v3 = vadd.f32 1.0, %v10460_v8  ;;  %v7576_v24 = vsub.f32 0.0, %v14182_v63  ;;  %v7829_v62 = vmul.f32 1.442695, %v7575_v53 }
 0x903   : > { %v10464_v23 = vpop.eup %10463  ;;  %v8354_v34 = vrot.slane %v8353_v33, 4  ;;  %v8212_v2 = vmul.f32 %v10462_v4, %v14078_v17  ;;  %10483 = vrcp.f32 %v7863_v9 }
 0x904   : > { %v10466_v16 = vpop.eup %10465  ;;  %10485 = vrcp.f32 %v7864_v3  ;;  %v7879_v54 = vadd.f32 1.0, %v10464_v23  ;;  %v7831_v8 = vmul.f32 1.442695, %v7576_v24 }
 0x905   : > { %v10468_v31 = vpop.eup %10467  ;;  %v8355_v27 = vadd.f32 %v8354_v34, %v8353_v33  ;;  %v8366_v26 = vadd.f32 %v8365_v30, %v8212_v2  ;;  %10487 = vpow2.f32 %v7797_v43  ;;  %v8103_v3 = vmul.f32 %v10466_v16, %v14082_v11 }
 0x906   : > { %v10470_v21 = vpop.eup %10469  ;;  %10489 = vrcp.f32 %v7879_v54  ;;  %v7880_v22 = vadd.f32 1.0, %v10468_v31 }
 0x907   : > { %v10472_v59 = vpop.eup %10471  ;;  %v8356_v17 = vrot.slane %v8355_v27, 2  ;;  %v8367_v44 = vrot.slane %v8366_v26, 4  ;;  %v7895_v52 = vadd.f32 1.0, %v10470_v21  ;;  %10491 = vpow2.f32 %v7799_v48 }
 0x908   : > { %v10474_v0 = vpop.eup %10473  ;;  %10493 = vrcp.f32 %v7880_v22  ;;  %v7896_v29 = vadd.f32 1.0, %v10472_v59 }
 0x909   : > { %v10476_v60 = vpop.eup %10475  ;;  %v8357_v47 = vadd.f32 %v8356_v17, %v8355_v27  ;;  %v8368_v42 = vadd.f32 %v8367_v44, %v8366_v26  ;;  %10495 = vrcp.f32 %v7895_v52  ;;  %v7911_v28 = vadd.f32 1.0, %v10474_v0 }
 0x90a   : > { %v10478_v46 = vpop.eup %10477  ;;  %10497 = vrcp.f32 %v7896_v29  ;;  %v7912_v55 = vadd.f32 1.0, %v10476_v60 }
 0x90b   : > { %v10480_v13 = vpop.eup %10479  ;;  %v8358_v51 = vrot.slane %v8357_v47, 1  ;;  %v8369_v10 = vrot.slane %v8368_v42, 2  ;;  %10499 = vrcp.f32 %v7911_v28  ;;  %v7927_v35 = vadd.f32 1.0, %v10478_v46 }
 0x90c   : > { %v10482_v30 = vpop.eup %10481  ;;  %10501 = vrcp.f32 %v7912_v55  ;;  %v7928_v50 = vadd.f32 1.0, %v10480_v13 }
 0x90d   : > { %v10484_v33 = vpop.eup %10483  ;;  %v8359_v9 = vadd.f32 %v8358_v51, %v8357_v47  ;;  %v8370_v43 = vadd.f32 %v8369_v10, %v8368_v42  ;;  %10503 = vrcp.f32 %v7927_v35  ;;  %v8104_v36 = vmul.f32 %v10482_v30, %v14107_v32 }
 0x90e   : > { %v10486_v4 = vpop.eup %10485  ;;  %v8119_v23 = vmul.f32 %v10484_v33, %v14102_v25  ;;  %10505 = vrcp.f32 %v7928_v50 }
 0x90f   : > { %v10488_v34 = vpop.eup %10487  ;;  %v14189_v2 = vmul.f32 0.015625, %v8359_v9  ;;  %v8371_v48 = vrot.slane %v8370_v43, 1  ;;  %v8120_v54 = vmul.f32 %v10486_v4, %v14112_v39  ;;  %10507 = vpow2.f32 %v7829_v62 }
 0x910   : > { %v10490_v14 = vpop.eup %10489  ;;  %v8399_v31 = vadd.f32 %v8119_v23, %v8103_v3  ;;  %v7943_v27 = vadd.f32 1.0, %v10488_v34  ;;  %10509 = vpow2.f32 %v7831_v8 }
 0x911   : > { %v10492_v26 = vpop.eup %10491  ;;  %v8372_v21 = vadd.f32 %v8371_v48, %v8370_v43  ;;  %v8412_v22 = vadd.f32 %v8120_v54, %v8104_v36  ;;  %v8135_v11 = vmul.f32 %v10490_v14, %v14116_v7 }
 0x912   : > { %v10494_v32 = vpop.eup %10493  ;;  %10511 = vrcp.f32 %v7943_v27  ;;  %v7944_v25 = vadd.f32 1.0, %v10492_v26 }
 0x913   : > { %v10496_v16 = vpop.eup %10495  ;;  %v14193_v53 = vmul.f32 0.015625, %v8372_v21  ;;  %v8400_v59 = vadd.f32 %v8399_v31, %v8135_v11  ;;  %v8136_v17 = vmul.f32 %v10494_v32, %v14127_v12 }
 0x914   : > { %v10498_v39 = vpop.eup %10497  ;;  %v8151_v44 = vmul.f32 %v10496_v16, %v14132_v41  ;;  %10513 = vrcp.f32 %v7944_v25 }
 0x915   : > { %v10500_v52 = vpop.eup %10499  ;;  %v8413_v0 = vadd.f32 %v8412_v22, %v8136_v17  ;;  %v8152_v29 = vmul.f32 %v10498_v39, %v14136_v5 }
 0x916   : > { %v10502_v24 = vpop.eup %10501  ;;  %v8401_v60 = vadd.f32 %v8400_v59, %v8151_v44  ;;  %v8167_v7 = vmul.f32 %v10500_v52, %v14141_v15 }
 0x917   : > { %v10504_v47 = vpop.eup %10503  ;;  %v8414_v42 = vadd.f32 %v8413_v0, %v8152_v29  ;;  %v8168_v28 = vmul.f32 %v10502_v24, %v14145_v45 }
 0x918   : > { %v10506_v46 = vpop.eup %10505  ;;  %v8402_v55 = vadd.f32 %v8401_v60, %v8167_v7  ;;  %v8183_v12 = vmul.f32 %v10504_v47, %v14153_v38 }
 0x919   : > { %v10508_v62 = vpop.eup %10507  ;;  %v8415_v13 = vadd.f32 %v8414_v42, %v8168_v28  ;;  %v8184_v41 = vmul.f32 %v10506_v46, %v14157_v61 }
 0x91a   : > { %v10510_v51 = vpop.eup %10509  ;;  %v8403_v10 = vadd.f32 %v8402_v55, %v8183_v12  ;;  %v7959_v35 = vadd.f32 1.0, %v10508_v62 }
 0x91b   : > { %v8416_v5 = vadd.f32 %v8415_v13, %v8184_v41  ;;  %v7960_v30 = vadd.f32 1.0, %v10510_v51 }
 0x91c   : > { %v10512_v50 = vpop.eup %10511  ;;  %10515 = vrcp.f32 %v7959_v35 }
 0x91d   : > { %v8199_v15 = vmul.f32 %v10512_v50, %v14161_v40  ;;  %10517 = vrcp.f32 %v7960_v30 }
 0x91e   : > { %v10514_v8 = vpop.eup %10513 }
 0x91f   : > { %v8404_v45 = vadd.f32 %v8403_v10, %v8199_v15  ;;  %v8200_v33 = vmul.f32 %v10514_v8, %v14166_v49 }
 0x921   : > { %v8417_v9 = vadd.f32 %v8416_v5, %v8200_v33 }
 0x926   : > { %v10516_v38 = vpop.eup %10515 }
 0x927   : > { %v10518_v43 = vpop.eup %10517  ;;  %v8215_v4 = vmul.f32 %v10516_v38, %v14177_v56 }
 0x928   : > { %v8216_v61 = vmul.f32 %v10518_v43, %v14182_v63 }
 0x929   : > { %v8405_v3 = vadd.f32 %v8404_v45, %v8215_v4 }
 0x92a   : > { %v8418_v36 = vadd.f32 %v8417_v9, %v8216_v61 }
 0x92b   : > { %v8406_v23 = vrot.slane %v8405_v3, 4 }
 0x92c   : > { %v8419_v34 = vrot.slane %v8418_v36, 4 }
 0x92d   : > { %v8407_v48 = vadd.f32 %v8406_v23, %v8405_v3 }
 0x92e   : > { %v8420_v54 = vadd.f32 %v8419_v34, %v8418_v36 }
 0x92f   : > { %v8408_v14 = vrot.slane %v8407_v48, 2 }
 0x930   : > { %v8421_v40 = vrot.slane %v8420_v54, 2 }
 0x931   : > { %v8409_v31 = vadd.f32 %v8408_v14, %v8407_v48 }
 0x932   : > { %v8422_v27 = vadd.f32 %v8421_v40, %v8420_v54 }
 0x933   : > { %v8410_v26 = vrot.slane %v8409_v31, 1 }
 0x934   : > { %v8423_v21 = vrot.slane %v8422_v27, 1 }
 0x935   : > { %v8411_v49 = vadd.f32 %v8410_v26, %v8409_v31 }
 0x936   : > { %v8424_v22 = vadd.f32 %v8423_v21, %v8422_v27 }
 0x937   : > { %v14206_v11 = vmul.f32 0.015625, %v8411_v49 }
 0x938   : > { %v14208_v32 = vmul.f32 0.015625, %v8424_v22 }
 0x939   : > { %10584 = dma.done.wait [#allocation7], 32768 }
 0x93a   : > { %10585 = vsyncadd [#allocation7], 4294934528  ;;  %v14592_v56 = vld [vmem:[#allocation39_spill] sm:$0xff]  ;;  %v8452_v25 = vpack.c.bf16 %v14089_v37, %v14089_v37  ;;  %v8464_v44 = vld [vmem:[#allocation6 + $0x18] sm:$0xff]  ;;  %vm9230_vm2 = vcmask 73728   ;;  %s9531_s25 = sshll.u32 %s10741_s1, 4 }
 0x93b   : > { %v8446_v63 = vpack.c.bf16 %v14592_v56, %v14592_v56  ;;  %v8462_v16 = vld [vmem:[#allocation6 + $0x8] sm:$0xff]  ;;  %v8461_v17 = vld [vmem:[#allocation6] sm:$0xff]  ;;  %v8560_v52 = vld [vmem:[#allocation6 + $0x318] sm:$0xff]  ;;  %s9257_s20 = sshll.u32 %s11933_s27, 4  ;;  %s14598_s0 = sld [smem:[#allocation68_spill]]  ;;  %s14307_s20 = int_to_ptr.vmem [resolvable:$true] %s9257_s20 }
 0x93c   : > { %8884 = vmatprep.mubr.bf16.mxu0 %v8452_v25  ;;  %v8558_v59 = vld [vmem:[#allocation6 + $0x308] sm:$0xff]  ;;  %8729 = vmatprep.subr.bf16.mxu1 %v8462_v16  ;;  %v8557_v39 = vld [vmem:[#allocation6 + $0x300] sm:$0xff]  ;;  %v8463_v0 = vld [vmem:[#allocation6 + $0x10] sm:$0xff]  ;;  %s14600_s21 = sand.u32 1, %s10596_s30   ;;  %s10540_s23 = scalar_lea.vmem %s14307_s20, 16 }
 0x93d   : > { %8761 = vmatprep.mubr.bf16.mxu1 %v8446_v63  ;;  %8852 = vmatprep.subr.bf16.mxu0 %v8558_v59  ;;  %v8559_v29 = vld [vmem:[#allocation6 + $0x310] sm:$0xff]  ;;  %v8466_v24 = vld [vmem:[#allocation6 + $0x28] sm:$0xff]  ;;  %v8465_v37 = vld [vmem:[#allocation6 + $0x20] sm:$0xff]  ;;  %s9245_s24 = scalar_lea.sflag [#allocation9], %s14600_s21  ;;  %p10541_p11 = scmp.ne.s32.totalorder %s14307_s20, %s10540_s23 }
 0x93e   : > { %8730 = vmatpush1.bf16.msra.mxu1 %v8461_v17  ;;  %8853 = vmatpush1.bf16.msra.mxu0 %v8557_v39  ;;  %v8562_v60 = vld [vmem:[#allocation6 + $0x328] sm:$0xff]  ;;  %v8561_v7 = vld [vmem:[#allocation6 + $0x320] sm:$0xff]  ;;  %v8468_v47 = vld [vmem:[#allocation6 + $0x38] sm:$0xff]  ;;  %s10619_s1 = smov [#allocation8]  }
 0x93f   : > { %8731 = vmatprep.subr.bf16.mxu1 %v8464_v44  ;;  %8854 = vmatprep.subr.bf16.mxu0 %v8560_v52  ;;  %v8564_v42 = vld [vmem:[#allocation6 + $0x338] sm:$0xff]  ;;  %v8467_v28 = vld [vmem:[#allocation6 + $0x30] sm:$0xff]  ;;  %v8470_v55 = vld [vmem:[#allocation6 + $0x48] sm:$0xff]  ;;  %p10542_p12 = pnand %p10541_p11, %p10758_p5  ;;  %s10544_s2 = sshll.u32 %s10619_s1, 4  ;;  %s10545_s2 = int_to_ptr.vmem [resolvable:$false] %s10544_s2 }
 0x940   : > { %v8563_v46 = vld [vmem:[#allocation6 + $0x330] sm:$0xff]  ;;  %v8566_v12 = vld [vmem:[#allocation6 + $0x348] sm:$0xff]  ;;  %v8469_v62 = vld [vmem:[#allocation6 + $0x40] sm:$0xff]  ;;  %s10546_s26 = scalar_lea.vmem %s10545_s2, 32  ;;  %p10547_p0 = scmp.lt.s32.totalorder %s14307_s20, %s10545_s2 }
 0x941   : > { %v8565_v13 = vld [vmem:[#allocation6 + $0x340] sm:$0xff]  ;;  %v8472_v41 = vld [vmem:[#allocation6 + $0x58] sm:$0xff]  ;;  %v8471_v10 = vld [vmem:[#allocation6 + $0x50] sm:$0xff]  ;;  %s14599_s29 = smov %s14598_s0  ;;  %s14305_s28 = scalar_lea.hbm %s14598_s0, %s9531_s25 }
 0x942   : > { %8732 = vmatpush1.bf16.msra.mxu1 %v8463_v0  ;;  %8855 = vmatpush1.bf16.msra.mxu0 %v8559_v29  ;;  %v8568_v51 = vld [vmem:[#allocation6 + $0x358] sm:$0xff]  ;;  %v8567_v35 = vld [vmem:[#allocation6 + $0x350] sm:$0xff]  ;;  %v8474_v5 = vld [vmem:[#allocation6 + $0x68] sm:$0xff]  ;;  %p10543_p13 = pneg %p10542_p12  ;;  %p10548_p1 = scmp.lt.s32.totalorder %s10546_s26, %s10540_s23 }
 0x943   : > { %8733 = vmatprep.subr.bf16.mxu1 %v8466_v24  ;;  %8856 = vmatprep.subr.bf16.mxu0 %v8562_v60  ;;  %v8570_v30 = vld [vmem:[#allocation6 + $0x368] sm:$0xff]  ;;  %v8473_v50 = vld [vmem:[#allocation6 + $0x60] sm:$0xff]  ;;  %v8476_v8 = vld [vmem:[#allocation6 + $0x78] sm:$0xff] }
 0x944   : > { %v8569_v15 = vld [vmem:[#allocation6 + $0x360] sm:$0xff]  ;;  %v8572_v45 = vld [vmem:[#allocation6 + $0x378] sm:$0xff]  ;;  %v8475_v33 = vld [vmem:[#allocation6 + $0x70] sm:$0xff]  ;;  %p10549_p2 = por %p10548_p1, %p10547_p0 }
 0x945   : > { %v8571_v9 = vld [vmem:[#allocation6 + $0x370] sm:$0xff]  ;;  %v8478_v38 = vld [vmem:[#allocation6 + $0x88] sm:$0xff]  ;;  %v8477_v4 = vld [vmem:[#allocation6 + $0x80] sm:$0xff] }
 0x946   : > { %8734 = vmatpush1.bf16.msra.mxu1 %v8465_v37  ;;  %8857 = vmatpush1.bf16.msra.mxu0 %v8561_v7  ;;  %v8574_v43 = vld [vmem:[#allocation6 + $0x388] sm:$0xff]  ;;  %v8573_v61 = vld [vmem:[#allocation6 + $0x380] sm:$0xff]  ;;  %v8480_v3 = vld [vmem:[#allocation6 + $0x98] sm:$0xff]  ;;  %p10550_p3 = pnand %p10549_p2, %p10543_p13 }
 0x947   : > { %8735 = vmatprep.subr.bf16.mxu1 %v8468_v47  ;;  %8858 = vmatprep.subr.bf16.mxu0 %v8564_v42  ;;  %v8576_v36 = vld [vmem:[#allocation6 + $0x398] sm:$0xff]  ;;  %v8479_v23 = vld [vmem:[#allocation6 + $0x90] sm:$0xff]  ;;  %v8482_v48 = vld [vmem:[#allocation6 + $0xa8] sm:$0xff] }
 0x948   : > { %v8575_v34 = vld [vmem:[#allocation6 + $0x390] sm:$0xff]  ;;  %v8578_v54 = vld [vmem:[#allocation6 + $0x3a8] sm:$0xff]  ;;  %v8481_v14 = vld [vmem:[#allocation6 + $0xa0] sm:$0xff] }
 0x949   : > { %v8577_v40 = vld [vmem:[#allocation6 + $0x3a0] sm:$0xff]  ;;  %v8484_v31 = vld [vmem:[#allocation6 + $0xb8] sm:$0xff]  ;;  %v8483_v26 = vld [vmem:[#allocation6 + $0xb0] sm:$0xff] }
 0x94a   : > { %8736 = vmatpush1.bf16.msra.mxu1 %v8467_v28  ;;  %8859 = vmatpush1.bf16.msra.mxu0 %v8563_v46  ;;  %v8580_v27 = vld [vmem:[#allocation6 + $0x3b8] sm:$0xff]  ;;  %v8579_v21 = vld [vmem:[#allocation6 + $0x3b0] sm:$0xff]  ;;  %v8486_v49 = vld [vmem:[#allocation6 + $0xc8] sm:$0xff]  ;;  %v8451_v46 = vpack.c.bf16 %v14068_v1, %v14068_v1 }
 0x94b   : > { %8737 = vmatprep.subr.bf16.mxu1 %v8470_v55  ;;  %8860 = vmatprep.subr.bf16.mxu0 %v8566_v12  ;;  %v8582_v22 = vld [vmem:[#allocation6 + $0x3c8] sm:$0xff]  ;;  %v8485_v56 = vld [vmem:[#allocation6 + $0xc0] sm:$0xff]  ;;  %v8488_v25 = vld [vmem:[#allocation6 + $0xd8] sm:$0xff] }
 0x94c   : > { %v8581_v63 = vld [vmem:[#allocation6 + $0x3c0] sm:$0xff]  ;;  %v8584_v16 = vld [vmem:[#allocation6 + $0x3d8] sm:$0xff]  ;;  %v8487_v59 = vld [vmem:[#allocation6 + $0xd0] sm:$0xff] }
 0x94d   : > { %v8583_v17 = vld [vmem:[#allocation6 + $0x3d0] sm:$0xff]  ;;  %v8490_v39 = vld [vmem:[#allocation6 + $0xe8] sm:$0xff]  ;;  %v8489_v52 = vld [vmem:[#allocation6 + $0xe0] sm:$0xff] }
 0x94e   : > { %8738 = vmatpush1.bf16.msra.mxu1 %v8469_v62  ;;  %8861 = vmatpush1.bf16.msra.mxu0 %v8565_v13  ;;  %v8586_v44 = vld [vmem:[#allocation6 + $0x3e8] sm:$0xff]  ;;  %v8585_v0 = vld [vmem:[#allocation6 + $0x3e0] sm:$0xff]  ;;  %v8492_v29 = vld [vmem:[#allocation6 + $0xf8] sm:$0xff] }
 0x94f   : > { %8739 = vmatprep.subr.bf16.mxu1 %v8472_v41  ;;  %8862 = vmatprep.subr.bf16.mxu0 %v8568_v51  ;;  %v8588_v24 = vld [vmem:[#allocation6 + $0x3f8] sm:$0xff]  ;;  %v8491_v60 = vld [vmem:[#allocation6 + $0xf0] sm:$0xff]  ;;  %v8494_v7 = vld [vmem:[#allocation6 + $0x108] sm:$0xff]  ;;  %v8448_v41 = vpack.c.bf16 %v13877_v58, %v13877_v58  ;;  %v8454_v51 = vpack.c.bf16 %v13883_v20, %v13883_v20 }
 0x950   : > { %v8587_v37 = vld [vmem:[#allocation6 + $0x3f0] sm:$0xff]  ;;  %v8590_v47 = vld [vmem:[#allocation6 + $0x408] sm:$0xff]  ;;  %v8493_v55 = vld [vmem:[#allocation6 + $0x100] sm:$0xff] }
 0x951   : > { %v14593_v42 = vld [vmem:[#allocation37_spill] sm:$0xff]  ;;  %v8589_v12 = vld [vmem:[#allocation6 + $0x400] sm:$0xff]  ;;  %v8498_v1 = vld [vmem:[#allocation6 + $0x128] sm:$0xff] }
 0x952   : > { %8740 = vmatpush1.bf16.msra.mxu1 %v8471_v10  ;;  %8863 = vmatpush1.bf16.msra.mxu0 %v8567_v35  ;;  %v8445_v28 = vpack.c.bf16 %v14593_v42, %v14593_v42  ;;  %v8496_v62 = vld [vmem:[#allocation6 + $0x118] sm:$0xff]  ;;  %v8495_v10 = vld [vmem:[#allocation6 + $0x110] sm:$0xff] }
 0x953   : > { %8741 = vmatprep.subr.bf16.mxu1 %v8474_v5  ;;  %8864 = vmatprep.subr.bf16.mxu0 %v8570_v30  ;;  %v8592_v13 = vld [vmem:[#allocation6 + $0x418] sm:$0xff]  ;;  %v8591_v35 = vld [vmem:[#allocation6 + $0x410] sm:$0xff]  ;;  %v8594_v5 = vld [vmem:[#allocation6 + $0x428] sm:$0xff] }
 0x954   : > { %v8497_v30 = vld [vmem:[#allocation6 + $0x120] sm:$0xff]  ;;  %v8500_v58 = vld [vmem:[#allocation6 + $0x138] sm:$0xff] }
 0x955   : > { %v8596_v20 = vld [vmem:[#allocation6 + $0x438] sm:$0xff] }
 0x956   : > { %8742 = vmatpush1.bf16.msra.mxu1 %v8473_v50  ;;  %8865 = vmatpush1.bf16.msra.mxu0 %v8569_v15  ;;  %v8593_v50 = vld [vmem:[#allocation6 + $0x420] sm:$0xff]  ;;  %v8499_v15 = vld [vmem:[#allocation6 + $0x130] sm:$0xff]  ;;  %v8616_v42 = vld [vmem:[#allocation6 + $0x4d8] sm:$0xff] }
 0x957   : > { %8743 = vmatprep.subr.bf16.mxu1 %v8476_v8  ;;  %8866 = vmatprep.subr.bf16.mxu0 %v8572_v45  ;;  %v8595_v8 = vld [vmem:[#allocation6 + $0x430] sm:$0xff]  ;;  %v8502_v45 = vld [vmem:[#allocation6 + $0x148] sm:$0xff] }
 0x95a   : > { %8744 = vmatpush1.bf16.msra.mxu1 %v8475_v33  ;;  %8867 = vmatpush1.bf16.msra.mxu0 %v8571_v9  ;;  %v8598_v33 = vld [vmem:[#allocation6 + $0x448] sm:$0xff]  ;;  %v8501_v9 = vld [vmem:[#allocation6 + $0x140] sm:$0xff] }
 0x95b   : > { %8745 = vmatprep.subr.bf16.mxu1 %v8478_v38  ;;  %8868 = vmatprep.subr.bf16.mxu0 %v8574_v43  ;;  %v8597_v38 = vld [vmem:[#allocation6 + $0x440] sm:$0xff]  ;;  %v8504_v43 = vld [vmem:[#allocation6 + $0x158] sm:$0xff] }
 0x95e   : > { %8746 = vmatpush1.bf16.msra.mxu1 %v8477_v4  ;;  %8869 = vmatpush1.bf16.msra.mxu0 %v8573_v61  ;;  %v8600_v4 = vld [vmem:[#allocation6 + $0x458] sm:$0xff]  ;;  %v8503_v61 = vld [vmem:[#allocation6 + $0x150] sm:$0xff] }
 0x95f   : > { %8747 = vmatprep.subr.bf16.mxu1 %v8480_v3  ;;  %8870 = vmatprep.subr.bf16.mxu0 %v8576_v36  ;;  %v8599_v3 = vld [vmem:[#allocation6 + $0x450] sm:$0xff]  ;;  %v8506_v36 = vld [vmem:[#allocation6 + $0x168] sm:$0xff] }
 0x962   : > { %8748 = vmatpush1.bf16.msra.mxu1 %v8479_v23  ;;  %8871 = vmatpush1.bf16.msra.mxu0 %v8575_v34  ;;  %v8602_v23 = vld [vmem:[#allocation6 + $0x468] sm:$0xff]  ;;  %v8505_v34 = vld [vmem:[#allocation6 + $0x160] sm:$0xff] }
 0x963   : > { %8749 = vmatprep.subr.bf16.mxu1 %v8482_v48  ;;  %8872 = vmatprep.subr.bf16.mxu0 %v8578_v54  ;;  %v8601_v48 = vld [vmem:[#allocation6 + $0x460] sm:$0xff]  ;;  %v8508_v54 = vld [vmem:[#allocation6 + $0x178] sm:$0xff] }
 0x966   : > { %8750 = vmatpush1.bf16.msra.mxu1 %v8481_v14  ;;  %8873 = vmatpush1.bf16.msra.mxu0 %v8577_v40  ;;  %v8604_v14 = vld [vmem:[#allocation6 + $0x478] sm:$0xff]  ;;  %v8507_v40 = vld [vmem:[#allocation6 + $0x170] sm:$0xff] }
 0x967   : > { %8751 = vmatprep.subr.bf16.mxu1 %v8484_v31  ;;  %8874 = vmatprep.subr.bf16.mxu0 %v8580_v27  ;;  %v8603_v31 = vld [vmem:[#allocation6 + $0x470] sm:$0xff]  ;;  %v8510_v27 = vld [vmem:[#allocation6 + $0x188] sm:$0xff] }
 0x96a   : > { %8752 = vmatpush1.bf16.msra.mxu1 %v8483_v26  ;;  %8875 = vmatpush1.bf16.msra.mxu0 %v8579_v21  ;;  %v8606_v26 = vld [vmem:[#allocation6 + $0x488] sm:$0xff]  ;;  %v8509_v21 = vld [vmem:[#allocation6 + $0x180] sm:$0xff] }
 0x96b   : > { %8753 = vmatprep.subr.bf16.mxu1 %v8486_v49  ;;  %8876 = vmatprep.subr.bf16.mxu0 %v8582_v22  ;;  %v8605_v49 = vld [vmem:[#allocation6 + $0x480] sm:$0xff]  ;;  %v8512_v22 = vld [vmem:[#allocation6 + $0x198] sm:$0xff] }
 0x96e   : > { %8754 = vmatpush1.bf16.msra.mxu1 %v8485_v56  ;;  %8877 = vmatpush1.bf16.msra.mxu0 %v8581_v63  ;;  %v8608_v56 = vld [vmem:[#allocation6 + $0x498] sm:$0xff]  ;;  %v8511_v63 = vld [vmem:[#allocation6 + $0x190] sm:$0xff] }
 0x96f   : > { %8755 = vmatprep.subr.bf16.mxu1 %v8488_v25  ;;  %8878 = vmatprep.subr.bf16.mxu0 %v8584_v16  ;;  %v8607_v25 = vld [vmem:[#allocation6 + $0x490] sm:$0xff]  ;;  %v8514_v16 = vld [vmem:[#allocation6 + $0x1a8] sm:$0xff] }
 0x972   : > { %8756 = vmatpush1.bf16.msra.mxu1 %v8487_v59  ;;  %8879 = vmatpush1.bf16.msra.mxu0 %v8583_v17  ;;  %v8610_v59 = vld [vmem:[#allocation6 + $0x4a8] sm:$0xff]  ;;  %v8513_v17 = vld [vmem:[#allocation6 + $0x1a0] sm:$0xff] }
 0x973   : > { %8757 = vmatprep.subr.bf16.mxu1 %v8490_v39  ;;  %8880 = vmatprep.subr.bf16.mxu0 %v8586_v44  ;;  %v8609_v39 = vld [vmem:[#allocation6 + $0x4a0] sm:$0xff]  ;;  %v8516_v44 = vld [vmem:[#allocation6 + $0x1b8] sm:$0xff] }
 0x976   : > { %8758 = vmatpush1.bf16.msra.mxu1 %v8489_v52  ;;  %8881 = vmatpush1.bf16.msra.mxu0 %v8585_v0  ;;  %v8612_v52 = vld [vmem:[#allocation6 + $0x4b8] sm:$0xff]  ;;  %v8515_v0 = vld [vmem:[#allocation6 + $0x1b0] sm:$0xff] }
 0x977   : > { %8759 = vmatprep.subr.bf16.mxu1 %v8492_v29  ;;  %8882 = vmatprep.subr.bf16.mxu0 %v8588_v24  ;;  %v8611_v29 = vld [vmem:[#allocation6 + $0x4b0] sm:$0xff]  ;;  %v8518_v24 = vld [vmem:[#allocation6 + $0x1c8] sm:$0xff] }
 0x97a   : > { %8760 = vmatpush1.bf16.msra.mxu1 %v8491_v60  ;;  %8883 = vmatpush1.bf16.msra.mxu0 %v8587_v37  ;;  %v8614_v60 = vld [vmem:[#allocation6 + $0x4c8] sm:$0xff]  ;;  %v8517_v37 = vld [vmem:[#allocation6 + $0x1c0] sm:$0xff] }
 0x97b   : > { %8770 = vmatprep.subr.bf16.mxu1 %v8494_v7  ;;  %8893 = vmatprep.subr.bf16.mxu0 %v8590_v47  ;;  %v8613_v7 = vld [vmem:[#allocation6 + $0x4c0] sm:$0xff]  ;;  %v8520_v47 = vld [vmem:[#allocation6 + $0x1d8] sm:$0xff] }
 0x97d   : > { %8762 = vmatmul.mubr.bf16.vlgmr.msra.gmra.mrb[100].mxu1 %v8445_v28  ;;  %8885 = vmatmul.mubr.bf16.vlgmr.msra.gmra.mrb[60].mxu0 %v8451_v46  ;;  %v8519_v28 = vld [vmem:[#allocation6 + $0x1d0] sm:$0xff] }
 0x97e   : > { %8771 = vmatpush1.bf16.msra.mxu1 %v8493_v55  ;;  %8894 = vmatpush1.bf16.msra.mxu0 %v8589_v12  ;;  %v8615_v46 = vld [vmem:[#allocation6 + $0x4d0] sm:$0xff]  ;;  %v8522_v55 = vld [vmem:[#allocation6 + $0x1e8] sm:$0xff] }
 0x97f   : > { %8772 = vmatprep.subr.bf16.mxu1 %v8496_v62  ;;  %8895 = vmatprep.subr.bf16.mxu0 %v8592_v13  ;;  %v8618_v12 = vld [vmem:[#allocation6 + $0x4e8] sm:$0xff]  ;;  %v8521_v62 = vld [vmem:[#allocation6 + $0x1e0] sm:$0xff] }
 0x980   : > { %8802 = vmatprep.mubr.bf16.mxu1 %v8448_v41  ;;  %8925 = vmatprep.mubr.bf16.mxu0 %v8454_v51  ;;  %v8617_v13 = vld [vmem:[#allocation6 + $0x4e0] sm:$0xff]  ;;  %v8524_v41 = vld [vmem:[#allocation6 + $0x1f8] sm:$0xff] }
 0x981   : > { %v8620_v51 = vld [vmem:[#allocation6 + $0x4f8] sm:$0xff] }
 0x982   : > { %8773 = vmatpush1.bf16.msra.mxu1 %v8495_v10  ;;  %8896 = vmatpush1.bf16.msra.mxu0 %v8591_v35  ;;  %v8523_v10 = vld [vmem:[#allocation6 + $0x1f0] sm:$0xff] }
 0x983   : > { %8774 = vmatprep.subr.bf16.mxu1 %v8498_v1  ;;  %8897 = vmatprep.subr.bf16.mxu0 %v8594_v5  ;;  %v8619_v35 = vld [vmem:[#allocation6 + $0x4f0] sm:$0xff]  ;;  %v8526_v1 = vld [vmem:[#allocation6 + $0x208] sm:$0xff] }
 0x984   : > { %v8622_v5 = vld [vmem:[#allocation6 + $0x508] sm:$0xff] }
 0x986   : > { %8775 = vmatpush1.bf16.msra.mxu1 %v8497_v30  ;;  %8898 = vmatpush1.bf16.msra.mxu0 %v8593_v50  ;;  %v8447_v30 = vpack.c.bf16 %v13830_v57, %v13830_v57  ;;  %v8453_v50 = vpack.c.bf16 %v13837_v18, %v13837_v18  ;;  %v8527_v57 = vld [vmem:[#allocation6 + $0x210] sm:$0xff] }
 0x987   : > { %8776 = vmatprep.subr.bf16.mxu1 %v8500_v58  ;;  %8899 = vmatprep.subr.bf16.mxu0 %v8596_v20  ;;  %v8525_v58 = vld [vmem:[#allocation6 + $0x200] sm:$0xff]  ;;  %v8623_v18 = vld [vmem:[#allocation6 + $0x510] sm:$0xff] }
 0x988   : > { %v8621_v20 = vld [vmem:[#allocation6 + $0x500] sm:$0xff] }
 0x98a   : > { %8777 = vmatpush1.bf16.msra.mxu1 %v8499_v15  ;;  %8900 = vmatpush1.bf16.msra.mxu0 %v8595_v8  ;;  %v8528_v15 = vld [vmem:[#allocation6 + $0x218] sm:$0xff] }
 0x98b   : > { %8778 = vmatprep.subr.bf16.mxu1 %v8502_v45  ;;  %8901 = vmatprep.subr.bf16.mxu0 %v8598_v33  ;;  %v8624_v8 = vld [vmem:[#allocation6 + $0x518] sm:$0xff] }
 0x98c   : > { %v14594_v45 = vld [vmem:[#allocation61_spill] sm:$0xff] }
 0x98d   : > { %v8450_v33 = vpack.c.bf16 %v14594_v45, %v14594_v45  ;;  %v8555_v45 = vld [vmem:[#allocation6 + $0x2f0] sm:$0xff] }
 0x98e   : > { %8779 = vmatpush1.bf16.msra.mxu1 %v8501_v9  ;;  %8902 = vmatpush1.bf16.msra.mxu0 %v8597_v38  ;;  %v8456_v9 = vpack.c.bf16 %v14193_v53, %v14193_v53  ;;  %v8530_v38 = vld [vmem:[#allocation6 + $0x228] sm:$0xff]  ;;  %v8628_v53 = vld [vmem:[#allocation6 + $0x538] sm:$0xff] }
 0x98f   : > { %8780 = vmatprep.subr.bf16.mxu1 %v8504_v43  ;;  %8903 = vmatprep.subr.bf16.mxu0 %v8600_v4  ;;  %v8626_v43 = vld [vmem:[#allocation6 + $0x528] sm:$0xff]  ;;  %v8529_v4 = vld [vmem:[#allocation6 + $0x220] sm:$0xff] }
 0x992   : > { %8781 = vmatpush1.bf16.msra.mxu1 %v8503_v61  ;;  %8904 = vmatpush1.bf16.msra.mxu0 %v8599_v3  ;;  %v8625_v61 = vld [vmem:[#allocation6 + $0x520] sm:$0xff]  ;;  %v8532_v3 = vld [vmem:[#allocation6 + $0x238] sm:$0xff] }
 0x993   : > { %8782 = vmatprep.subr.bf16.mxu1 %v8506_v36  ;;  %8905 = vmatprep.subr.bf16.mxu0 %v8602_v23  ;;  %v8531_v36 = vld [vmem:[#allocation6 + $0x230] sm:$0xff] }
 0x994   : > { %v8627_v23 = vld [vmem:[#allocation6 + $0x530] sm:$0xff] }
 0x996   : > { %8783 = vmatpush1.bf16.msra.mxu1 %v8505_v34  ;;  %8906 = vmatpush1.bf16.msra.mxu0 %v8601_v48  ;;  %v8534_v34 = vld [vmem:[#allocation6 + $0x248] sm:$0xff] }
 0x997   : > { %8784 = vmatprep.subr.bf16.mxu1 %v8508_v54  ;;  %8907 = vmatprep.subr.bf16.mxu0 %v8604_v14  ;;  %v8630_v48 = vld [vmem:[#allocation6 + $0x548] sm:$0xff]  ;;  %v8533_v54 = vld [vmem:[#allocation6 + $0x240] sm:$0xff] }
 0x998   : > { %v8629_v14 = vld [vmem:[#allocation6 + $0x540] sm:$0xff] }
 0x99a   : > { %8785 = vmatpush1.bf16.msra.mxu1 %v8507_v40  ;;  %8908 = vmatpush1.bf16.msra.mxu0 %v8603_v31  ;;  %v8536_v40 = vld [vmem:[#allocation6 + $0x258] sm:$0xff] }
 0x99b   : > { %8786 = vmatprep.subr.bf16.mxu1 %v8510_v27  ;;  %8909 = vmatprep.subr.bf16.mxu0 %v8606_v26  ;;  %v8632_v31 = vld [vmem:[#allocation6 + $0x558] sm:$0xff]  ;;  %v8535_v27 = vld [vmem:[#allocation6 + $0x250] sm:$0xff] }
 0x99c   : > { %v8631_v26 = vld [vmem:[#allocation6 + $0x550] sm:$0xff] }
 0x99e   : > { %8787 = vmatpush1.bf16.msra.mxu1 %v8509_v21  ;;  %8910 = vmatpush1.bf16.msra.mxu0 %v8605_v49  ;;  %v8538_v21 = vld [vmem:[#allocation6 + $0x268] sm:$0xff] }
 0x99f   : > { %8788 = vmatprep.subr.bf16.mxu1 %v8512_v22  ;;  %8911 = vmatprep.subr.bf16.mxu0 %v8608_v56  ;;  %v8634_v49 = vld [vmem:[#allocation6 + $0x568] sm:$0xff]  ;;  %v8537_v22 = vld [vmem:[#allocation6 + $0x260] sm:$0xff] }
 0x9a0   : > { %v8633_v56 = vld [vmem:[#allocation6 + $0x560] sm:$0xff] }
 0x9a2   : > { %8789 = vmatpush1.bf16.msra.mxu1 %v8511_v63  ;;  %8912 = vmatpush1.bf16.msra.mxu0 %v8607_v25  ;;  %v8540_v63 = vld [vmem:[#allocation6 + $0x278] sm:$0xff] }
 0x9a3   : > { %8790 = vmatprep.subr.bf16.mxu1 %v8514_v16  ;;  %8913 = vmatprep.subr.bf16.mxu0 %v8610_v59  ;;  %v8636_v25 = vld [vmem:[#allocation6 + $0x578] sm:$0xff]  ;;  %v8539_v16 = vld [vmem:[#allocation6 + $0x270] sm:$0xff] }
 0x9a4   : > { %v8635_v59 = vld [vmem:[#allocation6 + $0x570] sm:$0xff] }
 0x9a6   : > { %8791 = vmatpush1.bf16.msra.mxu1 %v8513_v17  ;;  %8914 = vmatpush1.bf16.msra.mxu0 %v8609_v39  ;;  %v8542_v17 = vld [vmem:[#allocation6 + $0x288] sm:$0xff] }
 0x9a7   : > { %8792 = vmatprep.subr.bf16.mxu1 %v8516_v44  ;;  %8915 = vmatprep.subr.bf16.mxu0 %v8612_v52  ;;  %v8638_v39 = vld [vmem:[#allocation6 + $0x588] sm:$0xff]  ;;  %v8541_v44 = vld [vmem:[#allocation6 + $0x280] sm:$0xff] }
 0x9a8   : > { %v8637_v52 = vld [vmem:[#allocation6 + $0x580] sm:$0xff] }
 0x9aa   : > { %8793 = vmatpush1.bf16.msra.mxu1 %v8515_v0  ;;  %8916 = vmatpush1.bf16.msra.mxu0 %v8611_v29  ;;  %v8544_v0 = vld [vmem:[#allocation6 + $0x298] sm:$0xff] }
 0x9ab   : > { %8794 = vmatprep.subr.bf16.mxu1 %v8518_v24  ;;  %8917 = vmatprep.subr.bf16.mxu0 %v8614_v60  ;;  %v8640_v29 = vld [vmem:[#allocation6 + $0x598] sm:$0xff]  ;;  %v8543_v24 = vld [vmem:[#allocation6 + $0x290] sm:$0xff] }
 0x9ac   : > { %v8639_v60 = vld [vmem:[#allocation6 + $0x590] sm:$0xff] }
 0x9ae   : > { %8795 = vmatpush1.bf16.msra.mxu1 %v8517_v37  ;;  %8918 = vmatpush1.bf16.msra.mxu0 %v8613_v7  ;;  %v8546_v37 = vld [vmem:[#allocation6 + $0x2a8] sm:$0xff] }
 0x9af   : > { %8796 = vmatprep.subr.bf16.mxu1 %v8520_v47  ;;  %8919 = vmatprep.subr.bf16.mxu0 %v8616_v42  ;;  %v8642_v7 = vld [vmem:[#allocation6 + $0x5a8] sm:$0xff]  ;;  %v8545_v47 = vld [vmem:[#allocation6 + $0x2a0] sm:$0xff] }
 0x9b0   : > { %v8641_v42 = vld [vmem:[#allocation6 + $0x5a0] sm:$0xff] }
 0x9b2   : > { %8797 = vmatpush1.bf16.msra.mxu1 %v8519_v28  ;;  %8920 = vmatpush1.bf16.msra.mxu0 %v8615_v46  ;;  %v8548_v28 = vld [vmem:[#allocation6 + $0x2b8] sm:$0xff] }
 0x9b3   : > { %8798 = vmatprep.subr.bf16.mxu1 %v8522_v55  ;;  %8921 = vmatprep.subr.bf16.mxu0 %v8618_v12  ;;  %v8644_v46 = vld [vmem:[#allocation6 + $0x5b8] sm:$0xff]  ;;  %v8547_v55 = vld [vmem:[#allocation6 + $0x2b0] sm:$0xff] }
 0x9b4   : > { %v8643_v12 = vld [vmem:[#allocation6 + $0x5b0] sm:$0xff] }
 0x9b6   : > { %8799 = vmatpush1.bf16.msra.mxu1 %v8521_v62  ;;  %8922 = vmatpush1.bf16.msra.mxu0 %v8617_v13  ;;  %v8550_v62 = vld [vmem:[#allocation6 + $0x2c8] sm:$0xff] }
 0x9b7   : > { %8800 = vmatprep.subr.bf16.mxu1 %v8524_v41  ;;  %8923 = vmatprep.subr.bf16.mxu0 %v8620_v51  ;;  %v8646_v13 = vld [vmem:[#allocation6 + $0x5c8] sm:$0xff]  ;;  %v8549_v41 = vld [vmem:[#allocation6 + $0x2c0] sm:$0xff] }
 0x9b8   : > { %v8645_v51 = vld [vmem:[#allocation6 + $0x5c0] sm:$0xff] }
 0x9ba   : > { %8801 = vmatpush1.bf16.msra.mxu1 %v8523_v10  ;;  %8924 = vmatpush1.bf16.msra.mxu0 %v8619_v35  ;;  %v8552_v10 = vld [vmem:[#allocation6 + $0x2d8] sm:$0xff] }
 0x9bb   : > { %8811 = vmatprep.subr.bf16.mxu1 %v8526_v1  ;;  %8934 = vmatprep.subr.bf16.mxu0 %v8622_v5  ;;  %v8648_v35 = vld [vmem:[#allocation6 + $0x5d8] sm:$0xff]  ;;  %v8551_v1 = vld [vmem:[#allocation6 + $0x2d0] sm:$0xff] }
 0x9bc   : > { %v8647_v5 = vld [vmem:[#allocation6 + $0x5d0] sm:$0xff] }
 0x9bd   : > { %8803 = vmatmul.mubr.bf16.vlgmr.msra.gmra.mrb[100].mxu1 %v8447_v30  ;;  %8926 = vmatmul.mubr.bf16.vlgmr.msra.gmra.mrb[60].mxu0 %v8453_v50  ;;  %v8554_v30 = vld [vmem:[#allocation6 + $0x2e8] sm:$0xff] }
 0x9be   : > { %8812 = vmatpush1.bf16.msra.mxu1 %v8525_v58  ;;  %8935 = vmatpush1.bf16.msra.mxu0 %v8621_v20  ;;  %v8650_v50 = vld [vmem:[#allocation6 + $0x5e8] sm:$0xff]  ;;  %v8553_v58 = vld [vmem:[#allocation6 + $0x2e0] sm:$0xff] }
 0x9bf   : > { %8813 = vmatprep.subr.bf16.mxu1 %v8528_v15  ;;  %8936 = vmatprep.subr.bf16.mxu0 %v8624_v8  ;;  %v8649_v20 = vld [vmem:[#allocation6 + $0x5e0] sm:$0xff]  ;;  %v8556_v15 = vld [vmem:[#allocation6 + $0x2f8] sm:$0xff] }
 0x9c0   : > { %8843 = vmatprep.mubr.bf16.mxu1 %v8450_v33  ;;  %8966 = vmatprep.mubr.bf16.mxu0 %v8456_v9  ;;  %v8652_v8 = vld [vmem:[#allocation6 + $0x5f8] sm:$0xff]  ;;  %v8651_v33 = vld [vmem:[#allocation6 + $0x5f0] sm:$0xff]  ;;  %v8654_v9 = vld [vmem:[#allocation6 + $0x608] sm:$0xff] }
 0x9c2   : > { %8814 = vmatpush1.bf16.msra.mxu1 %v8527_v57  ;;  %8937 = vmatpush1.bf16.msra.mxu0 %v8623_v18  ;;  %v14595_v57 = vld [vmem:[#allocation38_spill] sm:$0xff] }
 0x9c3   : > { %8815 = vmatprep.subr.bf16.mxu1 %v8530_v38  ;;  %8938 = vmatprep.subr.bf16.mxu0 %v8626_v43  ;;  %v8449_v18 = vpack.c.bf16 %v14595_v57, %v14595_v57  ;;  %v8455_v38 = vpack.c.bf16 %v14189_v2, %v14189_v2  ;;  %v8458_v43 = vpack.c.bf16 %v14123_v6, %v14123_v6  ;;  %v8659_v2 = vld [vmem:[#allocation6 + $0x630] sm:$0xff]  ;;  %v8661_v6 = vld [vmem:[#allocation6 + $0x640] sm:$0xff]  ;;  %v10527_v57 = vld [vmem:[%s14368_s17 + $0x18] sm:$0xff]  }
 0x9c6   : > { %8816 = vmatpush1.bf16.msra.mxu1 %v8529_v4  ;;  %8939 = vmatpush1.bf16.msra.mxu0 %v8625_v61  ;;  %v8653_v4 = vld [vmem:[#allocation6 + $0x600] sm:$0xff]  ;;  %v8656_v61 = vld [vmem:[#allocation6 + $0x618] sm:$0xff] }
 0x9c7   : > { %8817 = vmatprep.subr.bf16.mxu1 %v8532_v3  ;;  %8940 = vmatprep.subr.bf16.mxu0 %v8628_v53  ;;  %v8655_v3 = vld [vmem:[#allocation6 + $0x610] sm:$0xff]  ;;  %v8658_v53 = vld [vmem:[#allocation6 + $0x628] sm:$0xff] }
 0x9ca   : > { %8818 = vmatpush1.bf16.msra.mxu1 %v8531_v36  ;;  %8941 = vmatpush1.bf16.msra.mxu0 %v8627_v23  ;;  %v8657_v36 = vld [vmem:[#allocation6 + $0x620] sm:$0xff]  ;;  %v8660_v23 = vld [vmem:[#allocation6 + $0x638] sm:$0xff] }
 0x9cb   : > { %8819 = vmatprep.subr.bf16.mxu1 %v8534_v34  ;;  %8942 = vmatprep.subr.bf16.mxu0 %v8630_v48  ;;  %v8662_v34 = vld [vmem:[#allocation6 + $0x648] sm:$0xff]  ;;  %v8664_v48 = vld [vmem:[#allocation6 + $0x658] sm:$0xff] }
 0x9ce   : > { %8820 = vmatpush1.bf16.msra.mxu1 %v8533_v54  ;;  %8943 = vmatpush1.bf16.msra.mxu0 %v8629_v14  ;;  %v8663_v54 = vld [vmem:[#allocation6 + $0x650] sm:$0xff]  ;;  %v8666_v14 = vld [vmem:[#allocation6 + $0x668] sm:$0xff] }
 0x9cf   : > { %8821 = vmatprep.subr.bf16.mxu1 %v8536_v40  ;;  %8944 = vmatprep.subr.bf16.mxu0 %v8632_v31  ;;  %v8665_v40 = vld [vmem:[#allocation6 + $0x660] sm:$0xff]  ;;  %v8668_v31 = vld [vmem:[#allocation6 + $0x678] sm:$0xff] }
 0x9d2   : > { %8822 = vmatpush1.bf16.msra.mxu1 %v8535_v27  ;;  %8945 = vmatpush1.bf16.msra.mxu0 %v8631_v26  ;;  %v8667_v27 = vld [vmem:[#allocation6 + $0x670] sm:$0xff]  ;;  %v8670_v26 = vld [vmem:[#allocation6 + $0x688] sm:$0xff] }
 0x9d3   : > { %8823 = vmatprep.subr.bf16.mxu1 %v8538_v21  ;;  %8946 = vmatprep.subr.bf16.mxu0 %v8634_v49  ;;  %v8669_v21 = vld [vmem:[#allocation6 + $0x680] sm:$0xff]  ;;  %v8672_v49 = vld [vmem:[#allocation6 + $0x698] sm:$0xff] }
 0x9d6   : > { %8824 = vmatpush1.bf16.msra.mxu1 %v8537_v22  ;;  %8947 = vmatpush1.bf16.msra.mxu0 %v8633_v56  ;;  %v8671_v22 = vld [vmem:[#allocation6 + $0x690] sm:$0xff]  ;;  %v8674_v56 = vld [vmem:[#allocation6 + $0x6a8] sm:$0xff] }
 0x9d7   : > { %8825 = vmatprep.subr.bf16.mxu1 %v8540_v63  ;;  %8948 = vmatprep.subr.bf16.mxu0 %v8636_v25  ;;  %v8673_v63 = vld [vmem:[#allocation6 + $0x6a0] sm:$0xff]  ;;  %v8676_v25 = vld [vmem:[#allocation6 + $0x6b8] sm:$0xff] }
 0x9da   : > { %8826 = vmatpush1.bf16.msra.mxu1 %v8539_v16  ;;  %8949 = vmatpush1.bf16.msra.mxu0 %v8635_v59  ;;  %v8675_v16 = vld [vmem:[#allocation6 + $0x6b0] sm:$0xff]  ;;  %v8678_v59 = vld [vmem:[#allocation6 + $0x6c8] sm:$0xff] }
 0x9db   : > { %8827 = vmatprep.subr.bf16.mxu1 %v8542_v17  ;;  %8950 = vmatprep.subr.bf16.mxu0 %v8638_v39  ;;  %v8677_v17 = vld [vmem:[#allocation6 + $0x6c0] sm:$0xff]  ;;  %v8680_v39 = vld [vmem:[#allocation6 + $0x6d8] sm:$0xff] }
 0x9de   : > { %8828 = vmatpush1.bf16.msra.mxu1 %v8541_v44  ;;  %8951 = vmatpush1.bf16.msra.mxu0 %v8637_v52  ;;  %v8679_v44 = vld [vmem:[#allocation6 + $0x6d0] sm:$0xff]  ;;  %v8682_v52 = vld [vmem:[#allocation6 + $0x6e8] sm:$0xff] }
 0x9df   : > { %8829 = vmatprep.subr.bf16.mxu1 %v8544_v0  ;;  %8952 = vmatprep.subr.bf16.mxu0 %v8640_v29  ;;  %v8681_v0 = vld [vmem:[#allocation6 + $0x6e0] sm:$0xff]  ;;  %v8684_v29 = vld [vmem:[#allocation6 + $0x6f8] sm:$0xff] }
 0x9e2   : > { %8830 = vmatpush1.bf16.msra.mxu1 %v8543_v24  ;;  %8953 = vmatpush1.bf16.msra.mxu0 %v8639_v60  ;;  %v8683_v24 = vld [vmem:[#allocation6 + $0x6f0] sm:$0xff]  ;;  %v8686_v60 = vld [vmem:[#allocation6 + $0x708] sm:$0xff] }
 0x9e3   : > { %8831 = vmatprep.subr.bf16.mxu1 %v8546_v37  ;;  %8954 = vmatprep.subr.bf16.mxu0 %v8642_v7  ;;  %v8457_v37 = vpack.c.bf16 %v14071_v19, %v14071_v19  ;;  %v8460_v7 = vpack.c.bf16 %v14208_v32, %v14208_v32  ;;  %v8691_v19 = vld [vmem:[#allocation6 + $0x730] sm:$0xff]  ;;  %v8693_v32 = vld [vmem:[#allocation6 + $0x740] sm:$0xff] }
 0x9e6   : > { %8832 = vmatpush1.bf16.msra.mxu1 %v8545_v47  ;;  %8955 = vmatpush1.bf16.msra.mxu0 %v8641_v42  ;;  %v8685_v47 = vld [vmem:[#allocation6 + $0x700] sm:$0xff]  ;;  %v8688_v42 = vld [vmem:[#allocation6 + $0x718] sm:$0xff] }
 0x9e7   : > { %8833 = vmatprep.subr.bf16.mxu1 %v8548_v28  ;;  %8956 = vmatprep.subr.bf16.mxu0 %v8644_v46  ;;  %v8687_v28 = vld [vmem:[#allocation6 + $0x710] sm:$0xff]  ;;  %v8690_v46 = vld [vmem:[#allocation6 + $0x728] sm:$0xff] }
 0x9ea   : > { %8834 = vmatpush1.bf16.msra.mxu1 %v8547_v55  ;;  %8957 = vmatpush1.bf16.msra.mxu0 %v8643_v12  ;;  %v8689_v55 = vld [vmem:[#allocation6 + $0x720] sm:$0xff]  ;;  %v8692_v12 = vld [vmem:[#allocation6 + $0x738] sm:$0xff] }
 0x9eb   : > { %8835 = vmatprep.subr.bf16.mxu1 %v8550_v62  ;;  %8958 = vmatprep.subr.bf16.mxu0 %v8646_v13  ;;  %v8694_v62 = vld [vmem:[#allocation6 + $0x748] sm:$0xff]  ;;  %v8696_v13 = vld [vmem:[#allocation6 + $0x758] sm:$0xff] }
 0x9ee   : > { %8836 = vmatpush1.bf16.msra.mxu1 %v8549_v41  ;;  %8959 = vmatpush1.bf16.msra.mxu0 %v8645_v51  ;;  %v8695_v41 = vld [vmem:[#allocation6 + $0x750] sm:$0xff]  ;;  %v8698_v51 = vld [vmem:[#allocation6 + $0x768] sm:$0xff] }
 0x9ef   : > { %8837 = vmatprep.subr.bf16.mxu1 %v8552_v10  ;;  %8960 = vmatprep.subr.bf16.mxu0 %v8648_v35  ;;  %v8697_v10 = vld [vmem:[#allocation6 + $0x760] sm:$0xff]  ;;  %v10520_v35 = vld [vmem:[%s14368_s17 + $0x40] sm:$0xff]  }
 0x9f2   : > { %8838 = vmatpush1.bf16.msra.mxu1 %v8551_v1  ;;  %8961 = vmatpush1.bf16.msra.mxu0 %v8647_v5  ;;  %v10521_v1 = vld [vmem:[%s14368_s17] sm:$0xff]   ;;  %v10522_v5 = vld [vmem:[%s14368_s17 + $0x48] sm:$0xff]  }
 0x9f3   : > { %8839 = vmatprep.subr.bf16.mxu1 %v8554_v30  ;;  %8962 = vmatprep.subr.bf16.mxu0 %v8650_v50  ;;  %v8700_v30 = vld [vmem:[#allocation6 + $0x778] sm:$0xff] }
 0x9f4   : > { %v10523_v50 = vld [vmem:[%s14368_s17 + $0x8] sm:$0xff]  }
 0x9f6   : > { %8840 = vmatpush1.bf16.msra.mxu1 %v8553_v58  ;;  %8963 = vmatpush1.bf16.msra.mxu0 %v8649_v20  ;;  %v8699_v58 = vld [vmem:[#allocation6 + $0x770] sm:$0xff]  ;;  %v10524_v20 = vld [vmem:[%s14368_s17 + $0x50] sm:$0xff]  }
 0x9f7   : > { %8841 = vmatprep.subr.bf16.mxu1 %v8556_v15  ;;  %8964 = vmatprep.subr.bf16.mxu0 %v8652_v8  ;;  %v8702_v15 = vld [vmem:[#allocation6 + $0x788] sm:$0xff]  ;;  %v10525_v8 = vld [vmem:[%s14368_s17 + $0x10] sm:$0xff]  }
 0x9fa   : > { %8842 = vmatpush1.bf16.msra.mxu1 %v8555_v45  ;;  %8965 = vmatpush1.bf16.msra.mxu0 %v8651_v33  ;;  %v8701_v45 = vld [vmem:[#allocation6 + $0x780] sm:$0xff]  ;;  %v10526_v33 = vld [vmem:[%s14368_s17 + $0x58] sm:$0xff]  }
 0x9fb   : > { %8975 = vmatprep.subr.bf16.mxu0 %v8654_v9  ;;  %9603 = vmatprep.subr.bf16.mxu1 %v10520_v35  ;;  %v8704_v9 = vld [vmem:[#allocation6 + $0x798] sm:$0xff] }
 0x9fd   : > { %8844 = vmatmul.mubr.bf16.vlgmr.msra.gmra.mrb[100].mxu1 %v8449_v18  ;;  %8967 = vmatmul.mubr.bf16.vlgmr.msra.gmra.mrb[60].mxu0 %v8455_v38  ;;  %v8703_v18 = vld [vmem:[#allocation6 + $0x790] sm:$0xff] }
 0x9fe   : > { %8976 = vmatpush1.bf16.msra.mxu0 %v8653_v4  ;;  %9007 = vmatprep.mubr.bf16.mxu0 %v8458_v43  ;;  %v10528_v38 = vld [vmem:[%s14368_s17 + $0x60] sm:$0xff]   ;;  %v8706_v43 = vld [vmem:[#allocation6 + $0x7a8] sm:$0xff] }
 0x9ff   : > { %8977 = vmatprep.subr.bf16.mxu0 %v8656_v61  ;;  %9604 = vmatpush3.bf16.msra.mxu1 %v10521_v1  ;;  %v10529_v4 = vld [vmem:[%s14368_s17 + $0x20] sm:$0xff]   ;;  %v8705_v61 = vld [vmem:[#allocation6 + $0x7a0] sm:$0xff] }
 0xa00   : > { %9605 = vmatprep.subr.bf16.mxu1 %v10522_v5 }
 0xa02   : > { %8978 = vmatpush1.bf16.msra.mxu0 %v8655_v3  ;;  %v10530_v3 = vld [vmem:[%s14368_s17 + $0x68] sm:$0xff]  }
 0xa03   : > { %8979 = vmatprep.subr.bf16.mxu0 %v8658_v53  ;;  %9606 = vmatpush3.bf16.msra.mxu1 %v10523_v50  ;;  %v8708_v53 = vld [vmem:[#allocation6 + $0x7b8] sm:$0xff] }
 0xa04   : > { %9607 = vmatprep.subr.bf16.mxu1 %v10524_v20 }
 0xa06   : > { %8980 = vmatpush1.bf16.msra.mxu0 %v8657_v36  ;;  %v10531_v36 = vld [vmem:[%s14368_s17 + $0x28] sm:$0xff]  }
 0xa07   : > { %8981 = vmatprep.subr.bf16.mxu0 %v8660_v23  ;;  %9608 = vmatpush3.bf16.msra.mxu1 %v10525_v8  ;;  %v8707_v23 = vld [vmem:[#allocation6 + $0x7b0] sm:$0xff] }
 0xa08   : > { %9609 = vmatprep.subr.bf16.mxu1 %v10526_v33 }
 0xa0a   : > { %8982 = vmatpush1.bf16.msra.mxu0 %v8659_v2  ;;  %v8710_v2 = vld [vmem:[#allocation6 + $0x7c8] sm:$0xff] }
 0xa0b   : > { %8983 = vmatprep.subr.bf16.mxu0 %v8662_v34  ;;  %9610 = vmatpush3.bf16.msra.mxu1 %v10527_v57  ;;  %v8709_v34 = vld [vmem:[#allocation6 + $0x7c0] sm:$0xff] }
 0xa0c   : > { %9611 = vmatprep.subr.bf16.mxu1 %v10528_v38 }
 0xa0e   : > { %8984 = vmatpush1.bf16.msra.mxu0 %v8661_v6  ;;  %v8712_v6 = vld [vmem:[#allocation6 + $0x7d8] sm:$0xff] }
 0xa0f   : > { %8985 = vmatprep.subr.bf16.mxu0 %v8664_v48  ;;  %9612 = vmatpush3.bf16.msra.mxu1 %v10529_v4  ;;  %v8711_v48 = vld [vmem:[#allocation6 + $0x7d0] sm:$0xff] }
 0xa10   : > { %9613 = vmatprep.subr.bf16.mxu1 %v10530_v3 }
 0xa12   : > { %8986 = vmatpush1.bf16.msra.mxu0 %v8663_v54  ;;  %v8714_v54 = vld [vmem:[#allocation6 + $0x7e8] sm:$0xff] }
 0xa13   : > { %8987 = vmatprep.subr.bf16.mxu0 %v8666_v14  ;;  %9614 = vmatpush3.bf16.msra.mxu1 %v10531_v36  ;;  %v8713_v14 = vld [vmem:[#allocation6 + $0x7e0] sm:$0xff] }
 0xa16   : > { %8988 = vmatpush1.bf16.msra.mxu0 %v8665_v40  ;;  %v8716_v40 = vld [vmem:[#allocation6 + $0x7f8] sm:$0xff] }
 0xa17   : > { %8989 = vmatprep.subr.bf16.mxu0 %v8668_v31  ;;  %v8715_v31 = vld [vmem:[#allocation6 + $0x7f0] sm:$0xff] }
 0xa1a   : > { %8990 = vmatpush1.bf16.msra.mxu0 %v8667_v27  ;;  %v8459_v27 = vpack.c.bf16 %v14206_v11, %v14206_v11  ;;  %v10534_v11 = vld [vmem:[%s14368_s17 + $0x78] sm:$0xff]  }
 0xa1b   : > { %8991 = vmatprep.subr.bf16.mxu0 %v8670_v26  ;;  %v10532_v26 = vld [vmem:[%s14368_s17 + $0x70] sm:$0xff]  }
 0xa1c   : > { %9615 = vmatprep.subr.bf16.mxu1 %v10532_v26 }
 0xa1e   : > { %8992 = vmatpush1.bf16.msra.mxu0 %v8669_v21 }
 0xa1f   : > { %8993 = vmatprep.subr.bf16.mxu0 %v8672_v49  ;;  %v10533_v49 = vld [vmem:[%s14368_s17 + $0x30] sm:$0xff]  }
 0xa20   : > { %9616 = vmatpush3.bf16.msra.mxu1 %v10533_v49 }
 0xa21   : > { %9617 = vmatprep.subr.bf16.mxu1 %v10534_v11 }
 0xa22   : > { %8994 = vmatpush1.bf16.msra.mxu0 %v8671_v22 }
 0xa23   : > { %8995 = vmatprep.subr.bf16.mxu0 %v8674_v56 }
 0xa26   : > { %8996 = vmatpush1.bf16.msra.mxu0 %v8673_v63 }
 0xa27   : > { %8997 = vmatprep.subr.bf16.mxu0 %v8676_v25  ;;  %v10535_v25 = vld [vmem:[%s14368_s17 + $0x38] sm:$0xff]  }
 0xa28   : > { %9618 = vmatpush3.bf16.msra.mxu1 %v10535_v25 }
 0xa2a   : > { %8998 = vmatpush1.bf16.msra.mxu0 %v8675_v16  ;;  %v8717_v16 = vld [vmem:[%s14367_s16] sm:$0x3] }
 0xa2b   : > { %8999 = vmatprep.subr.bf16.mxu0 %v8678_v59  ;;  %v14596_v59 = vld [vmem:[#allocation20_spill] sm:$0xff] }
 0xa2e   : > { %9000 = vmatpush1.bf16.msra.mxu0 %v8677_v17  ;;  %v8722_v17 = vrot.slane %v8717_v16, %v14596_v59 }
 0xa2f   : > { %9001 = vmatprep.subr.bf16.mxu0 %v8680_v39  ;;  %v14597_v39 = vld [vmem:[#allocation21_spill] sm:$0xff] }
 0xa32   : > { %9002 = vmatpush1.bf16.msra.mxu0 %v8679_v44  ;;  %v8726_v44 = vrot.slane %v8717_v16, %v14597_v39 }
 0xa33   : > { %9003 = vmatprep.subr.bf16.mxu0 %v8682_v52 }
 0xa36   : > { %9004 = vmatpush1.bf16.msra.mxu0 %v8681_v0 }
 0xa37   : > { %9005 = vmatprep.subr.bf16.mxu0 %v8684_v29 }
 0xa3a   : > { %9006 = vmatpush1.bf16.msra.mxu0 %v8683_v24 }
 0xa3b   : > { %9016 = vmatprep.subr.bf16.mxu0 %v8686_v60 }
 0xa3d   : > { %9008 = vmatmul.mubr.bf16.vlgmr.msra.gmra.mrb[60].mxu0 %v8457_v37 }
 0xa3e   : > { %9017 = vmatpush1.bf16.msra.mxu0 %v8685_v47  ;;  %9048 = vmatprep.mubr.bf16.mxu0 %v8460_v7 }
 0xa3f   : > { %9018 = vmatprep.subr.bf16.mxu0 %v8688_v42 }
 0xa42   : > { %9019 = vmatpush1.bf16.msra.mxu0 %v8687_v28 }
 0xa43   : > { %9020 = vmatprep.subr.bf16.mxu0 %v8690_v46 }
 0xa46   : > { %9021 = vmatpush1.bf16.msra.mxu0 %v8689_v55 }
 0xa47   : > { %9022 = vmatprep.subr.bf16.mxu0 %v8692_v12 }
 0xa4a   : > { %9023 = vmatpush1.bf16.msra.mxu0 %v8691_v19 }
 0xa4b   : > { %9024 = vmatprep.subr.bf16.mxu0 %v8694_v62  ;;  %v9093_v62 = vld [vmem:[%s14369_s18] sm:$0x1] }
 0xa4e   : > { %9025 = vmatpush1.bf16.msra.mxu0 %v8693_v32 }
 0xa4f   : > { %9026 = vmatprep.subr.bf16.mxu0 %v8696_v13 }
 0xa52   : > { %9027 = vmatpush1.bf16.msra.mxu0 %v8695_v41 }
 0xa53   : > { %9028 = vmatprep.subr.bf16.mxu0 %v8698_v51 }
 0xa56   : > { %9029 = vmatpush1.bf16.msra.mxu0 %v8697_v10 }
 0xa57   : > { %9030 = vmatprep.subr.bf16.mxu0 %v8700_v30 }
 0xa5a   : > { %9031 = vmatpush1.bf16.msra.mxu0 %v8699_v58 }
 0xa5b   : > { %9032 = vmatprep.subr.bf16.mxu0 %v8702_v15 }
 0xa5e   : > { %9033 = vmatpush1.bf16.msra.mxu0 %v8701_v45 }
 0xa5f   : > { %9034 = vmatprep.subr.bf16.mxu0 %v8704_v9 }
 0xa62   : > { %9035 = vmatpush1.bf16.msra.mxu0 %v8703_v18 }
 0xa63   : > { %9036 = vmatprep.subr.bf16.mxu0 %v8706_v43 }
 0xa66   : > { %9037 = vmatpush1.bf16.msra.mxu0 %v8705_v61 }
 0xa67   : > { %9038 = vmatprep.subr.bf16.mxu0 %v8708_v53 }
 0xa6a   : > { %9039 = vmatpush1.bf16.msra.mxu0 %v8707_v23 }
 0xa6b   : > { %9040 = vmatprep.subr.bf16.mxu0 %v8710_v2 }
 0xa6e   : > { %9041 = vmatpush1.bf16.msra.mxu0 %v8709_v34 }
 0xa6f   : > { %9042 = vmatprep.subr.bf16.mxu0 %v8712_v6 }
 0xa72   : > { %9043 = vmatpush1.bf16.msra.mxu0 %v8711_v48 }
 0xa73   : > { %9044 = vmatprep.subr.bf16.mxu0 %v8714_v54 }
 0xa76   : > { %9045 = vmatpush1.bf16.msra.mxu0 %v8713_v14 }
 0xa77   : > { %9046 = vmatprep.subr.bf16.mxu0 %v8716_v40 }
 0xa7a   : > { %9047 = vmatpush1.bf16.msra.mxu0 %v8715_v31 }
 0xa7d   : > { %9049 = vmatmul.mubr.bf16.vlgmr.msra.gmra.mrb[60].mxu0 %v8459_v27 }
 0xad0   : > { %v8845_v21 = vpop.f32.mrb[100].mxu1 }
 0xad1   : > { %v8847_v22 = vpop.f32.mrb[101].mxu1  ;;  %v9823_v52 = vadd.f32 %v8845_v21, %v8722_v17 }
 0xad2   : > { %v8849_v56 = vpop.f32.mrb[102].mxu1  ;;  %v9825_v0 = vadd.f32 %v8847_v22, %v8726_v44 }
 0xad3   : > { %v8850_v63 = vpop.f32.mrb[103].mxu1 }
 0xb50   : > { %v9050_v29 = vpop.f32.mrb[60].mxu0 }
 0xb51   : > { %v9824_v24 = vadd.f32 %v9823_v52, %v9050_v29  ;;  %v9052_v60 = vpop.f32.mrb[61].mxu0 }
 0xb52   : > { %v9826_v37 = vadd.f32 %v9825_v0, %v9052_v60  ;;  %v9054_v7 = vpop.f32.mrb[62].mxu0 }
 0xb53   : > { %v9057_v47 = vmax.f32 %v9824_v24, 0.0  ;;  %v9055_v42 = vpop.f32.mrb[63].mxu0 }
 0xb54   : > { %v9058_v28 = vmax.f32 %v9826_v37, 0.0 }
 0xb55   : > { %v9059_v55 = vpack.c.bf16 %v9057_v47, %v9057_v47 }
 0xb56   : > { %v9060_v46 = vpack.c.bf16 %v9058_v28, %v9058_v28 }
 0xb58   : > { %9222 = vmatprep.mubr.bf16.mxu1 %v9060_v46 }
 0xb59   : > { %9223 = vmatmul.mubr.bf16.vlgmr.msra.gmra.mrb[104].mxu1 %v9059_v55 }
 0xc2c   : > { %v9619_v12 = vpop.f32.mrb[104].mxu1 }
 0xc2d   : > { %v9620_v19 = vpop.f32.mrb[105].mxu1 }
 0xc2e   : > { %v9621_v32 = vadd.f32 %v9620_v19, %v9619_v12  ;;  %v9622_v13 = vpop.f32.mrb[106].mxu1 }
 0xc2f   : > { %v9623_v41 = vpop.f32.mrb[107].mxu1 }
 0xc30   : > { %v9225_v51 = vadd.f32 %v9621_v32, %v9093_v62 }
 0xc32   : > { %v9231_v10 = vsel %vm9230_vm2, %v9225_v51, -inf }
 0xc33   : > { %9232 = vmax.xlane.f32.xlu0 %v9231_v10 }
 0xcc0   : > { %v9233_v35 = vpop.xlane.xlu0 %9232 }
 0xcc1   : > { %v9234_v1 = vsub.f32 %v9225_v51, %v9233_v35 }
 0xcc3   : > { %v9235_v5 = vmul.f32 1.442695, %v9234_v1 }
 0xcc5   : > { %10536 = vpow2.f32 %v9235_v5 }
 0xccf   : > { %v10537_v30 = vpop.eup %10536 }
 0xcd0   : > { %v9237_v50 = vsel %vm9230_vm2, %v10537_v30, 0.0 }
 0xcd1   : > { %9238 = vadd.xlane.f32.xlu0 %v9237_v50 }
 0xd5e   : > { %v9239_v58 = vpop.xlane.xlu0 %9238 }
 0xd5f   : > { %10538 = vlog2.f32 %v9239_v58 }
 0xd69   : > { %v10539_v20 = vpop.eup %10538 }
 0xd6a   : > { %v9241_v15 = vmul.f32 0.6931472, %v10539_v20 }
 0xd6c   : > { %v9242_v8 = vsub.f32 %v9234_v1, %v9241_v15 }
 0xd6e   : > { %9243 = vst.msk [vmem:[%s11933_s27] sm:$0x1] %vm9230_vm2, %v9242_v8 }
 0xd6f   : > { %10553 = shalt.err (!%p10550_p3)
}
 0xd70   : > { %s10554_s27 = scalar_lea.hbm %s14305_s28, 16  ;;  %s10558_s0 = scalar_lea.hbm %s14599_s29, 32 }
 0xd71   : > { %p10555_p4 = scmp.ne.s32.totalorder %s14305_s28, %s10554_s27  ;;  %p10559_p9 = scmp.lt.u32.totalorder %s14305_s28, %s14599_s29 }
 0xd72   : > { %p10560_p10 = scmp.lt.u32.totalorder %s10558_s0, %s10554_s27  ;;  %p10562_p12 = scmp.lt.u32.totalorder %s10554_s27, %s14305_s28 }
 0xd73   : > { %p10556_p7 = pnand %p10555_p4, %p10758_p5 }
 0xd74   : > { %p10561_p11 = por %p10560_p10, %p10559_p9 }
 0xd75   : > { %p10557_p8 = pneg %p10556_p7 }
 0xd76   : > { %p10563_p13 = por %p10562_p12, %p10561_p11 }
 0xd78   : > { %p10564_p0 = pnand %p10563_p13, %p10557_p8 }
 0xd7a   : > { %10567 = shalt.err (!%p10564_p0)
}
 0xd7b   : > { %9851 = dma.vmem_to_hbm [thread:$0]  (%p10758_p5), %s14307_s20, 16, %s14305_s28, %s9245_s24  }
 0xd7c PF: > { %s14601_s23 = sld [smem:[#allocation15_spill]]  ;;  %s14602_s1 = sld [smem:[#allocation13_spill]] }
 0xd82   : > { %p9857_p1 = scmp.ge.s32.totalorder %s14601_s23, 2  ;;  %s9269_s25 = sand.u32 1, %s14602_s1  }
 0xd83   : > { %s9270_s19 = scalar_lea.sflag [#allocation9], %s9269_s25 }
 0xd84   : > { %p9854_p2 = pnand %p9857_p1, %p10762_p6 }
 0xd86   : > { %10587 = dma.done.wait (!%p9854_p2), %s9270_s19, 16  }
 0xd87   : > { %10589 = vsyncadd (!%p9854_p2), %s9270_s19, 4294967280  ;;  %s14604_s21 = sld [smem:[#allocation16_spill]]  ;;  %s14605_s27 = sld [smem:[#allocation14_spill]] }
 0xd88   : > { %s14606_s20 = sld [smem:[#allocation17_spill]]  ;;  %s14607_s0 = smov %s10596_s30 }
 0xd8d   : > { %p29_p3 = scmp.ge.s32.totalorder %s14604_s21, 4   ;;  %s14608_s30 = smov %s14605_s27 }
 0xd8f   :  { %31 = sbr.rel (!%p29_p3) target bundleno = 9 (0x9), region = 288 }
 0xd96   :  { %9274 = vsyncpa [#allocation9], 1 }
 0xd97   :  { %9276 = vsyncpa [#allocation9 + $0x1], 1 }
 0xd98   :  { %9277 = vsyncmov [#allocation7] }
 0xd9b   :  { %s9278_s3 = vpop.sfrf %9277 }
 0xd9c   :  { %p9534_p5 = scmp.ne.s32.totalorder %s9278_s3, 0 }
 0xd9e   :  { %9282 = shalt.err (%p9534_p5)  }

</bundles_post_ra>
